<compile_context>
chip_gen: v6e
topology: v6e:2x2x1
jax: 0.10.0
libtpu: 0.0.40
codegen_flags: <defaults>
</compile_context>

<pallas_src>
import math

import jax
import jax.numpy as jnp
from jax.experimental import pallas as pl
from jax.experimental.pallas import tpu as pltpu

_EPS = 1e-5  # BatchNorm2d eps in the reference module


# ---------------------------------------------------------------------------
# Fused TripletAttention kernel (one batch element per grid step)
# ---------------------------------------------------------------------------
def _triplet_attention_kernel(x_ref, wb_ref, o_ref, pad_hw, pad_cw, pad_hc):
    """x_ref/o_ref: (1, C, H, W) VMEM blocks.

    wb_ref: (3, 100) SMEM parameter table, rows = (hw, cw, hc) branches:
        [0:49]   7x7 weights applied to the max-pool channel (row-major ky*7+kx)
        [49:98]  7x7 weights applied to the mean-pool channel
        [98]     folded BatchNorm scale,  [99] folded BatchNorm bias
    pad_*: (2, A+6, B+6) f32 VMEM scratch holding the zero-padded (max, mean)
           ZPool maps of each branch for the 7x7 / pad=3 stencil.
    """
    _, C, H, W = x_ref.shape

    # Zero the padded stencil buffers (3-wide halo must be zero every step).
    pad_hw[...] = jnp.zeros_like(pad_hw)
    pad_cw[...] = jnp.zeros_like(pad_cw)
    pad_hc[...] = jnp.zeros_like(pad_hc)

    # ---- ZPool for all three branches in a single pass over channels ------
    run_max = None
    run_sum = None
    for c in range(C):
        xc = x_ref[0, c].astype(jnp.float32)                       # (H, W)
        run_max = xc if c == 0 else jnp.maximum(run_max, xc)
        run_sum = xc if c == 0 else run_sum + xc
        # cw branch pools over H: one (1, W) row per channel, (C, W) plane.
        pad_cw[0, 3 + c:4 + c, 3:3 + W] = jnp.max(xc, axis=0, keepdims=True)
        pad_cw[1, 3 + c:4 + c, 3:3 + W] = jnp.mean(xc, axis=0, keepdims=True)
        # hc branch pools over W: one (H, 1) column per channel, stored in the
        # permuted-frame (H, C) orientation so the conv needs no transposes.
        pad_hc[0, 3:3 + H, 3 + c:4 + c] = jnp.max(xc, axis=1, keepdims=True)
        pad_hc[1, 3:3 + H, 3 + c:4 + c] = jnp.mean(xc, axis=1, keepdims=True)
    # hw branch pools over C.
    pad_hw[0, 3:3 + H, 3:3 + W] = run_max
    pad_hw[1, 3:3 + H, 3:3 + W] = run_sum * (1.0 / C)

    # ---- 7x7 conv (2->1 ch, pad 3) + folded BN + sigmoid as a 49-tap stencil
    def conv7_bn_sigmoid(pad, b):
        a_dim = pad.shape[1] - 6
        b_dim = pad.shape[2] - 6
        acc = jnp.zeros((a_dim, b_dim), jnp.float32)
        for i in range(7):                 # static unroll; weights are SMEM
            for j in range(7):             # scalars broadcast by the VPU
                k = i * 7 + j
                acc = acc + wb_ref[b, k] * pad[0, i:i + a_dim, j:j + b_dim]
                acc = acc + wb_ref[b, 49 + k] * pad[1, i:i + a_dim, j:j + b_dim]
        return jax.nn.sigmoid(acc * wb_ref[b, 98] + wb_ref[b, 99])

    s_hw = conv7_bn_sigmoid(pad_hw, 0)     # (H, W)
    s_cw = conv7_bn_sigmoid(pad_cw, 1)     # (C, W)
    s_hc = conv7_bn_sigmoid(pad_hc, 2)     # (H, C)  (permuted-frame layout)

    # ---- combine: out[c,h,w] = x * (s_hw[h,w] + s_cw[c,w] + s_hc[h,c]) / 3 --
    third = 1.0 / 3.0
    for c in range(C):
        xc = x_ref[0, c].astype(jnp.float32)                       # (H, W)
        comb = (s_hw + s_cw[c:c + 1, :] + s_hc[:, c:c + 1]) * third
        o_ref[0, c] = (xc * comb).astype(o_ref.dtype)


# ---------------------------------------------------------------------------
# Wrapper
# ---------------------------------------------------------------------------
@jax.jit
def triplet_attention(x, wb):
    """x: (N, C, H, W) activations; wb: (3, 100) packed gate parameters."""
    N, C, H, W = x.shape
    itemsize = jnp.dtype(x.dtype).itemsize
    tile_bytes = C * H * W * itemsize
    scratch_bytes = 4 * 2 * ((H + 6) * (W + 6) + (C + 6) * (W + 6) + (H + 6) * (C + 6))
    vmem_limit = int(min(100 * 1024 * 1024,
                         max(16 * 1024 * 1024,
                             4 * tile_bytes + scratch_bytes + (2 << 20))))

    plane = H * W + C * W + H * C
    cost = pl.CostEstimate(
        flops=int(N * (10 * C * H * W + 4 * 49 * plane)),
        transcendentals=int(N * plane),
        bytes_accessed=int(2 * N * tile_bytes + wb.size * 4),
    )

    return pl.pallas_call(
        _triplet_attention_kernel,
        out_shape=jax.ShapeDtypeStruct((N, C, H, W), x.dtype),
        grid=(N,),
        in_specs=[
            pl.BlockSpec((1, C, H, W), lambda n: (n, 0, 0, 0)),
            pl.BlockSpec(memory_space=pltpu.MemorySpace.SMEM),
        ],
        out_specs=pl.BlockSpec((1, C, H, W), lambda n: (n, 0, 0, 0)),
        scratch_shapes=[
            pltpu.VMEM((2, H + 6, W + 6), jnp.float32),   # hw branch (max, mean)
            pltpu.VMEM((2, C + 6, W + 6), jnp.float32),   # cw branch
            pltpu.VMEM((2, H + 6, C + 6), jnp.float32),   # hc branch
        ],
        compiler_params=pltpu.CompilerParams(
            dimension_semantics=("parallel",),
            vmem_limit_bytes=vmem_limit,
        ),
        cost_estimate=cost,
    )(x, wb)


# ---------------------------------------------------------------------------
# Parameter construction (Conv2d(2,1,7,bias=False) + eval-mode BatchNorm2d(1))
# ---------------------------------------------------------------------------
def init_gate_params(key):
    kw, kg, kb, km, kv = jax.random.split(key, 5)
    w = jax.random.normal(kw, (2, 7, 7), jnp.float32) / math.sqrt(2 * 49)
    gamma = jax.random.uniform(kg, (), jnp.float32, 0.5, 1.5)
    beta = jax.random.normal(kb, (), jnp.float32) * 0.1
    mean = jax.random.normal(km, (), jnp.float32) * 0.1
    var = jax.random.uniform(kv, (), jnp.float32, 0.5, 1.5)
    return w, gamma, beta, mean, var


def fold_bn(gamma, beta, mean, var):
    scale = gamma / jnp.sqrt(var + _EPS)
    return scale, beta - mean * scale


def pack_gate_params(gates):
    """gates = [(w, gamma, beta, mean, var)] for (hw, cw, hc) -> (3, 100) f32."""
    rows = []
    for (w, gamma, beta, mean, var) in gates:
        s, b = fold_bn(gamma, beta, mean, var)
        rows.append(jnp.concatenate([w[0].reshape(49), w[1].reshape(49),
                                     jnp.stack([s, b])]))
    return jnp.stack(rows).astype(jnp.float32)


# ---------------------------------------------------------------------------
# Pure-JAX reference (mirrors the PyTorch module) for validation
# ---------------------------------------------------------------------------
def _gate_ref(xp, w, gamma, beta, mean, var):
    zmax = jnp.max(xp, axis=1, keepdims=True)
    zmean = jnp.mean(xp, axis=1, keepdims=True)
    z = jnp.concatenate([zmax, zmean], axis=1)                     # (N, 2, A, B)
    conv = jax.lax.conv_general_dilated(
        z, w[None], window_strides=(1, 1), padding=((3, 3), (3, 3)),
        dimension_numbers=("NCHW", "OIHW", "NCHW"),
        precision=jax.lax.Precision.HIGHEST)
    bn = (conv - mean) / jnp.sqrt(var + _EPS) * gamma + beta
    return xp * jax.nn.sigmoid(bn)


def triplet_attention_ref(x, gates):
    g_hw, g_cw, g_hc = gates
    o_hw = _gate_ref(x, *g_hw)
    xp1 = jnp.transpose(x, (0, 2, 1, 3))
    o_cw = jnp.transpose(_gate_ref(xp1, *g_cw), (0, 2, 1, 3))
    xp2 = jnp.transpose(x, (0, 3, 2, 1))
    o_hc = jnp.transpose(_gate_ref(xp2, *g_hc), (0, 3, 2, 1))
    return (o_hw + o_cw + o_hc) / 3.0


if __name__ == "__main__":
    N, C, H, W = 2, 8, 16, 16
    key = jax.random.PRNGKey(0)
    kx, khw, kcw, khc = jax.random.split(key, 4)
    x = jax.random.normal(kx, (N, C, H, W), jnp.float32)
    gates = [init_gate_params(khw), init_gate_params(kcw), init_gate_params(khc)]
    wb = pack_gate_params(gates)

    out = triplet_attention(x, wb)
    jax.block_until_ready(out)
    assert out.shape == (N, C, H, W), out.shape
    assert bool(jnp.all(jnp.isfinite(out)))

    ref = triplet_attention_ref(x, gates)
    err = float(jnp.max(jnp.abs(out - ref)))
    assert err < 1e-4, f"max abs error vs reference: {err}"
    print("KERNEL_OK")
</pallas_src>

<mosaic_0001>
module attributes {stable_mosaic.version = 11 : i64} {
  func.func @_triplet_attention_kernel(%arg0: i32, %arg1: memref<1x8x16x16xf32, #tpu.memory_space<vmem>>, %arg2: memref<3x100xf32, #tpu.memory_space<smem>>, %arg3: memref<1x8x16x16xf32, #tpu.memory_space<vmem>>, %arg4: memref<2x22x22xf32, #tpu.memory_space<vmem>>, %arg5: memref<2x14x22xf32, #tpu.memory_space<vmem>>, %arg6: memref<2x22x14xf32, #tpu.memory_space<vmem>>) attributes {dimension_semantics = [#tpu.dimension_semantics<parallel>], iteration_bounds = array<i64: 2>, scalar_prefetch = 0 : i64, scratch_operands = 3 : i64, tpu.core_type = #tpu.core_type<tc>, window_params = [{transform_indices = @transform_0, window_bounds = array<i64: 1, 8, 16, 16>}, {transform_indices = @transform_1, window_bounds = array<i64: 3, 100>}, {transform_indices = @transform_2, window_bounds = array<i64: 1, 8, 16, 16>}]} {
    %cst = arith.constant 0.000000e+00 : f32
    %0 = vector.broadcast %cst : f32 to vector<2x22x22xf32>
    %c0 = arith.constant 0 : index
    %c0_0 = arith.constant 0 : index
    %c0_1 = arith.constant 0 : index
    %1 = vector.load %arg4[%c0, %c0_0, %c0_1] : memref<2x22x22xf32, #tpu.memory_space<vmem>>, vector<2x22x22xf32>
    tpu.vector_store %arg4[%c0, %c0_0, %c0_1], %0 {strides = array<i32>} : memref<2x22x22xf32, #tpu.memory_space<vmem>>, vector<2x22x22xf32>,
    %cst_2 = arith.constant 0.000000e+00 : f32
    %2 = vector.broadcast %cst_2 : f32 to vector<2x14x22xf32>
    %c0_3 = arith.constant 0 : index
    %c0_4 = arith.constant 0 : index
    %c0_5 = arith.constant 0 : index
    %3 = vector.load %arg5[%c0_3, %c0_4, %c0_5] : memref<2x14x22xf32, #tpu.memory_space<vmem>>, vector<2x14x22xf32>
    tpu.vector_store %arg5[%c0_3, %c0_4, %c0_5], %2 {strides = array<i32>} : memref<2x14x22xf32, #tpu.memory_space<vmem>>, vector<2x14x22xf32>,
    %cst_6 = arith.constant 0.000000e+00 : f32
    %4 = vector.broadcast %cst_6 : f32 to vector<2x22x14xf32>
    %c0_7 = arith.constant 0 : index
    %c0_8 = arith.constant 0 : index
    %c0_9 = arith.constant 0 : index
    %5 = vector.load %arg6[%c0_7, %c0_8, %c0_9] : memref<2x22x14xf32, #tpu.memory_space<vmem>>, vector<2x22x14xf32>
    tpu.vector_store %arg6[%c0_7, %c0_8, %c0_9], %4 {strides = array<i32>} : memref<2x22x14xf32, #tpu.memory_space<vmem>>, vector<2x22x14xf32>,
    %c0_10 = arith.constant 0 : index
    %c0_11 = arith.constant 0 : index
    %c0_12 = arith.constant 0 : index
    %c0_13 = arith.constant 0 : index
    %6 = vector.load %arg1[%c0_10, %c0_11, %c0_12, %c0_13] : memref<1x8x16x16xf32, #tpu.memory_space<vmem>>, vector<1x1x16x16xf32>
    %7 = vector.shape_cast %6 : vector<1x1x16x16xf32> to vector<16x16xf32>
    %cst_14 = arith.constant dense<0xFF800000> : vector<16xf32>
    %8 = vector.multi_reduction <maximumf>, %7, %cst_14 [0] : vector<16x16xf32> to vector<16xf32>
    %9 = vector.shape_cast %8 : vector<16xf32> to vector<1x16xf32>
    %c0_15 = arith.constant 0 : index
    %c3 = arith.constant 3 : index
    %c3_16 = arith.constant 3 : index
    %10 = vector.load %arg5[%c0_15, %c3, %c3_16] : memref<2x14x22xf32, #tpu.memory_space<vmem>>, vector<1x1x16xf32>
    %11 = vector.shape_cast %10 : vector<1x1x16xf32> to vector<1x16xf32>
    %12 = vector.shape_cast %9 : vector<1x16xf32> to vector<1x1x16xf32>
    tpu.vector_store %arg5[%c0_15, %c3, %c3_16], %12 {strides = array<i32>} : memref<2x14x22xf32, #tpu.memory_space<vmem>>, vector<1x1x16xf32>,
    %cst_17 = arith.constant dense<0.000000e+00> : vector<16xf32>
    %13 = vector.multi_reduction <add>, %7, %cst_17 [0] : vector<16x16xf32> to vector<16xf32>
    %14 = vector.shape_cast %13 : vector<16xf32> to vector<1x16xf32>
    %cst_18 = arith.constant 1.600000e+01 : f32
    %15 = vector.broadcast %cst_18 : f32 to vector<1x16xf32>
    %16 = arith.divf %14, %15 : vector<1x16xf32>
    %c1 = arith.constant 1 : index
    %c3_19 = arith.constant 3 : index
    %c3_20 = arith.constant 3 : index
    %17 = vector.load %arg5[%c1, %c3_19, %c3_20] : memref<2x14x22xf32, #tpu.memory_space<vmem>>, vector<1x1x16xf32>
    %18 = vector.shape_cast %17 : vector<1x1x16xf32> to vector<1x16xf32>
    %19 = vector.shape_cast %16 : vector<1x16xf32> to vector<1x1x16xf32>
    tpu.vector_store %arg5[%c1, %c3_19, %c3_20], %19 {strides = array<i32>} : memref<2x14x22xf32, #tpu.memory_space<vmem>>, vector<1x1x16xf32>,
    %cst_21 = arith.constant dense<0xFF800000> : vector<16xf32>
    %20 = vector.multi_reduction <maximumf>, %7, %cst_21 [1] : vector<16x16xf32> to vector<16xf32>
    %21 = vector.shape_cast %20 : vector<16xf32> to vector<16x1xf32>
    %c0_22 = arith.constant 0 : index
    %c3_23 = arith.constant 3 : index
    %c3_24 = arith.constant 3 : index
    %22 = vector.load %arg6[%c0_22, %c3_23, %c3_24] : memref<2x22x14xf32, #tpu.memory_space<vmem>>, vector<1x16x1xf32>
    %23 = vector.shape_cast %22 : vector<1x16x1xf32> to vector<16x1xf32>
    %24 = vector.shape_cast %21 : vector<16x1xf32> to vector<1x16x1xf32>
    tpu.vector_store %arg6[%c0_22, %c3_23, %c3_24], %24 {strides = array<i32>} : memref<2x22x14xf32, #tpu.memory_space<vmem>>, vector<1x16x1xf32>,
    %cst_25 = arith.constant dense<0.000000e+00> : vector<16xf32>
    %25 = vector.multi_reduction <add>, %7, %cst_25 [1] : vector<16x16xf32> to vector<16xf32>
    %26 = vector.shape_cast %25 : vector<16xf32> to vector<16x1xf32>
    %cst_26 = arith.constant 1.600000e+01 : f32
    %27 = vector.broadcast %cst_26 : f32 to vector<16x1xf32>
    %28 = arith.divf %26, %27 : vector<16x1xf32>
    %c1_27 = arith.constant 1 : index
    %c3_28 = arith.constant 3 : index
    %c3_29 = arith.constant 3 : index
    %29 = vector.load %arg6[%c1_27, %c3_28, %c3_29] : memref<2x22x14xf32, #tpu.memory_space<vmem>>, vector<1x16x1xf32>
    %30 = vector.shape_cast %29 : vector<1x16x1xf32> to vector<16x1xf32>
    %31 = vector.shape_cast %28 : vector<16x1xf32> to vector<1x16x1xf32>
    tpu.vector_store %arg6[%c1_27, %c3_28, %c3_29], %31 {strides = array<i32>} : memref<2x22x14xf32, #tpu.memory_space<vmem>>, vector<1x16x1xf32>,
    %c0_30 = arith.constant 0 : index
    %c1_31 = arith.constant 1 : index
    %c0_32 = arith.constant 0 : index
    %c0_33 = arith.constant 0 : index
    %32 = vector.load %arg1[%c0_30, %c1_31, %c0_32, %c0_33] : memref<1x8x16x16xf32, #tpu.memory_space<vmem>>, vector<1x1x16x16xf32>
    %33 = vector.shape_cast %32 : vector<1x1x16x16xf32> to vector<16x16xf32>
    %34 = arith.maximumf %7, %33 : vector<16x16xf32>
    %35 = arith.addf %7, %33 : vector<16x16xf32>
    %cst_34 = arith.constant dense<0xFF800000> : vector<16xf32>
    %36 = vector.multi_reduction <maximumf>, %33, %cst_34 [0] : vector<16x16xf32> to vector<16xf32>
    %37 = vector.shape_cast %36 : vector<16xf32> to vector<1x16xf32>
    %c0_35 = arith.constant 0 : index
    %c4 = arith.constant 4 : index
    %c3_36 = arith.constant 3 : index
    %38 = vector.load %arg5[%c0_35, %c4, %c3_36] : memref<2x14x22xf32, #tpu.memory_space<vmem>>, vector<1x1x16xf32>
    %39 = vector.shape_cast %38 : vector<1x1x16xf32> to vector<1x16xf32>
    %40 = vector.shape_cast %37 : vector<1x16xf32> to vector<1x1x16xf32>
    tpu.vector_store %arg5[%c0_35, %c4, %c3_36], %40 {strides = array<i32>} : memref<2x14x22xf32, #tpu.memory_space<vmem>>, vector<1x1x16xf32>,
    %cst_37 = arith.constant dense<0.000000e+00> : vector<16xf32>
    %41 = vector.multi_reduction <add>, %33, %cst_37 [0] : vector<16x16xf32> to vector<16xf32>
    %42 = vector.shape_cast %41 : vector<16xf32> to vector<1x16xf32>
    %cst_38 = arith.constant 1.600000e+01 : f32
    %43 = vector.broadcast %cst_38 : f32 to vector<1x16xf32>
    %44 = arith.divf %42, %43 : vector<1x16xf32>
    %c1_39 = arith.constant 1 : index
    %c4_40 = arith.constant 4 : index
    %c3_41 = arith.constant 3 : index
    %45 = vector.load %arg5[%c1_39, %c4_40, %c3_41] : memref<2x14x22xf32, #tpu.memory_space<vmem>>, vector<1x1x16xf32>
    %46 = vector.shape_cast %45 : vector<1x1x16xf32> to vector<1x16xf32>
    %47 = vector.shape_cast %44 : vector<1x16xf32> to vector<1x1x16xf32>
    tpu.vector_store %arg5[%c1_39, %c4_40, %c3_41], %47 {strides = array<i32>} : memref<2x14x22xf32, #tpu.memory_space<vmem>>, vector<1x1x16xf32>,
    %cst_42 = arith.constant dense<0xFF800000> : vector<16xf32>
    %48 = vector.multi_reduction <maximumf>, %33, %cst_42 [1] : vector<16x16xf32> to vector<16xf32>
    %49 = vector.shape_cast %48 : vector<16xf32> to vector<16x1xf32>
    %c0_43 = arith.constant 0 : index
    %c3_44 = arith.constant 3 : index
    %c4_45 = arith.constant 4 : index
    %50 = vector.load %arg6[%c0_43, %c3_44, %c4_45] : memref<2x22x14xf32, #tpu.memory_space<vmem>>, vector<1x16x1xf32>
    %51 = vector.shape_cast %50 : vector<1x16x1xf32> to vector<16x1xf32>
    %52 = vector.shape_cast %49 : vector<16x1xf32> to vector<1x16x1xf32>
    tpu.vector_store %arg6[%c0_43, %c3_44, %c4_45], %52 {strides = array<i32>} : memref<2x22x14xf32, #tpu.memory_space<vmem>>, vector<1x16x1xf32>,
    %cst_46 = arith.constant dense<0.000000e+00> : vector<16xf32>
    %53 = vector.multi_reduction <add>, %33, %cst_46 [1] : vector<16x16xf32> to vector<16xf32>
    %54 = vector.shape_cast %53 : vector<16xf32> to vector<16x1xf32>
    %cst_47 = arith.constant 1.600000e+01 : f32
    %55 = vector.broadcast %cst_47 : f32 to vector<16x1xf32>
    %56 = arith.divf %54, %55 : vector<16x1xf32>
    %c1_48 = arith.constant 1 : index
    %c3_49 = arith.constant 3 : index
    %c4_50 = arith.constant 4 : index
    %57 = vector.load %arg6[%c1_48, %c3_49, %c4_50] : memref<2x22x14xf32, #tpu.memory_space<vmem>>, vector<1x16x1xf32>
    %58 = vector.shape_cast %57 : vector<1x16x1xf32> to vector<16x1xf32>
    %59 = vector.shape_cast %56 : vector<16x1xf32> to vector<1x16x1xf32>
    tpu.vector_store %arg6[%c1_48, %c3_49, %c4_50], %59 {strides = array<i32>} : memref<2x22x14xf32, #tpu.memory_space<vmem>>, vector<1x16x1xf32>,
    %c0_51 = arith.constant 0 : index
    %c2 = arith.constant 2 : index
    %c0_52 = arith.constant 0 : index
    %c0_53 = arith.constant 0 : index
    %60 = vector.load %arg1[%c0_51, %c2, %c0_52, %c0_53] : memref<1x8x16x16xf32, #tpu.memory_space<vmem>>, vector<1x1x16x16xf32>
    %61 = vector.shape_cast %60 : vector<1x1x16x16xf32> to vector<16x16xf32>
    %62 = arith.maximumf %34, %61 : vector<16x16xf32>
    %63 = arith.addf %35, %61 : vector<16x16xf32>
    %cst_54 = arith.constant dense<0xFF800000> : vector<16xf32>
    %64 = vector.multi_reduction <maximumf>, %61, %cst_54 [0] : vector<16x16xf32> to vector<16xf32>
    %65 = vector.shape_cast %64 : vector<16xf32> to vector<1x16xf32>
    %c0_55 = arith.constant 0 : index
    %c5 = arith.constant 5 : index
    %c3_56 = arith.constant 3 : index
    %66 = vector.load %arg5[%c0_55, %c5, %c3_56] : memref<2x14x22xf32, #tpu.memory_space<vmem>>, vector<1x1x16xf32>
    %67 = vector.shape_cast %66 : vector<1x1x16xf32> to vector<1x16xf32>
    %68 = vector.shape_cast %65 : vector<1x16xf32> to vector<1x1x16xf32>
    tpu.vector_store %arg5[%c0_55, %c5, %c3_56], %68 {strides = array<i32>} : memref<2x14x22xf32, #tpu.memory_space<vmem>>, vector<1x1x16xf32>,
    %cst_57 = arith.constant dense<0.000000e+00> : vector<16xf32>
    %69 = vector.multi_reduction <add>, %61, %cst_57 [0] : vector<16x16xf32> to vector<16xf32>
    %70 = vector.shape_cast %69 : vector<16xf32> to vector<1x16xf32>
    %cst_58 = arith.constant 1.600000e+01 : f32
    %71 = vector.broadcast %cst_58 : f32 to vector<1x16xf32>
    %72 = arith.divf %70, %71 : vector<1x16xf32>
    %c1_59 = arith.constant 1 : index
    %c5_60 = arith.constant 5 : index
    %c3_61 = arith.constant 3 : index
    %73 = vector.load %arg5[%c1_59, %c5_60, %c3_61] : memref<2x14x22xf32, #tpu.memory_space<vmem>>, vector<1x1x16xf32>
    %74 = vector.shape_cast %73 : vector<1x1x16xf32> to vector<1x16xf32>
    %75 = vector.shape_cast %72 : vector<1x16xf32> to vector<1x1x16xf32>
    tpu.vector_store %arg5[%c1_59, %c5_60, %c3_61], %75 {strides = array<i32>} : memref<2x14x22xf32, #tpu.memory_space<vmem>>, vector<1x1x16xf32>,
    %cst_62 = arith.constant dense<0xFF800000> : vector<16xf32>
    %76 = vector.multi_reduction <maximumf>, %61, %cst_62 [1] : vector<16x16xf32> to vector<16xf32>
    %77 = vector.shape_cast %76 : vector<16xf32> to vector<16x1xf32>
    %c0_63 = arith.constant 0 : index
    %c3_64 = arith.constant 3 : index
    %c5_65 = arith.constant 5 : index
    %78 = vector.load %arg6[%c0_63, %c3_64, %c5_65] : memref<2x22x14xf32, #tpu.memory_space<vmem>>, vector<1x16x1xf32>
    %79 = vector.shape_cast %78 : vector<1x16x1xf32> to vector<16x1xf32>
    %80 = vector.shape_cast %77 : vector<16x1xf32> to vector<1x16x1xf32>
    tpu.vector_store %arg6[%c0_63, %c3_64, %c5_65], %80 {strides = array<i32>} : memref<2x22x14xf32, #tpu.memory_space<vmem>>, vector<1x16x1xf32>,
    %cst_66 = arith.constant dense<0.000000e+00> : vector<16xf32>
    %81 = vector.multi_reduction <add>, %61, %cst_66 [1] : vector<16x16xf32> to vector<16xf32>
    %82 = vector.shape_cast %81 : vector<16xf32> to vector<16x1xf32>
    %cst_67 = arith.constant 1.600000e+01 : f32
    %83 = vector.broadcast %cst_67 : f32 to vector<16x1xf32>
    %84 = arith.divf %82, %83 : vector<16x1xf32>
    %c1_68 = arith.constant 1 : index
    %c3_69 = arith.constant 3 : index
    %c5_70 = arith.constant 5 : index
    %85 = vector.load %arg6[%c1_68, %c3_69, %c5_70] : memref<2x22x14xf32, #tpu.memory_space<vmem>>, vector<1x16x1xf32>
    %86 = vector.shape_cast %85 : vector<1x16x1xf32> to vector<16x1xf32>
    %87 = vector.shape_cast %84 : vector<16x1xf32> to vector<1x16x1xf32>
    tpu.vector_store %arg6[%c1_68, %c3_69, %c5_70], %87 {strides = array<i32>} : memref<2x22x14xf32, #tpu.memory_space<vmem>>, vector<1x16x1xf32>,
    %c0_71 = arith.constant 0 : index
    %c3_72 = arith.constant 3 : index
    %c0_73 = arith.constant 0 : index
    %c0_74 = arith.constant 0 : index
    %88 = vector.load %arg1[%c0_71, %c3_72, %c0_73, %c0_74] : memref<1x8x16x16xf32, #tpu.memory_space<vmem>>, vector<1x1x16x16xf32>
    %89 = vector.shape_cast %88 : vector<1x1x16x16xf32> to vector<16x16xf32>
    %90 = arith.maximumf %62, %89 : vector<16x16xf32>
    %91 = arith.addf %63, %89 : vector<16x16xf32>
    %cst_75 = arith.constant dense<0xFF800000> : vector<16xf32>
    %92 = vector.multi_reduction <maximumf>, %89, %cst_75 [0] : vector<16x16xf32> to vector<16xf32>
    %93 = vector.shape_cast %92 : vector<16xf32> to vector<1x16xf32>
    %c0_76 = arith.constant 0 : index
    %c6 = arith.constant 6 : index
    %c3_77 = arith.constant 3 : index
    %94 = vector.load %arg5[%c0_76, %c6, %c3_77] : memref<2x14x22xf32, #tpu.memory_space<vmem>>, vector<1x1x16xf32>
    %95 = vector.shape_cast %94 : vector<1x1x16xf32> to vector<1x16xf32>
    %96 = vector.shape_cast %93 : vector<1x16xf32> to vector<1x1x16xf32>
    tpu.vector_store %arg5[%c0_76, %c6, %c3_77], %96 {strides = array<i32>} : memref<2x14x22xf32, #tpu.memory_space<vmem>>, vector<1x1x16xf32>,
    %cst_78 = arith.constant dense<0.000000e+00> : vector<16xf32>
    %97 = vector.multi_reduction <add>, %89, %cst_78 [0] : vector<16x16xf32> to vector<16xf32>
    %98 = vector.shape_cast %97 : vector<16xf32> to vector<1x16xf32>
    %cst_79 = arith.constant 1.600000e+01 : f32
    %99 = vector.broadcast %cst_79 : f32 to vector<1x16xf32>
    %100 = arith.divf %98, %99 : vector<1x16xf32>
    %c1_80 = arith.constant 1 : index
    %c6_81 = arith.constant 6 : index
    %c3_82 = arith.constant 3 : index
    %101 = vector.load %arg5[%c1_80, %c6_81, %c3_82] : memref<2x14x22xf32, #tpu.memory_space<vmem>>, vector<1x1x16xf32>
    %102 = vector.shape_cast %101 : vector<1x1x16xf32> to vector<1x16xf32>
    %103 = vector.shape_cast %100 : vector<1x16xf32> to vector<1x1x16xf32>
    tpu.vector_store %arg5[%c1_80, %c6_81, %c3_82], %103 {strides = array<i32>} : memref<2x14x22xf32, #tpu.memory_space<vmem>>, vector<1x1x16xf32>,
    %cst_83 = arith.constant dense<0xFF800000> : vector<16xf32>
    %104 = vector.multi_reduction <maximumf>, %89, %cst_83 [1] : vector<16x16xf32> to vector<16xf32>
    %105 = vector.shape_cast %104 : vector<16xf32> to vector<16x1xf32>
    %c0_84 = arith.constant 0 : index
    %c3_85 = arith.constant 3 : index
    %c6_86 = arith.constant 6 : index
    %106 = vector.load %arg6[%c0_84, %c3_85, %c6_86] : memref<2x22x14xf32, #tpu.memory_space<vmem>>, vector<1x16x1xf32>
    %107 = vector.shape_cast %106 : vector<1x16x1xf32> to vector<16x1xf32>
    %108 = vector.shape_cast %105 : vector<16x1xf32> to vector<1x16x1xf32>
    tpu.vector_store %arg6[%c0_84, %c3_85, %c6_86], %108 {strides = array<i32>} : memref<2x22x14xf32, #tpu.memory_space<vmem>>, vector<1x16x1xf32>,
    %cst_87 = arith.constant dense<0.000000e+00> : vector<16xf32>
    %109 = vector.multi_reduction <add>, %89, %cst_87 [1] : vector<16x16xf32> to vector<16xf32>
    %110 = vector.shape_cast %109 : vector<16xf32> to vector<16x1xf32>
    %cst_88 = arith.constant 1.600000e+01 : f32
    %111 = vector.broadcast %cst_88 : f32 to vector<16x1xf32>
    %112 = arith.divf %110, %111 : vector<16x1xf32>
    %c1_89 = arith.constant 1 : index
    %c3_90 = arith.constant 3 : index
    %c6_91 = arith.constant 6 : index
    %113 = vector.load %arg6[%c1_89, %c3_90, %c6_91] : memref<2x22x14xf32, #tpu.memory_space<vmem>>, vector<1x16x1xf32>
    %114 = vector.shape_cast %113 : vector<1x16x1xf32> to vector<16x1xf32>
    %115 = vector.shape_cast %112 : vector<16x1xf32> to vector<1x16x1xf32>
    tpu.vector_store %arg6[%c1_89, %c3_90, %c6_91], %115 {strides = array<i32>} : memref<2x22x14xf32, #tpu.memory_space<vmem>>, vector<1x16x1xf32>,
    %c0_92 = arith.constant 0 : index
    %c4_93 = arith.constant 4 : index
    %c0_94 = arith.constant 0 : index
    %c0_95 = arith.constant 0 : index
    %116 = vector.load %arg1[%c0_92, %c4_93, %c0_94, %c0_95] : memref<1x8x16x16xf32, #tpu.memory_space<vmem>>, vector<1x1x16x16xf32>
    %117 = vector.shape_cast %116 : vector<1x1x16x16xf32> to vector<16x16xf32>
    %118 = arith.maximumf %90, %117 : vector<16x16xf32>
    %119 = arith.addf %91, %117 : vector<16x16xf32>
    %cst_96 = arith.constant dense<0xFF800000> : vector<16xf32>
    %120 = vector.multi_reduction <maximumf>, %117, %cst_96 [0] : vector<16x16xf32> to vector<16xf32>
    %121 = vector.shape_cast %120 : vector<16xf32> to vector<1x16xf32>
    %c0_97 = arith.constant 0 : index
    %c7 = arith.constant 7 : index
    %c3_98 = arith.constant 3 : index
    %122 = vector.load %arg5[%c0_97, %c7, %c3_98] : memref<2x14x22xf32, #tpu.memory_space<vmem>>, vector<1x1x16xf32>
    %123 = vector.shape_cast %122 : vector<1x1x16xf32> to vector<1x16xf32>
    %124 = vector.shape_cast %121 : vector<1x16xf32> to vector<1x1x16xf32>
    tpu.vector_store %arg5[%c0_97, %c7, %c3_98], %124 {strides = array<i32>} : memref<2x14x22xf32, #tpu.memory_space<vmem>>, vector<1x1x16xf32>,
    %cst_99 = arith.constant dense<0.000000e+00> : vector<16xf32>
    %125 = vector.multi_reduction <add>, %117, %cst_99 [0] : vector<16x16xf32> to vector<16xf32>
    %126 = vector.shape_cast %125 : vector<16xf32> to vector<1x16xf32>
    %cst_100 = arith.constant 1.600000e+01 : f32
    %127 = vector.broadcast %cst_100 : f32 to vector<1x16xf32>
    %128 = arith.divf %126, %127 : vector<1x16xf32>
    %c1_101 = arith.constant 1 : index
    %c7_102 = arith.constant 7 : index
    %c3_103 = arith.constant 3 : index
    %129 = vector.load %arg5[%c1_101, %c7_102, %c3_103] : memref<2x14x22xf32, #tpu.memory_space<vmem>>, vector<1x1x16xf32>
    %130 = vector.shape_cast %129 : vector<1x1x16xf32> to vector<1x16xf32>
    %131 = vector.shape_cast %128 : vector<1x16xf32> to vector<1x1x16xf32>
    tpu.vector_store %arg5[%c1_101, %c7_102, %c3_103], %131 {strides = array<i32>} : memref<2x14x22xf32, #tpu.memory_space<vmem>>, vector<1x1x16xf32>,
    %cst_104 = arith.constant dense<0xFF800000> : vector<16xf32>
    %132 = vector.multi_reduction <maximumf>, %117, %cst_104 [1] : vector<16x16xf32> to vector<16xf32>
    %133 = vector.shape_cast %132 : vector<16xf32> to vector<16x1xf32>
    %c0_105 = arith.constant 0 : index
    %c3_106 = arith.constant 3 : index
    %c7_107 = arith.constant 7 : index
    %134 = vector.load %arg6[%c0_105, %c3_106, %c7_107] : memref<2x22x14xf32, #tpu.memory_space<vmem>>, vector<1x16x1xf32>
    %135 = vector.shape_cast %134 : vector<1x16x1xf32> to vector<16x1xf32>
    %136 = vector.shape_cast %133 : vector<16x1xf32> to vector<1x16x1xf32>
    tpu.vector_store %arg6[%c0_105, %c3_106, %c7_107], %136 {strides = array<i32>} : memref<2x22x14xf32, #tpu.memory_space<vmem>>, vector<1x16x1xf32>,
    %cst_108 = arith.constant dense<0.000000e+00> : vector<16xf32>
    %137 = vector.multi_reduction <add>, %117, %cst_108 [1] : vector<16x16xf32> to vector<16xf32>
    %138 = vector.shape_cast %137 : vector<16xf32> to vector<16x1xf32>
    %cst_109 = arith.constant 1.600000e+01 : f32
    %139 = vector.broadcast %cst_109 : f32 to vector<16x1xf32>
    %140 = arith.divf %138, %139 : vector<16x1xf32>
    %c1_110 = arith.constant 1 : index
    %c3_111 = arith.constant 3 : index
    %c7_112 = arith.constant 7 : index
    %141 = vector.load %arg6[%c1_110, %c3_111, %c7_112] : memref<2x22x14xf32, #tpu.memory_space<vmem>>, vector<1x16x1xf32>
    %142 = vector.shape_cast %141 : vector<1x16x1xf32> to vector<16x1xf32>
    %143 = vector.shape_cast %140 : vector<16x1xf32> to vector<1x16x1xf32>
    tpu.vector_store %arg6[%c1_110, %c3_111, %c7_112], %143 {strides = array<i32>} : memref<2x22x14xf32, #tpu.memory_space<vmem>>, vector<1x16x1xf32>,
    %c0_113 = arith.constant 0 : index
    %c5_114 = arith.constant 5 : index
    %c0_115 = arith.constant 0 : index
    %c0_116 = arith.constant 0 : index
    %144 = vector.load %arg1[%c0_113, %c5_114, %c0_115, %c0_116] : memref<1x8x16x16xf32, #tpu.memory_space<vmem>>, vector<1x1x16x16xf32>
    %145 = vector.shape_cast %144 : vector<1x1x16x16xf32> to vector<16x16xf32>
    %146 = arith.maximumf %118, %145 : vector<16x16xf32>
    %147 = arith.addf %119, %145 : vector<16x16xf32>
    %cst_117 = arith.constant dense<0xFF800000> : vector<16xf32>
    %148 = vector.multi_reduction <maximumf>, %145, %cst_117 [0] : vector<16x16xf32> to vector<16xf32>
    %149 = vector.shape_cast %148 : vector<16xf32> to vector<1x16xf32>
    %c0_118 = arith.constant 0 : index
    %c8 = arith.constant 8 : index
    %c3_119 = arith.constant 3 : index
    %150 = vector.load %arg5[%c0_118, %c8, %c3_119] : memref<2x14x22xf32, #tpu.memory_space<vmem>>, vector<1x1x16xf32>
    %151 = vector.shape_cast %150 : vector<1x1x16xf32> to vector<1x16xf32>
    %152 = vector.shape_cast %149 : vector<1x16xf32> to vector<1x1x16xf32>
    tpu.vector_store %arg5[%c0_118, %c8, %c3_119], %152 {strides = array<i32>} : memref<2x14x22xf32, #tpu.memory_space<vmem>>, vector<1x1x16xf32>,
    %cst_120 = arith.constant dense<0.000000e+00> : vector<16xf32>
    %153 = vector.multi_reduction <add>, %145, %cst_120 [0] : vector<16x16xf32> to vector<16xf32>
    %154 = vector.shape_cast %153 : vector<16xf32> to vector<1x16xf32>
    %cst_121 = arith.constant 1.600000e+01 : f32
    %155 = vector.broadcast %cst_121 : f32 to vector<1x16xf32>
    %156 = arith.divf %154, %155 : vector<1x16xf32>
    %c1_122 = arith.constant 1 : index
    %c8_123 = arith.constant 8 : index
    %c3_124 = arith.constant 3 : index
    %157 = vector.load %arg5[%c1_122, %c8_123, %c3_124] : memref<2x14x22xf32, #tpu.memory_space<vmem>>, vector<1x1x16xf32>
    %158 = vector.shape_cast %157 : vector<1x1x16xf32> to vector<1x16xf32>
    %159 = vector.shape_cast %156 : vector<1x16xf32> to vector<1x1x16xf32>
    tpu.vector_store %arg5[%c1_122, %c8_123, %c3_124], %159 {strides = array<i32>} : memref<2x14x22xf32, #tpu.memory_space<vmem>>, vector<1x1x16xf32>,
    %cst_125 = arith.constant dense<0xFF800000> : vector<16xf32>
    %160 = vector.multi_reduction <maximumf>, %145, %cst_125 [1] : vector<16x16xf32> to vector<16xf32>
    %161 = vector.shape_cast %160 : vector<16xf32> to vector<16x1xf32>
    %c0_126 = arith.constant 0 : index
    %c3_127 = arith.constant 3 : index
    %c8_128 = arith.constant 8 : index
    %162 = vector.load %arg6[%c0_126, %c3_127, %c8_128] : memref<2x22x14xf32, #tpu.memory_space<vmem>>, vector<1x16x1xf32>
    %163 = vector.shape_cast %162 : vector<1x16x1xf32> to vector<16x1xf32>
    %164 = vector.shape_cast %161 : vector<16x1xf32> to vector<1x16x1xf32>
    tpu.vector_store %arg6[%c0_126, %c3_127, %c8_128], %164 {strides = array<i32>} : memref<2x22x14xf32, #tpu.memory_space<vmem>>, vector<1x16x1xf32>,
    %cst_129 = arith.constant dense<0.000000e+00> : vector<16xf32>
    %165 = vector.multi_reduction <add>, %145, %cst_129 [1] : vector<16x16xf32> to vector<16xf32>
    %166 = vector.shape_cast %165 : vector<16xf32> to vector<16x1xf32>
    %cst_130 = arith.constant 1.600000e+01 : f32
    %167 = vector.broadcast %cst_130 : f32 to vector<16x1xf32>
    %168 = arith.divf %166, %167 : vector<16x1xf32>
    %c1_131 = arith.constant 1 : index
    %c3_132 = arith.constant 3 : index
    %c8_133 = arith.constant 8 : index
    %169 = vector.load %arg6[%c1_131, %c3_132, %c8_133] : memref<2x22x14xf32, #tpu.memory_space<vmem>>, vector<1x16x1xf32>
    %170 = vector.shape_cast %169 : vector<1x16x1xf32> to vector<16x1xf32>
    %171 = vector.shape_cast %168 : vector<16x1xf32> to vector<1x16x1xf32>
    tpu.vector_store %arg6[%c1_131, %c3_132, %c8_133], %171 {strides = array<i32>} : memref<2x22x14xf32, #tpu.memory_space<vmem>>, vector<1x16x1xf32>,
    %c0_134 = arith.constant 0 : index
    %c6_135 = arith.constant 6 : index
    %c0_136 = arith.constant 0 : index
    %c0_137 = arith.constant 0 : index
    %172 = vector.load %arg1[%c0_134, %c6_135, %c0_136, %c0_137] : memref<1x8x16x16xf32, #tpu.memory_space<vmem>>, vector<1x1x16x16xf32>
    %173 = vector.shape_cast %172 : vector<1x1x16x16xf32> to vector<16x16xf32>
    %174 = arith.maximumf %146, %173 : vector<16x16xf32>
    %175 = arith.addf %147, %173 : vector<16x16xf32>
    %cst_138 = arith.constant dense<0xFF800000> : vector<16xf32>
    %176 = vector.multi_reduction <maximumf>, %173, %cst_138 [0] : vector<16x16xf32> to vector<16xf32>
    %177 = vector.shape_cast %176 : vector<16xf32> to vector<1x16xf32>
    %c0_139 = arith.constant 0 : index
    %c9 = arith.constant 9 : index
    %c3_140 = arith.constant 3 : index
    %178 = vector.load %arg5[%c0_139, %c9, %c3_140] : memref<2x14x22xf32, #tpu.memory_space<vmem>>, vector<1x1x16xf32>
    %179 = vector.shape_cast %178 : vector<1x1x16xf32> to vector<1x16xf32>
    %180 = vector.shape_cast %177 : vector<1x16xf32> to vector<1x1x16xf32>
    tpu.vector_store %arg5[%c0_139, %c9, %c3_140], %180 {strides = array<i32>} : memref<2x14x22xf32, #tpu.memory_space<vmem>>, vector<1x1x16xf32>,
    %cst_141 = arith.constant dense<0.000000e+00> : vector<16xf32>
    %181 = vector.multi_reduction <add>, %173, %cst_141 [0] : vector<16x16xf32> to vector<16xf32>
    %182 = vector.shape_cast %181 : vector<16xf32> to vector<1x16xf32>
    %cst_142 = arith.constant 1.600000e+01 : f32
    %183 = vector.broadcast %cst_142 : f32 to vector<1x16xf32>
    %184 = arith.divf %182, %183 : vector<1x16xf32>
    %c1_143 = arith.constant 1 : index
    %c9_144 = arith.constant 9 : index
    %c3_145 = arith.constant 3 : index
    %185 = vector.load %arg5[%c1_143, %c9_144, %c3_145] : memref<2x14x22xf32, #tpu.memory_space<vmem>>, vector<1x1x16xf32>
    %186 = vector.shape_cast %185 : vector<1x1x16xf32> to vector<1x16xf32>
    %187 = vector.shape_cast %184 : vector<1x16xf32> to vector<1x1x16xf32>
    tpu.vector_store %arg5[%c1_143, %c9_144, %c3_145], %187 {strides = array<i32>} : memref<2x14x22xf32, #tpu.memory_space<vmem>>, vector<1x1x16xf32>,
    %cst_146 = arith.constant dense<0xFF800000> : vector<16xf32>
    %188 = vector.multi_reduction <maximumf>, %173, %cst_146 [1] : vector<16x16xf32> to vector<16xf32>
    %189 = vector.shape_cast %188 : vector<16xf32> to vector<16x1xf32>
    %c0_147 = arith.constant 0 : index
    %c3_148 = arith.constant 3 : index
    %c9_149 = arith.constant 9 : index
    %190 = vector.load %arg6[%c0_147, %c3_148, %c9_149] : memref<2x22x14xf32, #tpu.memory_space<vmem>>, vector<1x16x1xf32>
    %191 = vector.shape_cast %190 : vector<1x16x1xf32> to vector<16x1xf32>
    %192 = vector.shape_cast %189 : vector<16x1xf32> to vector<1x16x1xf32>
    tpu.vector_store %arg6[%c0_147, %c3_148, %c9_149], %192 {strides = array<i32>} : memref<2x22x14xf32, #tpu.memory_space<vmem>>, vector<1x16x1xf32>,
    %cst_150 = arith.constant dense<0.000000e+00> : vector<16xf32>
    %193 = vector.multi_reduction <add>, %173, %cst_150 [1] : vector<16x16xf32> to vector<16xf32>
    %194 = vector.shape_cast %193 : vector<16xf32> to vector<16x1xf32>
    %cst_151 = arith.constant 1.600000e+01 : f32
    %195 = vector.broadcast %cst_151 : f32 to vector<16x1xf32>
    %196 = arith.divf %194, %195 : vector<16x1xf32>
    %c1_152 = arith.constant 1 : index
    %c3_153 = arith.constant 3 : index
    %c9_154 = arith.constant 9 : index
    %197 = vector.load %arg6[%c1_152, %c3_153, %c9_154] : memref<2x22x14xf32, #tpu.memory_space<vmem>>, vector<1x16x1xf32>
    %198 = vector.shape_cast %197 : vector<1x16x1xf32> to vector<16x1xf32>
    %199 = vector.shape_cast %196 : vector<16x1xf32> to vector<1x16x1xf32>
    tpu.vector_store %arg6[%c1_152, %c3_153, %c9_154], %199 {strides = array<i32>} : memref<2x22x14xf32, #tpu.memory_space<vmem>>, vector<1x16x1xf32>,
    %c0_155 = arith.constant 0 : index
    %c7_156 = arith.constant 7 : index
    %c0_157 = arith.constant 0 : index
    %c0_158 = arith.constant 0 : index
    %200 = vector.load %arg1[%c0_155, %c7_156, %c0_157, %c0_158] : memref<1x8x16x16xf32, #tpu.memory_space<vmem>>, vector<1x1x16x16xf32>
    %201 = vector.shape_cast %200 : vector<1x1x16x16xf32> to vector<16x16xf32>
    %202 = arith.maximumf %174, %201 : vector<16x16xf32>
    %203 = arith.addf %175, %201 : vector<16x16xf32>
    %cst_159 = arith.constant dense<0xFF800000> : vector<16xf32>
    %204 = vector.multi_reduction <maximumf>, %201, %cst_159 [0] : vector<16x16xf32> to vector<16xf32>
    %205 = vector.shape_cast %204 : vector<16xf32> to vector<1x16xf32>
    %c0_160 = arith.constant 0 : index
    %c10 = arith.constant 10 : index
    %c3_161 = arith.constant 3 : index
    %206 = vector.load %arg5[%c0_160, %c10, %c3_161] : memref<2x14x22xf32, #tpu.memory_space<vmem>>, vector<1x1x16xf32>
    %207 = vector.shape_cast %206 : vector<1x1x16xf32> to vector<1x16xf32>
    %208 = vector.shape_cast %205 : vector<1x16xf32> to vector<1x1x16xf32>
    tpu.vector_store %arg5[%c0_160, %c10, %c3_161], %208 {strides = array<i32>} : memref<2x14x22xf32, #tpu.memory_space<vmem>>, vector<1x1x16xf32>,
    %cst_162 = arith.constant dense<0.000000e+00> : vector<16xf32>
    %209 = vector.multi_reduction <add>, %201, %cst_162 [0] : vector<16x16xf32> to vector<16xf32>
    %210 = vector.shape_cast %209 : vector<16xf32> to vector<1x16xf32>
    %cst_163 = arith.constant 1.600000e+01 : f32
    %211 = vector.broadcast %cst_163 : f32 to vector<1x16xf32>
    %212 = arith.divf %210, %211 : vector<1x16xf32>
    %c1_164 = arith.constant 1 : index
    %c10_165 = arith.constant 10 : index
    %c3_166 = arith.constant 3 : index
    %213 = vector.load %arg5[%c1_164, %c10_165, %c3_166] : memref<2x14x22xf32, #tpu.memory_space<vmem>>, vector<1x1x16xf32>
    %214 = vector.shape_cast %213 : vector<1x1x16xf32> to vector<1x16xf32>
    %215 = vector.shape_cast %212 : vector<1x16xf32> to vector<1x1x16xf32>
    tpu.vector_store %arg5[%c1_164, %c10_165, %c3_166], %215 {strides = array<i32>} : memref<2x14x22xf32, #tpu.memory_space<vmem>>, vector<1x1x16xf32>,
    %cst_167 = arith.constant dense<0xFF800000> : vector<16xf32>
    %216 = vector.multi_reduction <maximumf>, %201, %cst_167 [1] : vector<16x16xf32> to vector<16xf32>
    %217 = vector.shape_cast %216 : vector<16xf32> to vector<16x1xf32>
    %c0_168 = arith.constant 0 : index
    %c3_169 = arith.constant 3 : index
    %c10_170 = arith.constant 10 : index
    %218 = vector.load %arg6[%c0_168, %c3_169, %c10_170] : memref<2x22x14xf32, #tpu.memory_space<vmem>>, vector<1x16x1xf32>
    %219 = vector.shape_cast %218 : vector<1x16x1xf32> to vector<16x1xf32>
    %220 = vector.shape_cast %217 : vector<16x1xf32> to vector<1x16x1xf32>
    tpu.vector_store %arg6[%c0_168, %c3_169, %c10_170], %220 {strides = array<i32>} : memref<2x22x14xf32, #tpu.memory_space<vmem>>, vector<1x16x1xf32>,
    %cst_171 = arith.constant dense<0.000000e+00> : vector<16xf32>
    %221 = vector.multi_reduction <add>, %201, %cst_171 [1] : vector<16x16xf32> to vector<16xf32>
    %222 = vector.shape_cast %221 : vector<16xf32> to vector<16x1xf32>
    %cst_172 = arith.constant 1.600000e+01 : f32
    %223 = vector.broadcast %cst_172 : f32 to vector<16x1xf32>
    %224 = arith.divf %222, %223 : vector<16x1xf32>
    %c1_173 = arith.constant 1 : index
    %c3_174 = arith.constant 3 : index
    %c10_175 = arith.constant 10 : index
    %225 = vector.load %arg6[%c1_173, %c3_174, %c10_175] : memref<2x22x14xf32, #tpu.memory_space<vmem>>, vector<1x16x1xf32>
    %226 = vector.shape_cast %225 : vector<1x16x1xf32> to vector<16x1xf32>
    %227 = vector.shape_cast %224 : vector<16x1xf32> to vector<1x16x1xf32>
    tpu.vector_store %arg6[%c1_173, %c3_174, %c10_175], %227 {strides = array<i32>} : memref<2x22x14xf32, #tpu.memory_space<vmem>>, vector<1x16x1xf32>,
    %c0_176 = arith.constant 0 : index
    %c3_177 = arith.constant 3 : index
    %c3_178 = arith.constant 3 : index
    %228 = vector.load %arg4[%c0_176, %c3_177, %c3_178] : memref<2x22x22xf32, #tpu.memory_space<vmem>>, vector<1x16x16xf32>
    %229 = vector.shape_cast %228 : vector<1x16x16xf32> to vector<16x16xf32>
    %230 = vector.shape_cast %202 : vector<16x16xf32> to vector<1x16x16xf32>
    tpu.vector_store %arg4[%c0_176, %c3_177, %c3_178], %230 {strides = array<i32>} : memref<2x22x22xf32, #tpu.memory_space<vmem>>, vector<1x16x16xf32>,
    %cst_179 = arith.constant 1.250000e-01 : f32
    %231 = vector.broadcast %cst_179 : f32 to vector<16x16xf32>
    %232 = arith.mulf %203, %231 : vector<16x16xf32>
    %c1_180 = arith.constant 1 : index
    %c3_181 = arith.constant 3 : index
    %c3_182 = arith.constant 3 : index
    %233 = vector.load %arg4[%c1_180, %c3_181, %c3_182] : memref<2x22x22xf32, #tpu.memory_space<vmem>>, vector<1x16x16xf32>
    %234 = vector.shape_cast %233 : vector<1x16x16xf32> to vector<16x16xf32>
    %235 = vector.shape_cast %232 : vector<16x16xf32> to vector<1x16x16xf32>
    tpu.vector_store %arg4[%c1_180, %c3_181, %c3_182], %235 {strides = array<i32>} : memref<2x22x22xf32, #tpu.memory_space<vmem>>, vector<1x16x16xf32>,
    %cst_183 = arith.constant 0.000000e+00 : f32
    %236 = vector.broadcast %cst_183 : f32 to vector<16x16xf32>
    %c0_184 = arith.constant 0 : index
    %c0_185 = arith.constant 0 : index
    %237 = memref.load %arg2[%c0_184, %c0_185] : memref<3x100xf32, #tpu.memory_space<smem>>
    %c0_186 = arith.constant 0 : index
    %c0_187 = arith.constant 0 : index
    %c0_188 = arith.constant 0 : index
    %238 = vector.load %arg4[%c0_186, %c0_187, %c0_188] : memref<2x22x22xf32, #tpu.memory_space<vmem>>, vector<1x16x16xf32>
    %239 = vector.shape_cast %238 : vector<1x16x16xf32> to vector<16x16xf32>
    %240 = vector.broadcast %237 : f32 to vector<16x16xf32>
    %241 = arith.mulf %240, %239 : vector<16x16xf32>
    %242 = arith.addf %236, %241 : vector<16x16xf32>
    %c0_189 = arith.constant 0 : index
    %c49 = arith.constant 49 : index
    %243 = memref.load %arg2[%c0_189, %c49] : memref<3x100xf32, #tpu.memory_space<smem>>
    %c1_190 = arith.constant 1 : index
    %c0_191 = arith.constant 0 : index
    %c0_192 = arith.constant 0 : index
    %244 = vector.load %arg4[%c1_190, %c0_191, %c0_192] : memref<2x22x22xf32, #tpu.memory_space<vmem>>, vector<1x16x16xf32>
    %245 = vector.shape_cast %244 : vector<1x16x16xf32> to vector<16x16xf32>
    %246 = vector.broadcast %243 : f32 to vector<16x16xf32>
    %247 = arith.mulf %246, %245 : vector<16x16xf32>
    %248 = arith.addf %242, %247 : vector<16x16xf32>
    %c0_193 = arith.constant 0 : index
    %c1_194 = arith.constant 1 : index
    %249 = memref.load %arg2[%c0_193, %c1_194] : memref<3x100xf32, #tpu.memory_space<smem>>
    %c0_195 = arith.constant 0 : index
    %c0_196 = arith.constant 0 : index
    %c1_197 = arith.constant 1 : index
    %250 = vector.load %arg4[%c0_195, %c0_196, %c1_197] : memref<2x22x22xf32, #tpu.memory_space<vmem>>, vector<1x16x16xf32>
    %251 = vector.shape_cast %250 : vector<1x16x16xf32> to vector<16x16xf32>
    %252 = vector.broadcast %249 : f32 to vector<16x16xf32>
    %253 = arith.mulf %252, %251 : vector<16x16xf32>
    %254 = arith.addf %248, %253 : vector<16x16xf32>
    %c0_198 = arith.constant 0 : index
    %c50 = arith.constant 50 : index
    %255 = memref.load %arg2[%c0_198, %c50] : memref<3x100xf32, #tpu.memory_space<smem>>
    %c1_199 = arith.constant 1 : index
    %c0_200 = arith.constant 0 : index
    %c1_201 = arith.constant 1 : index
    %256 = vector.load %arg4[%c1_199, %c0_200, %c1_201] : memref<2x22x22xf32, #tpu.memory_space<vmem>>, vector<1x16x16xf32>
    %257 = vector.shape_cast %256 : vector<1x16x16xf32> to vector<16x16xf32>
    %258 = vector.broadcast %255 : f32 to vector<16x16xf32>
    %259 = arith.mulf %258, %257 : vector<16x16xf32>
    %260 = arith.addf %254, %259 : vector<16x16xf32>
    %c0_202 = arith.constant 0 : index
    %c2_203 = arith.constant 2 : index
    %261 = memref.load %arg2[%c0_202, %c2_203] : memref<3x100xf32, #tpu.memory_space<smem>>
    %c0_204 = arith.constant 0 : index
    %c0_205 = arith.constant 0 : index
    %c2_206 = arith.constant 2 : index
    %262 = vector.load %arg4[%c0_204, %c0_205, %c2_206] : memref<2x22x22xf32, #tpu.memory_space<vmem>>, vector<1x16x16xf32>
    %263 = vector.shape_cast %262 : vector<1x16x16xf32> to vector<16x16xf32>
    %264 = vector.broadcast %261 : f32 to vector<16x16xf32>
    %265 = arith.mulf %264, %263 : vector<16x16xf32>
    %266 = arith.addf %260, %265 : vector<16x16xf32>
    %c0_207 = arith.constant 0 : index
    %c51 = arith.constant 51 : index
    %267 = memref.load %arg2[%c0_207, %c51] : memref<3x100xf32, #tpu.memory_space<smem>>
    %c1_208 = arith.constant 1 : index
    %c0_209 = arith.constant 0 : index
    %c2_210 = arith.constant 2 : index
    %268 = vector.load %arg4[%c1_208, %c0_209, %c2_210] : memref<2x22x22xf32, #tpu.memory_space<vmem>>, vector<1x16x16xf32>
    %269 = vector.shape_cast %268 : vector<1x16x16xf32> to vector<16x16xf32>
    %270 = vector.broadcast %267 : f32 to vector<16x16xf32>
    %271 = arith.mulf %270, %269 : vector<16x16xf32>
    %272 = arith.addf %266, %271 : vector<16x16xf32>
    %c0_211 = arith.constant 0 : index
    %c3_212 = arith.constant 3 : index
    %273 = memref.load %arg2[%c0_211, %c3_212] : memref<3x100xf32, #tpu.memory_space<smem>>
    %c0_213 = arith.constant 0 : index
    %c0_214 = arith.constant 0 : index
    %c3_215 = arith.constant 3 : index
    %274 = vector.load %arg4[%c0_213, %c0_214, %c3_215] : memref<2x22x22xf32, #tpu.memory_space<vmem>>, vector<1x16x16xf32>
    %275 = vector.shape_cast %274 : vector<1x16x16xf32> to vector<16x16xf32>
    %276 = vector.broadcast %273 : f32 to vector<16x16xf32>
    %277 = arith.mulf %276, %275 : vector<16x16xf32>
    %278 = arith.addf %272, %277 : vector<16x16xf32>
    %c0_216 = arith.constant 0 : index
    %c52 = arith.constant 52 : index
    %279 = memref.load %arg2[%c0_216, %c52] : memref<3x100xf32, #tpu.memory_space<smem>>
    %c1_217 = arith.constant 1 : index
    %c0_218 = arith.constant 0 : index
    %c3_219 = arith.constant 3 : index
    %280 = vector.load %arg4[%c1_217, %c0_218, %c3_219] : memref<2x22x22xf32, #tpu.memory_space<vmem>>, vector<1x16x16xf32>
    %281 = vector.shape_cast %280 : vector<1x16x16xf32> to vector<16x16xf32>
    %282 = vector.broadcast %279 : f32 to vector<16x16xf32>
    %283 = arith.mulf %282, %281 : vector<16x16xf32>
    %284 = arith.addf %278, %283 : vector<16x16xf32>
    %c0_220 = arith.constant 0 : index
    %c4_221 = arith.constant 4 : index
    %285 = memref.load %arg2[%c0_220, %c4_221] : memref<3x100xf32, #tpu.memory_space<smem>>
    %c0_222 = arith.constant 0 : index
    %c0_223 = arith.constant 0 : index
    %c4_224 = arith.constant 4 : index
    %286 = vector.load %arg4[%c0_222, %c0_223, %c4_224] : memref<2x22x22xf32, #tpu.memory_space<vmem>>, vector<1x16x16xf32>
    %287 = vector.shape_cast %286 : vector<1x16x16xf32> to vector<16x16xf32>
    %288 = vector.broadcast %285 : f32 to vector<16x16xf32>
    %289 = arith.mulf %288, %287 : vector<16x16xf32>
    %290 = arith.addf %284, %289 : vector<16x16xf32>
    %c0_225 = arith.constant 0 : index
    %c53 = arith.constant 53 : index
    %291 = memref.load %arg2[%c0_225, %c53] : memref<3x100xf32, #tpu.memory_space<smem>>
    %c1_226 = arith.constant 1 : index
    %c0_227 = arith.constant 0 : index
    %c4_228 = arith.constant 4 : index
    %292 = vector.load %arg4[%c1_226, %c0_227, %c4_228] : memref<2x22x22xf32, #tpu.memory_space<vmem>>, vector<1x16x16xf32>
    %293 = vector.shape_cast %292 : vector<1x16x16xf32> to vector<16x16xf32>
    %294 = vector.broadcast %291 : f32 to vector<16x16xf32>
    %295 = arith.mulf %294, %293 : vector<16x16xf32>
    %296 = arith.addf %290, %295 : vector<16x16xf32>
    %c0_229 = arith.constant 0 : index
    %c5_230 = arith.constant 5 : index
    %297 = memref.load %arg2[%c0_229, %c5_230] : memref<3x100xf32, #tpu.memory_space<smem>>
    %c0_231 = arith.constant 0 : index
    %c0_232 = arith.constant 0 : index
    %c5_233 = arith.constant 5 : index
    %298 = vector.load %arg4[%c0_231, %c0_232, %c5_233] : memref<2x22x22xf32, #tpu.memory_space<vmem>>, vector<1x16x16xf32>
    %299 = vector.shape_cast %298 : vector<1x16x16xf32> to vector<16x16xf32>
    %300 = vector.broadcast %297 : f32 to vector<16x16xf32>
    %301 = arith.mulf %300, %299 : vector<16x16xf32>
    %302 = arith.addf %296, %301 : vector<16x16xf32>
    %c0_234 = arith.constant 0 : index
    %c54 = arith.constant 54 : index
    %303 = memref.load %arg2[%c0_234, %c54] : memref<3x100xf32, #tpu.memory_space<smem>>
    %c1_235 = arith.constant 1 : index
    %c0_236 = arith.constant 0 : index
    %c5_237 = arith.constant 5 : index
    %304 = vector.load %arg4[%c1_235, %c0_236, %c5_237] : memref<2x22x22xf32, #tpu.memory_space<vmem>>, vector<1x16x16xf32>
    %305 = vector.shape_cast %304 : vector<1x16x16xf32> to vector<16x16xf32>
    %306 = vector.broadcast %303 : f32 to vector<16x16xf32>
    %307 = arith.mulf %306, %305 : vector<16x16xf32>
    %308 = arith.addf %302, %307 : vector<16x16xf32>
    %c0_238 = arith.constant 0 : index
    %c6_239 = arith.constant 6 : index
    %309 = memref.load %arg2[%c0_238, %c6_239] : memref<3x100xf32, #tpu.memory_space<smem>>
    %c0_240 = arith.constant 0 : index
    %c0_241 = arith.constant 0 : index
    %c6_242 = arith.constant 6 : index
    %310 = vector.load %arg4[%c0_240, %c0_241, %c6_242] : memref<2x22x22xf32, #tpu.memory_space<vmem>>, vector<1x16x16xf32>
    %311 = vector.shape_cast %310 : vector<1x16x16xf32> to vector<16x16xf32>
    %312 = vector.broadcast %309 : f32 to vector<16x16xf32>
    %313 = arith.mulf %312, %311 : vector<16x16xf32>
    %314 = arith.addf %308, %313 : vector<16x16xf32>
    %c0_243 = arith.constant 0 : index
    %c55 = arith.constant 55 : index
    %315 = memref.load %arg2[%c0_243, %c55] : memref<3x100xf32, #tpu.memory_space<smem>>
    %c1_244 = arith.constant 1 : index
    %c0_245 = arith.constant 0 : index
    %c6_246 = arith.constant 6 : index
    %316 = vector.load %arg4[%c1_244, %c0_245, %c6_246] : memref<2x22x22xf32, #tpu.memory_space<vmem>>, vector<1x16x16xf32>
    %317 = vector.shape_cast %316 : vector<1x16x16xf32> to vector<16x16xf32>
    %318 = vector.broadcast %315 : f32 to vector<16x16xf32>
    %319 = arith.mulf %318, %317 : vector<16x16xf32>
    %320 = arith.addf %314, %319 : vector<16x16xf32>
    %c0_247 = arith.constant 0 : index
    %c7_248 = arith.constant 7 : index
    %321 = memref.load %arg2[%c0_247, %c7_248] : memref<3x100xf32, #tpu.memory_space<smem>>
    %c0_249 = arith.constant 0 : index
    %c1_250 = arith.constant 1 : index
    %c0_251 = arith.constant 0 : index
    %322 = vector.load %arg4[%c0_249, %c1_250, %c0_251] : memref<2x22x22xf32, #tpu.memory_space<vmem>>, vector<1x16x16xf32>
    %323 = vector.shape_cast %322 : vector<1x16x16xf32> to vector<16x16xf32>
    %324 = vector.broadcast %321 : f32 to vector<16x16xf32>
    %325 = arith.mulf %324, %323 : vector<16x16xf32>
    %326 = arith.addf %320, %325 : vector<16x16xf32>
    %c0_252 = arith.constant 0 : index
    %c56 = arith.constant 56 : index
    %327 = memref.load %arg2[%c0_252, %c56] : memref<3x100xf32, #tpu.memory_space<smem>>
    %c1_253 = arith.constant 1 : index
    %c1_254 = arith.constant 1 : index
    %c0_255 = arith.constant 0 : index
    %328 = vector.load %arg4[%c1_253, %c1_254, %c0_255] : memref<2x22x22xf32, #tpu.memory_space<vmem>>, vector<1x16x16xf32>
    %329 = vector.shape_cast %328 : vector<1x16x16xf32> to vector<16x16xf32>
    %330 = vector.broadcast %327 : f32 to vector<16x16xf32>
    %331 = arith.mulf %330, %329 : vector<16x16xf32>
    %332 = arith.addf %326, %331 : vector<16x16xf32>
    %c0_256 = arith.constant 0 : index
    %c8_257 = arith.constant 8 : index
    %333 = memref.load %arg2[%c0_256, %c8_257] : memref<3x100xf32, #tpu.memory_space<smem>>
    %c0_258 = arith.constant 0 : index
    %c1_259 = arith.constant 1 : index
    %c1_260 = arith.constant 1 : index
    %334 = vector.load %arg4[%c0_258, %c1_259, %c1_260] : memref<2x22x22xf32, #tpu.memory_space<vmem>>, vector<1x16x16xf32>
    %335 = vector.shape_cast %334 : vector<1x16x16xf32> to vector<16x16xf32>
    %336 = vector.broadcast %333 : f32 to vector<16x16xf32>
    %337 = arith.mulf %336, %335 : vector<16x16xf32>
    %338 = arith.addf %332, %337 : vector<16x16xf32>
    %c0_261 = arith.constant 0 : index
    %c57 = arith.constant 57 : index
    %339 = memref.load %arg2[%c0_261, %c57] : memref<3x100xf32, #tpu.memory_space<smem>>
    %c1_262 = arith.constant 1 : index
    %c1_263 = arith.constant 1 : index
    %c1_264 = arith.constant 1 : index
    %340 = vector.load %arg4[%c1_262, %c1_263, %c1_264] : memref<2x22x22xf32, #tpu.memory_space<vmem>>, vector<1x16x16xf32>
    %341 = vector.shape_cast %340 : vector<1x16x16xf32> to vector<16x16xf32>
    %342 = vector.broadcast %339 : f32 to vector<16x16xf32>
    %343 = arith.mulf %342, %341 : vector<16x16xf32>
    %344 = arith.addf %338, %343 : vector<16x16xf32>
    %c0_265 = arith.constant 0 : index
    %c9_266 = arith.constant 9 : index
    %345 = memref.load %arg2[%c0_265, %c9_266] : memref<3x100xf32, #tpu.memory_space<smem>>
    %c0_267 = arith.constant 0 : index
    %c1_268 = arith.constant 1 : index
    %c2_269 = arith.constant 2 : index
    %346 = vector.load %arg4[%c0_267, %c1_268, %c2_269] : memref<2x22x22xf32, #tpu.memory_space<vmem>>, vector<1x16x16xf32>
    %347 = vector.shape_cast %346 : vector<1x16x16xf32> to vector<16x16xf32>
    %348 = vector.broadcast %345 : f32 to vector<16x16xf32>
    %349 = arith.mulf %348, %347 : vector<16x16xf32>
    %350 = arith.addf %344, %349 : vector<16x16xf32>
    %c0_270 = arith.constant 0 : index
    %c58 = arith.constant 58 : index
    %351 = memref.load %arg2[%c0_270, %c58] : memref<3x100xf32, #tpu.memory_space<smem>>
    %c1_271 = arith.constant 1 : index
    %c1_272 = arith.constant 1 : index
    %c2_273 = arith.constant 2 : index
    %352 = vector.load %arg4[%c1_271, %c1_272, %c2_273] : memref<2x22x22xf32, #tpu.memory_space<vmem>>, vector<1x16x16xf32>
    %353 = vector.shape_cast %352 : vector<1x16x16xf32> to vector<16x16xf32>
    %354 = vector.broadcast %351 : f32 to vector<16x16xf32>
    %355 = arith.mulf %354, %353 : vector<16x16xf32>
    %356 = arith.addf %350, %355 : vector<16x16xf32>
    %c0_274 = arith.constant 0 : index
    %c10_275 = arith.constant 10 : index
    %357 = memref.load %arg2[%c0_274, %c10_275] : memref<3x100xf32, #tpu.memory_space<smem>>
    %c0_276 = arith.constant 0 : index
    %c1_277 = arith.constant 1 : index
    %c3_278 = arith.constant 3 : index
    %358 = vector.load %arg4[%c0_276, %c1_277, %c3_278] : memref<2x22x22xf32, #tpu.memory_space<vmem>>, vector<1x16x16xf32>
    %359 = vector.shape_cast %358 : vector<1x16x16xf32> to vector<16x16xf32>
    %360 = vector.broadcast %357 : f32 to vector<16x16xf32>
    %361 = arith.mulf %360, %359 : vector<16x16xf32>
    %362 = arith.addf %356, %361 : vector<16x16xf32>
    %c0_279 = arith.constant 0 : index
    %c59 = arith.constant 59 : index
    %363 = memref.load %arg2[%c0_279, %c59] : memref<3x100xf32, #tpu.memory_space<smem>>
    %c1_280 = arith.constant 1 : index
    %c1_281 = arith.constant 1 : index
    %c3_282 = arith.constant 3 : index
    %364 = vector.load %arg4[%c1_280, %c1_281, %c3_282] : memref<2x22x22xf32, #tpu.memory_space<vmem>>, vector<1x16x16xf32>
    %365 = vector.shape_cast %364 : vector<1x16x16xf32> to vector<16x16xf32>
    %366 = vector.broadcast %363 : f32 to vector<16x16xf32>
    %367 = arith.mulf %366, %365 : vector<16x16xf32>
    %368 = arith.addf %362, %367 : vector<16x16xf32>
    %c0_283 = arith.constant 0 : index
    %c11 = arith.constant 11 : index
    %369 = memref.load %arg2[%c0_283, %c11] : memref<3x100xf32, #tpu.memory_space<smem>>
    %c0_284 = arith.constant 0 : index
    %c1_285 = arith.constant 1 : index
    %c4_286 = arith.constant 4 : index
    %370 = vector.load %arg4[%c0_284, %c1_285, %c4_286] : memref<2x22x22xf32, #tpu.memory_space<vmem>>, vector<1x16x16xf32>
    %371 = vector.shape_cast %370 : vector<1x16x16xf32> to vector<16x16xf32>
    %372 = vector.broadcast %369 : f32 to vector<16x16xf32>
    %373 = arith.mulf %372, %371 : vector<16x16xf32>
    %374 = arith.addf %368, %373 : vector<16x16xf32>
    %c0_287 = arith.constant 0 : index
    %c60 = arith.constant 60 : index
    %375 = memref.load %arg2[%c0_287, %c60] : memref<3x100xf32, #tpu.memory_space<smem>>
    %c1_288 = arith.constant 1 : index
    %c1_289 = arith.constant 1 : index
    %c4_290 = arith.constant 4 : index
    %376 = vector.load %arg4[%c1_288, %c1_289, %c4_290] : memref<2x22x22xf32, #tpu.memory_space<vmem>>, vector<1x16x16xf32>
    %377 = vector.shape_cast %376 : vector<1x16x16xf32> to vector<16x16xf32>
    %378 = vector.broadcast %375 : f32 to vector<16x16xf32>
    %379 = arith.mulf %378, %377 : vector<16x16xf32>
    %380 = arith.addf %374, %379 : vector<16x16xf32>
    %c0_291 = arith.constant 0 : index
    %c12 = arith.constant 12 : index
    %381 = memref.load %arg2[%c0_291, %c12] : memref<3x100xf32, #tpu.memory_space<smem>>
    %c0_292 = arith.constant 0 : index
    %c1_293 = arith.constant 1 : index
    %c5_294 = arith.constant 5 : index
    %382 = vector.load %arg4[%c0_292, %c1_293, %c5_294] : memref<2x22x22xf32, #tpu.memory_space<vmem>>, vector<1x16x16xf32>
    %383 = vector.shape_cast %382 : vector<1x16x16xf32> to vector<16x16xf32>
    %384 = vector.broadcast %381 : f32 to vector<16x16xf32>
    %385 = arith.mulf %384, %383 : vector<16x16xf32>
    %386 = arith.addf %380, %385 : vector<16x16xf32>
    %c0_295 = arith.constant 0 : index
    %c61 = arith.constant 61 : index
    %387 = memref.load %arg2[%c0_295, %c61] : memref<3x100xf32, #tpu.memory_space<smem>>
    %c1_296 = arith.constant 1 : index
    %c1_297 = arith.constant 1 : index
    %c5_298 = arith.constant 5 : index
    %388 = vector.load %arg4[%c1_296, %c1_297, %c5_298] : memref<2x22x22xf32, #tpu.memory_space<vmem>>, vector<1x16x16xf32>
    %389 = vector.shape_cast %388 : vector<1x16x16xf32> to vector<16x16xf32>
    %390 = vector.broadcast %387 : f32 to vector<16x16xf32>
    %391 = arith.mulf %390, %389 : vector<16x16xf32>
    %392 = arith.addf %386, %391 : vector<16x16xf32>
    %c0_299 = arith.constant 0 : index
    %c13 = arith.constant 13 : index
    %393 = memref.load %arg2[%c0_299, %c13] : memref<3x100xf32, #tpu.memory_space<smem>>
    %c0_300 = arith.constant 0 : index
    %c1_301 = arith.constant 1 : index
    %c6_302 = arith.constant 6 : index
    %394 = vector.load %arg4[%c0_300, %c1_301, %c6_302] : memref<2x22x22xf32, #tpu.memory_space<vmem>>, vector<1x16x16xf32>
    %395 = vector.shape_cast %394 : vector<1x16x16xf32> to vector<16x16xf32>
    %396 = vector.broadcast %393 : f32 to vector<16x16xf32>
    %397 = arith.mulf %396, %395 : vector<16x16xf32>
    %398 = arith.addf %392, %397 : vector<16x16xf32>
    %c0_303 = arith.constant 0 : index
    %c62 = arith.constant 62 : index
    %399 = memref.load %arg2[%c0_303, %c62] : memref<3x100xf32, #tpu.memory_space<smem>>
    %c1_304 = arith.constant 1 : index
    %c1_305 = arith.constant 1 : index
    %c6_306 = arith.constant 6 : index
    %400 = vector.load %arg4[%c1_304, %c1_305, %c6_306] : memref<2x22x22xf32, #tpu.memory_space<vmem>>, vector<1x16x16xf32>
    %401 = vector.shape_cast %400 : vector<1x16x16xf32> to vector<16x16xf32>
    %402 = vector.broadcast %399 : f32 to vector<16x16xf32>
    %403 = arith.mulf %402, %401 : vector<16x16xf32>
    %404 = arith.addf %398, %403 : vector<16x16xf32>
    %c0_307 = arith.constant 0 : index
    %c14 = arith.constant 14 : index
    %405 = memref.load %arg2[%c0_307, %c14] : memref<3x100xf32, #tpu.memory_space<smem>>
    %c0_308 = arith.constant 0 : index
    %c2_309 = arith.constant 2 : index
    %c0_310 = arith.constant 0 : index
    %406 = vector.load %arg4[%c0_308, %c2_309, %c0_310] : memref<2x22x22xf32, #tpu.memory_space<vmem>>, vector<1x16x16xf32>
    %407 = vector.shape_cast %406 : vector<1x16x16xf32> to vector<16x16xf32>
    %408 = vector.broadcast %405 : f32 to vector<16x16xf32>
    %409 = arith.mulf %408, %407 : vector<16x16xf32>
    %410 = arith.addf %404, %409 : vector<16x16xf32>
    %c0_311 = arith.constant 0 : index
    %c63 = arith.constant 63 : index
    %411 = memref.load %arg2[%c0_311, %c63] : memref<3x100xf32, #tpu.memory_space<smem>>
    %c1_312 = arith.constant 1 : index
    %c2_313 = arith.constant 2 : index
    %c0_314 = arith.constant 0 : index
    %412 = vector.load %arg4[%c1_312, %c2_313, %c0_314] : memref<2x22x22xf32, #tpu.memory_space<vmem>>, vector<1x16x16xf32>
    %413 = vector.shape_cast %412 : vector<1x16x16xf32> to vector<16x16xf32>
    %414 = vector.broadcast %411 : f32 to vector<16x16xf32>
    %415 = arith.mulf %414, %413 : vector<16x16xf32>
    %416 = arith.addf %410, %415 : vector<16x16xf32>
    %c0_315 = arith.constant 0 : index
    %c15 = arith.constant 15 : index
    %417 = memref.load %arg2[%c0_315, %c15] : memref<3x100xf32, #tpu.memory_space<smem>>
    %c0_316 = arith.constant 0 : index
    %c2_317 = arith.constant 2 : index
    %c1_318 = arith.constant 1 : index
    %418 = vector.load %arg4[%c0_316, %c2_317, %c1_318] : memref<2x22x22xf32, #tpu.memory_space<vmem>>, vector<1x16x16xf32>
    %419 = vector.shape_cast %418 : vector<1x16x16xf32> to vector<16x16xf32>
    %420 = vector.broadcast %417 : f32 to vector<16x16xf32>
    %421 = arith.mulf %420, %419 : vector<16x16xf32>
    %422 = arith.addf %416, %421 : vector<16x16xf32>
    %c0_319 = arith.constant 0 : index
    %c64 = arith.constant 64 : index
    %423 = memref.load %arg2[%c0_319, %c64] : memref<3x100xf32, #tpu.memory_space<smem>>
    %c1_320 = arith.constant 1 : index
    %c2_321 = arith.constant 2 : index
    %c1_322 = arith.constant 1 : index
    %424 = vector.load %arg4[%c1_320, %c2_321, %c1_322] : memref<2x22x22xf32, #tpu.memory_space<vmem>>, vector<1x16x16xf32>
    %425 = vector.shape_cast %424 : vector<1x16x16xf32> to vector<16x16xf32>
    %426 = vector.broadcast %423 : f32 to vector<16x16xf32>
    %427 = arith.mulf %426, %425 : vector<16x16xf32>
    %428 = arith.addf %422, %427 : vector<16x16xf32>
    %c0_323 = arith.constant 0 : index
    %c16 = arith.constant 16 : index
    %429 = memref.load %arg2[%c0_323, %c16] : memref<3x100xf32, #tpu.memory_space<smem>>
    %c0_324 = arith.constant 0 : index
    %c2_325 = arith.constant 2 : index
    %c2_326 = arith.constant 2 : index
    %430 = vector.load %arg4[%c0_324, %c2_325, %c2_326] : memref<2x22x22xf32, #tpu.memory_space<vmem>>, vector<1x16x16xf32>
    %431 = vector.shape_cast %430 : vector<1x16x16xf32> to vector<16x16xf32>
    %432 = vector.broadcast %429 : f32 to vector<16x16xf32>
    %433 = arith.mulf %432, %431 : vector<16x16xf32>
    %434 = arith.addf %428, %433 : vector<16x16xf32>
    %c0_327 = arith.constant 0 : index
    %c65 = arith.constant 65 : index
    %435 = memref.load %arg2[%c0_327, %c65] : memref<3x100xf32, #tpu.memory_space<smem>>
    %c1_328 = arith.constant 1 : index
    %c2_329 = arith.constant 2 : index
    %c2_330 = arith.constant 2 : index
    %436 = vector.load %arg4[%c1_328, %c2_329, %c2_330] : memref<2x22x22xf32, #tpu.memory_space<vmem>>, vector<1x16x16xf32>
    %437 = vector.shape_cast %436 : vector<1x16x16xf32> to vector<16x16xf32>
    %438 = vector.broadcast %435 : f32 to vector<16x16xf32>
    %439 = arith.mulf %438, %437 : vector<16x16xf32>
    %440 = arith.addf %434, %439 : vector<16x16xf32>
    %c0_331 = arith.constant 0 : index
    %c17 = arith.constant 17 : index
    %441 = memref.load %arg2[%c0_331, %c17] : memref<3x100xf32, #tpu.memory_space<smem>>
    %c0_332 = arith.constant 0 : index
    %c2_333 = arith.constant 2 : index
    %c3_334 = arith.constant 3 : index
    %442 = vector.load %arg4[%c0_332, %c2_333, %c3_334] : memref<2x22x22xf32, #tpu.memory_space<vmem>>, vector<1x16x16xf32>
    %443 = vector.shape_cast %442 : vector<1x16x16xf32> to vector<16x16xf32>
    %444 = vector.broadcast %441 : f32 to vector<16x16xf32>
    %445 = arith.mulf %444, %443 : vector<16x16xf32>
    %446 = arith.addf %440, %445 : vector<16x16xf32>
    %c0_335 = arith.constant 0 : index
    %c66 = arith.constant 66 : index
    %447 = memref.load %arg2[%c0_335, %c66] : memref<3x100xf32, #tpu.memory_space<smem>>
    %c1_336 = arith.constant 1 : index
    %c2_337 = arith.constant 2 : index
    %c3_338 = arith.constant 3 : index
    %448 = vector.load %arg4[%c1_336, %c2_337, %c3_338] : memref<2x22x22xf32, #tpu.memory_space<vmem>>, vector<1x16x16xf32>
    %449 = vector.shape_cast %448 : vector<1x16x16xf32> to vector<16x16xf32>
    %450 = vector.broadcast %447 : f32 to vector<16x16xf32>
    %451 = arith.mulf %450, %449 : vector<16x16xf32>
    %452 = arith.addf %446, %451 : vector<16x16xf32>
    %c0_339 = arith.constant 0 : index
    %c18 = arith.constant 18 : index
    %453 = memref.load %arg2[%c0_339, %c18] : memref<3x100xf32, #tpu.memory_space<smem>>
    %c0_340 = arith.constant 0 : index
    %c2_341 = arith.constant 2 : index
    %c4_342 = arith.constant 4 : index
    %454 = vector.load %arg4[%c0_340, %c2_341, %c4_342] : memref<2x22x22xf32, #tpu.memory_space<vmem>>, vector<1x16x16xf32>
    %455 = vector.shape_cast %454 : vector<1x16x16xf32> to vector<16x16xf32>
    %456 = vector.broadcast %453 : f32 to vector<16x16xf32>
    %457 = arith.mulf %456, %455 : vector<16x16xf32>
    %458 = arith.addf %452, %457 : vector<16x16xf32>
    %c0_343 = arith.constant 0 : index
    %c67 = arith.constant 67 : index
    %459 = memref.load %arg2[%c0_343, %c67] : memref<3x100xf32, #tpu.memory_space<smem>>
    %c1_344 = arith.constant 1 : index
    %c2_345 = arith.constant 2 : index
    %c4_346 = arith.constant 4 : index
    %460 = vector.load %arg4[%c1_344, %c2_345, %c4_346] : memref<2x22x22xf32, #tpu.memory_space<vmem>>, vector<1x16x16xf32>
    %461 = vector.shape_cast %460 : vector<1x16x16xf32> to vector<16x16xf32>
    %462 = vector.broadcast %459 : f32 to vector<16x16xf32>
    %463 = arith.mulf %462, %461 : vector<16x16xf32>
    %464 = arith.addf %458, %463 : vector<16x16xf32>
    %c0_347 = arith.constant 0 : index
    %c19 = arith.constant 19 : index
    %465 = memref.load %arg2[%c0_347, %c19] : memref<3x100xf32, #tpu.memory_space<smem>>
    %c0_348 = arith.constant 0 : index
    %c2_349 = arith.constant 2 : index
    %c5_350 = arith.constant 5 : index
    %466 = vector.load %arg4[%c0_348, %c2_349, %c5_350] : memref<2x22x22xf32, #tpu.memory_space<vmem>>, vector<1x16x16xf32>
    %467 = vector.shape_cast %466 : vector<1x16x16xf32> to vector<16x16xf32>
    %468 = vector.broadcast %465 : f32 to vector<16x16xf32>
    %469 = arith.mulf %468, %467 : vector<16x16xf32>
    %470 = arith.addf %464, %469 : vector<16x16xf32>
    %c0_351 = arith.constant 0 : index
    %c68 = arith.constant 68 : index
    %471 = memref.load %arg2[%c0_351, %c68] : memref<3x100xf32, #tpu.memory_space<smem>>
    %c1_352 = arith.constant 1 : index
    %c2_353 = arith.constant 2 : index
    %c5_354 = arith.constant 5 : index
    %472 = vector.load %arg4[%c1_352, %c2_353, %c5_354] : memref<2x22x22xf32, #tpu.memory_space<vmem>>, vector<1x16x16xf32>
    %473 = vector.shape_cast %472 : vector<1x16x16xf32> to vector<16x16xf32>
    %474 = vector.broadcast %471 : f32 to vector<16x16xf32>
    %475 = arith.mulf %474, %473 : vector<16x16xf32>
    %476 = arith.addf %470, %475 : vector<16x16xf32>
    %c0_355 = arith.constant 0 : index
    %c20 = arith.constant 20 : index
    %477 = memref.load %arg2[%c0_355, %c20] : memref<3x100xf32, #tpu.memory_space<smem>>
    %c0_356 = arith.constant 0 : index
    %c2_357 = arith.constant 2 : index
    %c6_358 = arith.constant 6 : index
    %478 = vector.load %arg4[%c0_356, %c2_357, %c6_358] : memref<2x22x22xf32, #tpu.memory_space<vmem>>, vector<1x16x16xf32>
    %479 = vector.shape_cast %478 : vector<1x16x16xf32> to vector<16x16xf32>
    %480 = vector.broadcast %477 : f32 to vector<16x16xf32>
    %481 = arith.mulf %480, %479 : vector<16x16xf32>
    %482 = arith.addf %476, %481 : vector<16x16xf32>
    %c0_359 = arith.constant 0 : index
    %c69 = arith.constant 69 : index
    %483 = memref.load %arg2[%c0_359, %c69] : memref<3x100xf32, #tpu.memory_space<smem>>
    %c1_360 = arith.constant 1 : index
    %c2_361 = arith.constant 2 : index
    %c6_362 = arith.constant 6 : index
    %484 = vector.load %arg4[%c1_360, %c2_361, %c6_362] : memref<2x22x22xf32, #tpu.memory_space<vmem>>, vector<1x16x16xf32>
    %485 = vector.shape_cast %484 : vector<1x16x16xf32> to vector<16x16xf32>
    %486 = vector.broadcast %483 : f32 to vector<16x16xf32>
    %487 = arith.mulf %486, %485 : vector<16x16xf32>
    %488 = arith.addf %482, %487 : vector<16x16xf32>
    %c0_363 = arith.constant 0 : index
    %c21 = arith.constant 21 : index
    %489 = memref.load %arg2[%c0_363, %c21] : memref<3x100xf32, #tpu.memory_space<smem>>
    %c0_364 = arith.constant 0 : index
    %c3_365 = arith.constant 3 : index
    %c0_366 = arith.constant 0 : index
    %490 = vector.load %arg4[%c0_364, %c3_365, %c0_366] : memref<2x22x22xf32, #tpu.memory_space<vmem>>, vector<1x16x16xf32>
    %491 = vector.shape_cast %490 : vector<1x16x16xf32> to vector<16x16xf32>
    %492 = vector.broadcast %489 : f32 to vector<16x16xf32>
    %493 = arith.mulf %492, %491 : vector<16x16xf32>
    %494 = arith.addf %488, %493 : vector<16x16xf32>
    %c0_367 = arith.constant 0 : index
    %c70 = arith.constant 70 : index
    %495 = memref.load %arg2[%c0_367, %c70] : memref<3x100xf32, #tpu.memory_space<smem>>
    %c1_368 = arith.constant 1 : index
    %c3_369 = arith.constant 3 : index
    %c0_370 = arith.constant 0 : index
    %496 = vector.load %arg4[%c1_368, %c3_369, %c0_370] : memref<2x22x22xf32, #tpu.memory_space<vmem>>, vector<1x16x16xf32>
    %497 = vector.shape_cast %496 : vector<1x16x16xf32> to vector<16x16xf32>
    %498 = vector.broadcast %495 : f32 to vector<16x16xf32>
    %499 = arith.mulf %498, %497 : vector<16x16xf32>
    %500 = arith.addf %494, %499 : vector<16x16xf32>
    %c0_371 = arith.constant 0 : index
    %c22 = arith.constant 22 : index
    %501 = memref.load %arg2[%c0_371, %c22] : memref<3x100xf32, #tpu.memory_space<smem>>
    %c0_372 = arith.constant 0 : index
    %c3_373 = arith.constant 3 : index
    %c1_374 = arith.constant 1 : index
    %502 = vector.load %arg4[%c0_372, %c3_373, %c1_374] : memref<2x22x22xf32, #tpu.memory_space<vmem>>, vector<1x16x16xf32>
    %503 = vector.shape_cast %502 : vector<1x16x16xf32> to vector<16x16xf32>
    %504 = vector.broadcast %501 : f32 to vector<16x16xf32>
    %505 = arith.mulf %504, %503 : vector<16x16xf32>
    %506 = arith.addf %500, %505 : vector<16x16xf32>
    %c0_375 = arith.constant 0 : index
    %c71 = arith.constant 71 : index
    %507 = memref.load %arg2[%c0_375, %c71] : memref<3x100xf32, #tpu.memory_space<smem>>
    %c1_376 = arith.constant 1 : index
    %c3_377 = arith.constant 3 : index
    %c1_378 = arith.constant 1 : index
    %508 = vector.load %arg4[%c1_376, %c3_377, %c1_378] : memref<2x22x22xf32, #tpu.memory_space<vmem>>, vector<1x16x16xf32>
    %509 = vector.shape_cast %508 : vector<1x16x16xf32> to vector<16x16xf32>
    %510 = vector.broadcast %507 : f32 to vector<16x16xf32>
    %511 = arith.mulf %510, %509 : vector<16x16xf32>
    %512 = arith.addf %506, %511 : vector<16x16xf32>
    %c0_379 = arith.constant 0 : index
    %c23 = arith.constant 23 : index
    %513 = memref.load %arg2[%c0_379, %c23] : memref<3x100xf32, #tpu.memory_space<smem>>
    %c0_380 = arith.constant 0 : index
    %c3_381 = arith.constant 3 : index
    %c2_382 = arith.constant 2 : index
    %514 = vector.load %arg4[%c0_380, %c3_381, %c2_382] : memref<2x22x22xf32, #tpu.memory_space<vmem>>, vector<1x16x16xf32>
    %515 = vector.shape_cast %514 : vector<1x16x16xf32> to vector<16x16xf32>
    %516 = vector.broadcast %513 : f32 to vector<16x16xf32>
    %517 = arith.mulf %516, %515 : vector<16x16xf32>
    %518 = arith.addf %512, %517 : vector<16x16xf32>
    %c0_383 = arith.constant 0 : index
    %c72 = arith.constant 72 : index
    %519 = memref.load %arg2[%c0_383, %c72] : memref<3x100xf32, #tpu.memory_space<smem>>
    %c1_384 = arith.constant 1 : index
    %c3_385 = arith.constant 3 : index
    %c2_386 = arith.constant 2 : index
    %520 = vector.load %arg4[%c1_384, %c3_385, %c2_386] : memref<2x22x22xf32, #tpu.memory_space<vmem>>, vector<1x16x16xf32>
    %521 = vector.shape_cast %520 : vector<1x16x16xf32> to vector<16x16xf32>
    %522 = vector.broadcast %519 : f32 to vector<16x16xf32>
    %523 = arith.mulf %522, %521 : vector<16x16xf32>
    %524 = arith.addf %518, %523 : vector<16x16xf32>
    %c0_387 = arith.constant 0 : index
    %c24 = arith.constant 24 : index
    %525 = memref.load %arg2[%c0_387, %c24] : memref<3x100xf32, #tpu.memory_space<smem>>
    %c0_388 = arith.constant 0 : index
    %c3_389 = arith.constant 3 : index
    %c3_390 = arith.constant 3 : index
    %526 = vector.load %arg4[%c0_388, %c3_389, %c3_390] : memref<2x22x22xf32, #tpu.memory_space<vmem>>, vector<1x16x16xf32>
    %527 = vector.shape_cast %526 : vector<1x16x16xf32> to vector<16x16xf32>
    %528 = vector.broadcast %525 : f32 to vector<16x16xf32>
    %529 = arith.mulf %528, %527 : vector<16x16xf32>
    %530 = arith.addf %524, %529 : vector<16x16xf32>
    %c0_391 = arith.constant 0 : index
    %c73 = arith.constant 73 : index
    %531 = memref.load %arg2[%c0_391, %c73] : memref<3x100xf32, #tpu.memory_space<smem>>
    %c1_392 = arith.constant 1 : index
    %c3_393 = arith.constant 3 : index
    %c3_394 = arith.constant 3 : index
    %532 = vector.load %arg4[%c1_392, %c3_393, %c3_394] : memref<2x22x22xf32, #tpu.memory_space<vmem>>, vector<1x16x16xf32>
    %533 = vector.shape_cast %532 : vector<1x16x16xf32> to vector<16x16xf32>
    %534 = vector.broadcast %531 : f32 to vector<16x16xf32>
    %535 = arith.mulf %534, %533 : vector<16x16xf32>
    %536 = arith.addf %530, %535 : vector<16x16xf32>
    %c0_395 = arith.constant 0 : index
    %c25 = arith.constant 25 : index
    %537 = memref.load %arg2[%c0_395, %c25] : memref<3x100xf32, #tpu.memory_space<smem>>
    %c0_396 = arith.constant 0 : index
    %c3_397 = arith.constant 3 : index
    %c4_398 = arith.constant 4 : index
    %538 = vector.load %arg4[%c0_396, %c3_397, %c4_398] : memref<2x22x22xf32, #tpu.memory_space<vmem>>, vector<1x16x16xf32>
    %539 = vector.shape_cast %538 : vector<1x16x16xf32> to vector<16x16xf32>
    %540 = vector.broadcast %537 : f32 to vector<16x16xf32>
    %541 = arith.mulf %540, %539 : vector<16x16xf32>
    %542 = arith.addf %536, %541 : vector<16x16xf32>
    %c0_399 = arith.constant 0 : index
    %c74 = arith.constant 74 : index
    %543 = memref.load %arg2[%c0_399, %c74] : memref<3x100xf32, #tpu.memory_space<smem>>
    %c1_400 = arith.constant 1 : index
    %c3_401 = arith.constant 3 : index
    %c4_402 = arith.constant 4 : index
    %544 = vector.load %arg4[%c1_400, %c3_401, %c4_402] : memref<2x22x22xf32, #tpu.memory_space<vmem>>, vector<1x16x16xf32>
    %545 = vector.shape_cast %544 : vector<1x16x16xf32> to vector<16x16xf32>
    %546 = vector.broadcast %543 : f32 to vector<16x16xf32>
    %547 = arith.mulf %546, %545 : vector<16x16xf32>
    %548 = arith.addf %542, %547 : vector<16x16xf32>
    %c0_403 = arith.constant 0 : index
    %c26 = arith.constant 26 : index
    %549 = memref.load %arg2[%c0_403, %c26] : memref<3x100xf32, #tpu.memory_space<smem>>
    %c0_404 = arith.constant 0 : index
    %c3_405 = arith.constant 3 : index
    %c5_406 = arith.constant 5 : index
    %550 = vector.load %arg4[%c0_404, %c3_405, %c5_406] : memref<2x22x22xf32, #tpu.memory_space<vmem>>, vector<1x16x16xf32>
    %551 = vector.shape_cast %550 : vector<1x16x16xf32> to vector<16x16xf32>
    %552 = vector.broadcast %549 : f32 to vector<16x16xf32>
    %553 = arith.mulf %552, %551 : vector<16x16xf32>
    %554 = arith.addf %548, %553 : vector<16x16xf32>
    %c0_407 = arith.constant 0 : index
    %c75 = arith.constant 75 : index
    %555 = memref.load %arg2[%c0_407, %c75] : memref<3x100xf32, #tpu.memory_space<smem>>
    %c1_408 = arith.constant 1 : index
    %c3_409 = arith.constant 3 : index
    %c5_410 = arith.constant 5 : index
    %556 = vector.load %arg4[%c1_408, %c3_409, %c5_410] : memref<2x22x22xf32, #tpu.memory_space<vmem>>, vector<1x16x16xf32>
    %557 = vector.shape_cast %556 : vector<1x16x16xf32> to vector<16x16xf32>
    %558 = vector.broadcast %555 : f32 to vector<16x16xf32>
    %559 = arith.mulf %558, %557 : vector<16x16xf32>
    %560 = arith.addf %554, %559 : vector<16x16xf32>
    %c0_411 = arith.constant 0 : index
    %c27 = arith.constant 27 : index
    %561 = memref.load %arg2[%c0_411, %c27] : memref<3x100xf32, #tpu.memory_space<smem>>
    %c0_412 = arith.constant 0 : index
    %c3_413 = arith.constant 3 : index
    %c6_414 = arith.constant 6 : index
    %562 = vector.load %arg4[%c0_412, %c3_413, %c6_414] : memref<2x22x22xf32, #tpu.memory_space<vmem>>, vector<1x16x16xf32>
    %563 = vector.shape_cast %562 : vector<1x16x16xf32> to vector<16x16xf32>
    %564 = vector.broadcast %561 : f32 to vector<16x16xf32>
    %565 = arith.mulf %564, %563 : vector<16x16xf32>
    %566 = arith.addf %560, %565 : vector<16x16xf32>
    %c0_415 = arith.constant 0 : index
    %c76 = arith.constant 76 : index
    %567 = memref.load %arg2[%c0_415, %c76] : memref<3x100xf32, #tpu.memory_space<smem>>
    %c1_416 = arith.constant 1 : index
    %c3_417 = arith.constant 3 : index
    %c6_418 = arith.constant 6 : index
    %568 = vector.load %arg4[%c1_416, %c3_417, %c6_418] : memref<2x22x22xf32, #tpu.memory_space<vmem>>, vector<1x16x16xf32>
    %569 = vector.shape_cast %568 : vector<1x16x16xf32> to vector<16x16xf32>
    %570 = vector.broadcast %567 : f32 to vector<16x16xf32>
    %571 = arith.mulf %570, %569 : vector<16x16xf32>
    %572 = arith.addf %566, %571 : vector<16x16xf32>
    %c0_419 = arith.constant 0 : index
    %c28 = arith.constant 28 : index
    %573 = memref.load %arg2[%c0_419, %c28] : memref<3x100xf32, #tpu.memory_space<smem>>
    %c0_420 = arith.constant 0 : index
    %c4_421 = arith.constant 4 : index
    %c0_422 = arith.constant 0 : index
    %574 = vector.load %arg4[%c0_420, %c4_421, %c0_422] : memref<2x22x22xf32, #tpu.memory_space<vmem>>, vector<1x16x16xf32>
    %575 = vector.shape_cast %574 : vector<1x16x16xf32> to vector<16x16xf32>
    %576 = vector.broadcast %573 : f32 to vector<16x16xf32>
    %577 = arith.mulf %576, %575 : vector<16x16xf32>
    %578 = arith.addf %572, %577 : vector<16x16xf32>
    %c0_423 = arith.constant 0 : index
    %c77 = arith.constant 77 : index
    %579 = memref.load %arg2[%c0_423, %c77] : memref<3x100xf32, #tpu.memory_space<smem>>
    %c1_424 = arith.constant 1 : index
    %c4_425 = arith.constant 4 : index
    %c0_426 = arith.constant 0 : index
    %580 = vector.load %arg4[%c1_424, %c4_425, %c0_426] : memref<2x22x22xf32, #tpu.memory_space<vmem>>, vector<1x16x16xf32>
    %581 = vector.shape_cast %580 : vector<1x16x16xf32> to vector<16x16xf32>
    %582 = vector.broadcast %579 : f32 to vector<16x16xf32>
    %583 = arith.mulf %582, %581 : vector<16x16xf32>
    %584 = arith.addf %578, %583 : vector<16x16xf32>
    %c0_427 = arith.constant 0 : index
    %c29 = arith.constant 29 : index
    %585 = memref.load %arg2[%c0_427, %c29] : memref<3x100xf32, #tpu.memory_space<smem>>
    %c0_428 = arith.constant 0 : index
    %c4_429 = arith.constant 4 : index
    %c1_430 = arith.constant 1 : index
    %586 = vector.load %arg4[%c0_428, %c4_429, %c1_430] : memref<2x22x22xf32, #tpu.memory_space<vmem>>, vector<1x16x16xf32>
    %587 = vector.shape_cast %586 : vector<1x16x16xf32> to vector<16x16xf32>
    %588 = vector.broadcast %585 : f32 to vector<16x16xf32>
    %589 = arith.mulf %588, %587 : vector<16x16xf32>
    %590 = arith.addf %584, %589 : vector<16x16xf32>
    %c0_431 = arith.constant 0 : index
    %c78 = arith.constant 78 : index
    %591 = memref.load %arg2[%c0_431, %c78] : memref<3x100xf32, #tpu.memory_space<smem>>
    %c1_432 = arith.constant 1 : index
    %c4_433 = arith.constant 4 : index
    %c1_434 = arith.constant 1 : index
    %592 = vector.load %arg4[%c1_432, %c4_433, %c1_434] : memref<2x22x22xf32, #tpu.memory_space<vmem>>, vector<1x16x16xf32>
    %593 = vector.shape_cast %592 : vector<1x16x16xf32> to vector<16x16xf32>
    %594 = vector.broadcast %591 : f32 to vector<16x16xf32>
    %595 = arith.mulf %594, %593 : vector<16x16xf32>
    %596 = arith.addf %590, %595 : vector<16x16xf32>
    %c0_435 = arith.constant 0 : index
    %c30 = arith.constant 30 : index
    %597 = memref.load %arg2[%c0_435, %c30] : memref<3x100xf32, #tpu.memory_space<smem>>
    %c0_436 = arith.constant 0 : index
    %c4_437 = arith.constant 4 : index
    %c2_438 = arith.constant 2 : index
    %598 = vector.load %arg4[%c0_436, %c4_437, %c2_438] : memref<2x22x22xf32, #tpu.memory_space<vmem>>, vector<1x16x16xf32>
    %599 = vector.shape_cast %598 : vector<1x16x16xf32> to vector<16x16xf32>
    %600 = vector.broadcast %597 : f32 to vector<16x16xf32>
    %601 = arith.mulf %600, %599 : vector<16x16xf32>
    %602 = arith.addf %596, %601 : vector<16x16xf32>
    %c0_439 = arith.constant 0 : index
    %c79 = arith.constant 79 : index
    %603 = memref.load %arg2[%c0_439, %c79] : memref<3x100xf32, #tpu.memory_space<smem>>
    %c1_440 = arith.constant 1 : index
    %c4_441 = arith.constant 4 : index
    %c2_442 = arith.constant 2 : index
    %604 = vector.load %arg4[%c1_440, %c4_441, %c2_442] : memref<2x22x22xf32, #tpu.memory_space<vmem>>, vector<1x16x16xf32>
    %605 = vector.shape_cast %604 : vector<1x16x16xf32> to vector<16x16xf32>
    %606 = vector.broadcast %603 : f32 to vector<16x16xf32>
    %607 = arith.mulf %606, %605 : vector<16x16xf32>
    %608 = arith.addf %602, %607 : vector<16x16xf32>
    %c0_443 = arith.constant 0 : index
    %c31 = arith.constant 31 : index
    %609 = memref.load %arg2[%c0_443, %c31] : memref<3x100xf32, #tpu.memory_space<smem>>
    %c0_444 = arith.constant 0 : index
    %c4_445 = arith.constant 4 : index
    %c3_446 = arith.constant 3 : index
    %610 = vector.load %arg4[%c0_444, %c4_445, %c3_446] : memref<2x22x22xf32, #tpu.memory_space<vmem>>, vector<1x16x16xf32>
    %611 = vector.shape_cast %610 : vector<1x16x16xf32> to vector<16x16xf32>
    %612 = vector.broadcast %609 : f32 to vector<16x16xf32>
    %613 = arith.mulf %612, %611 : vector<16x16xf32>
    %614 = arith.addf %608, %613 : vector<16x16xf32>
    %c0_447 = arith.constant 0 : index
    %c80 = arith.constant 80 : index
    %615 = memref.load %arg2[%c0_447, %c80] : memref<3x100xf32, #tpu.memory_space<smem>>
    %c1_448 = arith.constant 1 : index
    %c4_449 = arith.constant 4 : index
    %c3_450 = arith.constant 3 : index
    %616 = vector.load %arg4[%c1_448, %c4_449, %c3_450] : memref<2x22x22xf32, #tpu.memory_space<vmem>>, vector<1x16x16xf32>
    %617 = vector.shape_cast %616 : vector<1x16x16xf32> to vector<16x16xf32>
    %618 = vector.broadcast %615 : f32 to vector<16x16xf32>
    %619 = arith.mulf %618, %617 : vector<16x16xf32>
    %620 = arith.addf %614, %619 : vector<16x16xf32>
    %c0_451 = arith.constant 0 : index
    %c32 = arith.constant 32 : index
    %621 = memref.load %arg2[%c0_451, %c32] : memref<3x100xf32, #tpu.memory_space<smem>>
    %c0_452 = arith.constant 0 : index
    %c4_453 = arith.constant 4 : index
    %c4_454 = arith.constant 4 : index
    %622 = vector.load %arg4[%c0_452, %c4_453, %c4_454] : memref<2x22x22xf32, #tpu.memory_space<vmem>>, vector<1x16x16xf32>
    %623 = vector.shape_cast %622 : vector<1x16x16xf32> to vector<16x16xf32>
    %624 = vector.broadcast %621 : f32 to vector<16x16xf32>
    %625 = arith.mulf %624, %623 : vector<16x16xf32>
    %626 = arith.addf %620, %625 : vector<16x16xf32>
    %c0_455 = arith.constant 0 : index
    %c81 = arith.constant 81 : index
    %627 = memref.load %arg2[%c0_455, %c81] : memref<3x100xf32, #tpu.memory_space<smem>>
    %c1_456 = arith.constant 1 : index
    %c4_457 = arith.constant 4 : index
    %c4_458 = arith.constant 4 : index
    %628 = vector.load %arg4[%c1_456, %c4_457, %c4_458] : memref<2x22x22xf32, #tpu.memory_space<vmem>>, vector<1x16x16xf32>
    %629 = vector.shape_cast %628 : vector<1x16x16xf32> to vector<16x16xf32>
    %630 = vector.broadcast %627 : f32 to vector<16x16xf32>
    %631 = arith.mulf %630, %629 : vector<16x16xf32>
    %632 = arith.addf %626, %631 : vector<16x16xf32>
    %c0_459 = arith.constant 0 : index
    %c33 = arith.constant 33 : index
    %633 = memref.load %arg2[%c0_459, %c33] : memref<3x100xf32, #tpu.memory_space<smem>>
    %c0_460 = arith.constant 0 : index
    %c4_461 = arith.constant 4 : index
    %c5_462 = arith.constant 5 : index
    %634 = vector.load %arg4[%c0_460, %c4_461, %c5_462] : memref<2x22x22xf32, #tpu.memory_space<vmem>>, vector<1x16x16xf32>
    %635 = vector.shape_cast %634 : vector<1x16x16xf32> to vector<16x16xf32>
    %636 = vector.broadcast %633 : f32 to vector<16x16xf32>
    %637 = arith.mulf %636, %635 : vector<16x16xf32>
    %638 = arith.addf %632, %637 : vector<16x16xf32>
    %c0_463 = arith.constant 0 : index
    %c82 = arith.constant 82 : index
    %639 = memref.load %arg2[%c0_463, %c82] : memref<3x100xf32, #tpu.memory_space<smem>>
    %c1_464 = arith.constant 1 : index
    %c4_465 = arith.constant 4 : index
    %c5_466 = arith.constant 5 : index
    %640 = vector.load %arg4[%c1_464, %c4_465, %c5_466] : memref<2x22x22xf32, #tpu.memory_space<vmem>>, vector<1x16x16xf32>
    %641 = vector.shape_cast %640 : vector<1x16x16xf32> to vector<16x16xf32>
    %642 = vector.broadcast %639 : f32 to vector<16x16xf32>
    %643 = arith.mulf %642, %641 : vector<16x16xf32>
    %644 = arith.addf %638, %643 : vector<16x16xf32>
    %c0_467 = arith.constant 0 : index
    %c34 = arith.constant 34 : index
    %645 = memref.load %arg2[%c0_467, %c34] : memref<3x100xf32, #tpu.memory_space<smem>>
    %c0_468 = arith.constant 0 : index
    %c4_469 = arith.constant 4 : index
    %c6_470 = arith.constant 6 : index
    %646 = vector.load %arg4[%c0_468, %c4_469, %c6_470] : memref<2x22x22xf32, #tpu.memory_space<vmem>>, vector<1x16x16xf32>
    %647 = vector.shape_cast %646 : vector<1x16x16xf32> to vector<16x16xf32>
    %648 = vector.broadcast %645 : f32 to vector<16x16xf32>
    %649 = arith.mulf %648, %647 : vector<16x16xf32>
    %650 = arith.addf %644, %649 : vector<16x16xf32>
    %c0_471 = arith.constant 0 : index
    %c83 = arith.constant 83 : index
    %651 = memref.load %arg2[%c0_471, %c83] : memref<3x100xf32, #tpu.memory_space<smem>>
    %c1_472 = arith.constant 1 : index
    %c4_473 = arith.constant 4 : index
    %c6_474 = arith.constant 6 : index
    %652 = vector.load %arg4[%c1_472, %c4_473, %c6_474] : memref<2x22x22xf32, #tpu.memory_space<vmem>>, vector<1x16x16xf32>
    %653 = vector.shape_cast %652 : vector<1x16x16xf32> to vector<16x16xf32>
    %654 = vector.broadcast %651 : f32 to vector<16x16xf32>
    %655 = arith.mulf %654, %653 : vector<16x16xf32>
    %656 = arith.addf %650, %655 : vector<16x16xf32>
    %c0_475 = arith.constant 0 : index
    %c35 = arith.constant 35 : index
    %657 = memref.load %arg2[%c0_475, %c35] : memref<3x100xf32, #tpu.memory_space<smem>>
    %c0_476 = arith.constant 0 : index
    %c5_477 = arith.constant 5 : index
    %c0_478 = arith.constant 0 : index
    %658 = vector.load %arg4[%c0_476, %c5_477, %c0_478] : memref<2x22x22xf32, #tpu.memory_space<vmem>>, vector<1x16x16xf32>
    %659 = vector.shape_cast %658 : vector<1x16x16xf32> to vector<16x16xf32>
    %660 = vector.broadcast %657 : f32 to vector<16x16xf32>
    %661 = arith.mulf %660, %659 : vector<16x16xf32>
    %662 = arith.addf %656, %661 : vector<16x16xf32>
    %c0_479 = arith.constant 0 : index
    %c84 = arith.constant 84 : index
    %663 = memref.load %arg2[%c0_479, %c84] : memref<3x100xf32, #tpu.memory_space<smem>>
    %c1_480 = arith.constant 1 : index
    %c5_481 = arith.constant 5 : index
    %c0_482 = arith.constant 0 : index
    %664 = vector.load %arg4[%c1_480, %c5_481, %c0_482] : memref<2x22x22xf32, #tpu.memory_space<vmem>>, vector<1x16x16xf32>
    %665 = vector.shape_cast %664 : vector<1x16x16xf32> to vector<16x16xf32>
    %666 = vector.broadcast %663 : f32 to vector<16x16xf32>
    %667 = arith.mulf %666, %665 : vector<16x16xf32>
    %668 = arith.addf %662, %667 : vector<16x16xf32>
    %c0_483 = arith.constant 0 : index
    %c36 = arith.constant 36 : index
    %669 = memref.load %arg2[%c0_483, %c36] : memref<3x100xf32, #tpu.memory_space<smem>>
    %c0_484 = arith.constant 0 : index
    %c5_485 = arith.constant 5 : index
    %c1_486 = arith.constant 1 : index
    %670 = vector.load %arg4[%c0_484, %c5_485, %c1_486] : memref<2x22x22xf32, #tpu.memory_space<vmem>>, vector<1x16x16xf32>
    %671 = vector.shape_cast %670 : vector<1x16x16xf32> to vector<16x16xf32>
    %672 = vector.broadcast %669 : f32 to vector<16x16xf32>
    %673 = arith.mulf %672, %671 : vector<16x16xf32>
    %674 = arith.addf %668, %673 : vector<16x16xf32>
    %c0_487 = arith.constant 0 : index
    %c85 = arith.constant 85 : index
    %675 = memref.load %arg2[%c0_487, %c85] : memref<3x100xf32, #tpu.memory_space<smem>>
    %c1_488 = arith.constant 1 : index
    %c5_489 = arith.constant 5 : index
    %c1_490 = arith.constant 1 : index
    %676 = vector.load %arg4[%c1_488, %c5_489, %c1_490] : memref<2x22x22xf32, #tpu.memory_space<vmem>>, vector<1x16x16xf32>
    %677 = vector.shape_cast %676 : vector<1x16x16xf32> to vector<16x16xf32>
    %678 = vector.broadcast %675 : f32 to vector<16x16xf32>
    %679 = arith.mulf %678, %677 : vector<16x16xf32>
    %680 = arith.addf %674, %679 : vector<16x16xf32>
    %c0_491 = arith.constant 0 : index
    %c37 = arith.constant 37 : index
    %681 = memref.load %arg2[%c0_491, %c37] : memref<3x100xf32, #tpu.memory_space<smem>>
    %c0_492 = arith.constant 0 : index
    %c5_493 = arith.constant 5 : index
    %c2_494 = arith.constant 2 : index
    %682 = vector.load %arg4[%c0_492, %c5_493, %c2_494] : memref<2x22x22xf32, #tpu.memory_space<vmem>>, vector<1x16x16xf32>
    %683 = vector.shape_cast %682 : vector<1x16x16xf32> to vector<16x16xf32>
    %684 = vector.broadcast %681 : f32 to vector<16x16xf32>
    %685 = arith.mulf %684, %683 : vector<16x16xf32>
    %686 = arith.addf %680, %685 : vector<16x16xf32>
    %c0_495 = arith.constant 0 : index
    %c86 = arith.constant 86 : index
    %687 = memref.load %arg2[%c0_495, %c86] : memref<3x100xf32, #tpu.memory_space<smem>>
    %c1_496 = arith.constant 1 : index
    %c5_497 = arith.constant 5 : index
    %c2_498 = arith.constant 2 : index
    %688 = vector.load %arg4[%c1_496, %c5_497, %c2_498] : memref<2x22x22xf32, #tpu.memory_space<vmem>>, vector<1x16x16xf32>
    %689 = vector.shape_cast %688 : vector<1x16x16xf32> to vector<16x16xf32>
    %690 = vector.broadcast %687 : f32 to vector<16x16xf32>
    %691 = arith.mulf %690, %689 : vector<16x16xf32>
    %692 = arith.addf %686, %691 : vector<16x16xf32>
    %c0_499 = arith.constant 0 : index
    %c38 = arith.constant 38 : index
    %693 = memref.load %arg2[%c0_499, %c38] : memref<3x100xf32, #tpu.memory_space<smem>>
    %c0_500 = arith.constant 0 : index
    %c5_501 = arith.constant 5 : index
    %c3_502 = arith.constant 3 : index
    %694 = vector.load %arg4[%c0_500, %c5_501, %c3_502] : memref<2x22x22xf32, #tpu.memory_space<vmem>>, vector<1x16x16xf32>
    %695 = vector.shape_cast %694 : vector<1x16x16xf32> to vector<16x16xf32>
    %696 = vector.broadcast %693 : f32 to vector<16x16xf32>
    %697 = arith.mulf %696, %695 : vector<16x16xf32>
    %698 = arith.addf %692, %697 : vector<16x16xf32>
    %c0_503 = arith.constant 0 : index
    %c87 = arith.constant 87 : index
    %699 = memref.load %arg2[%c0_503, %c87] : memref<3x100xf32, #tpu.memory_space<smem>>
    %c1_504 = arith.constant 1 : index
    %c5_505 = arith.constant 5 : index
    %c3_506 = arith.constant 3 : index
    %700 = vector.load %arg4[%c1_504, %c5_505, %c3_506] : memref<2x22x22xf32, #tpu.memory_space<vmem>>, vector<1x16x16xf32>
    %701 = vector.shape_cast %700 : vector<1x16x16xf32> to vector<16x16xf32>
    %702 = vector.broadcast %699 : f32 to vector<16x16xf32>
    %703 = arith.mulf %702, %701 : vector<16x16xf32>
    %704 = arith.addf %698, %703 : vector<16x16xf32>
    %c0_507 = arith.constant 0 : index
    %c39 = arith.constant 39 : index
    %705 = memref.load %arg2[%c0_507, %c39] : memref<3x100xf32, #tpu.memory_space<smem>>
    %c0_508 = arith.constant 0 : index
    %c5_509 = arith.constant 5 : index
    %c4_510 = arith.constant 4 : index
    %706 = vector.load %arg4[%c0_508, %c5_509, %c4_510] : memref<2x22x22xf32, #tpu.memory_space<vmem>>, vector<1x16x16xf32>
    %707 = vector.shape_cast %706 : vector<1x16x16xf32> to vector<16x16xf32>
    %708 = vector.broadcast %705 : f32 to vector<16x16xf32>
    %709 = arith.mulf %708, %707 : vector<16x16xf32>
    %710 = arith.addf %704, %709 : vector<16x16xf32>
    %c0_511 = arith.constant 0 : index
    %c88 = arith.constant 88 : index
    %711 = memref.load %arg2[%c0_511, %c88] : memref<3x100xf32, #tpu.memory_space<smem>>
    %c1_512 = arith.constant 1 : index
    %c5_513 = arith.constant 5 : index
    %c4_514 = arith.constant 4 : index
    %712 = vector.load %arg4[%c1_512, %c5_513, %c4_514] : memref<2x22x22xf32, #tpu.memory_space<vmem>>, vector<1x16x16xf32>
    %713 = vector.shape_cast %712 : vector<1x16x16xf32> to vector<16x16xf32>
    %714 = vector.broadcast %711 : f32 to vector<16x16xf32>
    %715 = arith.mulf %714, %713 : vector<16x16xf32>
    %716 = arith.addf %710, %715 : vector<16x16xf32>
    %c0_515 = arith.constant 0 : index
    %c40 = arith.constant 40 : index
    %717 = memref.load %arg2[%c0_515, %c40] : memref<3x100xf32, #tpu.memory_space<smem>>
    %c0_516 = arith.constant 0 : index
    %c5_517 = arith.constant 5 : index
    %c5_518 = arith.constant 5 : index
    %718 = vector.load %arg4[%c0_516, %c5_517, %c5_518] : memref<2x22x22xf32, #tpu.memory_space<vmem>>, vector<1x16x16xf32>
    %719 = vector.shape_cast %718 : vector<1x16x16xf32> to vector<16x16xf32>
    %720 = vector.broadcast %717 : f32 to vector<16x16xf32>
    %721 = arith.mulf %720, %719 : vector<16x16xf32>
    %722 = arith.addf %716, %721 : vector<16x16xf32>
    %c0_519 = arith.constant 0 : index
    %c89 = arith.constant 89 : index
    %723 = memref.load %arg2[%c0_519, %c89] : memref<3x100xf32, #tpu.memory_space<smem>>
    %c1_520 = arith.constant 1 : index
    %c5_521 = arith.constant 5 : index
    %c5_522 = arith.constant 5 : index
    %724 = vector.load %arg4[%c1_520, %c5_521, %c5_522] : memref<2x22x22xf32, #tpu.memory_space<vmem>>, vector<1x16x16xf32>
    %725 = vector.shape_cast %724 : vector<1x16x16xf32> to vector<16x16xf32>
    %726 = vector.broadcast %723 : f32 to vector<16x16xf32>
    %727 = arith.mulf %726, %725 : vector<16x16xf32>
    %728 = arith.addf %722, %727 : vector<16x16xf32>
    %c0_523 = arith.constant 0 : index
    %c41 = arith.constant 41 : index
    %729 = memref.load %arg2[%c0_523, %c41] : memref<3x100xf32, #tpu.memory_space<smem>>
    %c0_524 = arith.constant 0 : index
    %c5_525 = arith.constant 5 : index
    %c6_526 = arith.constant 6 : index
    %730 = vector.load %arg4[%c0_524, %c5_525, %c6_526] : memref<2x22x22xf32, #tpu.memory_space<vmem>>, vector<1x16x16xf32>
    %731 = vector.shape_cast %730 : vector<1x16x16xf32> to vector<16x16xf32>
    %732 = vector.broadcast %729 : f32 to vector<16x16xf32>
    %733 = arith.mulf %732, %731 : vector<16x16xf32>
    %734 = arith.addf %728, %733 : vector<16x16xf32>
    %c0_527 = arith.constant 0 : index
    %c90 = arith.constant 90 : index
    %735 = memref.load %arg2[%c0_527, %c90] : memref<3x100xf32, #tpu.memory_space<smem>>
    %c1_528 = arith.constant 1 : index
    %c5_529 = arith.constant 5 : index
    %c6_530 = arith.constant 6 : index
    %736 = vector.load %arg4[%c1_528, %c5_529, %c6_530] : memref<2x22x22xf32, #tpu.memory_space<vmem>>, vector<1x16x16xf32>
    %737 = vector.shape_cast %736 : vector<1x16x16xf32> to vector<16x16xf32>
    %738 = vector.broadcast %735 : f32 to vector<16x16xf32>
    %739 = arith.mulf %738, %737 : vector<16x16xf32>
    %740 = arith.addf %734, %739 : vector<16x16xf32>
    %c0_531 = arith.constant 0 : index
    %c42 = arith.constant 42 : index
    %741 = memref.load %arg2[%c0_531, %c42] : memref<3x100xf32, #tpu.memory_space<smem>>
    %c0_532 = arith.constant 0 : index
    %c6_533 = arith.constant 6 : index
    %c0_534 = arith.constant 0 : index
    %742 = vector.load %arg4[%c0_532, %c6_533, %c0_534] : memref<2x22x22xf32, #tpu.memory_space<vmem>>, vector<1x16x16xf32>
    %743 = vector.shape_cast %742 : vector<1x16x16xf32> to vector<16x16xf32>
    %744 = vector.broadcast %741 : f32 to vector<16x16xf32>
    %745 = arith.mulf %744, %743 : vector<16x16xf32>
    %746 = arith.addf %740, %745 : vector<16x16xf32>
    %c0_535 = arith.constant 0 : index
    %c91 = arith.constant 91 : index
    %747 = memref.load %arg2[%c0_535, %c91] : memref<3x100xf32, #tpu.memory_space<smem>>
    %c1_536 = arith.constant 1 : index
    %c6_537 = arith.constant 6 : index
    %c0_538 = arith.constant 0 : index
    %748 = vector.load %arg4[%c1_536, %c6_537, %c0_538] : memref<2x22x22xf32, #tpu.memory_space<vmem>>, vector<1x16x16xf32>
    %749 = vector.shape_cast %748 : vector<1x16x16xf32> to vector<16x16xf32>
    %750 = vector.broadcast %747 : f32 to vector<16x16xf32>
    %751 = arith.mulf %750, %749 : vector<16x16xf32>
    %752 = arith.addf %746, %751 : vector<16x16xf32>
    %c0_539 = arith.constant 0 : index
    %c43 = arith.constant 43 : index
    %753 = memref.load %arg2[%c0_539, %c43] : memref<3x100xf32, #tpu.memory_space<smem>>
    %c0_540 = arith.constant 0 : index
    %c6_541 = arith.constant 6 : index
    %c1_542 = arith.constant 1 : index
    %754 = vector.load %arg4[%c0_540, %c6_541, %c1_542] : memref<2x22x22xf32, #tpu.memory_space<vmem>>, vector<1x16x16xf32>
    %755 = vector.shape_cast %754 : vector<1x16x16xf32> to vector<16x16xf32>
    %756 = vector.broadcast %753 : f32 to vector<16x16xf32>
    %757 = arith.mulf %756, %755 : vector<16x16xf32>
    %758 = arith.addf %752, %757 : vector<16x16xf32>
    %c0_543 = arith.constant 0 : index
    %c92 = arith.constant 92 : index
    %759 = memref.load %arg2[%c0_543, %c92] : memref<3x100xf32, #tpu.memory_space<smem>>
    %c1_544 = arith.constant 1 : index
    %c6_545 = arith.constant 6 : index
    %c1_546 = arith.constant 1 : index
    %760 = vector.load %arg4[%c1_544, %c6_545, %c1_546] : memref<2x22x22xf32, #tpu.memory_space<vmem>>, vector<1x16x16xf32>
    %761 = vector.shape_cast %760 : vector<1x16x16xf32> to vector<16x16xf32>
    %762 = vector.broadcast %759 : f32 to vector<16x16xf32>
    %763 = arith.mulf %762, %761 : vector<16x16xf32>
    %764 = arith.addf %758, %763 : vector<16x16xf32>
    %c0_547 = arith.constant 0 : index
    %c44 = arith.constant 44 : index
    %765 = memref.load %arg2[%c0_547, %c44] : memref<3x100xf32, #tpu.memory_space<smem>>
    %c0_548 = arith.constant 0 : index
    %c6_549 = arith.constant 6 : index
    %c2_550 = arith.constant 2 : index
    %766 = vector.load %arg4[%c0_548, %c6_549, %c2_550] : memref<2x22x22xf32, #tpu.memory_space<vmem>>, vector<1x16x16xf32>
    %767 = vector.shape_cast %766 : vector<1x16x16xf32> to vector<16x16xf32>
    %768 = vector.broadcast %765 : f32 to vector<16x16xf32>
    %769 = arith.mulf %768, %767 : vector<16x16xf32>
    %770 = arith.addf %764, %769 : vector<16x16xf32>
    %c0_551 = arith.constant 0 : index
    %c93 = arith.constant 93 : index
    %771 = memref.load %arg2[%c0_551, %c93] : memref<3x100xf32, #tpu.memory_space<smem>>
    %c1_552 = arith.constant 1 : index
    %c6_553 = arith.constant 6 : index
    %c2_554 = arith.constant 2 : index
    %772 = vector.load %arg4[%c1_552, %c6_553, %c2_554] : memref<2x22x22xf32, #tpu.memory_space<vmem>>, vector<1x16x16xf32>
    %773 = vector.shape_cast %772 : vector<1x16x16xf32> to vector<16x16xf32>
    %774 = vector.broadcast %771 : f32 to vector<16x16xf32>
    %775 = arith.mulf %774, %773 : vector<16x16xf32>
    %776 = arith.addf %770, %775 : vector<16x16xf32>
    %c0_555 = arith.constant 0 : index
    %c45 = arith.constant 45 : index
    %777 = memref.load %arg2[%c0_555, %c45] : memref<3x100xf32, #tpu.memory_space<smem>>
    %c0_556 = arith.constant 0 : index
    %c6_557 = arith.constant 6 : index
    %c3_558 = arith.constant 3 : index
    %778 = vector.load %arg4[%c0_556, %c6_557, %c3_558] : memref<2x22x22xf32, #tpu.memory_space<vmem>>, vector<1x16x16xf32>
    %779 = vector.shape_cast %778 : vector<1x16x16xf32> to vector<16x16xf32>
    %780 = vector.broadcast %777 : f32 to vector<16x16xf32>
    %781 = arith.mulf %780, %779 : vector<16x16xf32>
    %782 = arith.addf %776, %781 : vector<16x16xf32>
    %c0_559 = arith.constant 0 : index
    %c94 = arith.constant 94 : index
    %783 = memref.load %arg2[%c0_559, %c94] : memref<3x100xf32, #tpu.memory_space<smem>>
    %c1_560 = arith.constant 1 : index
    %c6_561 = arith.constant 6 : index
    %c3_562 = arith.constant 3 : index
    %784 = vector.load %arg4[%c1_560, %c6_561, %c3_562] : memref<2x22x22xf32, #tpu.memory_space<vmem>>, vector<1x16x16xf32>
    %785 = vector.shape_cast %784 : vector<1x16x16xf32> to vector<16x16xf32>
    %786 = vector.broadcast %783 : f32 to vector<16x16xf32>
    %787 = arith.mulf %786, %785 : vector<16x16xf32>
    %788 = arith.addf %782, %787 : vector<16x16xf32>
    %c0_563 = arith.constant 0 : index
    %c46 = arith.constant 46 : index
    %789 = memref.load %arg2[%c0_563, %c46] : memref<3x100xf32, #tpu.memory_space<smem>>
    %c0_564 = arith.constant 0 : index
    %c6_565 = arith.constant 6 : index
    %c4_566 = arith.constant 4 : index
    %790 = vector.load %arg4[%c0_564, %c6_565, %c4_566] : memref<2x22x22xf32, #tpu.memory_space<vmem>>, vector<1x16x16xf32>
    %791 = vector.shape_cast %790 : vector<1x16x16xf32> to vector<16x16xf32>
    %792 = vector.broadcast %789 : f32 to vector<16x16xf32>
    %793 = arith.mulf %792, %791 : vector<16x16xf32>
    %794 = arith.addf %788, %793 : vector<16x16xf32>
    %c0_567 = arith.constant 0 : index
    %c95 = arith.constant 95 : index
    %795 = memref.load %arg2[%c0_567, %c95] : memref<3x100xf32, #tpu.memory_space<smem>>
    %c1_568 = arith.constant 1 : index
    %c6_569 = arith.constant 6 : index
    %c4_570 = arith.constant 4 : index
    %796 = vector.load %arg4[%c1_568, %c6_569, %c4_570] : memref<2x22x22xf32, #tpu.memory_space<vmem>>, vector<1x16x16xf32>
    %797 = vector.shape_cast %796 : vector<1x16x16xf32> to vector<16x16xf32>
    %798 = vector.broadcast %795 : f32 to vector<16x16xf32>
    %799 = arith.mulf %798, %797 : vector<16x16xf32>
    %800 = arith.addf %794, %799 : vector<16x16xf32>
    %c0_571 = arith.constant 0 : index
    %c47 = arith.constant 47 : index
    %801 = memref.load %arg2[%c0_571, %c47] : memref<3x100xf32, #tpu.memory_space<smem>>
    %c0_572 = arith.constant 0 : index
    %c6_573 = arith.constant 6 : index
    %c5_574 = arith.constant 5 : index
    %802 = vector.load %arg4[%c0_572, %c6_573, %c5_574] : memref<2x22x22xf32, #tpu.memory_space<vmem>>, vector<1x16x16xf32>
    %803 = vector.shape_cast %802 : vector<1x16x16xf32> to vector<16x16xf32>
    %804 = vector.broadcast %801 : f32 to vector<16x16xf32>
    %805 = arith.mulf %804, %803 : vector<16x16xf32>
    %806 = arith.addf %800, %805 : vector<16x16xf32>
    %c0_575 = arith.constant 0 : index
    %c96 = arith.constant 96 : index
    %807 = memref.load %arg2[%c0_575, %c96] : memref<3x100xf32, #tpu.memory_space<smem>>
    %c1_576 = arith.constant 1 : index
    %c6_577 = arith.constant 6 : index
    %c5_578 = arith.constant 5 : index
    %808 = vector.load %arg4[%c1_576, %c6_577, %c5_578] : memref<2x22x22xf32, #tpu.memory_space<vmem>>, vector<1x16x16xf32>
    %809 = vector.shape_cast %808 : vector<1x16x16xf32> to vector<16x16xf32>
    %810 = vector.broadcast %807 : f32 to vector<16x16xf32>
    %811 = arith.mulf %810, %809 : vector<16x16xf32>
    %812 = arith.addf %806, %811 : vector<16x16xf32>
    %c0_579 = arith.constant 0 : index
    %c48 = arith.constant 48 : index
    %813 = memref.load %arg2[%c0_579, %c48] : memref<3x100xf32, #tpu.memory_space<smem>>
    %c0_580 = arith.constant 0 : index
    %c6_581 = arith.constant 6 : index
    %c6_582 = arith.constant 6 : index
    %814 = vector.load %arg4[%c0_580, %c6_581, %c6_582] : memref<2x22x22xf32, #tpu.memory_space<vmem>>, vector<1x16x16xf32>
    %815 = vector.shape_cast %814 : vector<1x16x16xf32> to vector<16x16xf32>
    %816 = vector.broadcast %813 : f32 to vector<16x16xf32>
    %817 = arith.mulf %816, %815 : vector<16x16xf32>
    %818 = arith.addf %812, %817 : vector<16x16xf32>
    %c0_583 = arith.constant 0 : index
    %c97 = arith.constant 97 : index
    %819 = memref.load %arg2[%c0_583, %c97] : memref<3x100xf32, #tpu.memory_space<smem>>
    %c1_584 = arith.constant 1 : index
    %c6_585 = arith.constant 6 : index
    %c6_586 = arith.constant 6 : index
    %820 = vector.load %arg4[%c1_584, %c6_585, %c6_586] : memref<2x22x22xf32, #tpu.memory_space<vmem>>, vector<1x16x16xf32>
    %821 = vector.shape_cast %820 : vector<1x16x16xf32> to vector<16x16xf32>
    %822 = vector.broadcast %819 : f32 to vector<16x16xf32>
    %823 = arith.mulf %822, %821 : vector<16x16xf32>
    %824 = arith.addf %818, %823 : vector<16x16xf32>
    %c0_587 = arith.constant 0 : index
    %c98 = arith.constant 98 : index
    %825 = memref.load %arg2[%c0_587, %c98] : memref<3x100xf32, #tpu.memory_space<smem>>
    %826 = vector.broadcast %825 : f32 to vector<16x16xf32>
    %827 = arith.mulf %824, %826 : vector<16x16xf32>
    %c0_588 = arith.constant 0 : index
    %c99 = arith.constant 99 : index
    %828 = memref.load %arg2[%c0_588, %c99] : memref<3x100xf32, #tpu.memory_space<smem>>
    %829 = vector.broadcast %828 : f32 to vector<16x16xf32>
    %830 = arith.addf %827, %829 : vector<16x16xf32>
    %831 = arith.negf %830 : vector<16x16xf32>
    %832 = math.exp %831 : vector<16x16xf32>
    %cst_589 = arith.constant 1.000000e+00 : f32
    %833 = vector.broadcast %cst_589 : f32 to vector<16x16xf32>
    %834 = arith.addf %833, %832 : vector<16x16xf32>
    %835 = arith.divf %833, %834 : vector<16x16xf32>
    %cst_590 = arith.constant 0.000000e+00 : f32
    %836 = vector.broadcast %cst_590 : f32 to vector<8x16xf32>
    %c1_591 = arith.constant 1 : index
    %c0_592 = arith.constant 0 : index
    %837 = memref.load %arg2[%c1_591, %c0_592] : memref<3x100xf32, #tpu.memory_space<smem>>
    %c0_593 = arith.constant 0 : index
    %c0_594 = arith.constant 0 : index
    %c0_595 = arith.constant 0 : index
    %838 = vector.load %arg5[%c0_593, %c0_594, %c0_595] : memref<2x14x22xf32, #tpu.memory_space<vmem>>, vector<1x8x16xf32>
    %839 = vector.shape_cast %838 : vector<1x8x16xf32> to vector<8x16xf32>
    %840 = vector.broadcast %837 : f32 to vector<8x16xf32>
    %841 = arith.mulf %840, %839 : vector<8x16xf32>
    %842 = arith.addf %836, %841 : vector<8x16xf32>
    %c1_596 = arith.constant 1 : index
    %c49_597 = arith.constant 49 : index
    %843 = memref.load %arg2[%c1_596, %c49_597] : memref<3x100xf32, #tpu.memory_space<smem>>
    %c1_598 = arith.constant 1 : index
    %c0_599 = arith.constant 0 : index
    %c0_600 = arith.constant 0 : index
    %844 = vector.load %arg5[%c1_598, %c0_599, %c0_600] : memref<2x14x22xf32, #tpu.memory_space<vmem>>, vector<1x8x16xf32>
    %845 = vector.shape_cast %844 : vector<1x8x16xf32> to vector<8x16xf32>
    %846 = vector.broadcast %843 : f32 to vector<8x16xf32>
    %847 = arith.mulf %846, %845 : vector<8x16xf32>
    %848 = arith.addf %842, %847 : vector<8x16xf32>
    %c1_601 = arith.constant 1 : index
    %c1_602 = arith.constant 1 : index
    %849 = memref.load %arg2[%c1_601, %c1_602] : memref<3x100xf32, #tpu.memory_space<smem>>
    %c0_603 = arith.constant 0 : index
    %c0_604 = arith.constant 0 : index
    %c1_605 = arith.constant 1 : index
    %850 = vector.load %arg5[%c0_603, %c0_604, %c1_605] : memref<2x14x22xf32, #tpu.memory_space<vmem>>, vector<1x8x16xf32>
    %851 = vector.shape_cast %850 : vector<1x8x16xf32> to vector<8x16xf32>
    %852 = vector.broadcast %849 : f32 to vector<8x16xf32>
    %853 = arith.mulf %852, %851 : vector<8x16xf32>
    %854 = arith.addf %848, %853 : vector<8x16xf32>
    %c1_606 = arith.constant 1 : index
    %c50_607 = arith.constant 50 : index
    %855 = memref.load %arg2[%c1_606, %c50_607] : memref<3x100xf32, #tpu.memory_space<smem>>
    %c1_608 = arith.constant 1 : index
    %c0_609 = arith.constant 0 : index
    %c1_610 = arith.constant 1 : index
    %856 = vector.load %arg5[%c1_608, %c0_609, %c1_610] : memref<2x14x22xf32, #tpu.memory_space<vmem>>, vector<1x8x16xf32>
    %857 = vector.shape_cast %856 : vector<1x8x16xf32> to vector<8x16xf32>
    %858 = vector.broadcast %855 : f32 to vector<8x16xf32>
    %859 = arith.mulf %858, %857 : vector<8x16xf32>
    %860 = arith.addf %854, %859 : vector<8x16xf32>
    %c1_611 = arith.constant 1 : index
    %c2_612 = arith.constant 2 : index
    %861 = memref.load %arg2[%c1_611, %c2_612] : memref<3x100xf32, #tpu.memory_space<smem>>
    %c0_613 = arith.constant 0 : index
    %c0_614 = arith.constant 0 : index
    %c2_615 = arith.constant 2 : index
    %862 = vector.load %arg5[%c0_613, %c0_614, %c2_615] : memref<2x14x22xf32, #tpu.memory_space<vmem>>, vector<1x8x16xf32>
    %863 = vector.shape_cast %862 : vector<1x8x16xf32> to vector<8x16xf32>
    %864 = vector.broadcast %861 : f32 to vector<8x16xf32>
    %865 = arith.mulf %864, %863 : vector<8x16xf32>
    %866 = arith.addf %860, %865 : vector<8x16xf32>
    %c1_616 = arith.constant 1 : index
    %c51_617 = arith.constant 51 : index
    %867 = memref.load %arg2[%c1_616, %c51_617] : memref<3x100xf32, #tpu.memory_space<smem>>
    %c1_618 = arith.constant 1 : index
    %c0_619 = arith.constant 0 : index
    %c2_620 = arith.constant 2 : index
    %868 = vector.load %arg5[%c1_618, %c0_619, %c2_620] : memref<2x14x22xf32, #tpu.memory_space<vmem>>, vector<1x8x16xf32>
    %869 = vector.shape_cast %868 : vector<1x8x16xf32> to vector<8x16xf32>
    %870 = vector.broadcast %867 : f32 to vector<8x16xf32>
    %871 = arith.mulf %870, %869 : vector<8x16xf32>
    %872 = arith.addf %866, %871 : vector<8x16xf32>
    %c1_621 = arith.constant 1 : index
    %c3_622 = arith.constant 3 : index
    %873 = memref.load %arg2[%c1_621, %c3_622] : memref<3x100xf32, #tpu.memory_space<smem>>
    %c0_623 = arith.constant 0 : index
    %c0_624 = arith.constant 0 : index
    %c3_625 = arith.constant 3 : index
    %874 = vector.load %arg5[%c0_623, %c0_624, %c3_625] : memref<2x14x22xf32, #tpu.memory_space<vmem>>, vector<1x8x16xf32>
    %875 = vector.shape_cast %874 : vector<1x8x16xf32> to vector<8x16xf32>
    %876 = vector.broadcast %873 : f32 to vector<8x16xf32>
    %877 = arith.mulf %876, %875 : vector<8x16xf32>
    %878 = arith.addf %872, %877 : vector<8x16xf32>
    %c1_626 = arith.constant 1 : index
    %c52_627 = arith.constant 52 : index
    %879 = memref.load %arg2[%c1_626, %c52_627] : memref<3x100xf32, #tpu.memory_space<smem>>
    %c1_628 = arith.constant 1 : index
    %c0_629 = arith.constant 0 : index
    %c3_630 = arith.constant 3 : index
    %880 = vector.load %arg5[%c1_628, %c0_629, %c3_630] : memref<2x14x22xf32, #tpu.memory_space<vmem>>, vector<1x8x16xf32>
    %881 = vector.shape_cast %880 : vector<1x8x16xf32> to vector<8x16xf32>
    %882 = vector.broadcast %879 : f32 to vector<8x16xf32>
    %883 = arith.mulf %882, %881 : vector<8x16xf32>
    %884 = arith.addf %878, %883 : vector<8x16xf32>
    %c1_631 = arith.constant 1 : index
    %c4_632 = arith.constant 4 : index
    %885 = memref.load %arg2[%c1_631, %c4_632] : memref<3x100xf32, #tpu.memory_space<smem>>
    %c0_633 = arith.constant 0 : index
    %c0_634 = arith.constant 0 : index
    %c4_635 = arith.constant 4 : index
    %886 = vector.load %arg5[%c0_633, %c0_634, %c4_635] : memref<2x14x22xf32, #tpu.memory_space<vmem>>, vector<1x8x16xf32>
    %887 = vector.shape_cast %886 : vector<1x8x16xf32> to vector<8x16xf32>
    %888 = vector.broadcast %885 : f32 to vector<8x16xf32>
    %889 = arith.mulf %888, %887 : vector<8x16xf32>
    %890 = arith.addf %884, %889 : vector<8x16xf32>
    %c1_636 = arith.constant 1 : index
    %c53_637 = arith.constant 53 : index
    %891 = memref.load %arg2[%c1_636, %c53_637] : memref<3x100xf32, #tpu.memory_space<smem>>
    %c1_638 = arith.constant 1 : index
    %c0_639 = arith.constant 0 : index
    %c4_640 = arith.constant 4 : index
    %892 = vector.load %arg5[%c1_638, %c0_639, %c4_640] : memref<2x14x22xf32, #tpu.memory_space<vmem>>, vector<1x8x16xf32>
    %893 = vector.shape_cast %892 : vector<1x8x16xf32> to vector<8x16xf32>
    %894 = vector.broadcast %891 : f32 to vector<8x16xf32>
    %895 = arith.mulf %894, %893 : vector<8x16xf32>
    %896 = arith.addf %890, %895 : vector<8x16xf32>
    %c1_641 = arith.constant 1 : index
    %c5_642 = arith.constant 5 : index
    %897 = memref.load %arg2[%c1_641, %c5_642] : memref<3x100xf32, #tpu.memory_space<smem>>
    %c0_643 = arith.constant 0 : index
    %c0_644 = arith.constant 0 : index
    %c5_645 = arith.constant 5 : index
    %898 = vector.load %arg5[%c0_643, %c0_644, %c5_645] : memref<2x14x22xf32, #tpu.memory_space<vmem>>, vector<1x8x16xf32>
    %899 = vector.shape_cast %898 : vector<1x8x16xf32> to vector<8x16xf32>
    %900 = vector.broadcast %897 : f32 to vector<8x16xf32>
    %901 = arith.mulf %900, %899 : vector<8x16xf32>
    %902 = arith.addf %896, %901 : vector<8x16xf32>
    %c1_646 = arith.constant 1 : index
    %c54_647 = arith.constant 54 : index
    %903 = memref.load %arg2[%c1_646, %c54_647] : memref<3x100xf32, #tpu.memory_space<smem>>
    %c1_648 = arith.constant 1 : index
    %c0_649 = arith.constant 0 : index
    %c5_650 = arith.constant 5 : index
    %904 = vector.load %arg5[%c1_648, %c0_649, %c5_650] : memref<2x14x22xf32, #tpu.memory_space<vmem>>, vector<1x8x16xf32>
    %905 = vector.shape_cast %904 : vector<1x8x16xf32> to vector<8x16xf32>
    %906 = vector.broadcast %903 : f32 to vector<8x16xf32>
    %907 = arith.mulf %906, %905 : vector<8x16xf32>
    %908 = arith.addf %902, %907 : vector<8x16xf32>
    %c1_651 = arith.constant 1 : index
    %c6_652 = arith.constant 6 : index
    %909 = memref.load %arg2[%c1_651, %c6_652] : memref<3x100xf32, #tpu.memory_space<smem>>
    %c0_653 = arith.constant 0 : index
    %c0_654 = arith.constant 0 : index
    %c6_655 = arith.constant 6 : index
    %910 = vector.load %arg5[%c0_653, %c0_654, %c6_655] : memref<2x14x22xf32, #tpu.memory_space<vmem>>, vector<1x8x16xf32>
    %911 = vector.shape_cast %910 : vector<1x8x16xf32> to vector<8x16xf32>
    %912 = vector.broadcast %909 : f32 to vector<8x16xf32>
    %913 = arith.mulf %912, %911 : vector<8x16xf32>
    %914 = arith.addf %908, %913 : vector<8x16xf32>
    %c1_656 = arith.constant 1 : index
    %c55_657 = arith.constant 55 : index
    %915 = memref.load %arg2[%c1_656, %c55_657] : memref<3x100xf32, #tpu.memory_space<smem>>
    %c1_658 = arith.constant 1 : index
    %c0_659 = arith.constant 0 : index
    %c6_660 = arith.constant 6 : index
    %916 = vector.load %arg5[%c1_658, %c0_659, %c6_660] : memref<2x14x22xf32, #tpu.memory_space<vmem>>, vector<1x8x16xf32>
    %917 = vector.shape_cast %916 : vector<1x8x16xf32> to vector<8x16xf32>
    %918 = vector.broadcast %915 : f32 to vector<8x16xf32>
    %919 = arith.mulf %918, %917 : vector<8x16xf32>
    %920 = arith.addf %914, %919 : vector<8x16xf32>
    %c1_661 = arith.constant 1 : index
    %c7_662 = arith.constant 7 : index
    %921 = memref.load %arg2[%c1_661, %c7_662] : memref<3x100xf32, #tpu.memory_space<smem>>
    %c0_663 = arith.constant 0 : index
    %c1_664 = arith.constant 1 : index
    %c0_665 = arith.constant 0 : index
    %922 = vector.load %arg5[%c0_663, %c1_664, %c0_665] : memref<2x14x22xf32, #tpu.memory_space<vmem>>, vector<1x8x16xf32>
    %923 = vector.shape_cast %922 : vector<1x8x16xf32> to vector<8x16xf32>
    %924 = vector.broadcast %921 : f32 to vector<8x16xf32>
    %925 = arith.mulf %924, %923 : vector<8x16xf32>
    %926 = arith.addf %920, %925 : vector<8x16xf32>
    %c1_666 = arith.constant 1 : index
    %c56_667 = arith.constant 56 : index
    %927 = memref.load %arg2[%c1_666, %c56_667] : memref<3x100xf32, #tpu.memory_space<smem>>
    %c1_668 = arith.constant 1 : index
    %c1_669 = arith.constant 1 : index
    %c0_670 = arith.constant 0 : index
    %928 = vector.load %arg5[%c1_668, %c1_669, %c0_670] : memref<2x14x22xf32, #tpu.memory_space<vmem>>, vector<1x8x16xf32>
    %929 = vector.shape_cast %928 : vector<1x8x16xf32> to vector<8x16xf32>
    %930 = vector.broadcast %927 : f32 to vector<8x16xf32>
    %931 = arith.mulf %930, %929 : vector<8x16xf32>
    %932 = arith.addf %926, %931 : vector<8x16xf32>
    %c1_671 = arith.constant 1 : index
    %c8_672 = arith.constant 8 : index
    %933 = memref.load %arg2[%c1_671, %c8_672] : memref<3x100xf32, #tpu.memory_space<smem>>
    %c0_673 = arith.constant 0 : index
    %c1_674 = arith.constant 1 : index
    %c1_675 = arith.constant 1 : index
    %934 = vector.load %arg5[%c0_673, %c1_674, %c1_675] : memref<2x14x22xf32, #tpu.memory_space<vmem>>, vector<1x8x16xf32>
    %935 = vector.shape_cast %934 : vector<1x8x16xf32> to vector<8x16xf32>
    %936 = vector.broadcast %933 : f32 to vector<8x16xf32>
    %937 = arith.mulf %936, %935 : vector<8x16xf32>
    %938 = arith.addf %932, %937 : vector<8x16xf32>
    %c1_676 = arith.constant 1 : index
    %c57_677 = arith.constant 57 : index
    %939 = memref.load %arg2[%c1_676, %c57_677] : memref<3x100xf32, #tpu.memory_space<smem>>
    %c1_678 = arith.constant 1 : index
    %c1_679 = arith.constant 1 : index
    %c1_680 = arith.constant 1 : index
    %940 = vector.load %arg5[%c1_678, %c1_679, %c1_680] : memref<2x14x22xf32, #tpu.memory_space<vmem>>, vector<1x8x16xf32>
    %941 = vector.shape_cast %940 : vector<1x8x16xf32> to vector<8x16xf32>
    %942 = vector.broadcast %939 : f32 to vector<8x16xf32>
    %943 = arith.mulf %942, %941 : vector<8x16xf32>
    %944 = arith.addf %938, %943 : vector<8x16xf32>
    %c1_681 = arith.constant 1 : index
    %c9_682 = arith.constant 9 : index
    %945 = memref.load %arg2[%c1_681, %c9_682] : memref<3x100xf32, #tpu.memory_space<smem>>
    %c0_683 = arith.constant 0 : index
    %c1_684 = arith.constant 1 : index
    %c2_685 = arith.constant 2 : index
    %946 = vector.load %arg5[%c0_683, %c1_684, %c2_685] : memref<2x14x22xf32, #tpu.memory_space<vmem>>, vector<1x8x16xf32>
    %947 = vector.shape_cast %946 : vector<1x8x16xf32> to vector<8x16xf32>
    %948 = vector.broadcast %945 : f32 to vector<8x16xf32>
    %949 = arith.mulf %948, %947 : vector<8x16xf32>
    %950 = arith.addf %944, %949 : vector<8x16xf32>
    %c1_686 = arith.constant 1 : index
    %c58_687 = arith.constant 58 : index
    %951 = memref.load %arg2[%c1_686, %c58_687] : memref<3x100xf32, #tpu.memory_space<smem>>
    %c1_688 = arith.constant 1 : index
    %c1_689 = arith.constant 1 : index
    %c2_690 = arith.constant 2 : index
    %952 = vector.load %arg5[%c1_688, %c1_689, %c2_690] : memref<2x14x22xf32, #tpu.memory_space<vmem>>, vector<1x8x16xf32>
    %953 = vector.shape_cast %952 : vector<1x8x16xf32> to vector<8x16xf32>
    %954 = vector.broadcast %951 : f32 to vector<8x16xf32>
    %955 = arith.mulf %954, %953 : vector<8x16xf32>
    %956 = arith.addf %950, %955 : vector<8x16xf32>
    %c1_691 = arith.constant 1 : index
    %c10_692 = arith.constant 10 : index
    %957 = memref.load %arg2[%c1_691, %c10_692] : memref<3x100xf32, #tpu.memory_space<smem>>
    %c0_693 = arith.constant 0 : index
    %c1_694 = arith.constant 1 : index
    %c3_695 = arith.constant 3 : index
    %958 = vector.load %arg5[%c0_693, %c1_694, %c3_695] : memref<2x14x22xf32, #tpu.memory_space<vmem>>, vector<1x8x16xf32>
    %959 = vector.shape_cast %958 : vector<1x8x16xf32> to vector<8x16xf32>
    %960 = vector.broadcast %957 : f32 to vector<8x16xf32>
    %961 = arith.mulf %960, %959 : vector<8x16xf32>
    %962 = arith.addf %956, %961 : vector<8x16xf32>
    %c1_696 = arith.constant 1 : index
    %c59_697 = arith.constant 59 : index
    %963 = memref.load %arg2[%c1_696, %c59_697] : memref<3x100xf32, #tpu.memory_space<smem>>
    %c1_698 = arith.constant 1 : index
    %c1_699 = arith.constant 1 : index
    %c3_700 = arith.constant 3 : index
    %964 = vector.load %arg5[%c1_698, %c1_699, %c3_700] : memref<2x14x22xf32, #tpu.memory_space<vmem>>, vector<1x8x16xf32>
    %965 = vector.shape_cast %964 : vector<1x8x16xf32> to vector<8x16xf32>
    %966 = vector.broadcast %963 : f32 to vector<8x16xf32>
    %967 = arith.mulf %966, %965 : vector<8x16xf32>
    %968 = arith.addf %962, %967 : vector<8x16xf32>
    %c1_701 = arith.constant 1 : index
    %c11_702 = arith.constant 11 : index
    %969 = memref.load %arg2[%c1_701, %c11_702] : memref<3x100xf32, #tpu.memory_space<smem>>
    %c0_703 = arith.constant 0 : index
    %c1_704 = arith.constant 1 : index
    %c4_705 = arith.constant 4 : index
    %970 = vector.load %arg5[%c0_703, %c1_704, %c4_705] : memref<2x14x22xf32, #tpu.memory_space<vmem>>, vector<1x8x16xf32>
    %971 = vector.shape_cast %970 : vector<1x8x16xf32> to vector<8x16xf32>
    %972 = vector.broadcast %969 : f32 to vector<8x16xf32>
    %973 = arith.mulf %972, %971 : vector<8x16xf32>
    %974 = arith.addf %968, %973 : vector<8x16xf32>
    %c1_706 = arith.constant 1 : index
    %c60_707 = arith.constant 60 : index
    %975 = memref.load %arg2[%c1_706, %c60_707] : memref<3x100xf32, #tpu.memory_space<smem>>
    %c1_708 = arith.constant 1 : index
    %c1_709 = arith.constant 1 : index
    %c4_710 = arith.constant 4 : index
    %976 = vector.load %arg5[%c1_708, %c1_709, %c4_710] : memref<2x14x22xf32, #tpu.memory_space<vmem>>, vector<1x8x16xf32>
    %977 = vector.shape_cast %976 : vector<1x8x16xf32> to vector<8x16xf32>
    %978 = vector.broadcast %975 : f32 to vector<8x16xf32>
    %979 = arith.mulf %978, %977 : vector<8x16xf32>
    %980 = arith.addf %974, %979 : vector<8x16xf32>
    %c1_711 = arith.constant 1 : index
    %c12_712 = arith.constant 12 : index
    %981 = memref.load %arg2[%c1_711, %c12_712] : memref<3x100xf32, #tpu.memory_space<smem>>
    %c0_713 = arith.constant 0 : index
    %c1_714 = arith.constant 1 : index
    %c5_715 = arith.constant 5 : index
    %982 = vector.load %arg5[%c0_713, %c1_714, %c5_715] : memref<2x14x22xf32, #tpu.memory_space<vmem>>, vector<1x8x16xf32>
    %983 = vector.shape_cast %982 : vector<1x8x16xf32> to vector<8x16xf32>
    %984 = vector.broadcast %981 : f32 to vector<8x16xf32>
    %985 = arith.mulf %984, %983 : vector<8x16xf32>
    %986 = arith.addf %980, %985 : vector<8x16xf32>
    %c1_716 = arith.constant 1 : index
    %c61_717 = arith.constant 61 : index
    %987 = memref.load %arg2[%c1_716, %c61_717] : memref<3x100xf32, #tpu.memory_space<smem>>
    %c1_718 = arith.constant 1 : index
    %c1_719 = arith.constant 1 : index
    %c5_720 = arith.constant 5 : index
    %988 = vector.load %arg5[%c1_718, %c1_719, %c5_720] : memref<2x14x22xf32, #tpu.memory_space<vmem>>, vector<1x8x16xf32>
    %989 = vector.shape_cast %988 : vector<1x8x16xf32> to vector<8x16xf32>
    %990 = vector.broadcast %987 : f32 to vector<8x16xf32>
    %991 = arith.mulf %990, %989 : vector<8x16xf32>
    %992 = arith.addf %986, %991 : vector<8x16xf32>
    %c1_721 = arith.constant 1 : index
    %c13_722 = arith.constant 13 : index
    %993 = memref.load %arg2[%c1_721, %c13_722] : memref<3x100xf32, #tpu.memory_space<smem>>
    %c0_723 = arith.constant 0 : index
    %c1_724 = arith.constant 1 : index
    %c6_725 = arith.constant 6 : index
    %994 = vector.load %arg5[%c0_723, %c1_724, %c6_725] : memref<2x14x22xf32, #tpu.memory_space<vmem>>, vector<1x8x16xf32>
    %995 = vector.shape_cast %994 : vector<1x8x16xf32> to vector<8x16xf32>
    %996 = vector.broadcast %993 : f32 to vector<8x16xf32>
    %997 = arith.mulf %996, %995 : vector<8x16xf32>
    %998 = arith.addf %992, %997 : vector<8x16xf32>
    %c1_726 = arith.constant 1 : index
    %c62_727 = arith.constant 62 : index
    %999 = memref.load %arg2[%c1_726, %c62_727] : memref<3x100xf32, #tpu.memory_space<smem>>
    %c1_728 = arith.constant 1 : index
    %c1_729 = arith.constant 1 : index
    %c6_730 = arith.constant 6 : index
    %1000 = vector.load %arg5[%c1_728, %c1_729, %c6_730] : memref<2x14x22xf32, #tpu.memory_space<vmem>>, vector<1x8x16xf32>
    %1001 = vector.shape_cast %1000 : vector<1x8x16xf32> to vector<8x16xf32>
    %1002 = vector.broadcast %999 : f32 to vector<8x16xf32>
    %1003 = arith.mulf %1002, %1001 : vector<8x16xf32>
    %1004 = arith.addf %998, %1003 : vector<8x16xf32>
    %c1_731 = arith.constant 1 : index
    %c14_732 = arith.constant 14 : index
    %1005 = memref.load %arg2[%c1_731, %c14_732] : memref<3x100xf32, #tpu.memory_space<smem>>
    %c0_733 = arith.constant 0 : index
    %c2_734 = arith.constant 2 : index
    %c0_735 = arith.constant 0 : index
    %1006 = vector.load %arg5[%c0_733, %c2_734, %c0_735] : memref<2x14x22xf32, #tpu.memory_space<vmem>>, vector<1x8x16xf32>
    %1007 = vector.shape_cast %1006 : vector<1x8x16xf32> to vector<8x16xf32>
    %1008 = vector.broadcast %1005 : f32 to vector<8x16xf32>
    %1009 = arith.mulf %1008, %1007 : vector<8x16xf32>
    %1010 = arith.addf %1004, %1009 : vector<8x16xf32>
    %c1_736 = arith.constant 1 : index
    %c63_737 = arith.constant 63 : index
    %1011 = memref.load %arg2[%c1_736, %c63_737] : memref<3x100xf32, #tpu.memory_space<smem>>
    %c1_738 = arith.constant 1 : index
    %c2_739 = arith.constant 2 : index
    %c0_740 = arith.constant 0 : index
    %1012 = vector.load %arg5[%c1_738, %c2_739, %c0_740] : memref<2x14x22xf32, #tpu.memory_space<vmem>>, vector<1x8x16xf32>
    %1013 = vector.shape_cast %1012 : vector<1x8x16xf32> to vector<8x16xf32>
    %1014 = vector.broadcast %1011 : f32 to vector<8x16xf32>
    %1015 = arith.mulf %1014, %1013 : vector<8x16xf32>
    %1016 = arith.addf %1010, %1015 : vector<8x16xf32>
    %c1_741 = arith.constant 1 : index
    %c15_742 = arith.constant 15 : index
    %1017 = memref.load %arg2[%c1_741, %c15_742] : memref<3x100xf32, #tpu.memory_space<smem>>
    %c0_743 = arith.constant 0 : index
    %c2_744 = arith.constant 2 : index
    %c1_745 = arith.constant 1 : index
    %1018 = vector.load %arg5[%c0_743, %c2_744, %c1_745] : memref<2x14x22xf32, #tpu.memory_space<vmem>>, vector<1x8x16xf32>
    %1019 = vector.shape_cast %1018 : vector<1x8x16xf32> to vector<8x16xf32>
    %1020 = vector.broadcast %1017 : f32 to vector<8x16xf32>
    %1021 = arith.mulf %1020, %1019 : vector<8x16xf32>
    %1022 = arith.addf %1016, %1021 : vector<8x16xf32>
    %c1_746 = arith.constant 1 : index
    %c64_747 = arith.constant 64 : index
    %1023 = memref.load %arg2[%c1_746, %c64_747] : memref<3x100xf32, #tpu.memory_space<smem>>
    %c1_748 = arith.constant 1 : index
    %c2_749 = arith.constant 2 : index
    %c1_750 = arith.constant 1 : index
    %1024 = vector.load %arg5[%c1_748, %c2_749, %c1_750] : memref<2x14x22xf32, #tpu.memory_space<vmem>>, vector<1x8x16xf32>
    %1025 = vector.shape_cast %1024 : vector<1x8x16xf32> to vector<8x16xf32>
    %1026 = vector.broadcast %1023 : f32 to vector<8x16xf32>
    %1027 = arith.mulf %1026, %1025 : vector<8x16xf32>
    %1028 = arith.addf %1022, %1027 : vector<8x16xf32>
    %c1_751 = arith.constant 1 : index
    %c16_752 = arith.constant 16 : index
    %1029 = memref.load %arg2[%c1_751, %c16_752] : memref<3x100xf32, #tpu.memory_space<smem>>
    %c0_753 = arith.constant 0 : index
    %c2_754 = arith.constant 2 : index
    %c2_755 = arith.constant 2 : index
    %1030 = vector.load %arg5[%c0_753, %c2_754, %c2_755] : memref<2x14x22xf32, #tpu.memory_space<vmem>>, vector<1x8x16xf32>
    %1031 = vector.shape_cast %1030 : vector<1x8x16xf32> to vector<8x16xf32>
    %1032 = vector.broadcast %1029 : f32 to vector<8x16xf32>
    %1033 = arith.mulf %1032, %1031 : vector<8x16xf32>
    %1034 = arith.addf %1028, %1033 : vector<8x16xf32>
    %c1_756 = arith.constant 1 : index
    %c65_757 = arith.constant 65 : index
    %1035 = memref.load %arg2[%c1_756, %c65_757] : memref<3x100xf32, #tpu.memory_space<smem>>
    %c1_758 = arith.constant 1 : index
    %c2_759 = arith.constant 2 : index
    %c2_760 = arith.constant 2 : index
    %1036 = vector.load %arg5[%c1_758, %c2_759, %c2_760] : memref<2x14x22xf32, #tpu.memory_space<vmem>>, vector<1x8x16xf32>
    %1037 = vector.shape_cast %1036 : vector<1x8x16xf32> to vector<8x16xf32>
    %1038 = vector.broadcast %1035 : f32 to vector<8x16xf32>
    %1039 = arith.mulf %1038, %1037 : vector<8x16xf32>
    %1040 = arith.addf %1034, %1039 : vector<8x16xf32>
    %c1_761 = arith.constant 1 : index
    %c17_762 = arith.constant 17 : index
    %1041 = memref.load %arg2[%c1_761, %c17_762] : memref<3x100xf32, #tpu.memory_space<smem>>
    %c0_763 = arith.constant 0 : index
    %c2_764 = arith.constant 2 : index
    %c3_765 = arith.constant 3 : index
    %1042 = vector.load %arg5[%c0_763, %c2_764, %c3_765] : memref<2x14x22xf32, #tpu.memory_space<vmem>>, vector<1x8x16xf32>
    %1043 = vector.shape_cast %1042 : vector<1x8x16xf32> to vector<8x16xf32>
    %1044 = vector.broadcast %1041 : f32 to vector<8x16xf32>
    %1045 = arith.mulf %1044, %1043 : vector<8x16xf32>
    %1046 = arith.addf %1040, %1045 : vector<8x16xf32>
    %c1_766 = arith.constant 1 : index
    %c66_767 = arith.constant 66 : index
    %1047 = memref.load %arg2[%c1_766, %c66_767] : memref<3x100xf32, #tpu.memory_space<smem>>
    %c1_768 = arith.constant 1 : index
    %c2_769 = arith.constant 2 : index
    %c3_770 = arith.constant 3 : index
    %1048 = vector.load %arg5[%c1_768, %c2_769, %c3_770] : memref<2x14x22xf32, #tpu.memory_space<vmem>>, vector<1x8x16xf32>
    %1049 = vector.shape_cast %1048 : vector<1x8x16xf32> to vector<8x16xf32>
    %1050 = vector.broadcast %1047 : f32 to vector<8x16xf32>
    %1051 = arith.mulf %1050, %1049 : vector<8x16xf32>
    %1052 = arith.addf %1046, %1051 : vector<8x16xf32>
    %c1_771 = arith.constant 1 : index
    %c18_772 = arith.constant 18 : index
    %1053 = memref.load %arg2[%c1_771, %c18_772] : memref<3x100xf32, #tpu.memory_space<smem>>
    %c0_773 = arith.constant 0 : index
    %c2_774 = arith.constant 2 : index
    %c4_775 = arith.constant 4 : index
    %1054 = vector.load %arg5[%c0_773, %c2_774, %c4_775] : memref<2x14x22xf32, #tpu.memory_space<vmem>>, vector<1x8x16xf32>
    %1055 = vector.shape_cast %1054 : vector<1x8x16xf32> to vector<8x16xf32>
    %1056 = vector.broadcast %1053 : f32 to vector<8x16xf32>
    %1057 = arith.mulf %1056, %1055 : vector<8x16xf32>
    %1058 = arith.addf %1052, %1057 : vector<8x16xf32>
    %c1_776 = arith.constant 1 : index
    %c67_777 = arith.constant 67 : index
    %1059 = memref.load %arg2[%c1_776, %c67_777] : memref<3x100xf32, #tpu.memory_space<smem>>
    %c1_778 = arith.constant 1 : index
    %c2_779 = arith.constant 2 : index
    %c4_780 = arith.constant 4 : index
    %1060 = vector.load %arg5[%c1_778, %c2_779, %c4_780] : memref<2x14x22xf32, #tpu.memory_space<vmem>>, vector<1x8x16xf32>
    %1061 = vector.shape_cast %1060 : vector<1x8x16xf32> to vector<8x16xf32>
    %1062 = vector.broadcast %1059 : f32 to vector<8x16xf32>
    %1063 = arith.mulf %1062, %1061 : vector<8x16xf32>
    %1064 = arith.addf %1058, %1063 : vector<8x16xf32>
    %c1_781 = arith.constant 1 : index
    %c19_782 = arith.constant 19 : index
    %1065 = memref.load %arg2[%c1_781, %c19_782] : memref<3x100xf32, #tpu.memory_space<smem>>
    %c0_783 = arith.constant 0 : index
    %c2_784 = arith.constant 2 : index
    %c5_785 = arith.constant 5 : index
    %1066 = vector.load %arg5[%c0_783, %c2_784, %c5_785] : memref<2x14x22xf32, #tpu.memory_space<vmem>>, vector<1x8x16xf32>
    %1067 = vector.shape_cast %1066 : vector<1x8x16xf32> to vector<8x16xf32>
    %1068 = vector.broadcast %1065 : f32 to vector<8x16xf32>
    %1069 = arith.mulf %1068, %1067 : vector<8x16xf32>
    %1070 = arith.addf %1064, %1069 : vector<8x16xf32>
    %c1_786 = arith.constant 1 : index
    %c68_787 = arith.constant 68 : index
    %1071 = memref.load %arg2[%c1_786, %c68_787] : memref<3x100xf32, #tpu.memory_space<smem>>
    %c1_788 = arith.constant 1 : index
    %c2_789 = arith.constant 2 : index
    %c5_790 = arith.constant 5 : index
    %1072 = vector.load %arg5[%c1_788, %c2_789, %c5_790] : memref<2x14x22xf32, #tpu.memory_space<vmem>>, vector<1x8x16xf32>
    %1073 = vector.shape_cast %1072 : vector<1x8x16xf32> to vector<8x16xf32>
    %1074 = vector.broadcast %1071 : f32 to vector<8x16xf32>
    %1075 = arith.mulf %1074, %1073 : vector<8x16xf32>
    %1076 = arith.addf %1070, %1075 : vector<8x16xf32>
    %c1_791 = arith.constant 1 : index
    %c20_792 = arith.constant 20 : index
    %1077 = memref.load %arg2[%c1_791, %c20_792] : memref<3x100xf32, #tpu.memory_space<smem>>
    %c0_793 = arith.constant 0 : index
    %c2_794 = arith.constant 2 : index
    %c6_795 = arith.constant 6 : index
    %1078 = vector.load %arg5[%c0_793, %c2_794, %c6_795] : memref<2x14x22xf32, #tpu.memory_space<vmem>>, vector<1x8x16xf32>
    %1079 = vector.shape_cast %1078 : vector<1x8x16xf32> to vector<8x16xf32>
    %1080 = vector.broadcast %1077 : f32 to vector<8x16xf32>
    %1081 = arith.mulf %1080, %1079 : vector<8x16xf32>
    %1082 = arith.addf %1076, %1081 : vector<8x16xf32>
    %c1_796 = arith.constant 1 : index
    %c69_797 = arith.constant 69 : index
    %1083 = memref.load %arg2[%c1_796, %c69_797] : memref<3x100xf32, #tpu.memory_space<smem>>
    %c1_798 = arith.constant 1 : index
    %c2_799 = arith.constant 2 : index
    %c6_800 = arith.constant 6 : index
    %1084 = vector.load %arg5[%c1_798, %c2_799, %c6_800] : memref<2x14x22xf32, #tpu.memory_space<vmem>>, vector<1x8x16xf32>
    %1085 = vector.shape_cast %1084 : vector<1x8x16xf32> to vector<8x16xf32>
    %1086 = vector.broadcast %1083 : f32 to vector<8x16xf32>
    %1087 = arith.mulf %1086, %1085 : vector<8x16xf32>
    %1088 = arith.addf %1082, %1087 : vector<8x16xf32>
    %c1_801 = arith.constant 1 : index
    %c21_802 = arith.constant 21 : index
    %1089 = memref.load %arg2[%c1_801, %c21_802] : memref<3x100xf32, #tpu.memory_space<smem>>
    %c0_803 = arith.constant 0 : index
    %c3_804 = arith.constant 3 : index
    %c0_805 = arith.constant 0 : index
    %1090 = vector.load %arg5[%c0_803, %c3_804, %c0_805] : memref<2x14x22xf32, #tpu.memory_space<vmem>>, vector<1x8x16xf32>
    %1091 = vector.shape_cast %1090 : vector<1x8x16xf32> to vector<8x16xf32>
    %1092 = vector.broadcast %1089 : f32 to vector<8x16xf32>
    %1093 = arith.mulf %1092, %1091 : vector<8x16xf32>
    %1094 = arith.addf %1088, %1093 : vector<8x16xf32>
    %c1_806 = arith.constant 1 : index
    %c70_807 = arith.constant 70 : index
    %1095 = memref.load %arg2[%c1_806, %c70_807] : memref<3x100xf32, #tpu.memory_space<smem>>
    %c1_808 = arith.constant 1 : index
    %c3_809 = arith.constant 3 : index
    %c0_810 = arith.constant 0 : index
    %1096 = vector.load %arg5[%c1_808, %c3_809, %c0_810] : memref<2x14x22xf32, #tpu.memory_space<vmem>>, vector<1x8x16xf32>
    %1097 = vector.shape_cast %1096 : vector<1x8x16xf32> to vector<8x16xf32>
    %1098 = vector.broadcast %1095 : f32 to vector<8x16xf32>
    %1099 = arith.mulf %1098, %1097 : vector<8x16xf32>
    %1100 = arith.addf %1094, %1099 : vector<8x16xf32>
    %c1_811 = arith.constant 1 : index
    %c22_812 = arith.constant 22 : index
    %1101 = memref.load %arg2[%c1_811, %c22_812] : memref<3x100xf32, #tpu.memory_space<smem>>
    %c0_813 = arith.constant 0 : index
    %c3_814 = arith.constant 3 : index
    %c1_815 = arith.constant 1 : index
    %1102 = vector.load %arg5[%c0_813, %c3_814, %c1_815] : memref<2x14x22xf32, #tpu.memory_space<vmem>>, vector<1x8x16xf32>
    %1103 = vector.shape_cast %1102 : vector<1x8x16xf32> to vector<8x16xf32>
    %1104 = vector.broadcast %1101 : f32 to vector<8x16xf32>
    %1105 = arith.mulf %1104, %1103 : vector<8x16xf32>
    %1106 = arith.addf %1100, %1105 : vector<8x16xf32>
    %c1_816 = arith.constant 1 : index
    %c71_817 = arith.constant 71 : index
    %1107 = memref.load %arg2[%c1_816, %c71_817] : memref<3x100xf32, #tpu.memory_space<smem>>
    %c1_818 = arith.constant 1 : index
    %c3_819 = arith.constant 3 : index
    %c1_820 = arith.constant 1 : index
    %1108 = vector.load %arg5[%c1_818, %c3_819, %c1_820] : memref<2x14x22xf32, #tpu.memory_space<vmem>>, vector<1x8x16xf32>
    %1109 = vector.shape_cast %1108 : vector<1x8x16xf32> to vector<8x16xf32>
    %1110 = vector.broadcast %1107 : f32 to vector<8x16xf32>
    %1111 = arith.mulf %1110, %1109 : vector<8x16xf32>
    %1112 = arith.addf %1106, %1111 : vector<8x16xf32>
    %c1_821 = arith.constant 1 : index
    %c23_822 = arith.constant 23 : index
    %1113 = memref.load %arg2[%c1_821, %c23_822] : memref<3x100xf32, #tpu.memory_space<smem>>
    %c0_823 = arith.constant 0 : index
    %c3_824 = arith.constant 3 : index
    %c2_825 = arith.constant 2 : index
    %1114 = vector.load %arg5[%c0_823, %c3_824, %c2_825] : memref<2x14x22xf32, #tpu.memory_space<vmem>>, vector<1x8x16xf32>
    %1115 = vector.shape_cast %1114 : vector<1x8x16xf32> to vector<8x16xf32>
    %1116 = vector.broadcast %1113 : f32 to vector<8x16xf32>
    %1117 = arith.mulf %1116, %1115 : vector<8x16xf32>
    %1118 = arith.addf %1112, %1117 : vector<8x16xf32>
    %c1_826 = arith.constant 1 : index
    %c72_827 = arith.constant 72 : index
    %1119 = memref.load %arg2[%c1_826, %c72_827] : memref<3x100xf32, #tpu.memory_space<smem>>
    %c1_828 = arith.constant 1 : index
    %c3_829 = arith.constant 3 : index
    %c2_830 = arith.constant 2 : index
    %1120 = vector.load %arg5[%c1_828, %c3_829, %c2_830] : memref<2x14x22xf32, #tpu.memory_space<vmem>>, vector<1x8x16xf32>
    %1121 = vector.shape_cast %1120 : vector<1x8x16xf32> to vector<8x16xf32>
    %1122 = vector.broadcast %1119 : f32 to vector<8x16xf32>
    %1123 = arith.mulf %1122, %1121 : vector<8x16xf32>
    %1124 = arith.addf %1118, %1123 : vector<8x16xf32>
    %c1_831 = arith.constant 1 : index
    %c24_832 = arith.constant 24 : index
    %1125 = memref.load %arg2[%c1_831, %c24_832] : memref<3x100xf32, #tpu.memory_space<smem>>
    %c0_833 = arith.constant 0 : index
    %c3_834 = arith.constant 3 : index
    %c3_835 = arith.constant 3 : index
    %1126 = vector.load %arg5[%c0_833, %c3_834, %c3_835] : memref<2x14x22xf32, #tpu.memory_space<vmem>>, vector<1x8x16xf32>
    %1127 = vector.shape_cast %1126 : vector<1x8x16xf32> to vector<8x16xf32>
    %1128 = vector.broadcast %1125 : f32 to vector<8x16xf32>
    %1129 = arith.mulf %1128, %1127 : vector<8x16xf32>
    %1130 = arith.addf %1124, %1129 : vector<8x16xf32>
    %c1_836 = arith.constant 1 : index
    %c73_837 = arith.constant 73 : index
    %1131 = memref.load %arg2[%c1_836, %c73_837] : memref<3x100xf32, #tpu.memory_space<smem>>
    %c1_838 = arith.constant 1 : index
    %c3_839 = arith.constant 3 : index
    %c3_840 = arith.constant 3 : index
    %1132 = vector.load %arg5[%c1_838, %c3_839, %c3_840] : memref<2x14x22xf32, #tpu.memory_space<vmem>>, vector<1x8x16xf32>
    %1133 = vector.shape_cast %1132 : vector<1x8x16xf32> to vector<8x16xf32>
    %1134 = vector.broadcast %1131 : f32 to vector<8x16xf32>
    %1135 = arith.mulf %1134, %1133 : vector<8x16xf32>
    %1136 = arith.addf %1130, %1135 : vector<8x16xf32>
    %c1_841 = arith.constant 1 : index
    %c25_842 = arith.constant 25 : index
    %1137 = memref.load %arg2[%c1_841, %c25_842] : memref<3x100xf32, #tpu.memory_space<smem>>
    %c0_843 = arith.constant 0 : index
    %c3_844 = arith.constant 3 : index
    %c4_845 = arith.constant 4 : index
    %1138 = vector.load %arg5[%c0_843, %c3_844, %c4_845] : memref<2x14x22xf32, #tpu.memory_space<vmem>>, vector<1x8x16xf32>
    %1139 = vector.shape_cast %1138 : vector<1x8x16xf32> to vector<8x16xf32>
    %1140 = vector.broadcast %1137 : f32 to vector<8x16xf32>
    %1141 = arith.mulf %1140, %1139 : vector<8x16xf32>
    %1142 = arith.addf %1136, %1141 : vector<8x16xf32>
    %c1_846 = arith.constant 1 : index
    %c74_847 = arith.constant 74 : index
    %1143 = memref.load %arg2[%c1_846, %c74_847] : memref<3x100xf32, #tpu.memory_space<smem>>
    %c1_848 = arith.constant 1 : index
    %c3_849 = arith.constant 3 : index
    %c4_850 = arith.constant 4 : index
    %1144 = vector.load %arg5[%c1_848, %c3_849, %c4_850] : memref<2x14x22xf32, #tpu.memory_space<vmem>>, vector<1x8x16xf32>
    %1145 = vector.shape_cast %1144 : vector<1x8x16xf32> to vector<8x16xf32>
    %1146 = vector.broadcast %1143 : f32 to vector<8x16xf32>
    %1147 = arith.mulf %1146, %1145 : vector<8x16xf32>
    %1148 = arith.addf %1142, %1147 : vector<8x16xf32>
    %c1_851 = arith.constant 1 : index
    %c26_852 = arith.constant 26 : index
    %1149 = memref.load %arg2[%c1_851, %c26_852] : memref<3x100xf32, #tpu.memory_space<smem>>
    %c0_853 = arith.constant 0 : index
    %c3_854 = arith.constant 3 : index
    %c5_855 = arith.constant 5 : index
    %1150 = vector.load %arg5[%c0_853, %c3_854, %c5_855] : memref<2x14x22xf32, #tpu.memory_space<vmem>>, vector<1x8x16xf32>
    %1151 = vector.shape_cast %1150 : vector<1x8x16xf32> to vector<8x16xf32>
    %1152 = vector.broadcast %1149 : f32 to vector<8x16xf32>
    %1153 = arith.mulf %1152, %1151 : vector<8x16xf32>
    %1154 = arith.addf %1148, %1153 : vector<8x16xf32>
    %c1_856 = arith.constant 1 : index
    %c75_857 = arith.constant 75 : index
    %1155 = memref.load %arg2[%c1_856, %c75_857] : memref<3x100xf32, #tpu.memory_space<smem>>
    %c1_858 = arith.constant 1 : index
    %c3_859 = arith.constant 3 : index
    %c5_860 = arith.constant 5 : index
    %1156 = vector.load %arg5[%c1_858, %c3_859, %c5_860] : memref<2x14x22xf32, #tpu.memory_space<vmem>>, vector<1x8x16xf32>
    %1157 = vector.shape_cast %1156 : vector<1x8x16xf32> to vector<8x16xf32>
    %1158 = vector.broadcast %1155 : f32 to vector<8x16xf32>
    %1159 = arith.mulf %1158, %1157 : vector<8x16xf32>
    %1160 = arith.addf %1154, %1159 : vector<8x16xf32>
    %c1_861 = arith.constant 1 : index
    %c27_862 = arith.constant 27 : index
    %1161 = memref.load %arg2[%c1_861, %c27_862] : memref<3x100xf32, #tpu.memory_space<smem>>
    %c0_863 = arith.constant 0 : index
    %c3_864 = arith.constant 3 : index
    %c6_865 = arith.constant 6 : index
    %1162 = vector.load %arg5[%c0_863, %c3_864, %c6_865] : memref<2x14x22xf32, #tpu.memory_space<vmem>>, vector<1x8x16xf32>
    %1163 = vector.shape_cast %1162 : vector<1x8x16xf32> to vector<8x16xf32>
    %1164 = vector.broadcast %1161 : f32 to vector<8x16xf32>
    %1165 = arith.mulf %1164, %1163 : vector<8x16xf32>
    %1166 = arith.addf %1160, %1165 : vector<8x16xf32>
    %c1_866 = arith.constant 1 : index
    %c76_867 = arith.constant 76 : index
    %1167 = memref.load %arg2[%c1_866, %c76_867] : memref<3x100xf32, #tpu.memory_space<smem>>
    %c1_868 = arith.constant 1 : index
    %c3_869 = arith.constant 3 : index
    %c6_870 = arith.constant 6 : index
    %1168 = vector.load %arg5[%c1_868, %c3_869, %c6_870] : memref<2x14x22xf32, #tpu.memory_space<vmem>>, vector<1x8x16xf32>
    %1169 = vector.shape_cast %1168 : vector<1x8x16xf32> to vector<8x16xf32>
    %1170 = vector.broadcast %1167 : f32 to vector<8x16xf32>
    %1171 = arith.mulf %1170, %1169 : vector<8x16xf32>
    %1172 = arith.addf %1166, %1171 : vector<8x16xf32>
    %c1_871 = arith.constant 1 : index
    %c28_872 = arith.constant 28 : index
    %1173 = memref.load %arg2[%c1_871, %c28_872] : memref<3x100xf32, #tpu.memory_space<smem>>
    %c0_873 = arith.constant 0 : index
    %c4_874 = arith.constant 4 : index
    %c0_875 = arith.constant 0 : index
    %1174 = vector.load %arg5[%c0_873, %c4_874, %c0_875] : memref<2x14x22xf32, #tpu.memory_space<vmem>>, vector<1x8x16xf32>
    %1175 = vector.shape_cast %1174 : vector<1x8x16xf32> to vector<8x16xf32>
    %1176 = vector.broadcast %1173 : f32 to vector<8x16xf32>
    %1177 = arith.mulf %1176, %1175 : vector<8x16xf32>
    %1178 = arith.addf %1172, %1177 : vector<8x16xf32>
    %c1_876 = arith.constant 1 : index
    %c77_877 = arith.constant 77 : index
    %1179 = memref.load %arg2[%c1_876, %c77_877] : memref<3x100xf32, #tpu.memory_space<smem>>
    %c1_878 = arith.constant 1 : index
    %c4_879 = arith.constant 4 : index
    %c0_880 = arith.constant 0 : index
    %1180 = vector.load %arg5[%c1_878, %c4_879, %c0_880] : memref<2x14x22xf32, #tpu.memory_space<vmem>>, vector<1x8x16xf32>
    %1181 = vector.shape_cast %1180 : vector<1x8x16xf32> to vector<8x16xf32>
    %1182 = vector.broadcast %1179 : f32 to vector<8x16xf32>
    %1183 = arith.mulf %1182, %1181 : vector<8x16xf32>
    %1184 = arith.addf %1178, %1183 : vector<8x16xf32>
    %c1_881 = arith.constant 1 : index
    %c29_882 = arith.constant 29 : index
    %1185 = memref.load %arg2[%c1_881, %c29_882] : memref<3x100xf32, #tpu.memory_space<smem>>
    %c0_883 = arith.constant 0 : index
    %c4_884 = arith.constant 4 : index
    %c1_885 = arith.constant 1 : index
    %1186 = vector.load %arg5[%c0_883, %c4_884, %c1_885] : memref<2x14x22xf32, #tpu.memory_space<vmem>>, vector<1x8x16xf32>
    %1187 = vector.shape_cast %1186 : vector<1x8x16xf32> to vector<8x16xf32>
    %1188 = vector.broadcast %1185 : f32 to vector<8x16xf32>
    %1189 = arith.mulf %1188, %1187 : vector<8x16xf32>
    %1190 = arith.addf %1184, %1189 : vector<8x16xf32>
    %c1_886 = arith.constant 1 : index
    %c78_887 = arith.constant 78 : index
    %1191 = memref.load %arg2[%c1_886, %c78_887] : memref<3x100xf32, #tpu.memory_space<smem>>
    %c1_888 = arith.constant 1 : index
    %c4_889 = arith.constant 4 : index
    %c1_890 = arith.constant 1 : index
    %1192 = vector.load %arg5[%c1_888, %c4_889, %c1_890] : memref<2x14x22xf32, #tpu.memory_space<vmem>>, vector<1x8x16xf32>
    %1193 = vector.shape_cast %1192 : vector<1x8x16xf32> to vector<8x16xf32>
    %1194 = vector.broadcast %1191 : f32 to vector<8x16xf32>
    %1195 = arith.mulf %1194, %1193 : vector<8x16xf32>
    %1196 = arith.addf %1190, %1195 : vector<8x16xf32>
    %c1_891 = arith.constant 1 : index
    %c30_892 = arith.constant 30 : index
    %1197 = memref.load %arg2[%c1_891, %c30_892] : memref<3x100xf32, #tpu.memory_space<smem>>
    %c0_893 = arith.constant 0 : index
    %c4_894 = arith.constant 4 : index
    %c2_895 = arith.constant 2 : index
    %1198 = vector.load %arg5[%c0_893, %c4_894, %c2_895] : memref<2x14x22xf32, #tpu.memory_space<vmem>>, vector<1x8x16xf32>
    %1199 = vector.shape_cast %1198 : vector<1x8x16xf32> to vector<8x16xf32>
    %1200 = vector.broadcast %1197 : f32 to vector<8x16xf32>
    %1201 = arith.mulf %1200, %1199 : vector<8x16xf32>
    %1202 = arith.addf %1196, %1201 : vector<8x16xf32>
    %c1_896 = arith.constant 1 : index
    %c79_897 = arith.constant 79 : index
    %1203 = memref.load %arg2[%c1_896, %c79_897] : memref<3x100xf32, #tpu.memory_space<smem>>
    %c1_898 = arith.constant 1 : index
    %c4_899 = arith.constant 4 : index
    %c2_900 = arith.constant 2 : index
    %1204 = vector.load %arg5[%c1_898, %c4_899, %c2_900] : memref<2x14x22xf32, #tpu.memory_space<vmem>>, vector<1x8x16xf32>
    %1205 = vector.shape_cast %1204 : vector<1x8x16xf32> to vector<8x16xf32>
    %1206 = vector.broadcast %1203 : f32 to vector<8x16xf32>
    %1207 = arith.mulf %1206, %1205 : vector<8x16xf32>
    %1208 = arith.addf %1202, %1207 : vector<8x16xf32>
    %c1_901 = arith.constant 1 : index
    %c31_902 = arith.constant 31 : index
    %1209 = memref.load %arg2[%c1_901, %c31_902] : memref<3x100xf32, #tpu.memory_space<smem>>
    %c0_903 = arith.constant 0 : index
    %c4_904 = arith.constant 4 : index
    %c3_905 = arith.constant 3 : index
    %1210 = vector.load %arg5[%c0_903, %c4_904, %c3_905] : memref<2x14x22xf32, #tpu.memory_space<vmem>>, vector<1x8x16xf32>
    %1211 = vector.shape_cast %1210 : vector<1x8x16xf32> to vector<8x16xf32>
    %1212 = vector.broadcast %1209 : f32 to vector<8x16xf32>
    %1213 = arith.mulf %1212, %1211 : vector<8x16xf32>
    %1214 = arith.addf %1208, %1213 : vector<8x16xf32>
    %c1_906 = arith.constant 1 : index
    %c80_907 = arith.constant 80 : index
    %1215 = memref.load %arg2[%c1_906, %c80_907] : memref<3x100xf32, #tpu.memory_space<smem>>
    %c1_908 = arith.constant 1 : index
    %c4_909 = arith.constant 4 : index
    %c3_910 = arith.constant 3 : index
    %1216 = vector.load %arg5[%c1_908, %c4_909, %c3_910] : memref<2x14x22xf32, #tpu.memory_space<vmem>>, vector<1x8x16xf32>
    %1217 = vector.shape_cast %1216 : vector<1x8x16xf32> to vector<8x16xf32>
    %1218 = vector.broadcast %1215 : f32 to vector<8x16xf32>
    %1219 = arith.mulf %1218, %1217 : vector<8x16xf32>
    %1220 = arith.addf %1214, %1219 : vector<8x16xf32>
    %c1_911 = arith.constant 1 : index
    %c32_912 = arith.constant 32 : index
    %1221 = memref.load %arg2[%c1_911, %c32_912] : memref<3x100xf32, #tpu.memory_space<smem>>
    %c0_913 = arith.constant 0 : index
    %c4_914 = arith.constant 4 : index
    %c4_915 = arith.constant 4 : index
    %1222 = vector.load %arg5[%c0_913, %c4_914, %c4_915] : memref<2x14x22xf32, #tpu.memory_space<vmem>>, vector<1x8x16xf32>
    %1223 = vector.shape_cast %1222 : vector<1x8x16xf32> to vector<8x16xf32>
    %1224 = vector.broadcast %1221 : f32 to vector<8x16xf32>
    %1225 = arith.mulf %1224, %1223 : vector<8x16xf32>
    %1226 = arith.addf %1220, %1225 : vector<8x16xf32>
    %c1_916 = arith.constant 1 : index
    %c81_917 = arith.constant 81 : index
    %1227 = memref.load %arg2[%c1_916, %c81_917] : memref<3x100xf32, #tpu.memory_space<smem>>
    %c1_918 = arith.constant 1 : index
    %c4_919 = arith.constant 4 : index
    %c4_920 = arith.constant 4 : index
    %1228 = vector.load %arg5[%c1_918, %c4_919, %c4_920] : memref<2x14x22xf32, #tpu.memory_space<vmem>>, vector<1x8x16xf32>
    %1229 = vector.shape_cast %1228 : vector<1x8x16xf32> to vector<8x16xf32>
    %1230 = vector.broadcast %1227 : f32 to vector<8x16xf32>
    %1231 = arith.mulf %1230, %1229 : vector<8x16xf32>
    %1232 = arith.addf %1226, %1231 : vector<8x16xf32>
    %c1_921 = arith.constant 1 : index
    %c33_922 = arith.constant 33 : index
    %1233 = memref.load %arg2[%c1_921, %c33_922] : memref<3x100xf32, #tpu.memory_space<smem>>
    %c0_923 = arith.constant 0 : index
    %c4_924 = arith.constant 4 : index
    %c5_925 = arith.constant 5 : index
    %1234 = vector.load %arg5[%c0_923, %c4_924, %c5_925] : memref<2x14x22xf32, #tpu.memory_space<vmem>>, vector<1x8x16xf32>
    %1235 = vector.shape_cast %1234 : vector<1x8x16xf32> to vector<8x16xf32>
    %1236 = vector.broadcast %1233 : f32 to vector<8x16xf32>
    %1237 = arith.mulf %1236, %1235 : vector<8x16xf32>
    %1238 = arith.addf %1232, %1237 : vector<8x16xf32>
    %c1_926 = arith.constant 1 : index
    %c82_927 = arith.constant 82 : index
    %1239 = memref.load %arg2[%c1_926, %c82_927] : memref<3x100xf32, #tpu.memory_space<smem>>
    %c1_928 = arith.constant 1 : index
    %c4_929 = arith.constant 4 : index
    %c5_930 = arith.constant 5 : index
    %1240 = vector.load %arg5[%c1_928, %c4_929, %c5_930] : memref<2x14x22xf32, #tpu.memory_space<vmem>>, vector<1x8x16xf32>
    %1241 = vector.shape_cast %1240 : vector<1x8x16xf32> to vector<8x16xf32>
    %1242 = vector.broadcast %1239 : f32 to vector<8x16xf32>
    %1243 = arith.mulf %1242, %1241 : vector<8x16xf32>
    %1244 = arith.addf %1238, %1243 : vector<8x16xf32>
    %c1_931 = arith.constant 1 : index
    %c34_932 = arith.constant 34 : index
    %1245 = memref.load %arg2[%c1_931, %c34_932] : memref<3x100xf32, #tpu.memory_space<smem>>
    %c0_933 = arith.constant 0 : index
    %c4_934 = arith.constant 4 : index
    %c6_935 = arith.constant 6 : index
    %1246 = vector.load %arg5[%c0_933, %c4_934, %c6_935] : memref<2x14x22xf32, #tpu.memory_space<vmem>>, vector<1x8x16xf32>
    %1247 = vector.shape_cast %1246 : vector<1x8x16xf32> to vector<8x16xf32>
    %1248 = vector.broadcast %1245 : f32 to vector<8x16xf32>
    %1249 = arith.mulf %1248, %1247 : vector<8x16xf32>
    %1250 = arith.addf %1244, %1249 : vector<8x16xf32>
    %c1_936 = arith.constant 1 : index
    %c83_937 = arith.constant 83 : index
    %1251 = memref.load %arg2[%c1_936, %c83_937] : memref<3x100xf32, #tpu.memory_space<smem>>
    %c1_938 = arith.constant 1 : index
    %c4_939 = arith.constant 4 : index
    %c6_940 = arith.constant 6 : index
    %1252 = vector.load %arg5[%c1_938, %c4_939, %c6_940] : memref<2x14x22xf32, #tpu.memory_space<vmem>>, vector<1x8x16xf32>
    %1253 = vector.shape_cast %1252 : vector<1x8x16xf32> to vector<8x16xf32>
    %1254 = vector.broadcast %1251 : f32 to vector<8x16xf32>
    %1255 = arith.mulf %1254, %1253 : vector<8x16xf32>
    %1256 = arith.addf %1250, %1255 : vector<8x16xf32>
    %c1_941 = arith.constant 1 : index
    %c35_942 = arith.constant 35 : index
    %1257 = memref.load %arg2[%c1_941, %c35_942] : memref<3x100xf32, #tpu.memory_space<smem>>
    %c0_943 = arith.constant 0 : index
    %c5_944 = arith.constant 5 : index
    %c0_945 = arith.constant 0 : index
    %1258 = vector.load %arg5[%c0_943, %c5_944, %c0_945] : memref<2x14x22xf32, #tpu.memory_space<vmem>>, vector<1x8x16xf32>
    %1259 = vector.shape_cast %1258 : vector<1x8x16xf32> to vector<8x16xf32>
    %1260 = vector.broadcast %1257 : f32 to vector<8x16xf32>
    %1261 = arith.mulf %1260, %1259 : vector<8x16xf32>
    %1262 = arith.addf %1256, %1261 : vector<8x16xf32>
    %c1_946 = arith.constant 1 : index
    %c84_947 = arith.constant 84 : index
    %1263 = memref.load %arg2[%c1_946, %c84_947] : memref<3x100xf32, #tpu.memory_space<smem>>
    %c1_948 = arith.constant 1 : index
    %c5_949 = arith.constant 5 : index
    %c0_950 = arith.constant 0 : index
    %1264 = vector.load %arg5[%c1_948, %c5_949, %c0_950] : memref<2x14x22xf32, #tpu.memory_space<vmem>>, vector<1x8x16xf32>
    %1265 = vector.shape_cast %1264 : vector<1x8x16xf32> to vector<8x16xf32>
    %1266 = vector.broadcast %1263 : f32 to vector<8x16xf32>
    %1267 = arith.mulf %1266, %1265 : vector<8x16xf32>
    %1268 = arith.addf %1262, %1267 : vector<8x16xf32>
    %c1_951 = arith.constant 1 : index
    %c36_952 = arith.constant 36 : index
    %1269 = memref.load %arg2[%c1_951, %c36_952] : memref<3x100xf32, #tpu.memory_space<smem>>
    %c0_953 = arith.constant 0 : index
    %c5_954 = arith.constant 5 : index
    %c1_955 = arith.constant 1 : index
    %1270 = vector.load %arg5[%c0_953, %c5_954, %c1_955] : memref<2x14x22xf32, #tpu.memory_space<vmem>>, vector<1x8x16xf32>
    %1271 = vector.shape_cast %1270 : vector<1x8x16xf32> to vector<8x16xf32>
    %1272 = vector.broadcast %1269 : f32 to vector<8x16xf32>
    %1273 = arith.mulf %1272, %1271 : vector<8x16xf32>
    %1274 = arith.addf %1268, %1273 : vector<8x16xf32>
    %c1_956 = arith.constant 1 : index
    %c85_957 = arith.constant 85 : index
    %1275 = memref.load %arg2[%c1_956, %c85_957] : memref<3x100xf32, #tpu.memory_space<smem>>
    %c1_958 = arith.constant 1 : index
    %c5_959 = arith.constant 5 : index
    %c1_960 = arith.constant 1 : index
    %1276 = vector.load %arg5[%c1_958, %c5_959, %c1_960] : memref<2x14x22xf32, #tpu.memory_space<vmem>>, vector<1x8x16xf32>
    %1277 = vector.shape_cast %1276 : vector<1x8x16xf32> to vector<8x16xf32>
    %1278 = vector.broadcast %1275 : f32 to vector<8x16xf32>
    %1279 = arith.mulf %1278, %1277 : vector<8x16xf32>
    %1280 = arith.addf %1274, %1279 : vector<8x16xf32>
    %c1_961 = arith.constant 1 : index
    %c37_962 = arith.constant 37 : index
    %1281 = memref.load %arg2[%c1_961, %c37_962] : memref<3x100xf32, #tpu.memory_space<smem>>
    %c0_963 = arith.constant 0 : index
    %c5_964 = arith.constant 5 : index
    %c2_965 = arith.constant 2 : index
    %1282 = vector.load %arg5[%c0_963, %c5_964, %c2_965] : memref<2x14x22xf32, #tpu.memory_space<vmem>>, vector<1x8x16xf32>
    %1283 = vector.shape_cast %1282 : vector<1x8x16xf32> to vector<8x16xf32>
    %1284 = vector.broadcast %1281 : f32 to vector<8x16xf32>
    %1285 = arith.mulf %1284, %1283 : vector<8x16xf32>
    %1286 = arith.addf %1280, %1285 : vector<8x16xf32>
    %c1_966 = arith.constant 1 : index
    %c86_967 = arith.constant 86 : index
    %1287 = memref.load %arg2[%c1_966, %c86_967] : memref<3x100xf32, #tpu.memory_space<smem>>
    %c1_968 = arith.constant 1 : index
    %c5_969 = arith.constant 5 : index
    %c2_970 = arith.constant 2 : index
    %1288 = vector.load %arg5[%c1_968, %c5_969, %c2_970] : memref<2x14x22xf32, #tpu.memory_space<vmem>>, vector<1x8x16xf32>
    %1289 = vector.shape_cast %1288 : vector<1x8x16xf32> to vector<8x16xf32>
    %1290 = vector.broadcast %1287 : f32 to vector<8x16xf32>
    %1291 = arith.mulf %1290, %1289 : vector<8x16xf32>
    %1292 = arith.addf %1286, %1291 : vector<8x16xf32>
    %c1_971 = arith.constant 1 : index
    %c38_972 = arith.constant 38 : index
    %1293 = memref.load %arg2[%c1_971, %c38_972] : memref<3x100xf32, #tpu.memory_space<smem>>
    %c0_973 = arith.constant 0 : index
    %c5_974 = arith.constant 5 : index
    %c3_975 = arith.constant 3 : index
    %1294 = vector.load %arg5[%c0_973, %c5_974, %c3_975] : memref<2x14x22xf32, #tpu.memory_space<vmem>>, vector<1x8x16xf32>
    %1295 = vector.shape_cast %1294 : vector<1x8x16xf32> to vector<8x16xf32>
    %1296 = vector.broadcast %1293 : f32 to vector<8x16xf32>
    %1297 = arith.mulf %1296, %1295 : vector<8x16xf32>
    %1298 = arith.addf %1292, %1297 : vector<8x16xf32>
    %c1_976 = arith.constant 1 : index
    %c87_977 = arith.constant 87 : index
    %1299 = memref.load %arg2[%c1_976, %c87_977] : memref<3x100xf32, #tpu.memory_space<smem>>
    %c1_978 = arith.constant 1 : index
    %c5_979 = arith.constant 5 : index
    %c3_980 = arith.constant 3 : index
    %1300 = vector.load %arg5[%c1_978, %c5_979, %c3_980] : memref<2x14x22xf32, #tpu.memory_space<vmem>>, vector<1x8x16xf32>
    %1301 = vector.shape_cast %1300 : vector<1x8x16xf32> to vector<8x16xf32>
    %1302 = vector.broadcast %1299 : f32 to vector<8x16xf32>
    %1303 = arith.mulf %1302, %1301 : vector<8x16xf32>
    %1304 = arith.addf %1298, %1303 : vector<8x16xf32>
    %c1_981 = arith.constant 1 : index
    %c39_982 = arith.constant 39 : index
    %1305 = memref.load %arg2[%c1_981, %c39_982] : memref<3x100xf32, #tpu.memory_space<smem>>
    %c0_983 = arith.constant 0 : index
    %c5_984 = arith.constant 5 : index
    %c4_985 = arith.constant 4 : index
    %1306 = vector.load %arg5[%c0_983, %c5_984, %c4_985] : memref<2x14x22xf32, #tpu.memory_space<vmem>>, vector<1x8x16xf32>
    %1307 = vector.shape_cast %1306 : vector<1x8x16xf32> to vector<8x16xf32>
    %1308 = vector.broadcast %1305 : f32 to vector<8x16xf32>
    %1309 = arith.mulf %1308, %1307 : vector<8x16xf32>
    %1310 = arith.addf %1304, %1309 : vector<8x16xf32>
    %c1_986 = arith.constant 1 : index
    %c88_987 = arith.constant 88 : index
    %1311 = memref.load %arg2[%c1_986, %c88_987] : memref<3x100xf32, #tpu.memory_space<smem>>
    %c1_988 = arith.constant 1 : index
    %c5_989 = arith.constant 5 : index
    %c4_990 = arith.constant 4 : index
    %1312 = vector.load %arg5[%c1_988, %c5_989, %c4_990] : memref<2x14x22xf32, #tpu.memory_space<vmem>>, vector<1x8x16xf32>
    %1313 = vector.shape_cast %1312 : vector<1x8x16xf32> to vector<8x16xf32>
    %1314 = vector.broadcast %1311 : f32 to vector<8x16xf32>
    %1315 = arith.mulf %1314, %1313 : vector<8x16xf32>
    %1316 = arith.addf %1310, %1315 : vector<8x16xf32>
    %c1_991 = arith.constant 1 : index
    %c40_992 = arith.constant 40 : index
    %1317 = memref.load %arg2[%c1_991, %c40_992] : memref<3x100xf32, #tpu.memory_space<smem>>
    %c0_993 = arith.constant 0 : index
    %c5_994 = arith.constant 5 : index
    %c5_995 = arith.constant 5 : index
    %1318 = vector.load %arg5[%c0_993, %c5_994, %c5_995] : memref<2x14x22xf32, #tpu.memory_space<vmem>>, vector<1x8x16xf32>
    %1319 = vector.shape_cast %1318 : vector<1x8x16xf32> to vector<8x16xf32>
    %1320 = vector.broadcast %1317 : f32 to vector<8x16xf32>
    %1321 = arith.mulf %1320, %1319 : vector<8x16xf32>
    %1322 = arith.addf %1316, %1321 : vector<8x16xf32>
    %c1_996 = arith.constant 1 : index
    %c89_997 = arith.constant 89 : index
    %1323 = memref.load %arg2[%c1_996, %c89_997] : memref<3x100xf32, #tpu.memory_space<smem>>
    %c1_998 = arith.constant 1 : index
    %c5_999 = arith.constant 5 : index
    %c5_1000 = arith.constant 5 : index
    %1324 = vector.load %arg5[%c1_998, %c5_999, %c5_1000] : memref<2x14x22xf32, #tpu.memory_space<vmem>>, vector<1x8x16xf32>
    %1325 = vector.shape_cast %1324 : vector<1x8x16xf32> to vector<8x16xf32>
    %1326 = vector.broadcast %1323 : f32 to vector<8x16xf32>
    %1327 = arith.mulf %1326, %1325 : vector<8x16xf32>
    %1328 = arith.addf %1322, %1327 : vector<8x16xf32>
    %c1_1001 = arith.constant 1 : index
    %c41_1002 = arith.constant 41 : index
    %1329 = memref.load %arg2[%c1_1001, %c41_1002] : memref<3x100xf32, #tpu.memory_space<smem>>
    %c0_1003 = arith.constant 0 : index
    %c5_1004 = arith.constant 5 : index
    %c6_1005 = arith.constant 6 : index
    %1330 = vector.load %arg5[%c0_1003, %c5_1004, %c6_1005] : memref<2x14x22xf32, #tpu.memory_space<vmem>>, vector<1x8x16xf32>
    %1331 = vector.shape_cast %1330 : vector<1x8x16xf32> to vector<8x16xf32>
    %1332 = vector.broadcast %1329 : f32 to vector<8x16xf32>
    %1333 = arith.mulf %1332, %1331 : vector<8x16xf32>
    %1334 = arith.addf %1328, %1333 : vector<8x16xf32>
    %c1_1006 = arith.constant 1 : index
    %c90_1007 = arith.constant 90 : index
    %1335 = memref.load %arg2[%c1_1006, %c90_1007] : memref<3x100xf32, #tpu.memory_space<smem>>
    %c1_1008 = arith.constant 1 : index
    %c5_1009 = arith.constant 5 : index
    %c6_1010 = arith.constant 6 : index
    %1336 = vector.load %arg5[%c1_1008, %c5_1009, %c6_1010] : memref<2x14x22xf32, #tpu.memory_space<vmem>>, vector<1x8x16xf32>
    %1337 = vector.shape_cast %1336 : vector<1x8x16xf32> to vector<8x16xf32>
    %1338 = vector.broadcast %1335 : f32 to vector<8x16xf32>
    %1339 = arith.mulf %1338, %1337 : vector<8x16xf32>
    %1340 = arith.addf %1334, %1339 : vector<8x16xf32>
    %c1_1011 = arith.constant 1 : index
    %c42_1012 = arith.constant 42 : index
    %1341 = memref.load %arg2[%c1_1011, %c42_1012] : memref<3x100xf32, #tpu.memory_space<smem>>
    %c0_1013 = arith.constant 0 : index
    %c6_1014 = arith.constant 6 : index
    %c0_1015 = arith.constant 0 : index
    %1342 = vector.load %arg5[%c0_1013, %c6_1014, %c0_1015] : memref<2x14x22xf32, #tpu.memory_space<vmem>>, vector<1x8x16xf32>
    %1343 = vector.shape_cast %1342 : vector<1x8x16xf32> to vector<8x16xf32>
    %1344 = vector.broadcast %1341 : f32 to vector<8x16xf32>
    %1345 = arith.mulf %1344, %1343 : vector<8x16xf32>
    %1346 = arith.addf %1340, %1345 : vector<8x16xf32>
    %c1_1016 = arith.constant 1 : index
    %c91_1017 = arith.constant 91 : index
    %1347 = memref.load %arg2[%c1_1016, %c91_1017] : memref<3x100xf32, #tpu.memory_space<smem>>
    %c1_1018 = arith.constant 1 : index
    %c6_1019 = arith.constant 6 : index
    %c0_1020 = arith.constant 0 : index
    %1348 = vector.load %arg5[%c1_1018, %c6_1019, %c0_1020] : memref<2x14x22xf32, #tpu.memory_space<vmem>>, vector<1x8x16xf32>
    %1349 = vector.shape_cast %1348 : vector<1x8x16xf32> to vector<8x16xf32>
    %1350 = vector.broadcast %1347 : f32 to vector<8x16xf32>
    %1351 = arith.mulf %1350, %1349 : vector<8x16xf32>
    %1352 = arith.addf %1346, %1351 : vector<8x16xf32>
    %c1_1021 = arith.constant 1 : index
    %c43_1022 = arith.constant 43 : index
    %1353 = memref.load %arg2[%c1_1021, %c43_1022] : memref<3x100xf32, #tpu.memory_space<smem>>
    %c0_1023 = arith.constant 0 : index
    %c6_1024 = arith.constant 6 : index
    %c1_1025 = arith.constant 1 : index
    %1354 = vector.load %arg5[%c0_1023, %c6_1024, %c1_1025] : memref<2x14x22xf32, #tpu.memory_space<vmem>>, vector<1x8x16xf32>
    %1355 = vector.shape_cast %1354 : vector<1x8x16xf32> to vector<8x16xf32>
    %1356 = vector.broadcast %1353 : f32 to vector<8x16xf32>
    %1357 = arith.mulf %1356, %1355 : vector<8x16xf32>
    %1358 = arith.addf %1352, %1357 : vector<8x16xf32>
    %c1_1026 = arith.constant 1 : index
    %c92_1027 = arith.constant 92 : index
    %1359 = memref.load %arg2[%c1_1026, %c92_1027] : memref<3x100xf32, #tpu.memory_space<smem>>
    %c1_1028 = arith.constant 1 : index
    %c6_1029 = arith.constant 6 : index
    %c1_1030 = arith.constant 1 : index
    %1360 = vector.load %arg5[%c1_1028, %c6_1029, %c1_1030] : memref<2x14x22xf32, #tpu.memory_space<vmem>>, vector<1x8x16xf32>
    %1361 = vector.shape_cast %1360 : vector<1x8x16xf32> to vector<8x16xf32>
    %1362 = vector.broadcast %1359 : f32 to vector<8x16xf32>
    %1363 = arith.mulf %1362, %1361 : vector<8x16xf32>
    %1364 = arith.addf %1358, %1363 : vector<8x16xf32>
    %c1_1031 = arith.constant 1 : index
    %c44_1032 = arith.constant 44 : index
    %1365 = memref.load %arg2[%c1_1031, %c44_1032] : memref<3x100xf32, #tpu.memory_space<smem>>
    %c0_1033 = arith.constant 0 : index
    %c6_1034 = arith.constant 6 : index
    %c2_1035 = arith.constant 2 : index
    %1366 = vector.load %arg5[%c0_1033, %c6_1034, %c2_1035] : memref<2x14x22xf32, #tpu.memory_space<vmem>>, vector<1x8x16xf32>
    %1367 = vector.shape_cast %1366 : vector<1x8x16xf32> to vector<8x16xf32>
    %1368 = vector.broadcast %1365 : f32 to vector<8x16xf32>
    %1369 = arith.mulf %1368, %1367 : vector<8x16xf32>
    %1370 = arith.addf %1364, %1369 : vector<8x16xf32>
    %c1_1036 = arith.constant 1 : index
    %c93_1037 = arith.constant 93 : index
    %1371 = memref.load %arg2[%c1_1036, %c93_1037] : memref<3x100xf32, #tpu.memory_space<smem>>
    %c1_1038 = arith.constant 1 : index
    %c6_1039 = arith.constant 6 : index
    %c2_1040 = arith.constant 2 : index
    %1372 = vector.load %arg5[%c1_1038, %c6_1039, %c2_1040] : memref<2x14x22xf32, #tpu.memory_space<vmem>>, vector<1x8x16xf32>
    %1373 = vector.shape_cast %1372 : vector<1x8x16xf32> to vector<8x16xf32>
    %1374 = vector.broadcast %1371 : f32 to vector<8x16xf32>
    %1375 = arith.mulf %1374, %1373 : vector<8x16xf32>
    %1376 = arith.addf %1370, %1375 : vector<8x16xf32>
    %c1_1041 = arith.constant 1 : index
    %c45_1042 = arith.constant 45 : index
    %1377 = memref.load %arg2[%c1_1041, %c45_1042] : memref<3x100xf32, #tpu.memory_space<smem>>
    %c0_1043 = arith.constant 0 : index
    %c6_1044 = arith.constant 6 : index
    %c3_1045 = arith.constant 3 : index
    %1378 = vector.load %arg5[%c0_1043, %c6_1044, %c3_1045] : memref<2x14x22xf32, #tpu.memory_space<vmem>>, vector<1x8x16xf32>
    %1379 = vector.shape_cast %1378 : vector<1x8x16xf32> to vector<8x16xf32>
    %1380 = vector.broadcast %1377 : f32 to vector<8x16xf32>
    %1381 = arith.mulf %1380, %1379 : vector<8x16xf32>
    %1382 = arith.addf %1376, %1381 : vector<8x16xf32>
    %c1_1046 = arith.constant 1 : index
    %c94_1047 = arith.constant 94 : index
    %1383 = memref.load %arg2[%c1_1046, %c94_1047] : memref<3x100xf32, #tpu.memory_space<smem>>
    %c1_1048 = arith.constant 1 : index
    %c6_1049 = arith.constant 6 : index
    %c3_1050 = arith.constant 3 : index
    %1384 = vector.load %arg5[%c1_1048, %c6_1049, %c3_1050] : memref<2x14x22xf32, #tpu.memory_space<vmem>>, vector<1x8x16xf32>
    %1385 = vector.shape_cast %1384 : vector<1x8x16xf32> to vector<8x16xf32>
    %1386 = vector.broadcast %1383 : f32 to vector<8x16xf32>
    %1387 = arith.mulf %1386, %1385 : vector<8x16xf32>
    %1388 = arith.addf %1382, %1387 : vector<8x16xf32>
    %c1_1051 = arith.constant 1 : index
    %c46_1052 = arith.constant 46 : index
    %1389 = memref.load %arg2[%c1_1051, %c46_1052] : memref<3x100xf32, #tpu.memory_space<smem>>
    %c0_1053 = arith.constant 0 : index
    %c6_1054 = arith.constant 6 : index
    %c4_1055 = arith.constant 4 : index
    %1390 = vector.load %arg5[%c0_1053, %c6_1054, %c4_1055] : memref<2x14x22xf32, #tpu.memory_space<vmem>>, vector<1x8x16xf32>
    %1391 = vector.shape_cast %1390 : vector<1x8x16xf32> to vector<8x16xf32>
    %1392 = vector.broadcast %1389 : f32 to vector<8x16xf32>
    %1393 = arith.mulf %1392, %1391 : vector<8x16xf32>
    %1394 = arith.addf %1388, %1393 : vector<8x16xf32>
    %c1_1056 = arith.constant 1 : index
    %c95_1057 = arith.constant 95 : index
    %1395 = memref.load %arg2[%c1_1056, %c95_1057] : memref<3x100xf32, #tpu.memory_space<smem>>
    %c1_1058 = arith.constant 1 : index
    %c6_1059 = arith.constant 6 : index
    %c4_1060 = arith.constant 4 : index
    %1396 = vector.load %arg5[%c1_1058, %c6_1059, %c4_1060] : memref<2x14x22xf32, #tpu.memory_space<vmem>>, vector<1x8x16xf32>
    %1397 = vector.shape_cast %1396 : vector<1x8x16xf32> to vector<8x16xf32>
    %1398 = vector.broadcast %1395 : f32 to vector<8x16xf32>
    %1399 = arith.mulf %1398, %1397 : vector<8x16xf32>
    %1400 = arith.addf %1394, %1399 : vector<8x16xf32>
    %c1_1061 = arith.constant 1 : index
    %c47_1062 = arith.constant 47 : index
    %1401 = memref.load %arg2[%c1_1061, %c47_1062] : memref<3x100xf32, #tpu.memory_space<smem>>
    %c0_1063 = arith.constant 0 : index
    %c6_1064 = arith.constant 6 : index
    %c5_1065 = arith.constant 5 : index
    %1402 = vector.load %arg5[%c0_1063, %c6_1064, %c5_1065] : memref<2x14x22xf32, #tpu.memory_space<vmem>>, vector<1x8x16xf32>
    %1403 = vector.shape_cast %1402 : vector<1x8x16xf32> to vector<8x16xf32>
    %1404 = vector.broadcast %1401 : f32 to vector<8x16xf32>
    %1405 = arith.mulf %1404, %1403 : vector<8x16xf32>
    %1406 = arith.addf %1400, %1405 : vector<8x16xf32>
    %c1_1066 = arith.constant 1 : index
    %c96_1067 = arith.constant 96 : index
    %1407 = memref.load %arg2[%c1_1066, %c96_1067] : memref<3x100xf32, #tpu.memory_space<smem>>
    %c1_1068 = arith.constant 1 : index
    %c6_1069 = arith.constant 6 : index
    %c5_1070 = arith.constant 5 : index
    %1408 = vector.load %arg5[%c1_1068, %c6_1069, %c5_1070] : memref<2x14x22xf32, #tpu.memory_space<vmem>>, vector<1x8x16xf32>
    %1409 = vector.shape_cast %1408 : vector<1x8x16xf32> to vector<8x16xf32>
    %1410 = vector.broadcast %1407 : f32 to vector<8x16xf32>
    %1411 = arith.mulf %1410, %1409 : vector<8x16xf32>
    %1412 = arith.addf %1406, %1411 : vector<8x16xf32>
    %c1_1071 = arith.constant 1 : index
    %c48_1072 = arith.constant 48 : index
    %1413 = memref.load %arg2[%c1_1071, %c48_1072] : memref<3x100xf32, #tpu.memory_space<smem>>
    %c0_1073 = arith.constant 0 : index
    %c6_1074 = arith.constant 6 : index
    %c6_1075 = arith.constant 6 : index
    %1414 = vector.load %arg5[%c0_1073, %c6_1074, %c6_1075] : memref<2x14x22xf32, #tpu.memory_space<vmem>>, vector<1x8x16xf32>
    %1415 = vector.shape_cast %1414 : vector<1x8x16xf32> to vector<8x16xf32>
    %1416 = vector.broadcast %1413 : f32 to vector<8x16xf32>
    %1417 = arith.mulf %1416, %1415 : vector<8x16xf32>
    %1418 = arith.addf %1412, %1417 : vector<8x16xf32>
    %c1_1076 = arith.constant 1 : index
    %c97_1077 = arith.constant 97 : index
    %1419 = memref.load %arg2[%c1_1076, %c97_1077] : memref<3x100xf32, #tpu.memory_space<smem>>
    %c1_1078 = arith.constant 1 : index
    %c6_1079 = arith.constant 6 : index
    %c6_1080 = arith.constant 6 : index
    %1420 = vector.load %arg5[%c1_1078, %c6_1079, %c6_1080] : memref<2x14x22xf32, #tpu.memory_space<vmem>>, vector<1x8x16xf32>
    %1421 = vector.shape_cast %1420 : vector<1x8x16xf32> to vector<8x16xf32>
    %1422 = vector.broadcast %1419 : f32 to vector<8x16xf32>
    %1423 = arith.mulf %1422, %1421 : vector<8x16xf32>
    %1424 = arith.addf %1418, %1423 : vector<8x16xf32>
    %c1_1081 = arith.constant 1 : index
    %c98_1082 = arith.constant 98 : index
    %1425 = memref.load %arg2[%c1_1081, %c98_1082] : memref<3x100xf32, #tpu.memory_space<smem>>
    %1426 = vector.broadcast %1425 : f32 to vector<8x16xf32>
    %1427 = arith.mulf %1424, %1426 : vector<8x16xf32>
    %c1_1083 = arith.constant 1 : index
    %c99_1084 = arith.constant 99 : index
    %1428 = memref.load %arg2[%c1_1083, %c99_1084] : memref<3x100xf32, #tpu.memory_space<smem>>
    %1429 = vector.broadcast %1428 : f32 to vector<8x16xf32>
    %1430 = arith.addf %1427, %1429 : vector<8x16xf32>
    %1431 = arith.negf %1430 : vector<8x16xf32>
    %1432 = math.exp %1431 : vector<8x16xf32>
    %cst_1085 = arith.constant 1.000000e+00 : f32
    %1433 = vector.broadcast %cst_1085 : f32 to vector<8x16xf32>
    %1434 = arith.addf %1433, %1432 : vector<8x16xf32>
    %1435 = arith.divf %1433, %1434 : vector<8x16xf32>
    %cst_1086 = arith.constant 0.000000e+00 : f32
    %1436 = vector.broadcast %cst_1086 : f32 to vector<16x8xf32>
    %c2_1087 = arith.constant 2 : index
    %c0_1088 = arith.constant 0 : index
    %1437 = memref.load %arg2[%c2_1087, %c0_1088] : memref<3x100xf32, #tpu.memory_space<smem>>
    %c0_1089 = arith.constant 0 : index
    %c0_1090 = arith.constant 0 : index
    %c0_1091 = arith.constant 0 : index
    %1438 = vector.load %arg6[%c0_1089, %c0_1090, %c0_1091] : memref<2x22x14xf32, #tpu.memory_space<vmem>>, vector<1x16x8xf32>
    %1439 = vector.shape_cast %1438 : vector<1x16x8xf32> to vector<16x8xf32>
    %1440 = vector.broadcast %1437 : f32 to vector<16x8xf32>
    %1441 = arith.mulf %1440, %1439 : vector<16x8xf32>
    %1442 = arith.addf %1436, %1441 : vector<16x8xf32>
    %c2_1092 = arith.constant 2 : index
    %c49_1093 = arith.constant 49 : index
    %1443 = memref.load %arg2[%c2_1092, %c49_1093] : memref<3x100xf32, #tpu.memory_space<smem>>
    %c1_1094 = arith.constant 1 : index
    %c0_1095 = arith.constant 0 : index
    %c0_1096 = arith.constant 0 : index
    %1444 = vector.load %arg6[%c1_1094, %c0_1095, %c0_1096] : memref<2x22x14xf32, #tpu.memory_space<vmem>>, vector<1x16x8xf32>
    %1445 = vector.shape_cast %1444 : vector<1x16x8xf32> to vector<16x8xf32>
    %1446 = vector.broadcast %1443 : f32 to vector<16x8xf32>
    %1447 = arith.mulf %1446, %1445 : vector<16x8xf32>
    %1448 = arith.addf %1442, %1447 : vector<16x8xf32>
    %c2_1097 = arith.constant 2 : index
    %c1_1098 = arith.constant 1 : index
    %1449 = memref.load %arg2[%c2_1097, %c1_1098] : memref<3x100xf32, #tpu.memory_space<smem>>
    %c0_1099 = arith.constant 0 : index
    %c0_1100 = arith.constant 0 : index
    %c1_1101 = arith.constant 1 : index
    %1450 = vector.load %arg6[%c0_1099, %c0_1100, %c1_1101] : memref<2x22x14xf32, #tpu.memory_space<vmem>>, vector<1x16x8xf32>
    %1451 = vector.shape_cast %1450 : vector<1x16x8xf32> to vector<16x8xf32>
    %1452 = vector.broadcast %1449 : f32 to vector<16x8xf32>
    %1453 = arith.mulf %1452, %1451 : vector<16x8xf32>
    %1454 = arith.addf %1448, %1453 : vector<16x8xf32>
    %c2_1102 = arith.constant 2 : index
    %c50_1103 = arith.constant 50 : index
    %1455 = memref.load %arg2[%c2_1102, %c50_1103] : memref<3x100xf32, #tpu.memory_space<smem>>
    %c1_1104 = arith.constant 1 : index
    %c0_1105 = arith.constant 0 : index
    %c1_1106 = arith.constant 1 : index
    %1456 = vector.load %arg6[%c1_1104, %c0_1105, %c1_1106] : memref<2x22x14xf32, #tpu.memory_space<vmem>>, vector<1x16x8xf32>
    %1457 = vector.shape_cast %1456 : vector<1x16x8xf32> to vector<16x8xf32>
    %1458 = vector.broadcast %1455 : f32 to vector<16x8xf32>
    %1459 = arith.mulf %1458, %1457 : vector<16x8xf32>
    %1460 = arith.addf %1454, %1459 : vector<16x8xf32>
    %c2_1107 = arith.constant 2 : index
    %c2_1108 = arith.constant 2 : index
    %1461 = memref.load %arg2[%c2_1107, %c2_1108] : memref<3x100xf32, #tpu.memory_space<smem>>
    %c0_1109 = arith.constant 0 : index
    %c0_1110 = arith.constant 0 : index
    %c2_1111 = arith.constant 2 : index
    %1462 = vector.load %arg6[%c0_1109, %c0_1110, %c2_1111] : memref<2x22x14xf32, #tpu.memory_space<vmem>>, vector<1x16x8xf32>
    %1463 = vector.shape_cast %1462 : vector<1x16x8xf32> to vector<16x8xf32>
    %1464 = vector.broadcast %1461 : f32 to vector<16x8xf32>
    %1465 = arith.mulf %1464, %1463 : vector<16x8xf32>
    %1466 = arith.addf %1460, %1465 : vector<16x8xf32>
    %c2_1112 = arith.constant 2 : index
    %c51_1113 = arith.constant 51 : index
    %1467 = memref.load %arg2[%c2_1112, %c51_1113] : memref<3x100xf32, #tpu.memory_space<smem>>
    %c1_1114 = arith.constant 1 : index
    %c0_1115 = arith.constant 0 : index
    %c2_1116 = arith.constant 2 : index
    %1468 = vector.load %arg6[%c1_1114, %c0_1115, %c2_1116] : memref<2x22x14xf32, #tpu.memory_space<vmem>>, vector<1x16x8xf32>
    %1469 = vector.shape_cast %1468 : vector<1x16x8xf32> to vector<16x8xf32>
    %1470 = vector.broadcast %1467 : f32 to vector<16x8xf32>
    %1471 = arith.mulf %1470, %1469 : vector<16x8xf32>
    %1472 = arith.addf %1466, %1471 : vector<16x8xf32>
    %c2_1117 = arith.constant 2 : index
    %c3_1118 = arith.constant 3 : index
    %1473 = memref.load %arg2[%c2_1117, %c3_1118] : memref<3x100xf32, #tpu.memory_space<smem>>
    %c0_1119 = arith.constant 0 : index
    %c0_1120 = arith.constant 0 : index
    %c3_1121 = arith.constant 3 : index
    %1474 = vector.load %arg6[%c0_1119, %c0_1120, %c3_1121] : memref<2x22x14xf32, #tpu.memory_space<vmem>>, vector<1x16x8xf32>
    %1475 = vector.shape_cast %1474 : vector<1x16x8xf32> to vector<16x8xf32>
    %1476 = vector.broadcast %1473 : f32 to vector<16x8xf32>
    %1477 = arith.mulf %1476, %1475 : vector<16x8xf32>
    %1478 = arith.addf %1472, %1477 : vector<16x8xf32>
    %c2_1122 = arith.constant 2 : index
    %c52_1123 = arith.constant 52 : index
    %1479 = memref.load %arg2[%c2_1122, %c52_1123] : memref<3x100xf32, #tpu.memory_space<smem>>
    %c1_1124 = arith.constant 1 : index
    %c0_1125 = arith.constant 0 : index
    %c3_1126 = arith.constant 3 : index
    %1480 = vector.load %arg6[%c1_1124, %c0_1125, %c3_1126] : memref<2x22x14xf32, #tpu.memory_space<vmem>>, vector<1x16x8xf32>
    %1481 = vector.shape_cast %1480 : vector<1x16x8xf32> to vector<16x8xf32>
    %1482 = vector.broadcast %1479 : f32 to vector<16x8xf32>
    %1483 = arith.mulf %1482, %1481 : vector<16x8xf32>
    %1484 = arith.addf %1478, %1483 : vector<16x8xf32>
    %c2_1127 = arith.constant 2 : index
    %c4_1128 = arith.constant 4 : index
    %1485 = memref.load %arg2[%c2_1127, %c4_1128] : memref<3x100xf32, #tpu.memory_space<smem>>
    %c0_1129 = arith.constant 0 : index
    %c0_1130 = arith.constant 0 : index
    %c4_1131 = arith.constant 4 : index
    %1486 = vector.load %arg6[%c0_1129, %c0_1130, %c4_1131] : memref<2x22x14xf32, #tpu.memory_space<vmem>>, vector<1x16x8xf32>
    %1487 = vector.shape_cast %1486 : vector<1x16x8xf32> to vector<16x8xf32>
    %1488 = vector.broadcast %1485 : f32 to vector<16x8xf32>
    %1489 = arith.mulf %1488, %1487 : vector<16x8xf32>
    %1490 = arith.addf %1484, %1489 : vector<16x8xf32>
    %c2_1132 = arith.constant 2 : index
    %c53_1133 = arith.constant 53 : index
    %1491 = memref.load %arg2[%c2_1132, %c53_1133] : memref<3x100xf32, #tpu.memory_space<smem>>
    %c1_1134 = arith.constant 1 : index
    %c0_1135 = arith.constant 0 : index
    %c4_1136 = arith.constant 4 : index
    %1492 = vector.load %arg6[%c1_1134, %c0_1135, %c4_1136] : memref<2x22x14xf32, #tpu.memory_space<vmem>>, vector<1x16x8xf32>
    %1493 = vector.shape_cast %1492 : vector<1x16x8xf32> to vector<16x8xf32>
    %1494 = vector.broadcast %1491 : f32 to vector<16x8xf32>
    %1495 = arith.mulf %1494, %1493 : vector<16x8xf32>
    %1496 = arith.addf %1490, %1495 : vector<16x8xf32>
    %c2_1137 = arith.constant 2 : index
    %c5_1138 = arith.constant 5 : index
    %1497 = memref.load %arg2[%c2_1137, %c5_1138] : memref<3x100xf32, #tpu.memory_space<smem>>
    %c0_1139 = arith.constant 0 : index
    %c0_1140 = arith.constant 0 : index
    %c5_1141 = arith.constant 5 : index
    %1498 = vector.load %arg6[%c0_1139, %c0_1140, %c5_1141] : memref<2x22x14xf32, #tpu.memory_space<vmem>>, vector<1x16x8xf32>
    %1499 = vector.shape_cast %1498 : vector<1x16x8xf32> to vector<16x8xf32>
    %1500 = vector.broadcast %1497 : f32 to vector<16x8xf32>
    %1501 = arith.mulf %1500, %1499 : vector<16x8xf32>
    %1502 = arith.addf %1496, %1501 : vector<16x8xf32>
    %c2_1142 = arith.constant 2 : index
    %c54_1143 = arith.constant 54 : index
    %1503 = memref.load %arg2[%c2_1142, %c54_1143] : memref<3x100xf32, #tpu.memory_space<smem>>
    %c1_1144 = arith.constant 1 : index
    %c0_1145 = arith.constant 0 : index
    %c5_1146 = arith.constant 5 : index
    %1504 = vector.load %arg6[%c1_1144, %c0_1145, %c5_1146] : memref<2x22x14xf32, #tpu.memory_space<vmem>>, vector<1x16x8xf32>
    %1505 = vector.shape_cast %1504 : vector<1x16x8xf32> to vector<16x8xf32>
    %1506 = vector.broadcast %1503 : f32 to vector<16x8xf32>
    %1507 = arith.mulf %1506, %1505 : vector<16x8xf32>
    %1508 = arith.addf %1502, %1507 : vector<16x8xf32>
    %c2_1147 = arith.constant 2 : index
    %c6_1148 = arith.constant 6 : index
    %1509 = memref.load %arg2[%c2_1147, %c6_1148] : memref<3x100xf32, #tpu.memory_space<smem>>
    %c0_1149 = arith.constant 0 : index
    %c0_1150 = arith.constant 0 : index
    %c6_1151 = arith.constant 6 : index
    %1510 = vector.load %arg6[%c0_1149, %c0_1150, %c6_1151] : memref<2x22x14xf32, #tpu.memory_space<vmem>>, vector<1x16x8xf32>
    %1511 = vector.shape_cast %1510 : vector<1x16x8xf32> to vector<16x8xf32>
    %1512 = vector.broadcast %1509 : f32 to vector<16x8xf32>
    %1513 = arith.mulf %1512, %1511 : vector<16x8xf32>
    %1514 = arith.addf %1508, %1513 : vector<16x8xf32>
    %c2_1152 = arith.constant 2 : index
    %c55_1153 = arith.constant 55 : index
    %1515 = memref.load %arg2[%c2_1152, %c55_1153] : memref<3x100xf32, #tpu.memory_space<smem>>
    %c1_1154 = arith.constant 1 : index
    %c0_1155 = arith.constant 0 : index
    %c6_1156 = arith.constant 6 : index
    %1516 = vector.load %arg6[%c1_1154, %c0_1155, %c6_1156] : memref<2x22x14xf32, #tpu.memory_space<vmem>>, vector<1x16x8xf32>
    %1517 = vector.shape_cast %1516 : vector<1x16x8xf32> to vector<16x8xf32>
    %1518 = vector.broadcast %1515 : f32 to vector<16x8xf32>
    %1519 = arith.mulf %1518, %1517 : vector<16x8xf32>
    %1520 = arith.addf %1514, %1519 : vector<16x8xf32>
    %c2_1157 = arith.constant 2 : index
    %c7_1158 = arith.constant 7 : index
    %1521 = memref.load %arg2[%c2_1157, %c7_1158] : memref<3x100xf32, #tpu.memory_space<smem>>
    %c0_1159 = arith.constant 0 : index
    %c1_1160 = arith.constant 1 : index
    %c0_1161 = arith.constant 0 : index
    %1522 = vector.load %arg6[%c0_1159, %c1_1160, %c0_1161] : memref<2x22x14xf32, #tpu.memory_space<vmem>>, vector<1x16x8xf32>
    %1523 = vector.shape_cast %1522 : vector<1x16x8xf32> to vector<16x8xf32>
    %1524 = vector.broadcast %1521 : f32 to vector<16x8xf32>
    %1525 = arith.mulf %1524, %1523 : vector<16x8xf32>
    %1526 = arith.addf %1520, %1525 : vector<16x8xf32>
    %c2_1162 = arith.constant 2 : index
    %c56_1163 = arith.constant 56 : index
    %1527 = memref.load %arg2[%c2_1162, %c56_1163] : memref<3x100xf32, #tpu.memory_space<smem>>
    %c1_1164 = arith.constant 1 : index
    %c1_1165 = arith.constant 1 : index
    %c0_1166 = arith.constant 0 : index
    %1528 = vector.load %arg6[%c1_1164, %c1_1165, %c0_1166] : memref<2x22x14xf32, #tpu.memory_space<vmem>>, vector<1x16x8xf32>
    %1529 = vector.shape_cast %1528 : vector<1x16x8xf32> to vector<16x8xf32>
    %1530 = vector.broadcast %1527 : f32 to vector<16x8xf32>
    %1531 = arith.mulf %1530, %1529 : vector<16x8xf32>
    %1532 = arith.addf %1526, %1531 : vector<16x8xf32>
    %c2_1167 = arith.constant 2 : index
    %c8_1168 = arith.constant 8 : index
    %1533 = memref.load %arg2[%c2_1167, %c8_1168] : memref<3x100xf32, #tpu.memory_space<smem>>
    %c0_1169 = arith.constant 0 : index
    %c1_1170 = arith.constant 1 : index
    %c1_1171 = arith.constant 1 : index
    %1534 = vector.load %arg6[%c0_1169, %c1_1170, %c1_1171] : memref<2x22x14xf32, #tpu.memory_space<vmem>>, vector<1x16x8xf32>
    %1535 = vector.shape_cast %1534 : vector<1x16x8xf32> to vector<16x8xf32>
    %1536 = vector.broadcast %1533 : f32 to vector<16x8xf32>
    %1537 = arith.mulf %1536, %1535 : vector<16x8xf32>
    %1538 = arith.addf %1532, %1537 : vector<16x8xf32>
    %c2_1172 = arith.constant 2 : index
    %c57_1173 = arith.constant 57 : index
    %1539 = memref.load %arg2[%c2_1172, %c57_1173] : memref<3x100xf32, #tpu.memory_space<smem>>
    %c1_1174 = arith.constant 1 : index
    %c1_1175 = arith.constant 1 : index
    %c1_1176 = arith.constant 1 : index
    %1540 = vector.load %arg6[%c1_1174, %c1_1175, %c1_1176] : memref<2x22x14xf32, #tpu.memory_space<vmem>>, vector<1x16x8xf32>
    %1541 = vector.shape_cast %1540 : vector<1x16x8xf32> to vector<16x8xf32>
    %1542 = vector.broadcast %1539 : f32 to vector<16x8xf32>
    %1543 = arith.mulf %1542, %1541 : vector<16x8xf32>
    %1544 = arith.addf %1538, %1543 : vector<16x8xf32>
    %c2_1177 = arith.constant 2 : index
    %c9_1178 = arith.constant 9 : index
    %1545 = memref.load %arg2[%c2_1177, %c9_1178] : memref<3x100xf32, #tpu.memory_space<smem>>
    %c0_1179 = arith.constant 0 : index
    %c1_1180 = arith.constant 1 : index
    %c2_1181 = arith.constant 2 : index
    %1546 = vector.load %arg6[%c0_1179, %c1_1180, %c2_1181] : memref<2x22x14xf32, #tpu.memory_space<vmem>>, vector<1x16x8xf32>
    %1547 = vector.shape_cast %1546 : vector<1x16x8xf32> to vector<16x8xf32>
    %1548 = vector.broadcast %1545 : f32 to vector<16x8xf32>
    %1549 = arith.mulf %1548, %1547 : vector<16x8xf32>
    %1550 = arith.addf %1544, %1549 : vector<16x8xf32>
    %c2_1182 = arith.constant 2 : index
    %c58_1183 = arith.constant 58 : index
    %1551 = memref.load %arg2[%c2_1182, %c58_1183] : memref<3x100xf32, #tpu.memory_space<smem>>
    %c1_1184 = arith.constant 1 : index
    %c1_1185 = arith.constant 1 : index
    %c2_1186 = arith.constant 2 : index
    %1552 = vector.load %arg6[%c1_1184, %c1_1185, %c2_1186] : memref<2x22x14xf32, #tpu.memory_space<vmem>>, vector<1x16x8xf32>
    %1553 = vector.shape_cast %1552 : vector<1x16x8xf32> to vector<16x8xf32>
    %1554 = vector.broadcast %1551 : f32 to vector<16x8xf32>
    %1555 = arith.mulf %1554, %1553 : vector<16x8xf32>
    %1556 = arith.addf %1550, %1555 : vector<16x8xf32>
    %c2_1187 = arith.constant 2 : index
    %c10_1188 = arith.constant 10 : index
    %1557 = memref.load %arg2[%c2_1187, %c10_1188] : memref<3x100xf32, #tpu.memory_space<smem>>
    %c0_1189 = arith.constant 0 : index
    %c1_1190 = arith.constant 1 : index
    %c3_1191 = arith.constant 3 : index
    %1558 = vector.load %arg6[%c0_1189, %c1_1190, %c3_1191] : memref<2x22x14xf32, #tpu.memory_space<vmem>>, vector<1x16x8xf32>
    %1559 = vector.shape_cast %1558 : vector<1x16x8xf32> to vector<16x8xf32>
    %1560 = vector.broadcast %1557 : f32 to vector<16x8xf32>
    %1561 = arith.mulf %1560, %1559 : vector<16x8xf32>
    %1562 = arith.addf %1556, %1561 : vector<16x8xf32>
    %c2_1192 = arith.constant 2 : index
    %c59_1193 = arith.constant 59 : index
    %1563 = memref.load %arg2[%c2_1192, %c59_1193] : memref<3x100xf32, #tpu.memory_space<smem>>
    %c1_1194 = arith.constant 1 : index
    %c1_1195 = arith.constant 1 : index
    %c3_1196 = arith.constant 3 : index
    %1564 = vector.load %arg6[%c1_1194, %c1_1195, %c3_1196] : memref<2x22x14xf32, #tpu.memory_space<vmem>>, vector<1x16x8xf32>
    %1565 = vector.shape_cast %1564 : vector<1x16x8xf32> to vector<16x8xf32>
    %1566 = vector.broadcast %1563 : f32 to vector<16x8xf32>
    %1567 = arith.mulf %1566, %1565 : vector<16x8xf32>
    %1568 = arith.addf %1562, %1567 : vector<16x8xf32>
    %c2_1197 = arith.constant 2 : index
    %c11_1198 = arith.constant 11 : index
    %1569 = memref.load %arg2[%c2_1197, %c11_1198] : memref<3x100xf32, #tpu.memory_space<smem>>
    %c0_1199 = arith.constant 0 : index
    %c1_1200 = arith.constant 1 : index
    %c4_1201 = arith.constant 4 : index
    %1570 = vector.load %arg6[%c0_1199, %c1_1200, %c4_1201] : memref<2x22x14xf32, #tpu.memory_space<vmem>>, vector<1x16x8xf32>
    %1571 = vector.shape_cast %1570 : vector<1x16x8xf32> to vector<16x8xf32>
    %1572 = vector.broadcast %1569 : f32 to vector<16x8xf32>
    %1573 = arith.mulf %1572, %1571 : vector<16x8xf32>
    %1574 = arith.addf %1568, %1573 : vector<16x8xf32>
    %c2_1202 = arith.constant 2 : index
    %c60_1203 = arith.constant 60 : index
    %1575 = memref.load %arg2[%c2_1202, %c60_1203] : memref<3x100xf32, #tpu.memory_space<smem>>
    %c1_1204 = arith.constant 1 : index
    %c1_1205 = arith.constant 1 : index
    %c4_1206 = arith.constant 4 : index
    %1576 = vector.load %arg6[%c1_1204, %c1_1205, %c4_1206] : memref<2x22x14xf32, #tpu.memory_space<vmem>>, vector<1x16x8xf32>
    %1577 = vector.shape_cast %1576 : vector<1x16x8xf32> to vector<16x8xf32>
    %1578 = vector.broadcast %1575 : f32 to vector<16x8xf32>
    %1579 = arith.mulf %1578, %1577 : vector<16x8xf32>
    %1580 = arith.addf %1574, %1579 : vector<16x8xf32>
    %c2_1207 = arith.constant 2 : index
    %c12_1208 = arith.constant 12 : index
    %1581 = memref.load %arg2[%c2_1207, %c12_1208] : memref<3x100xf32, #tpu.memory_space<smem>>
    %c0_1209 = arith.constant 0 : index
    %c1_1210 = arith.constant 1 : index
    %c5_1211 = arith.constant 5 : index
    %1582 = vector.load %arg6[%c0_1209, %c1_1210, %c5_1211] : memref<2x22x14xf32, #tpu.memory_space<vmem>>, vector<1x16x8xf32>
    %1583 = vector.shape_cast %1582 : vector<1x16x8xf32> to vector<16x8xf32>
    %1584 = vector.broadcast %1581 : f32 to vector<16x8xf32>
    %1585 = arith.mulf %1584, %1583 : vector<16x8xf32>
    %1586 = arith.addf %1580, %1585 : vector<16x8xf32>
    %c2_1212 = arith.constant 2 : index
    %c61_1213 = arith.constant 61 : index
    %1587 = memref.load %arg2[%c2_1212, %c61_1213] : memref<3x100xf32, #tpu.memory_space<smem>>
    %c1_1214 = arith.constant 1 : index
    %c1_1215 = arith.constant 1 : index
    %c5_1216 = arith.constant 5 : index
    %1588 = vector.load %arg6[%c1_1214, %c1_1215, %c5_1216] : memref<2x22x14xf32, #tpu.memory_space<vmem>>, vector<1x16x8xf32>
    %1589 = vector.shape_cast %1588 : vector<1x16x8xf32> to vector<16x8xf32>
    %1590 = vector.broadcast %1587 : f32 to vector<16x8xf32>
    %1591 = arith.mulf %1590, %1589 : vector<16x8xf32>
    %1592 = arith.addf %1586, %1591 : vector<16x8xf32>
    %c2_1217 = arith.constant 2 : index
    %c13_1218 = arith.constant 13 : index
    %1593 = memref.load %arg2[%c2_1217, %c13_1218] : memref<3x100xf32, #tpu.memory_space<smem>>
    %c0_1219 = arith.constant 0 : index
    %c1_1220 = arith.constant 1 : index
    %c6_1221 = arith.constant 6 : index
    %1594 = vector.load %arg6[%c0_1219, %c1_1220, %c6_1221] : memref<2x22x14xf32, #tpu.memory_space<vmem>>, vector<1x16x8xf32>
    %1595 = vector.shape_cast %1594 : vector<1x16x8xf32> to vector<16x8xf32>
    %1596 = vector.broadcast %1593 : f32 to vector<16x8xf32>
    %1597 = arith.mulf %1596, %1595 : vector<16x8xf32>
    %1598 = arith.addf %1592, %1597 : vector<16x8xf32>
    %c2_1222 = arith.constant 2 : index
    %c62_1223 = arith.constant 62 : index
    %1599 = memref.load %arg2[%c2_1222, %c62_1223] : memref<3x100xf32, #tpu.memory_space<smem>>
    %c1_1224 = arith.constant 1 : index
    %c1_1225 = arith.constant 1 : index
    %c6_1226 = arith.constant 6 : index
    %1600 = vector.load %arg6[%c1_1224, %c1_1225, %c6_1226] : memref<2x22x14xf32, #tpu.memory_space<vmem>>, vector<1x16x8xf32>
    %1601 = vector.shape_cast %1600 : vector<1x16x8xf32> to vector<16x8xf32>
    %1602 = vector.broadcast %1599 : f32 to vector<16x8xf32>
    %1603 = arith.mulf %1602, %1601 : vector<16x8xf32>
    %1604 = arith.addf %1598, %1603 : vector<16x8xf32>
    %c2_1227 = arith.constant 2 : index
    %c14_1228 = arith.constant 14 : index
    %1605 = memref.load %arg2[%c2_1227, %c14_1228] : memref<3x100xf32, #tpu.memory_space<smem>>
    %c0_1229 = arith.constant 0 : index
    %c2_1230 = arith.constant 2 : index
    %c0_1231 = arith.constant 0 : index
    %1606 = vector.load %arg6[%c0_1229, %c2_1230, %c0_1231] : memref<2x22x14xf32, #tpu.memory_space<vmem>>, vector<1x16x8xf32>
    %1607 = vector.shape_cast %1606 : vector<1x16x8xf32> to vector<16x8xf32>
    %1608 = vector.broadcast %1605 : f32 to vector<16x8xf32>
    %1609 = arith.mulf %1608, %1607 : vector<16x8xf32>
    %1610 = arith.addf %1604, %1609 : vector<16x8xf32>
    %c2_1232 = arith.constant 2 : index
    %c63_1233 = arith.constant 63 : index
    %1611 = memref.load %arg2[%c2_1232, %c63_1233] : memref<3x100xf32, #tpu.memory_space<smem>>
    %c1_1234 = arith.constant 1 : index
    %c2_1235 = arith.constant 2 : index
    %c0_1236 = arith.constant 0 : index
    %1612 = vector.load %arg6[%c1_1234, %c2_1235, %c0_1236] : memref<2x22x14xf32, #tpu.memory_space<vmem>>, vector<1x16x8xf32>
    %1613 = vector.shape_cast %1612 : vector<1x16x8xf32> to vector<16x8xf32>
    %1614 = vector.broadcast %1611 : f32 to vector<16x8xf32>
    %1615 = arith.mulf %1614, %1613 : vector<16x8xf32>
    %1616 = arith.addf %1610, %1615 : vector<16x8xf32>
    %c2_1237 = arith.constant 2 : index
    %c15_1238 = arith.constant 15 : index
    %1617 = memref.load %arg2[%c2_1237, %c15_1238] : memref<3x100xf32, #tpu.memory_space<smem>>
    %c0_1239 = arith.constant 0 : index
    %c2_1240 = arith.constant 2 : index
    %c1_1241 = arith.constant 1 : index
    %1618 = vector.load %arg6[%c0_1239, %c2_1240, %c1_1241] : memref<2x22x14xf32, #tpu.memory_space<vmem>>, vector<1x16x8xf32>
    %1619 = vector.shape_cast %1618 : vector<1x16x8xf32> to vector<16x8xf32>
    %1620 = vector.broadcast %1617 : f32 to vector<16x8xf32>
    %1621 = arith.mulf %1620, %1619 : vector<16x8xf32>
    %1622 = arith.addf %1616, %1621 : vector<16x8xf32>
    %c2_1242 = arith.constant 2 : index
    %c64_1243 = arith.constant 64 : index
    %1623 = memref.load %arg2[%c2_1242, %c64_1243] : memref<3x100xf32, #tpu.memory_space<smem>>
    %c1_1244 = arith.constant 1 : index
    %c2_1245 = arith.constant 2 : index
    %c1_1246 = arith.constant 1 : index
    %1624 = vector.load %arg6[%c1_1244, %c2_1245, %c1_1246] : memref<2x22x14xf32, #tpu.memory_space<vmem>>, vector<1x16x8xf32>
    %1625 = vector.shape_cast %1624 : vector<1x16x8xf32> to vector<16x8xf32>
    %1626 = vector.broadcast %1623 : f32 to vector<16x8xf32>
    %1627 = arith.mulf %1626, %1625 : vector<16x8xf32>
    %1628 = arith.addf %1622, %1627 : vector<16x8xf32>
    %c2_1247 = arith.constant 2 : index
    %c16_1248 = arith.constant 16 : index
    %1629 = memref.load %arg2[%c2_1247, %c16_1248] : memref<3x100xf32, #tpu.memory_space<smem>>
    %c0_1249 = arith.constant 0 : index
    %c2_1250 = arith.constant 2 : index
    %c2_1251 = arith.constant 2 : index
    %1630 = vector.load %arg6[%c0_1249, %c2_1250, %c2_1251] : memref<2x22x14xf32, #tpu.memory_space<vmem>>, vector<1x16x8xf32>
    %1631 = vector.shape_cast %1630 : vector<1x16x8xf32> to vector<16x8xf32>
    %1632 = vector.broadcast %1629 : f32 to vector<16x8xf32>
    %1633 = arith.mulf %1632, %1631 : vector<16x8xf32>
    %1634 = arith.addf %1628, %1633 : vector<16x8xf32>
    %c2_1252 = arith.constant 2 : index
    %c65_1253 = arith.constant 65 : index
    %1635 = memref.load %arg2[%c2_1252, %c65_1253] : memref<3x100xf32, #tpu.memory_space<smem>>
    %c1_1254 = arith.constant 1 : index
    %c2_1255 = arith.constant 2 : index
    %c2_1256 = arith.constant 2 : index
    %1636 = vector.load %arg6[%c1_1254, %c2_1255, %c2_1256] : memref<2x22x14xf32, #tpu.memory_space<vmem>>, vector<1x16x8xf32>
    %1637 = vector.shape_cast %1636 : vector<1x16x8xf32> to vector<16x8xf32>
    %1638 = vector.broadcast %1635 : f32 to vector<16x8xf32>
    %1639 = arith.mulf %1638, %1637 : vector<16x8xf32>
    %1640 = arith.addf %1634, %1639 : vector<16x8xf32>
    %c2_1257 = arith.constant 2 : index
    %c17_1258 = arith.constant 17 : index
    %1641 = memref.load %arg2[%c2_1257, %c17_1258] : memref<3x100xf32, #tpu.memory_space<smem>>
    %c0_1259 = arith.constant 0 : index
    %c2_1260 = arith.constant 2 : index
    %c3_1261 = arith.constant 3 : index
    %1642 = vector.load %arg6[%c0_1259, %c2_1260, %c3_1261] : memref<2x22x14xf32, #tpu.memory_space<vmem>>, vector<1x16x8xf32>
    %1643 = vector.shape_cast %1642 : vector<1x16x8xf32> to vector<16x8xf32>
    %1644 = vector.broadcast %1641 : f32 to vector<16x8xf32>
    %1645 = arith.mulf %1644, %1643 : vector<16x8xf32>
    %1646 = arith.addf %1640, %1645 : vector<16x8xf32>
    %c2_1262 = arith.constant 2 : index
    %c66_1263 = arith.constant 66 : index
    %1647 = memref.load %arg2[%c2_1262, %c66_1263] : memref<3x100xf32, #tpu.memory_space<smem>>
    %c1_1264 = arith.constant 1 : index
    %c2_1265 = arith.constant 2 : index
    %c3_1266 = arith.constant 3 : index
    %1648 = vector.load %arg6[%c1_1264, %c2_1265, %c3_1266] : memref<2x22x14xf32, #tpu.memory_space<vmem>>, vector<1x16x8xf32>
    %1649 = vector.shape_cast %1648 : vector<1x16x8xf32> to vector<16x8xf32>
    %1650 = vector.broadcast %1647 : f32 to vector<16x8xf32>
    %1651 = arith.mulf %1650, %1649 : vector<16x8xf32>
    %1652 = arith.addf %1646, %1651 : vector<16x8xf32>
    %c2_1267 = arith.constant 2 : index
    %c18_1268 = arith.constant 18 : index
    %1653 = memref.load %arg2[%c2_1267, %c18_1268] : memref<3x100xf32, #tpu.memory_space<smem>>
    %c0_1269 = arith.constant 0 : index
    %c2_1270 = arith.constant 2 : index
    %c4_1271 = arith.constant 4 : index
    %1654 = vector.load %arg6[%c0_1269, %c2_1270, %c4_1271] : memref<2x22x14xf32, #tpu.memory_space<vmem>>, vector<1x16x8xf32>
    %1655 = vector.shape_cast %1654 : vector<1x16x8xf32> to vector<16x8xf32>
    %1656 = vector.broadcast %1653 : f32 to vector<16x8xf32>
    %1657 = arith.mulf %1656, %1655 : vector<16x8xf32>
    %1658 = arith.addf %1652, %1657 : vector<16x8xf32>
    %c2_1272 = arith.constant 2 : index
    %c67_1273 = arith.constant 67 : index
    %1659 = memref.load %arg2[%c2_1272, %c67_1273] : memref<3x100xf32, #tpu.memory_space<smem>>
    %c1_1274 = arith.constant 1 : index
    %c2_1275 = arith.constant 2 : index
    %c4_1276 = arith.constant 4 : index
    %1660 = vector.load %arg6[%c1_1274, %c2_1275, %c4_1276] : memref<2x22x14xf32, #tpu.memory_space<vmem>>, vector<1x16x8xf32>
    %1661 = vector.shape_cast %1660 : vector<1x16x8xf32> to vector<16x8xf32>
    %1662 = vector.broadcast %1659 : f32 to vector<16x8xf32>
    %1663 = arith.mulf %1662, %1661 : vector<16x8xf32>
    %1664 = arith.addf %1658, %1663 : vector<16x8xf32>
    %c2_1277 = arith.constant 2 : index
    %c19_1278 = arith.constant 19 : index
    %1665 = memref.load %arg2[%c2_1277, %c19_1278] : memref<3x100xf32, #tpu.memory_space<smem>>
    %c0_1279 = arith.constant 0 : index
    %c2_1280 = arith.constant 2 : index
    %c5_1281 = arith.constant 5 : index
    %1666 = vector.load %arg6[%c0_1279, %c2_1280, %c5_1281] : memref<2x22x14xf32, #tpu.memory_space<vmem>>, vector<1x16x8xf32>
    %1667 = vector.shape_cast %1666 : vector<1x16x8xf32> to vector<16x8xf32>
    %1668 = vector.broadcast %1665 : f32 to vector<16x8xf32>
    %1669 = arith.mulf %1668, %1667 : vector<16x8xf32>
    %1670 = arith.addf %1664, %1669 : vector<16x8xf32>
    %c2_1282 = arith.constant 2 : index
    %c68_1283 = arith.constant 68 : index
    %1671 = memref.load %arg2[%c2_1282, %c68_1283] : memref<3x100xf32, #tpu.memory_space<smem>>
    %c1_1284 = arith.constant 1 : index
    %c2_1285 = arith.constant 2 : index
    %c5_1286 = arith.constant 5 : index
    %1672 = vector.load %arg6[%c1_1284, %c2_1285, %c5_1286] : memref<2x22x14xf32, #tpu.memory_space<vmem>>, vector<1x16x8xf32>
    %1673 = vector.shape_cast %1672 : vector<1x16x8xf32> to vector<16x8xf32>
    %1674 = vector.broadcast %1671 : f32 to vector<16x8xf32>
    %1675 = arith.mulf %1674, %1673 : vector<16x8xf32>
    %1676 = arith.addf %1670, %1675 : vector<16x8xf32>
    %c2_1287 = arith.constant 2 : index
    %c20_1288 = arith.constant 20 : index
    %1677 = memref.load %arg2[%c2_1287, %c20_1288] : memref<3x100xf32, #tpu.memory_space<smem>>
    %c0_1289 = arith.constant 0 : index
    %c2_1290 = arith.constant 2 : index
    %c6_1291 = arith.constant 6 : index
    %1678 = vector.load %arg6[%c0_1289, %c2_1290, %c6_1291] : memref<2x22x14xf32, #tpu.memory_space<vmem>>, vector<1x16x8xf32>
    %1679 = vector.shape_cast %1678 : vector<1x16x8xf32> to vector<16x8xf32>
    %1680 = vector.broadcast %1677 : f32 to vector<16x8xf32>
    %1681 = arith.mulf %1680, %1679 : vector<16x8xf32>
    %1682 = arith.addf %1676, %1681 : vector<16x8xf32>
    %c2_1292 = arith.constant 2 : index
    %c69_1293 = arith.constant 69 : index
    %1683 = memref.load %arg2[%c2_1292, %c69_1293] : memref<3x100xf32, #tpu.memory_space<smem>>
    %c1_1294 = arith.constant 1 : index
    %c2_1295 = arith.constant 2 : index
    %c6_1296 = arith.constant 6 : index
    %1684 = vector.load %arg6[%c1_1294, %c2_1295, %c6_1296] : memref<2x22x14xf32, #tpu.memory_space<vmem>>, vector<1x16x8xf32>
    %1685 = vector.shape_cast %1684 : vector<1x16x8xf32> to vector<16x8xf32>
    %1686 = vector.broadcast %1683 : f32 to vector<16x8xf32>
    %1687 = arith.mulf %1686, %1685 : vector<16x8xf32>
    %1688 = arith.addf %1682, %1687 : vector<16x8xf32>
    %c2_1297 = arith.constant 2 : index
    %c21_1298 = arith.constant 21 : index
    %1689 = memref.load %arg2[%c2_1297, %c21_1298] : memref<3x100xf32, #tpu.memory_space<smem>>
    %c0_1299 = arith.constant 0 : index
    %c3_1300 = arith.constant 3 : index
    %c0_1301 = arith.constant 0 : index
    %1690 = vector.load %arg6[%c0_1299, %c3_1300, %c0_1301] : memref<2x22x14xf32, #tpu.memory_space<vmem>>, vector<1x16x8xf32>
    %1691 = vector.shape_cast %1690 : vector<1x16x8xf32> to vector<16x8xf32>
    %1692 = vector.broadcast %1689 : f32 to vector<16x8xf32>
    %1693 = arith.mulf %1692, %1691 : vector<16x8xf32>
    %1694 = arith.addf %1688, %1693 : vector<16x8xf32>
    %c2_1302 = arith.constant 2 : index
    %c70_1303 = arith.constant 70 : index
    %1695 = memref.load %arg2[%c2_1302, %c70_1303] : memref<3x100xf32, #tpu.memory_space<smem>>
    %c1_1304 = arith.constant 1 : index
    %c3_1305 = arith.constant 3 : index
    %c0_1306 = arith.constant 0 : index
    %1696 = vector.load %arg6[%c1_1304, %c3_1305, %c0_1306] : memref<2x22x14xf32, #tpu.memory_space<vmem>>, vector<1x16x8xf32>
    %1697 = vector.shape_cast %1696 : vector<1x16x8xf32> to vector<16x8xf32>
    %1698 = vector.broadcast %1695 : f32 to vector<16x8xf32>
    %1699 = arith.mulf %1698, %1697 : vector<16x8xf32>
    %1700 = arith.addf %1694, %1699 : vector<16x8xf32>
    %c2_1307 = arith.constant 2 : index
    %c22_1308 = arith.constant 22 : index
    %1701 = memref.load %arg2[%c2_1307, %c22_1308] : memref<3x100xf32, #tpu.memory_space<smem>>
    %c0_1309 = arith.constant 0 : index
    %c3_1310 = arith.constant 3 : index
    %c1_1311 = arith.constant 1 : index
    %1702 = vector.load %arg6[%c0_1309, %c3_1310, %c1_1311] : memref<2x22x14xf32, #tpu.memory_space<vmem>>, vector<1x16x8xf32>
    %1703 = vector.shape_cast %1702 : vector<1x16x8xf32> to vector<16x8xf32>
    %1704 = vector.broadcast %1701 : f32 to vector<16x8xf32>
    %1705 = arith.mulf %1704, %1703 : vector<16x8xf32>
    %1706 = arith.addf %1700, %1705 : vector<16x8xf32>
    %c2_1312 = arith.constant 2 : index
    %c71_1313 = arith.constant 71 : index
    %1707 = memref.load %arg2[%c2_1312, %c71_1313] : memref<3x100xf32, #tpu.memory_space<smem>>
    %c1_1314 = arith.constant 1 : index
    %c3_1315 = arith.constant 3 : index
    %c1_1316 = arith.constant 1 : index
    %1708 = vector.load %arg6[%c1_1314, %c3_1315, %c1_1316] : memref<2x22x14xf32, #tpu.memory_space<vmem>>, vector<1x16x8xf32>
    %1709 = vector.shape_cast %1708 : vector<1x16x8xf32> to vector<16x8xf32>
    %1710 = vector.broadcast %1707 : f32 to vector<16x8xf32>
    %1711 = arith.mulf %1710, %1709 : vector<16x8xf32>
    %1712 = arith.addf %1706, %1711 : vector<16x8xf32>
    %c2_1317 = arith.constant 2 : index
    %c23_1318 = arith.constant 23 : index
    %1713 = memref.load %arg2[%c2_1317, %c23_1318] : memref<3x100xf32, #tpu.memory_space<smem>>
    %c0_1319 = arith.constant 0 : index
    %c3_1320 = arith.constant 3 : index
    %c2_1321 = arith.constant 2 : index
    %1714 = vector.load %arg6[%c0_1319, %c3_1320, %c2_1321] : memref<2x22x14xf32, #tpu.memory_space<vmem>>, vector<1x16x8xf32>
    %1715 = vector.shape_cast %1714 : vector<1x16x8xf32> to vector<16x8xf32>
    %1716 = vector.broadcast %1713 : f32 to vector<16x8xf32>
    %1717 = arith.mulf %1716, %1715 : vector<16x8xf32>
    %1718 = arith.addf %1712, %1717 : vector<16x8xf32>
    %c2_1322 = arith.constant 2 : index
    %c72_1323 = arith.constant 72 : index
    %1719 = memref.load %arg2[%c2_1322, %c72_1323] : memref<3x100xf32, #tpu.memory_space<smem>>
    %c1_1324 = arith.constant 1 : index
    %c3_1325 = arith.constant 3 : index
    %c2_1326 = arith.constant 2 : index
    %1720 = vector.load %arg6[%c1_1324, %c3_1325, %c2_1326] : memref<2x22x14xf32, #tpu.memory_space<vmem>>, vector<1x16x8xf32>
    %1721 = vector.shape_cast %1720 : vector<1x16x8xf32> to vector<16x8xf32>
    %1722 = vector.broadcast %1719 : f32 to vector<16x8xf32>
    %1723 = arith.mulf %1722, %1721 : vector<16x8xf32>
    %1724 = arith.addf %1718, %1723 : vector<16x8xf32>
    %c2_1327 = arith.constant 2 : index
    %c24_1328 = arith.constant 24 : index
    %1725 = memref.load %arg2[%c2_1327, %c24_1328] : memref<3x100xf32, #tpu.memory_space<smem>>
    %c0_1329 = arith.constant 0 : index
    %c3_1330 = arith.constant 3 : index
    %c3_1331 = arith.constant 3 : index
    %1726 = vector.load %arg6[%c0_1329, %c3_1330, %c3_1331] : memref<2x22x14xf32, #tpu.memory_space<vmem>>, vector<1x16x8xf32>
    %1727 = vector.shape_cast %1726 : vector<1x16x8xf32> to vector<16x8xf32>
    %1728 = vector.broadcast %1725 : f32 to vector<16x8xf32>
    %1729 = arith.mulf %1728, %1727 : vector<16x8xf32>
    %1730 = arith.addf %1724, %1729 : vector<16x8xf32>
    %c2_1332 = arith.constant 2 : index
    %c73_1333 = arith.constant 73 : index
    %1731 = memref.load %arg2[%c2_1332, %c73_1333] : memref<3x100xf32, #tpu.memory_space<smem>>
    %c1_1334 = arith.constant 1 : index
    %c3_1335 = arith.constant 3 : index
    %c3_1336 = arith.constant 3 : index
    %1732 = vector.load %arg6[%c1_1334, %c3_1335, %c3_1336] : memref<2x22x14xf32, #tpu.memory_space<vmem>>, vector<1x16x8xf32>
    %1733 = vector.shape_cast %1732 : vector<1x16x8xf32> to vector<16x8xf32>
    %1734 = vector.broadcast %1731 : f32 to vector<16x8xf32>
    %1735 = arith.mulf %1734, %1733 : vector<16x8xf32>
    %1736 = arith.addf %1730, %1735 : vector<16x8xf32>
    %c2_1337 = arith.constant 2 : index
    %c25_1338 = arith.constant 25 : index
    %1737 = memref.load %arg2[%c2_1337, %c25_1338] : memref<3x100xf32, #tpu.memory_space<smem>>
    %c0_1339 = arith.constant 0 : index
    %c3_1340 = arith.constant 3 : index
    %c4_1341 = arith.constant 4 : index
    %1738 = vector.load %arg6[%c0_1339, %c3_1340, %c4_1341] : memref<2x22x14xf32, #tpu.memory_space<vmem>>, vector<1x16x8xf32>
    %1739 = vector.shape_cast %1738 : vector<1x16x8xf32> to vector<16x8xf32>
    %1740 = vector.broadcast %1737 : f32 to vector<16x8xf32>
    %1741 = arith.mulf %1740, %1739 : vector<16x8xf32>
    %1742 = arith.addf %1736, %1741 : vector<16x8xf32>
    %c2_1342 = arith.constant 2 : index
    %c74_1343 = arith.constant 74 : index
    %1743 = memref.load %arg2[%c2_1342, %c74_1343] : memref<3x100xf32, #tpu.memory_space<smem>>
    %c1_1344 = arith.constant 1 : index
    %c3_1345 = arith.constant 3 : index
    %c4_1346 = arith.constant 4 : index
    %1744 = vector.load %arg6[%c1_1344, %c3_1345, %c4_1346] : memref<2x22x14xf32, #tpu.memory_space<vmem>>, vector<1x16x8xf32>
    %1745 = vector.shape_cast %1744 : vector<1x16x8xf32> to vector<16x8xf32>
    %1746 = vector.broadcast %1743 : f32 to vector<16x8xf32>
    %1747 = arith.mulf %1746, %1745 : vector<16x8xf32>
    %1748 = arith.addf %1742, %1747 : vector<16x8xf32>
    %c2_1347 = arith.constant 2 : index
    %c26_1348 = arith.constant 26 : index
    %1749 = memref.load %arg2[%c2_1347, %c26_1348] : memref<3x100xf32, #tpu.memory_space<smem>>
    %c0_1349 = arith.constant 0 : index
    %c3_1350 = arith.constant 3 : index
    %c5_1351 = arith.constant 5 : index
    %1750 = vector.load %arg6[%c0_1349, %c3_1350, %c5_1351] : memref<2x22x14xf32, #tpu.memory_space<vmem>>, vector<1x16x8xf32>
    %1751 = vector.shape_cast %1750 : vector<1x16x8xf32> to vector<16x8xf32>
    %1752 = vector.broadcast %1749 : f32 to vector<16x8xf32>
    %1753 = arith.mulf %1752, %1751 : vector<16x8xf32>
    %1754 = arith.addf %1748, %1753 : vector<16x8xf32>
    %c2_1352 = arith.constant 2 : index
    %c75_1353 = arith.constant 75 : index
    %1755 = memref.load %arg2[%c2_1352, %c75_1353] : memref<3x100xf32, #tpu.memory_space<smem>>
    %c1_1354 = arith.constant 1 : index
    %c3_1355 = arith.constant 3 : index
    %c5_1356 = arith.constant 5 : index
    %1756 = vector.load %arg6[%c1_1354, %c3_1355, %c5_1356] : memref<2x22x14xf32, #tpu.memory_space<vmem>>, vector<1x16x8xf32>
    %1757 = vector.shape_cast %1756 : vector<1x16x8xf32> to vector<16x8xf32>
    %1758 = vector.broadcast %1755 : f32 to vector<16x8xf32>
    %1759 = arith.mulf %1758, %1757 : vector<16x8xf32>
    %1760 = arith.addf %1754, %1759 : vector<16x8xf32>
    %c2_1357 = arith.constant 2 : index
    %c27_1358 = arith.constant 27 : index
    %1761 = memref.load %arg2[%c2_1357, %c27_1358] : memref<3x100xf32, #tpu.memory_space<smem>>
    %c0_1359 = arith.constant 0 : index
    %c3_1360 = arith.constant 3 : index
    %c6_1361 = arith.constant 6 : index
    %1762 = vector.load %arg6[%c0_1359, %c3_1360, %c6_1361] : memref<2x22x14xf32, #tpu.memory_space<vmem>>, vector<1x16x8xf32>
    %1763 = vector.shape_cast %1762 : vector<1x16x8xf32> to vector<16x8xf32>
    %1764 = vector.broadcast %1761 : f32 to vector<16x8xf32>
    %1765 = arith.mulf %1764, %1763 : vector<16x8xf32>
    %1766 = arith.addf %1760, %1765 : vector<16x8xf32>
    %c2_1362 = arith.constant 2 : index
    %c76_1363 = arith.constant 76 : index
    %1767 = memref.load %arg2[%c2_1362, %c76_1363] : memref<3x100xf32, #tpu.memory_space<smem>>
    %c1_1364 = arith.constant 1 : index
    %c3_1365 = arith.constant 3 : index
    %c6_1366 = arith.constant 6 : index
    %1768 = vector.load %arg6[%c1_1364, %c3_1365, %c6_1366] : memref<2x22x14xf32, #tpu.memory_space<vmem>>, vector<1x16x8xf32>
    %1769 = vector.shape_cast %1768 : vector<1x16x8xf32> to vector<16x8xf32>
    %1770 = vector.broadcast %1767 : f32 to vector<16x8xf32>
    %1771 = arith.mulf %1770, %1769 : vector<16x8xf32>
    %1772 = arith.addf %1766, %1771 : vector<16x8xf32>
    %c2_1367 = arith.constant 2 : index
    %c28_1368 = arith.constant 28 : index
    %1773 = memref.load %arg2[%c2_1367, %c28_1368] : memref<3x100xf32, #tpu.memory_space<smem>>
    %c0_1369 = arith.constant 0 : index
    %c4_1370 = arith.constant 4 : index
    %c0_1371 = arith.constant 0 : index
    %1774 = vector.load %arg6[%c0_1369, %c4_1370, %c0_1371] : memref<2x22x14xf32, #tpu.memory_space<vmem>>, vector<1x16x8xf32>
    %1775 = vector.shape_cast %1774 : vector<1x16x8xf32> to vector<16x8xf32>
    %1776 = vector.broadcast %1773 : f32 to vector<16x8xf32>
    %1777 = arith.mulf %1776, %1775 : vector<16x8xf32>
    %1778 = arith.addf %1772, %1777 : vector<16x8xf32>
    %c2_1372 = arith.constant 2 : index
    %c77_1373 = arith.constant 77 : index
    %1779 = memref.load %arg2[%c2_1372, %c77_1373] : memref<3x100xf32, #tpu.memory_space<smem>>
    %c1_1374 = arith.constant 1 : index
    %c4_1375 = arith.constant 4 : index
    %c0_1376 = arith.constant 0 : index
    %1780 = vector.load %arg6[%c1_1374, %c4_1375, %c0_1376] : memref<2x22x14xf32, #tpu.memory_space<vmem>>, vector<1x16x8xf32>
    %1781 = vector.shape_cast %1780 : vector<1x16x8xf32> to vector<16x8xf32>
    %1782 = vector.broadcast %1779 : f32 to vector<16x8xf32>
    %1783 = arith.mulf %1782, %1781 : vector<16x8xf32>
    %1784 = arith.addf %1778, %1783 : vector<16x8xf32>
    %c2_1377 = arith.constant 2 : index
    %c29_1378 = arith.constant 29 : index
    %1785 = memref.load %arg2[%c2_1377, %c29_1378] : memref<3x100xf32, #tpu.memory_space<smem>>
    %c0_1379 = arith.constant 0 : index
    %c4_1380 = arith.constant 4 : index
    %c1_1381 = arith.constant 1 : index
    %1786 = vector.load %arg6[%c0_1379, %c4_1380, %c1_1381] : memref<2x22x14xf32, #tpu.memory_space<vmem>>, vector<1x16x8xf32>
    %1787 = vector.shape_cast %1786 : vector<1x16x8xf32> to vector<16x8xf32>
    %1788 = vector.broadcast %1785 : f32 to vector<16x8xf32>
    %1789 = arith.mulf %1788, %1787 : vector<16x8xf32>
    %1790 = arith.addf %1784, %1789 : vector<16x8xf32>
    %c2_1382 = arith.constant 2 : index
    %c78_1383 = arith.constant 78 : index
    %1791 = memref.load %arg2[%c2_1382, %c78_1383] : memref<3x100xf32, #tpu.memory_space<smem>>
    %c1_1384 = arith.constant 1 : index
    %c4_1385 = arith.constant 4 : index
    %c1_1386 = arith.constant 1 : index
    %1792 = vector.load %arg6[%c1_1384, %c4_1385, %c1_1386] : memref<2x22x14xf32, #tpu.memory_space<vmem>>, vector<1x16x8xf32>
    %1793 = vector.shape_cast %1792 : vector<1x16x8xf32> to vector<16x8xf32>
    %1794 = vector.broadcast %1791 : f32 to vector<16x8xf32>
    %1795 = arith.mulf %1794, %1793 : vector<16x8xf32>
    %1796 = arith.addf %1790, %1795 : vector<16x8xf32>
    %c2_1387 = arith.constant 2 : index
    %c30_1388 = arith.constant 30 : index
    %1797 = memref.load %arg2[%c2_1387, %c30_1388] : memref<3x100xf32, #tpu.memory_space<smem>>
    %c0_1389 = arith.constant 0 : index
    %c4_1390 = arith.constant 4 : index
    %c2_1391 = arith.constant 2 : index
    %1798 = vector.load %arg6[%c0_1389, %c4_1390, %c2_1391] : memref<2x22x14xf32, #tpu.memory_space<vmem>>, vector<1x16x8xf32>
    %1799 = vector.shape_cast %1798 : vector<1x16x8xf32> to vector<16x8xf32>
    %1800 = vector.broadcast %1797 : f32 to vector<16x8xf32>
    %1801 = arith.mulf %1800, %1799 : vector<16x8xf32>
    %1802 = arith.addf %1796, %1801 : vector<16x8xf32>
    %c2_1392 = arith.constant 2 : index
    %c79_1393 = arith.constant 79 : index
    %1803 = memref.load %arg2[%c2_1392, %c79_1393] : memref<3x100xf32, #tpu.memory_space<smem>>
    %c1_1394 = arith.constant 1 : index
    %c4_1395 = arith.constant 4 : index
    %c2_1396 = arith.constant 2 : index
    %1804 = vector.load %arg6[%c1_1394, %c4_1395, %c2_1396] : memref<2x22x14xf32, #tpu.memory_space<vmem>>, vector<1x16x8xf32>
    %1805 = vector.shape_cast %1804 : vector<1x16x8xf32> to vector<16x8xf32>
    %1806 = vector.broadcast %1803 : f32 to vector<16x8xf32>
    %1807 = arith.mulf %1806, %1805 : vector<16x8xf32>
    %1808 = arith.addf %1802, %1807 : vector<16x8xf32>
    %c2_1397 = arith.constant 2 : index
    %c31_1398 = arith.constant 31 : index
    %1809 = memref.load %arg2[%c2_1397, %c31_1398] : memref<3x100xf32, #tpu.memory_space<smem>>
    %c0_1399 = arith.constant 0 : index
    %c4_1400 = arith.constant 4 : index
    %c3_1401 = arith.constant 3 : index
    %1810 = vector.load %arg6[%c0_1399, %c4_1400, %c3_1401] : memref<2x22x14xf32, #tpu.memory_space<vmem>>, vector<1x16x8xf32>
    %1811 = vector.shape_cast %1810 : vector<1x16x8xf32> to vector<16x8xf32>
    %1812 = vector.broadcast %1809 : f32 to vector<16x8xf32>
    %1813 = arith.mulf %1812, %1811 : vector<16x8xf32>
    %1814 = arith.addf %1808, %1813 : vector<16x8xf32>
    %c2_1402 = arith.constant 2 : index
    %c80_1403 = arith.constant 80 : index
    %1815 = memref.load %arg2[%c2_1402, %c80_1403] : memref<3x100xf32, #tpu.memory_space<smem>>
    %c1_1404 = arith.constant 1 : index
    %c4_1405 = arith.constant 4 : index
    %c3_1406 = arith.constant 3 : index
    %1816 = vector.load %arg6[%c1_1404, %c4_1405, %c3_1406] : memref<2x22x14xf32, #tpu.memory_space<vmem>>, vector<1x16x8xf32>
    %1817 = vector.shape_cast %1816 : vector<1x16x8xf32> to vector<16x8xf32>
    %1818 = vector.broadcast %1815 : f32 to vector<16x8xf32>
    %1819 = arith.mulf %1818, %1817 : vector<16x8xf32>
    %1820 = arith.addf %1814, %1819 : vector<16x8xf32>
    %c2_1407 = arith.constant 2 : index
    %c32_1408 = arith.constant 32 : index
    %1821 = memref.load %arg2[%c2_1407, %c32_1408] : memref<3x100xf32, #tpu.memory_space<smem>>
    %c0_1409 = arith.constant 0 : index
    %c4_1410 = arith.constant 4 : index
    %c4_1411 = arith.constant 4 : index
    %1822 = vector.load %arg6[%c0_1409, %c4_1410, %c4_1411] : memref<2x22x14xf32, #tpu.memory_space<vmem>>, vector<1x16x8xf32>
    %1823 = vector.shape_cast %1822 : vector<1x16x8xf32> to vector<16x8xf32>
    %1824 = vector.broadcast %1821 : f32 to vector<16x8xf32>
    %1825 = arith.mulf %1824, %1823 : vector<16x8xf32>
    %1826 = arith.addf %1820, %1825 : vector<16x8xf32>
    %c2_1412 = arith.constant 2 : index
    %c81_1413 = arith.constant 81 : index
    %1827 = memref.load %arg2[%c2_1412, %c81_1413] : memref<3x100xf32, #tpu.memory_space<smem>>
    %c1_1414 = arith.constant 1 : index
    %c4_1415 = arith.constant 4 : index
    %c4_1416 = arith.constant 4 : index
    %1828 = vector.load %arg6[%c1_1414, %c4_1415, %c4_1416] : memref<2x22x14xf32, #tpu.memory_space<vmem>>, vector<1x16x8xf32>
    %1829 = vector.shape_cast %1828 : vector<1x16x8xf32> to vector<16x8xf32>
    %1830 = vector.broadcast %1827 : f32 to vector<16x8xf32>
    %1831 = arith.mulf %1830, %1829 : vector<16x8xf32>
    %1832 = arith.addf %1826, %1831 : vector<16x8xf32>
    %c2_1417 = arith.constant 2 : index
    %c33_1418 = arith.constant 33 : index
    %1833 = memref.load %arg2[%c2_1417, %c33_1418] : memref<3x100xf32, #tpu.memory_space<smem>>
    %c0_1419 = arith.constant 0 : index
    %c4_1420 = arith.constant 4 : index
    %c5_1421 = arith.constant 5 : index
    %1834 = vector.load %arg6[%c0_1419, %c4_1420, %c5_1421] : memref<2x22x14xf32, #tpu.memory_space<vmem>>, vector<1x16x8xf32>
    %1835 = vector.shape_cast %1834 : vector<1x16x8xf32> to vector<16x8xf32>
    %1836 = vector.broadcast %1833 : f32 to vector<16x8xf32>
    %1837 = arith.mulf %1836, %1835 : vector<16x8xf32>
    %1838 = arith.addf %1832, %1837 : vector<16x8xf32>
    %c2_1422 = arith.constant 2 : index
    %c82_1423 = arith.constant 82 : index
    %1839 = memref.load %arg2[%c2_1422, %c82_1423] : memref<3x100xf32, #tpu.memory_space<smem>>
    %c1_1424 = arith.constant 1 : index
    %c4_1425 = arith.constant 4 : index
    %c5_1426 = arith.constant 5 : index
    %1840 = vector.load %arg6[%c1_1424, %c4_1425, %c5_1426] : memref<2x22x14xf32, #tpu.memory_space<vmem>>, vector<1x16x8xf32>
    %1841 = vector.shape_cast %1840 : vector<1x16x8xf32> to vector<16x8xf32>
    %1842 = vector.broadcast %1839 : f32 to vector<16x8xf32>
    %1843 = arith.mulf %1842, %1841 : vector<16x8xf32>
    %1844 = arith.addf %1838, %1843 : vector<16x8xf32>
    %c2_1427 = arith.constant 2 : index
    %c34_1428 = arith.constant 34 : index
    %1845 = memref.load %arg2[%c2_1427, %c34_1428] : memref<3x100xf32, #tpu.memory_space<smem>>
    %c0_1429 = arith.constant 0 : index
    %c4_1430 = arith.constant 4 : index
    %c6_1431 = arith.constant 6 : index
    %1846 = vector.load %arg6[%c0_1429, %c4_1430, %c6_1431] : memref<2x22x14xf32, #tpu.memory_space<vmem>>, vector<1x16x8xf32>
    %1847 = vector.shape_cast %1846 : vector<1x16x8xf32> to vector<16x8xf32>
    %1848 = vector.broadcast %1845 : f32 to vector<16x8xf32>
    %1849 = arith.mulf %1848, %1847 : vector<16x8xf32>
    %1850 = arith.addf %1844, %1849 : vector<16x8xf32>
    %c2_1432 = arith.constant 2 : index
    %c83_1433 = arith.constant 83 : index
    %1851 = memref.load %arg2[%c2_1432, %c83_1433] : memref<3x100xf32, #tpu.memory_space<smem>>
    %c1_1434 = arith.constant 1 : index
    %c4_1435 = arith.constant 4 : index
    %c6_1436 = arith.constant 6 : index
    %1852 = vector.load %arg6[%c1_1434, %c4_1435, %c6_1436] : memref<2x22x14xf32, #tpu.memory_space<vmem>>, vector<1x16x8xf32>
    %1853 = vector.shape_cast %1852 : vector<1x16x8xf32> to vector<16x8xf32>
    %1854 = vector.broadcast %1851 : f32 to vector<16x8xf32>
    %1855 = arith.mulf %1854, %1853 : vector<16x8xf32>
    %1856 = arith.addf %1850, %1855 : vector<16x8xf32>
    %c2_1437 = arith.constant 2 : index
    %c35_1438 = arith.constant 35 : index
    %1857 = memref.load %arg2[%c2_1437, %c35_1438] : memref<3x100xf32, #tpu.memory_space<smem>>
    %c0_1439 = arith.constant 0 : index
    %c5_1440 = arith.constant 5 : index
    %c0_1441 = arith.constant 0 : index
    %1858 = vector.load %arg6[%c0_1439, %c5_1440, %c0_1441] : memref<2x22x14xf32, #tpu.memory_space<vmem>>, vector<1x16x8xf32>
    %1859 = vector.shape_cast %1858 : vector<1x16x8xf32> to vector<16x8xf32>
    %1860 = vector.broadcast %1857 : f32 to vector<16x8xf32>
    %1861 = arith.mulf %1860, %1859 : vector<16x8xf32>
    %1862 = arith.addf %1856, %1861 : vector<16x8xf32>
    %c2_1442 = arith.constant 2 : index
    %c84_1443 = arith.constant 84 : index
    %1863 = memref.load %arg2[%c2_1442, %c84_1443] : memref<3x100xf32, #tpu.memory_space<smem>>
    %c1_1444 = arith.constant 1 : index
    %c5_1445 = arith.constant 5 : index
    %c0_1446 = arith.constant 0 : index
    %1864 = vector.load %arg6[%c1_1444, %c5_1445, %c0_1446] : memref<2x22x14xf32, #tpu.memory_space<vmem>>, vector<1x16x8xf32>
    %1865 = vector.shape_cast %1864 : vector<1x16x8xf32> to vector<16x8xf32>
    %1866 = vector.broadcast %1863 : f32 to vector<16x8xf32>
    %1867 = arith.mulf %1866, %1865 : vector<16x8xf32>
    %1868 = arith.addf %1862, %1867 : vector<16x8xf32>
    %c2_1447 = arith.constant 2 : index
    %c36_1448 = arith.constant 36 : index
    %1869 = memref.load %arg2[%c2_1447, %c36_1448] : memref<3x100xf32, #tpu.memory_space<smem>>
    %c0_1449 = arith.constant 0 : index
    %c5_1450 = arith.constant 5 : index
    %c1_1451 = arith.constant 1 : index
    %1870 = vector.load %arg6[%c0_1449, %c5_1450, %c1_1451] : memref<2x22x14xf32, #tpu.memory_space<vmem>>, vector<1x16x8xf32>
    %1871 = vector.shape_cast %1870 : vector<1x16x8xf32> to vector<16x8xf32>
    %1872 = vector.broadcast %1869 : f32 to vector<16x8xf32>
    %1873 = arith.mulf %1872, %1871 : vector<16x8xf32>
    %1874 = arith.addf %1868, %1873 : vector<16x8xf32>
    %c2_1452 = arith.constant 2 : index
    %c85_1453 = arith.constant 85 : index
    %1875 = memref.load %arg2[%c2_1452, %c85_1453] : memref<3x100xf32, #tpu.memory_space<smem>>
    %c1_1454 = arith.constant 1 : index
    %c5_1455 = arith.constant 5 : index
    %c1_1456 = arith.constant 1 : index
    %1876 = vector.load %arg6[%c1_1454, %c5_1455, %c1_1456] : memref<2x22x14xf32, #tpu.memory_space<vmem>>, vector<1x16x8xf32>
    %1877 = vector.shape_cast %1876 : vector<1x16x8xf32> to vector<16x8xf32>
    %1878 = vector.broadcast %1875 : f32 to vector<16x8xf32>
    %1879 = arith.mulf %1878, %1877 : vector<16x8xf32>
    %1880 = arith.addf %1874, %1879 : vector<16x8xf32>
    %c2_1457 = arith.constant 2 : index
    %c37_1458 = arith.constant 37 : index
    %1881 = memref.load %arg2[%c2_1457, %c37_1458] : memref<3x100xf32, #tpu.memory_space<smem>>
    %c0_1459 = arith.constant 0 : index
    %c5_1460 = arith.constant 5 : index
    %c2_1461 = arith.constant 2 : index
    %1882 = vector.load %arg6[%c0_1459, %c5_1460, %c2_1461] : memref<2x22x14xf32, #tpu.memory_space<vmem>>, vector<1x16x8xf32>
    %1883 = vector.shape_cast %1882 : vector<1x16x8xf32> to vector<16x8xf32>
    %1884 = vector.broadcast %1881 : f32 to vector<16x8xf32>
    %1885 = arith.mulf %1884, %1883 : vector<16x8xf32>
    %1886 = arith.addf %1880, %1885 : vector<16x8xf32>
    %c2_1462 = arith.constant 2 : index
    %c86_1463 = arith.constant 86 : index
    %1887 = memref.load %arg2[%c2_1462, %c86_1463] : memref<3x100xf32, #tpu.memory_space<smem>>
    %c1_1464 = arith.constant 1 : index
    %c5_1465 = arith.constant 5 : index
    %c2_1466 = arith.constant 2 : index
    %1888 = vector.load %arg6[%c1_1464, %c5_1465, %c2_1466] : memref<2x22x14xf32, #tpu.memory_space<vmem>>, vector<1x16x8xf32>
    %1889 = vector.shape_cast %1888 : vector<1x16x8xf32> to vector<16x8xf32>
    %1890 = vector.broadcast %1887 : f32 to vector<16x8xf32>
    %1891 = arith.mulf %1890, %1889 : vector<16x8xf32>
    %1892 = arith.addf %1886, %1891 : vector<16x8xf32>
    %c2_1467 = arith.constant 2 : index
    %c38_1468 = arith.constant 38 : index
    %1893 = memref.load %arg2[%c2_1467, %c38_1468] : memref<3x100xf32, #tpu.memory_space<smem>>
    %c0_1469 = arith.constant 0 : index
    %c5_1470 = arith.constant 5 : index
    %c3_1471 = arith.constant 3 : index
    %1894 = vector.load %arg6[%c0_1469, %c5_1470, %c3_1471] : memref<2x22x14xf32, #tpu.memory_space<vmem>>, vector<1x16x8xf32>
    %1895 = vector.shape_cast %1894 : vector<1x16x8xf32> to vector<16x8xf32>
    %1896 = vector.broadcast %1893 : f32 to vector<16x8xf32>
    %1897 = arith.mulf %1896, %1895 : vector<16x8xf32>
    %1898 = arith.addf %1892, %1897 : vector<16x8xf32>
    %c2_1472 = arith.constant 2 : index
    %c87_1473 = arith.constant 87 : index
    %1899 = memref.load %arg2[%c2_1472, %c87_1473] : memref<3x100xf32, #tpu.memory_space<smem>>
    %c1_1474 = arith.constant 1 : index
    %c5_1475 = arith.constant 5 : index
    %c3_1476 = arith.constant 3 : index
    %1900 = vector.load %arg6[%c1_1474, %c5_1475, %c3_1476] : memref<2x22x14xf32, #tpu.memory_space<vmem>>, vector<1x16x8xf32>
    %1901 = vector.shape_cast %1900 : vector<1x16x8xf32> to vector<16x8xf32>
    %1902 = vector.broadcast %1899 : f32 to vector<16x8xf32>
    %1903 = arith.mulf %1902, %1901 : vector<16x8xf32>
    %1904 = arith.addf %1898, %1903 : vector<16x8xf32>
    %c2_1477 = arith.constant 2 : index
    %c39_1478 = arith.constant 39 : index
    %1905 = memref.load %arg2[%c2_1477, %c39_1478] : memref<3x100xf32, #tpu.memory_space<smem>>
    %c0_1479 = arith.constant 0 : index
    %c5_1480 = arith.constant 5 : index
    %c4_1481 = arith.constant 4 : index
    %1906 = vector.load %arg6[%c0_1479, %c5_1480, %c4_1481] : memref<2x22x14xf32, #tpu.memory_space<vmem>>, vector<1x16x8xf32>
    %1907 = vector.shape_cast %1906 : vector<1x16x8xf32> to vector<16x8xf32>
    %1908 = vector.broadcast %1905 : f32 to vector<16x8xf32>
    %1909 = arith.mulf %1908, %1907 : vector<16x8xf32>
    %1910 = arith.addf %1904, %1909 : vector<16x8xf32>
    %c2_1482 = arith.constant 2 : index
    %c88_1483 = arith.constant 88 : index
    %1911 = memref.load %arg2[%c2_1482, %c88_1483] : memref<3x100xf32, #tpu.memory_space<smem>>
    %c1_1484 = arith.constant 1 : index
    %c5_1485 = arith.constant 5 : index
    %c4_1486 = arith.constant 4 : index
    %1912 = vector.load %arg6[%c1_1484, %c5_1485, %c4_1486] : memref<2x22x14xf32, #tpu.memory_space<vmem>>, vector<1x16x8xf32>
    %1913 = vector.shape_cast %1912 : vector<1x16x8xf32> to vector<16x8xf32>
    %1914 = vector.broadcast %1911 : f32 to vector<16x8xf32>
    %1915 = arith.mulf %1914, %1913 : vector<16x8xf32>
    %1916 = arith.addf %1910, %1915 : vector<16x8xf32>
    %c2_1487 = arith.constant 2 : index
    %c40_1488 = arith.constant 40 : index
    %1917 = memref.load %arg2[%c2_1487, %c40_1488] : memref<3x100xf32, #tpu.memory_space<smem>>
    %c0_1489 = arith.constant 0 : index
    %c5_1490 = arith.constant 5 : index
    %c5_1491 = arith.constant 5 : index
    %1918 = vector.load %arg6[%c0_1489, %c5_1490, %c5_1491] : memref<2x22x14xf32, #tpu.memory_space<vmem>>, vector<1x16x8xf32>
    %1919 = vector.shape_cast %1918 : vector<1x16x8xf32> to vector<16x8xf32>
    %1920 = vector.broadcast %1917 : f32 to vector<16x8xf32>
    %1921 = arith.mulf %1920, %1919 : vector<16x8xf32>
    %1922 = arith.addf %1916, %1921 : vector<16x8xf32>
    %c2_1492 = arith.constant 2 : index
    %c89_1493 = arith.constant 89 : index
    %1923 = memref.load %arg2[%c2_1492, %c89_1493] : memref<3x100xf32, #tpu.memory_space<smem>>
    %c1_1494 = arith.constant 1 : index
    %c5_1495 = arith.constant 5 : index
    %c5_1496 = arith.constant 5 : index
    %1924 = vector.load %arg6[%c1_1494, %c5_1495, %c5_1496] : memref<2x22x14xf32, #tpu.memory_space<vmem>>, vector<1x16x8xf32>
    %1925 = vector.shape_cast %1924 : vector<1x16x8xf32> to vector<16x8xf32>
    %1926 = vector.broadcast %1923 : f32 to vector<16x8xf32>
    %1927 = arith.mulf %1926, %1925 : vector<16x8xf32>
    %1928 = arith.addf %1922, %1927 : vector<16x8xf32>
    %c2_1497 = arith.constant 2 : index
    %c41_1498 = arith.constant 41 : index
    %1929 = memref.load %arg2[%c2_1497, %c41_1498] : memref<3x100xf32, #tpu.memory_space<smem>>
    %c0_1499 = arith.constant 0 : index
    %c5_1500 = arith.constant 5 : index
    %c6_1501 = arith.constant 6 : index
    %1930 = vector.load %arg6[%c0_1499, %c5_1500, %c6_1501] : memref<2x22x14xf32, #tpu.memory_space<vmem>>, vector<1x16x8xf32>
    %1931 = vector.shape_cast %1930 : vector<1x16x8xf32> to vector<16x8xf32>
    %1932 = vector.broadcast %1929 : f32 to vector<16x8xf32>
    %1933 = arith.mulf %1932, %1931 : vector<16x8xf32>
    %1934 = arith.addf %1928, %1933 : vector<16x8xf32>
    %c2_1502 = arith.constant 2 : index
    %c90_1503 = arith.constant 90 : index
    %1935 = memref.load %arg2[%c2_1502, %c90_1503] : memref<3x100xf32, #tpu.memory_space<smem>>
    %c1_1504 = arith.constant 1 : index
    %c5_1505 = arith.constant 5 : index
    %c6_1506 = arith.constant 6 : index
    %1936 = vector.load %arg6[%c1_1504, %c5_1505, %c6_1506] : memref<2x22x14xf32, #tpu.memory_space<vmem>>, vector<1x16x8xf32>
    %1937 = vector.shape_cast %1936 : vector<1x16x8xf32> to vector<16x8xf32>
    %1938 = vector.broadcast %1935 : f32 to vector<16x8xf32>
    %1939 = arith.mulf %1938, %1937 : vector<16x8xf32>
    %1940 = arith.addf %1934, %1939 : vector<16x8xf32>
    %c2_1507 = arith.constant 2 : index
    %c42_1508 = arith.constant 42 : index
    %1941 = memref.load %arg2[%c2_1507, %c42_1508] : memref<3x100xf32, #tpu.memory_space<smem>>
    %c0_1509 = arith.constant 0 : index
    %c6_1510 = arith.constant 6 : index
    %c0_1511 = arith.constant 0 : index
    %1942 = vector.load %arg6[%c0_1509, %c6_1510, %c0_1511] : memref<2x22x14xf32, #tpu.memory_space<vmem>>, vector<1x16x8xf32>
    %1943 = vector.shape_cast %1942 : vector<1x16x8xf32> to vector<16x8xf32>
    %1944 = vector.broadcast %1941 : f32 to vector<16x8xf32>
    %1945 = arith.mulf %1944, %1943 : vector<16x8xf32>
    %1946 = arith.addf %1940, %1945 : vector<16x8xf32>
    %c2_1512 = arith.constant 2 : index
    %c91_1513 = arith.constant 91 : index
    %1947 = memref.load %arg2[%c2_1512, %c91_1513] : memref<3x100xf32, #tpu.memory_space<smem>>
    %c1_1514 = arith.constant 1 : index
    %c6_1515 = arith.constant 6 : index
    %c0_1516 = arith.constant 0 : index
    %1948 = vector.load %arg6[%c1_1514, %c6_1515, %c0_1516] : memref<2x22x14xf32, #tpu.memory_space<vmem>>, vector<1x16x8xf32>
    %1949 = vector.shape_cast %1948 : vector<1x16x8xf32> to vector<16x8xf32>
    %1950 = vector.broadcast %1947 : f32 to vector<16x8xf32>
    %1951 = arith.mulf %1950, %1949 : vector<16x8xf32>
    %1952 = arith.addf %1946, %1951 : vector<16x8xf32>
    %c2_1517 = arith.constant 2 : index
    %c43_1518 = arith.constant 43 : index
    %1953 = memref.load %arg2[%c2_1517, %c43_1518] : memref<3x100xf32, #tpu.memory_space<smem>>
    %c0_1519 = arith.constant 0 : index
    %c6_1520 = arith.constant 6 : index
    %c1_1521 = arith.constant 1 : index
    %1954 = vector.load %arg6[%c0_1519, %c6_1520, %c1_1521] : memref<2x22x14xf32, #tpu.memory_space<vmem>>, vector<1x16x8xf32>
    %1955 = vector.shape_cast %1954 : vector<1x16x8xf32> to vector<16x8xf32>
    %1956 = vector.broadcast %1953 : f32 to vector<16x8xf32>
    %1957 = arith.mulf %1956, %1955 : vector<16x8xf32>
    %1958 = arith.addf %1952, %1957 : vector<16x8xf32>
    %c2_1522 = arith.constant 2 : index
    %c92_1523 = arith.constant 92 : index
    %1959 = memref.load %arg2[%c2_1522, %c92_1523] : memref<3x100xf32, #tpu.memory_space<smem>>
    %c1_1524 = arith.constant 1 : index
    %c6_1525 = arith.constant 6 : index
    %c1_1526 = arith.constant 1 : index
    %1960 = vector.load %arg6[%c1_1524, %c6_1525, %c1_1526] : memref<2x22x14xf32, #tpu.memory_space<vmem>>, vector<1x16x8xf32>
    %1961 = vector.shape_cast %1960 : vector<1x16x8xf32> to vector<16x8xf32>
    %1962 = vector.broadcast %1959 : f32 to vector<16x8xf32>
    %1963 = arith.mulf %1962, %1961 : vector<16x8xf32>
    %1964 = arith.addf %1958, %1963 : vector<16x8xf32>
    %c2_1527 = arith.constant 2 : index
    %c44_1528 = arith.constant 44 : index
    %1965 = memref.load %arg2[%c2_1527, %c44_1528] : memref<3x100xf32, #tpu.memory_space<smem>>
    %c0_1529 = arith.constant 0 : index
    %c6_1530 = arith.constant 6 : index
    %c2_1531 = arith.constant 2 : index
    %1966 = vector.load %arg6[%c0_1529, %c6_1530, %c2_1531] : memref<2x22x14xf32, #tpu.memory_space<vmem>>, vector<1x16x8xf32>
    %1967 = vector.shape_cast %1966 : vector<1x16x8xf32> to vector<16x8xf32>
    %1968 = vector.broadcast %1965 : f32 to vector<16x8xf32>
    %1969 = arith.mulf %1968, %1967 : vector<16x8xf32>
    %1970 = arith.addf %1964, %1969 : vector<16x8xf32>
    %c2_1532 = arith.constant 2 : index
    %c93_1533 = arith.constant 93 : index
    %1971 = memref.load %arg2[%c2_1532, %c93_1533] : memref<3x100xf32, #tpu.memory_space<smem>>
    %c1_1534 = arith.constant 1 : index
    %c6_1535 = arith.constant 6 : index
    %c2_1536 = arith.constant 2 : index
    %1972 = vector.load %arg6[%c1_1534, %c6_1535, %c2_1536] : memref<2x22x14xf32, #tpu.memory_space<vmem>>, vector<1x16x8xf32>
    %1973 = vector.shape_cast %1972 : vector<1x16x8xf32> to vector<16x8xf32>
    %1974 = vector.broadcast %1971 : f32 to vector<16x8xf32>
    %1975 = arith.mulf %1974, %1973 : vector<16x8xf32>
    %1976 = arith.addf %1970, %1975 : vector<16x8xf32>
    %c2_1537 = arith.constant 2 : index
    %c45_1538 = arith.constant 45 : index
    %1977 = memref.load %arg2[%c2_1537, %c45_1538] : memref<3x100xf32, #tpu.memory_space<smem>>
    %c0_1539 = arith.constant 0 : index
    %c6_1540 = arith.constant 6 : index
    %c3_1541 = arith.constant 3 : index
    %1978 = vector.load %arg6[%c0_1539, %c6_1540, %c3_1541] : memref<2x22x14xf32, #tpu.memory_space<vmem>>, vector<1x16x8xf32>
    %1979 = vector.shape_cast %1978 : vector<1x16x8xf32> to vector<16x8xf32>
    %1980 = vector.broadcast %1977 : f32 to vector<16x8xf32>
    %1981 = arith.mulf %1980, %1979 : vector<16x8xf32>
    %1982 = arith.addf %1976, %1981 : vector<16x8xf32>
    %c2_1542 = arith.constant 2 : index
    %c94_1543 = arith.constant 94 : index
    %1983 = memref.load %arg2[%c2_1542, %c94_1543] : memref<3x100xf32, #tpu.memory_space<smem>>
    %c1_1544 = arith.constant 1 : index
    %c6_1545 = arith.constant 6 : index
    %c3_1546 = arith.constant 3 : index
    %1984 = vector.load %arg6[%c1_1544, %c6_1545, %c3_1546] : memref<2x22x14xf32, #tpu.memory_space<vmem>>, vector<1x16x8xf32>
    %1985 = vector.shape_cast %1984 : vector<1x16x8xf32> to vector<16x8xf32>
    %1986 = vector.broadcast %1983 : f32 to vector<16x8xf32>
    %1987 = arith.mulf %1986, %1985 : vector<16x8xf32>
    %1988 = arith.addf %1982, %1987 : vector<16x8xf32>
    %c2_1547 = arith.constant 2 : index
    %c46_1548 = arith.constant 46 : index
    %1989 = memref.load %arg2[%c2_1547, %c46_1548] : memref<3x100xf32, #tpu.memory_space<smem>>
    %c0_1549 = arith.constant 0 : index
    %c6_1550 = arith.constant 6 : index
    %c4_1551 = arith.constant 4 : index
    %1990 = vector.load %arg6[%c0_1549, %c6_1550, %c4_1551] : memref<2x22x14xf32, #tpu.memory_space<vmem>>, vector<1x16x8xf32>
    %1991 = vector.shape_cast %1990 : vector<1x16x8xf32> to vector<16x8xf32>
    %1992 = vector.broadcast %1989 : f32 to vector<16x8xf32>
    %1993 = arith.mulf %1992, %1991 : vector<16x8xf32>
    %1994 = arith.addf %1988, %1993 : vector<16x8xf32>
    %c2_1552 = arith.constant 2 : index
    %c95_1553 = arith.constant 95 : index
    %1995 = memref.load %arg2[%c2_1552, %c95_1553] : memref<3x100xf32, #tpu.memory_space<smem>>
    %c1_1554 = arith.constant 1 : index
    %c6_1555 = arith.constant 6 : index
    %c4_1556 = arith.constant 4 : index
    %1996 = vector.load %arg6[%c1_1554, %c6_1555, %c4_1556] : memref<2x22x14xf32, #tpu.memory_space<vmem>>, vector<1x16x8xf32>
    %1997 = vector.shape_cast %1996 : vector<1x16x8xf32> to vector<16x8xf32>
    %1998 = vector.broadcast %1995 : f32 to vector<16x8xf32>
    %1999 = arith.mulf %1998, %1997 : vector<16x8xf32>
    %2000 = arith.addf %1994, %1999 : vector<16x8xf32>
    %c2_1557 = arith.constant 2 : index
    %c47_1558 = arith.constant 47 : index
    %2001 = memref.load %arg2[%c2_1557, %c47_1558] : memref<3x100xf32, #tpu.memory_space<smem>>
    %c0_1559 = arith.constant 0 : index
    %c6_1560 = arith.constant 6 : index
    %c5_1561 = arith.constant 5 : index
    %2002 = vector.load %arg6[%c0_1559, %c6_1560, %c5_1561] : memref<2x22x14xf32, #tpu.memory_space<vmem>>, vector<1x16x8xf32>
    %2003 = vector.shape_cast %2002 : vector<1x16x8xf32> to vector<16x8xf32>
    %2004 = vector.broadcast %2001 : f32 to vector<16x8xf32>
    %2005 = arith.mulf %2004, %2003 : vector<16x8xf32>
    %2006 = arith.addf %2000, %2005 : vector<16x8xf32>
    %c2_1562 = arith.constant 2 : index
    %c96_1563 = arith.constant 96 : index
    %2007 = memref.load %arg2[%c2_1562, %c96_1563] : memref<3x100xf32, #tpu.memory_space<smem>>
    %c1_1564 = arith.constant 1 : index
    %c6_1565 = arith.constant 6 : index
    %c5_1566 = arith.constant 5 : index
    %2008 = vector.load %arg6[%c1_1564, %c6_1565, %c5_1566] : memref<2x22x14xf32, #tpu.memory_space<vmem>>, vector<1x16x8xf32>
    %2009 = vector.shape_cast %2008 : vector<1x16x8xf32> to vector<16x8xf32>
    %2010 = vector.broadcast %2007 : f32 to vector<16x8xf32>
    %2011 = arith.mulf %2010, %2009 : vector<16x8xf32>
    %2012 = arith.addf %2006, %2011 : vector<16x8xf32>
    %c2_1567 = arith.constant 2 : index
    %c48_1568 = arith.constant 48 : index
    %2013 = memref.load %arg2[%c2_1567, %c48_1568] : memref<3x100xf32, #tpu.memory_space<smem>>
    %c0_1569 = arith.constant 0 : index
    %c6_1570 = arith.constant 6 : index
    %c6_1571 = arith.constant 6 : index
    %2014 = vector.load %arg6[%c0_1569, %c6_1570, %c6_1571] : memref<2x22x14xf32, #tpu.memory_space<vmem>>, vector<1x16x8xf32>
    %2015 = vector.shape_cast %2014 : vector<1x16x8xf32> to vector<16x8xf32>
    %2016 = vector.broadcast %2013 : f32 to vector<16x8xf32>
    %2017 = arith.mulf %2016, %2015 : vector<16x8xf32>
    %2018 = arith.addf %2012, %2017 : vector<16x8xf32>
    %c2_1572 = arith.constant 2 : index
    %c97_1573 = arith.constant 97 : index
    %2019 = memref.load %arg2[%c2_1572, %c97_1573] : memref<3x100xf32, #tpu.memory_space<smem>>
    %c1_1574 = arith.constant 1 : index
    %c6_1575 = arith.constant 6 : index
    %c6_1576 = arith.constant 6 : index
    %2020 = vector.load %arg6[%c1_1574, %c6_1575, %c6_1576] : memref<2x22x14xf32, #tpu.memory_space<vmem>>, vector<1x16x8xf32>
    %2021 = vector.shape_cast %2020 : vector<1x16x8xf32> to vector<16x8xf32>
    %2022 = vector.broadcast %2019 : f32 to vector<16x8xf32>
    %2023 = arith.mulf %2022, %2021 : vector<16x8xf32>
    %2024 = arith.addf %2018, %2023 : vector<16x8xf32>
    %c2_1577 = arith.constant 2 : index
    %c98_1578 = arith.constant 98 : index
    %2025 = memref.load %arg2[%c2_1577, %c98_1578] : memref<3x100xf32, #tpu.memory_space<smem>>
    %2026 = vector.broadcast %2025 : f32 to vector<16x8xf32>
    %2027 = arith.mulf %2024, %2026 : vector<16x8xf32>
    %c2_1579 = arith.constant 2 : index
    %c99_1580 = arith.constant 99 : index
    %2028 = memref.load %arg2[%c2_1579, %c99_1580] : memref<3x100xf32, #tpu.memory_space<smem>>
    %2029 = vector.broadcast %2028 : f32 to vector<16x8xf32>
    %2030 = arith.addf %2027, %2029 : vector<16x8xf32>
    %2031 = arith.negf %2030 : vector<16x8xf32>
    %2032 = math.exp %2031 : vector<16x8xf32>
    %cst_1581 = arith.constant 1.000000e+00 : f32
    %2033 = vector.broadcast %cst_1581 : f32 to vector<16x8xf32>
    %2034 = arith.addf %2033, %2032 : vector<16x8xf32>
    %2035 = arith.divf %2033, %2034 : vector<16x8xf32>
    %c0_1582 = arith.constant 0 : index
    %c0_1583 = arith.constant 0 : index
    %c0_1584 = arith.constant 0 : index
    %c0_1585 = arith.constant 0 : index
    %2036 = vector.load %arg1[%c0_1582, %c0_1583, %c0_1584, %c0_1585] : memref<1x8x16x16xf32, #tpu.memory_space<vmem>>, vector<1x1x16x16xf32>
    %2037 = vector.shape_cast %2036 : vector<1x1x16x16xf32> to vector<16x16xf32>
    %2038 = vector.extract_strided_slice %1435 {offsets = [0, 0], sizes = [1, 16], strides = [1, 1]} : vector<8x16xf32> to vector<1x16xf32>
    %2039 = vector.broadcast %2038 : vector<1x16xf32> to vector<16x16xf32>
    %2040 = arith.addf %835, %2039 : vector<16x16xf32>
    %2041 = vector.extract_strided_slice %2035 {offsets = [0, 0], sizes = [16, 1], strides = [1, 1]} : vector<16x8xf32> to vector<16x1xf32>
    %2042 = vector.broadcast %2041 : vector<16x1xf32> to vector<16x16xf32>
    %2043 = arith.addf %2040, %2042 : vector<16x16xf32>
    %cst_1586 = arith.constant 0.333333343 : f32
    %2044 = vector.broadcast %cst_1586 : f32 to vector<16x16xf32>
    %2045 = arith.mulf %2043, %2044 : vector<16x16xf32>
    %2046 = arith.mulf %2037, %2045 : vector<16x16xf32>
    %c0_1587 = arith.constant 0 : index
    %c0_1588 = arith.constant 0 : index
    %c0_1589 = arith.constant 0 : index
    %c0_1590 = arith.constant 0 : index
    %2047 = vector.load %arg3[%c0_1587, %c0_1588, %c0_1589, %c0_1590] : memref<1x8x16x16xf32, #tpu.memory_space<vmem>>, vector<1x1x16x16xf32>
    %2048 = vector.shape_cast %2047 : vector<1x1x16x16xf32> to vector<16x16xf32>
    %2049 = vector.shape_cast %2046 : vector<16x16xf32> to vector<1x1x16x16xf32>
    tpu.vector_store %arg3[%c0_1587, %c0_1588, %c0_1589, %c0_1590], %2049 {strides = array<i32>} : memref<1x8x16x16xf32, #tpu.memory_space<vmem>>, vector<1x1x16x16xf32>,
    %c0_1591 = arith.constant 0 : index
    %c1_1592 = arith.constant 1 : index
    %c0_1593 = arith.constant 0 : index
    %c0_1594 = arith.constant 0 : index
    %2050 = vector.load %arg1[%c0_1591, %c1_1592, %c0_1593, %c0_1594] : memref<1x8x16x16xf32, #tpu.memory_space<vmem>>, vector<1x1x16x16xf32>
    %2051 = vector.shape_cast %2050 : vector<1x1x16x16xf32> to vector<16x16xf32>
    %2052 = vector.extract_strided_slice %1435 {offsets = [1, 0], sizes = [1, 16], strides = [1, 1]} : vector<8x16xf32> to vector<1x16xf32>
    %2053 = vector.broadcast %2052 : vector<1x16xf32> to vector<16x16xf32>
    %2054 = arith.addf %835, %2053 : vector<16x16xf32>
    %2055 = vector.extract_strided_slice %2035 {offsets = [0, 1], sizes = [16, 1], strides = [1, 1]} : vector<16x8xf32> to vector<16x1xf32>
    %2056 = vector.broadcast %2055 : vector<16x1xf32> to vector<16x16xf32>
    %2057 = arith.addf %2054, %2056 : vector<16x16xf32>
    %cst_1595 = arith.constant 0.333333343 : f32
    %2058 = vector.broadcast %cst_1595 : f32 to vector<16x16xf32>
    %2059 = arith.mulf %2057, %2058 : vector<16x16xf32>
    %2060 = arith.mulf %2051, %2059 : vector<16x16xf32>
    %c0_1596 = arith.constant 0 : index
    %c1_1597 = arith.constant 1 : index
    %c0_1598 = arith.constant 0 : index
    %c0_1599 = arith.constant 0 : index
    %2061 = vector.load %arg3[%c0_1596, %c1_1597, %c0_1598, %c0_1599] : memref<1x8x16x16xf32, #tpu.memory_space<vmem>>, vector<1x1x16x16xf32>
    %2062 = vector.shape_cast %2061 : vector<1x1x16x16xf32> to vector<16x16xf32>
    %2063 = vector.shape_cast %2060 : vector<16x16xf32> to vector<1x1x16x16xf32>
    tpu.vector_store %arg3[%c0_1596, %c1_1597, %c0_1598, %c0_1599], %2063 {strides = array<i32>} : memref<1x8x16x16xf32, #tpu.memory_space<vmem>>, vector<1x1x16x16xf32>,
    %c0_1600 = arith.constant 0 : index
    %c2_1601 = arith.constant 2 : index
    %c0_1602 = arith.constant 0 : index
    %c0_1603 = arith.constant 0 : index
    %2064 = vector.load %arg1[%c0_1600, %c2_1601, %c0_1602, %c0_1603] : memref<1x8x16x16xf32, #tpu.memory_space<vmem>>, vector<1x1x16x16xf32>
    %2065 = vector.shape_cast %2064 : vector<1x1x16x16xf32> to vector<16x16xf32>
    %2066 = vector.extract_strided_slice %1435 {offsets = [2, 0], sizes = [1, 16], strides = [1, 1]} : vector<8x16xf32> to vector<1x16xf32>
    %2067 = vector.broadcast %2066 : vector<1x16xf32> to vector<16x16xf32>
    %2068 = arith.addf %835, %2067 : vector<16x16xf32>
    %2069 = vector.extract_strided_slice %2035 {offsets = [0, 2], sizes = [16, 1], strides = [1, 1]} : vector<16x8xf32> to vector<16x1xf32>
    %2070 = vector.broadcast %2069 : vector<16x1xf32> to vector<16x16xf32>
    %2071 = arith.addf %2068, %2070 : vector<16x16xf32>
    %cst_1604 = arith.constant 0.333333343 : f32
    %2072 = vector.broadcast %cst_1604 : f32 to vector<16x16xf32>
    %2073 = arith.mulf %2071, %2072 : vector<16x16xf32>
    %2074 = arith.mulf %2065, %2073 : vector<16x16xf32>
    %c0_1605 = arith.constant 0 : index
    %c2_1606 = arith.constant 2 : index
    %c0_1607 = arith.constant 0 : index
    %c0_1608 = arith.constant 0 : index
    %2075 = vector.load %arg3[%c0_1605, %c2_1606, %c0_1607, %c0_1608] : memref<1x8x16x16xf32, #tpu.memory_space<vmem>>, vector<1x1x16x16xf32>
    %2076 = vector.shape_cast %2075 : vector<1x1x16x16xf32> to vector<16x16xf32>
    %2077 = vector.shape_cast %2074 : vector<16x16xf32> to vector<1x1x16x16xf32>
    tpu.vector_store %arg3[%c0_1605, %c2_1606, %c0_1607, %c0_1608], %2077 {strides = array<i32>} : memref<1x8x16x16xf32, #tpu.memory_space<vmem>>, vector<1x1x16x16xf32>,
    %c0_1609 = arith.constant 0 : index
    %c3_1610 = arith.constant 3 : index
    %c0_1611 = arith.constant 0 : index
    %c0_1612 = arith.constant 0 : index
    %2078 = vector.load %arg1[%c0_1609, %c3_1610, %c0_1611, %c0_1612] : memref<1x8x16x16xf32, #tpu.memory_space<vmem>>, vector<1x1x16x16xf32>
    %2079 = vector.shape_cast %2078 : vector<1x1x16x16xf32> to vector<16x16xf32>
    %2080 = vector.extract_strided_slice %1435 {offsets = [3, 0], sizes = [1, 16], strides = [1, 1]} : vector<8x16xf32> to vector<1x16xf32>
    %2081 = vector.broadcast %2080 : vector<1x16xf32> to vector<16x16xf32>
    %2082 = arith.addf %835, %2081 : vector<16x16xf32>
    %2083 = vector.extract_strided_slice %2035 {offsets = [0, 3], sizes = [16, 1], strides = [1, 1]} : vector<16x8xf32> to vector<16x1xf32>
    %2084 = vector.broadcast %2083 : vector<16x1xf32> to vector<16x16xf32>
    %2085 = arith.addf %2082, %2084 : vector<16x16xf32>
    %cst_1613 = arith.constant 0.333333343 : f32
    %2086 = vector.broadcast %cst_1613 : f32 to vector<16x16xf32>
    %2087 = arith.mulf %2085, %2086 : vector<16x16xf32>
    %2088 = arith.mulf %2079, %2087 : vector<16x16xf32>
    %c0_1614 = arith.constant 0 : index
    %c3_1615 = arith.constant 3 : index
    %c0_1616 = arith.constant 0 : index
    %c0_1617 = arith.constant 0 : index
    %2089 = vector.load %arg3[%c0_1614, %c3_1615, %c0_1616, %c0_1617] : memref<1x8x16x16xf32, #tpu.memory_space<vmem>>, vector<1x1x16x16xf32>
    %2090 = vector.shape_cast %2089 : vector<1x1x16x16xf32> to vector<16x16xf32>
    %2091 = vector.shape_cast %2088 : vector<16x16xf32> to vector<1x1x16x16xf32>
    tpu.vector_store %arg3[%c0_1614, %c3_1615, %c0_1616, %c0_1617], %2091 {strides = array<i32>} : memref<1x8x16x16xf32, #tpu.memory_space<vmem>>, vector<1x1x16x16xf32>,
    %c0_1618 = arith.constant 0 : index
    %c4_1619 = arith.constant 4 : index
    %c0_1620 = arith.constant 0 : index
    %c0_1621 = arith.constant 0 : index
    %2092 = vector.load %arg1[%c0_1618, %c4_1619, %c0_1620, %c0_1621] : memref<1x8x16x16xf32, #tpu.memory_space<vmem>>, vector<1x1x16x16xf32>
    %2093 = vector.shape_cast %2092 : vector<1x1x16x16xf32> to vector<16x16xf32>
    %2094 = vector.extract_strided_slice %1435 {offsets = [4, 0], sizes = [1, 16], strides = [1, 1]} : vector<8x16xf32> to vector<1x16xf32>
    %2095 = vector.broadcast %2094 : vector<1x16xf32> to vector<16x16xf32>
    %2096 = arith.addf %835, %2095 : vector<16x16xf32>
    %2097 = vector.extract_strided_slice %2035 {offsets = [0, 4], sizes = [16, 1], strides = [1, 1]} : vector<16x8xf32> to vector<16x1xf32>
    %2098 = vector.broadcast %2097 : vector<16x1xf32> to vector<16x16xf32>
    %2099 = arith.addf %2096, %2098 : vector<16x16xf32>
    %cst_1622 = arith.constant 0.333333343 : f32
    %2100 = vector.broadcast %cst_1622 : f32 to vector<16x16xf32>
    %2101 = arith.mulf %2099, %2100 : vector<16x16xf32>
    %2102 = arith.mulf %2093, %2101 : vector<16x16xf32>
    %c0_1623 = arith.constant 0 : index
    %c4_1624 = arith.constant 4 : index
    %c0_1625 = arith.constant 0 : index
    %c0_1626 = arith.constant 0 : index
    %2103 = vector.load %arg3[%c0_1623, %c4_1624, %c0_1625, %c0_1626] : memref<1x8x16x16xf32, #tpu.memory_space<vmem>>, vector<1x1x16x16xf32>
    %2104 = vector.shape_cast %2103 : vector<1x1x16x16xf32> to vector<16x16xf32>
    %2105 = vector.shape_cast %2102 : vector<16x16xf32> to vector<1x1x16x16xf32>
    tpu.vector_store %arg3[%c0_1623, %c4_1624, %c0_1625, %c0_1626], %2105 {strides = array<i32>} : memref<1x8x16x16xf32, #tpu.memory_space<vmem>>, vector<1x1x16x16xf32>,
    %c0_1627 = arith.constant 0 : index
    %c5_1628 = arith.constant 5 : index
    %c0_1629 = arith.constant 0 : index
    %c0_1630 = arith.constant 0 : index
    %2106 = vector.load %arg1[%c0_1627, %c5_1628, %c0_1629, %c0_1630] : memref<1x8x16x16xf32, #tpu.memory_space<vmem>>, vector<1x1x16x16xf32>
    %2107 = vector.shape_cast %2106 : vector<1x1x16x16xf32> to vector<16x16xf32>
    %2108 = vector.extract_strided_slice %1435 {offsets = [5, 0], sizes = [1, 16], strides = [1, 1]} : vector<8x16xf32> to vector<1x16xf32>
    %2109 = vector.broadcast %2108 : vector<1x16xf32> to vector<16x16xf32>
    %2110 = arith.addf %835, %2109 : vector<16x16xf32>
    %2111 = vector.extract_strided_slice %2035 {offsets = [0, 5], sizes = [16, 1], strides = [1, 1]} : vector<16x8xf32> to vector<16x1xf32>
    %2112 = vector.broadcast %2111 : vector<16x1xf32> to vector<16x16xf32>
    %2113 = arith.addf %2110, %2112 : vector<16x16xf32>
    %cst_1631 = arith.constant 0.333333343 : f32
    %2114 = vector.broadcast %cst_1631 : f32 to vector<16x16xf32>
    %2115 = arith.mulf %2113, %2114 : vector<16x16xf32>
    %2116 = arith.mulf %2107, %2115 : vector<16x16xf32>
    %c0_1632 = arith.constant 0 : index
    %c5_1633 = arith.constant 5 : index
    %c0_1634 = arith.constant 0 : index
    %c0_1635 = arith.constant 0 : index
    %2117 = vector.load %arg3[%c0_1632, %c5_1633, %c0_1634, %c0_1635] : memref<1x8x16x16xf32, #tpu.memory_space<vmem>>, vector<1x1x16x16xf32>
    %2118 = vector.shape_cast %2117 : vector<1x1x16x16xf32> to vector<16x16xf32>
    %2119 = vector.shape_cast %2116 : vector<16x16xf32> to vector<1x1x16x16xf32>
    tpu.vector_store %arg3[%c0_1632, %c5_1633, %c0_1634, %c0_1635], %2119 {strides = array<i32>} : memref<1x8x16x16xf32, #tpu.memory_space<vmem>>, vector<1x1x16x16xf32>,
    %c0_1636 = arith.constant 0 : index
    %c6_1637 = arith.constant 6 : index
    %c0_1638 = arith.constant 0 : index
    %c0_1639 = arith.constant 0 : index
    %2120 = vector.load %arg1[%c0_1636, %c6_1637, %c0_1638, %c0_1639] : memref<1x8x16x16xf32, #tpu.memory_space<vmem>>, vector<1x1x16x16xf32>
    %2121 = vector.shape_cast %2120 : vector<1x1x16x16xf32> to vector<16x16xf32>
    %2122 = vector.extract_strided_slice %1435 {offsets = [6, 0], sizes = [1, 16], strides = [1, 1]} : vector<8x16xf32> to vector<1x16xf32>
    %2123 = vector.broadcast %2122 : vector<1x16xf32> to vector<16x16xf32>
    %2124 = arith.addf %835, %2123 : vector<16x16xf32>
    %2125 = vector.extract_strided_slice %2035 {offsets = [0, 6], sizes = [16, 1], strides = [1, 1]} : vector<16x8xf32> to vector<16x1xf32>
    %2126 = vector.broadcast %2125 : vector<16x1xf32> to vector<16x16xf32>
    %2127 = arith.addf %2124, %2126 : vector<16x16xf32>
    %cst_1640 = arith.constant 0.333333343 : f32
    %2128 = vector.broadcast %cst_1640 : f32 to vector<16x16xf32>
    %2129 = arith.mulf %2127, %2128 : vector<16x16xf32>
    %2130 = arith.mulf %2121, %2129 : vector<16x16xf32>
    %c0_1641 = arith.constant 0 : index
    %c6_1642 = arith.constant 6 : index
    %c0_1643 = arith.constant 0 : index
    %c0_1644 = arith.constant 0 : index
    %2131 = vector.load %arg3[%c0_1641, %c6_1642, %c0_1643, %c0_1644] : memref<1x8x16x16xf32, #tpu.memory_space<vmem>>, vector<1x1x16x16xf32>
    %2132 = vector.shape_cast %2131 : vector<1x1x16x16xf32> to vector<16x16xf32>
    %2133 = vector.shape_cast %2130 : vector<16x16xf32> to vector<1x1x16x16xf32>
    tpu.vector_store %arg3[%c0_1641, %c6_1642, %c0_1643, %c0_1644], %2133 {strides = array<i32>} : memref<1x8x16x16xf32, #tpu.memory_space<vmem>>, vector<1x1x16x16xf32>,
    %c0_1645 = arith.constant 0 : index
    %c7_1646 = arith.constant 7 : index
    %c0_1647 = arith.constant 0 : index
    %c0_1648 = arith.constant 0 : index
    %2134 = vector.load %arg1[%c0_1645, %c7_1646, %c0_1647, %c0_1648] : memref<1x8x16x16xf32, #tpu.memory_space<vmem>>, vector<1x1x16x16xf32>
    %2135 = vector.shape_cast %2134 : vector<1x1x16x16xf32> to vector<16x16xf32>
    %2136 = vector.extract_strided_slice %1435 {offsets = [7, 0], sizes = [1, 16], strides = [1, 1]} : vector<8x16xf32> to vector<1x16xf32>
    %2137 = vector.broadcast %2136 : vector<1x16xf32> to vector<16x16xf32>
    %2138 = arith.addf %835, %2137 : vector<16x16xf32>
    %2139 = vector.extract_strided_slice %2035 {offsets = [0, 7], sizes = [16, 1], strides = [1, 1]} : vector<16x8xf32> to vector<16x1xf32>
    %2140 = vector.broadcast %2139 : vector<16x1xf32> to vector<16x16xf32>
    %2141 = arith.addf %2138, %2140 : vector<16x16xf32>
    %cst_1649 = arith.constant 0.333333343 : f32
    %2142 = vector.broadcast %cst_1649 : f32 to vector<16x16xf32>
    %2143 = arith.mulf %2141, %2142 : vector<16x16xf32>
    %2144 = arith.mulf %2135, %2143 : vector<16x16xf32>
    %c0_1650 = arith.constant 0 : index
    %c7_1651 = arith.constant 7 : index
    %c0_1652 = arith.constant 0 : index
    %c0_1653 = arith.constant 0 : index
    %2145 = vector.load %arg3[%c0_1650, %c7_1651, %c0_1652, %c0_1653] : memref<1x8x16x16xf32, #tpu.memory_space<vmem>>, vector<1x1x16x16xf32>
    %2146 = vector.shape_cast %2145 : vector<1x1x16x16xf32> to vector<16x16xf32>
    %2147 = vector.shape_cast %2144 : vector<16x16xf32> to vector<1x1x16x16xf32>
    tpu.vector_store %arg3[%c0_1650, %c7_1651, %c0_1652, %c0_1653], %2147 {strides = array<i32>} : memref<1x8x16x16xf32, #tpu.memory_space<vmem>>, vector<1x1x16x16xf32>,
    return
  }
  func.func @transform_0(%arg0: i32) -> (i32, i32, i32, i32) {
    %c0_i32 = arith.constant 0 : i32
    %c0_i32_0 = arith.constant 0 : i32
    %c0_i32_1 = arith.constant 0 : i32
    %c0_i32_2 = arith.constant 0 : i32
    return %arg0, %c0_i32, %c0_i32_0, %c0_i32_1 : i32, i32, i32, i32
  }
  func.func @transform_1(%arg0: i32) -> (i32, i32) {
    %c0_i32 = arith.constant 0 : i32
    %c0_i32_0 = arith.constant 0 : i32
    %c0_i32_1 = arith.constant 0 : i32
    return %c0_i32, %c0_i32_0 : i32, i32
  }
  func.func @transform_2(%arg0: i32) -> (i32, i32, i32, i32) {
    %c0_i32 = arith.constant 0 : i32
    %c0_i32_0 = arith.constant 0 : i32
    %c0_i32_1 = arith.constant 0 : i32
    %c0_i32_2 = arith.constant 0 : i32
    return %arg0, %c0_i32, %c0_i32_0, %c0_i32_1 : i32, i32, i32, i32
  }
}

</mosaic_0001>

<bundles_post_ra>
// kernel: triplet_attention.1
= control target key start
LH: loop header
LB: loop body
LE: loop exit
PB: predicated region body
PF: predicated region fallthrough
CT: control target
= control target key end

     0   :  { %7 = vsyncpa [#allocation6], 0  ;;  %s7300_s0 = inlined_call_operand.hbm [shape: f32[2,8,16,16], index: 0, kind: input, shape index: {}]   ;;  %s7301_s1 = inlined_call_operand.hbm [shape: f32[3,100], index: 1, kind: input, shape index: {}]   ;;  %s7302_s2 = inlined_call_operand.hbm [shape: f32[2,8,16,16], index: 2, kind: output, shape index: {}]  }
   0x1   :  { %9 = vsyncpa [#allocation6 + $0x1], 0 }
   0x2   :  { %10 = vsyncpa [#allocation8], 0 }
   0x3   :  { %11 = vsyncpa [#allocation7], 0 }
   0x4   :  { %13 = vsyncpa [#allocation7 + $0x1], 0  ;;  %s4922_s9 = smov 0   ;;  %s4924_s10 = smov 0  }
   0x5   :  { %s4926_s11 = smov 0   ;;  %s4928_s12 = smov 0  }
   0x6 LB: > { %s4943_s13 = sadd.s32 4294967295, %s4882_s12   ;;  %s4296_s14 = sadd.s32 4294967294, %s4882_s12   ;;  %s4882_s12 = sphi %s4928_s12, %s7354_s12   ;;  %s4878_s11 = sphi %s4926_s11, %s7353_s11   ;;  %s4874_s10 = sphi %s4924_s10, %s7352_s10   ;;  %s4870_s9 = sphi %s4922_s9, %s7351_s9  }
   0x7   : > { %s4947_s15 = sadd.s32 1, %s4882_s12   ;;  %s26_s16 = sadd.s32 1, %s4878_s11 }
   0x8   : > { %s23_s17 = ssub.s32 %s4882_s12, %s4947_s15  ;;  %p33_p0 = scmp.ne.s32.totalorder %s4878_s11, %s4874_s10 }
   0x9   : > { %p24_p1 = scmp.eq.s32.totalorder %s23_s17, 0  ;;  %p34_p2 = scmp.eq.s32.totalorder %s4882_s12, 0 }
   0xa   : > { %p39_p3 = scmp.ne.s32.totalorder %s4874_s10, %s4870_s9  ;;  %p7303_p4 = scmp.eq.s32.totalorder %s4943_s13, 0 }
   0xb   : > { %s4959_s18 = scalar_select %p24_p1, %s4878_s11, %s26_s16  }
   0xc   : > { %p4961_p5 = por %p34_p2, %p33_p0  ;;  %p4967_p6 = por %p7303_p4, %p39_p3 }
   0xd   : > { %p84_p7 = scmp.eq.s32.totalorder %s4943_s13, 1  ;;  %p90_p8 = scmp.eq.s32.totalorder %s4296_s14, 1 }
   0xe   : > { %s7319_s20 = scalar_select %p4967_p6, 1, 0 }
   0xf   : > { %p4297_p9 = scmp.ge.s32.totalorder %s4882_s12, 1  ;;  %p97_p10 = scmp.lt.s32.totalorder %s4882_s12, 3 }
  0x10   : > { %p4974_p11 = por %p84_p7, %p33_p0  ;;  %p4978_p12 = por %p90_p8, %p39_p3 }
  0x11   : > { %p4982_p13 = pnand %p4297_p9, %p97_p10  ;;  %p4681_p4 = scmp.lt.s32.totalorder %s4882_s12, 2 }
  0x12   : > { %s7320_s21 = scalar_select %p4974_p11, 1, 0 }
  0x13   : > { %s7321_s22 = scalar_select %p4978_p12, 1, 0 }
  0x14   : > { %s7322_s23 = scalar_select %p4982_p13, 1, 0 }
  0x15   : > { %p4668_p2 = pneg %p4982_p13  ;;  %s119_s24 = sand.u32 1, %s4878_s11  }
  0x16   : > { %s4658_s25 = sshll.u32 %s4882_s12, 11  ;;  %p7323_p6 = scmp.eq.s32.totalorder %s4943_s13, 0 }
  0x17   : > { %p4996_p7 = pnand %p4681_p4, %p4961_p5  ;;  %s4300_s27 = sshll.u32 %s119_s24, 7 }
  0x18   : > { %p4669_p0 = pnand %p4668_p2, %p7323_p6  ;;  %s4884_s28 = smov [#allocation9]  }
  0x19   : > { %s5006_s5 = scalar_lea.hbm %s7300_s0, %s4658_s25  ;;  %s123_s6 = scalar_lea.vmem [#allocation5], %s4300_s27 }
  0x1a   : > { %4671 = dma.hbm_to_smem (!%p4669_p0), %s7301_s1, 64, %s4884_s28, [#allocation8]  }
  0x1b   : > { %s130_s7 = sshll.u32 %s123_s6, 4  ;;  %s5010_s8 = scalar_lea.sflag [#allocation6], %s119_s24  ;;  %s5008_s7 = int_to_ptr.vmem [resolvable:$true] %s130_s7 }
  0x1c   : > { %s4786_s14 = scalar_lea.hbm %s5006_s5, 2048  ;;  %p4788_p4 = pneg %p4996_p7 }
  0x1d   : > { %p4787_p3 = scmp.ne.s32.totalorder %s5006_s5, %s4786_s14  ;;  %s4791_s19 = scalar_lea.hbm %s7300_s0, 4096 }
  0x1e   : > { %p4792_p8 = scmp.lt.s32.totalorder %s5006_s5, %s7300_s0  ;;  %p4793_p9 = scmp.lt.s32.totalorder %s4791_s19, %s4786_s14 }
  0x1f   : > { %p4789_p5 = pnand %p4788_p4, %p4787_p3 }
  0x20   : > { %p4794_p10 = por %p4793_p9, %p4792_p8 }
  0x21   : > { %p4790_p6 = pneg %p4789_p5 }
  0x23   : > { %p4795_p2 = pnand %p4794_p10, %p4790_p6 }
  0x25   : > { %4798 = shalt.err (!%p4795_p2)
}
  0x26   : > { %s4799_s24 = scalar_lea.vmem %s5008_s7, 2048  ;;  %s4885_s27 = smov [#allocation5]  }
  0x27   : > { %p4800_p0 = scmp.ne.s32.totalorder %s5008_s7, %s4799_s24  ;;  %s4804_s29 = sshll.u32 %s4885_s27, 4  ;;  %s4805_s29 = int_to_ptr.vmem [resolvable:$false] %s4804_s29 }
  0x28   : > { %s4806_s30 = scalar_lea.vmem %s4805_s29, 4096  ;;  %p4807_p5 = scmp.lt.s32.totalorder %s5008_s7, %s4805_s29 }
  0x29   : > { %p4802_p1 = pnand %p4800_p0, %p4788_p4  ;;  %p4808_p12 = scmp.lt.s32.totalorder %s4806_s30, %s4799_s24 }
  0x2b   : > { %p4803_p3 = pneg %p4802_p1  ;;  %p4809_p11 = por %p4808_p12, %p4807_p5 }
  0x2d   : > { %p4810_p13 = pnand %p4809_p11, %p4803_p3 }
  0x2f   : > { %4813 = shalt.err (!%p4810_p13)
}
  0x30   : > { %s4886_s3 = smov 128   ;;  %s4887_s4 = smov 8  }
  0x31   : > { %4675 = dma.hbm_to_vmem [thread:$0]  (!%p4996_p7), %s5006_s5, 2048, %s5008_s7, %s5010_s8, %s4886_s3, %s4886_s3, %s4887_s4  }
  0x32   : > { %p7325_p4 = scmp.ne.s32.totalorder %s7322_s23, 0 }
  0x34   : > { %142 = sbr.rel (%p7325_p4) target bundleno = 1814 (0x716), region = 28 }
  0x39   : > { %s5034_s6 = sand.u32 1, %s4874_s10   ;;  %p7326_p11 = scmp.ne.s32.totalorder %s7319_s20, 0 }
  0x3a   : > { %s7307_s14 = sshll.u32 %s5034_s6, 7  ;;  %s145_s16 = scalar_lea.sflag [#allocation6], %s5034_s6 }
  0x3b   : > { %s5040_s17 = scalar_lea.vmem [#allocation5], %s7307_s14 }
  0x3c   : > { %4857 = dma.done.wait (%p7326_p11), %s145_s16, 2048  }
  0x3d   : > { %4859 = vsyncadd (%p7326_p11), %s145_s16, 4294965248  ;;  %p7327_p12 = scmp.eq.s32.totalorder %s4943_s13, 0 }
  0x3f   : > { %4861 = dma.done.wait (%p7327_p12), [#allocation8], 64   ;;  %p7328_p13 = pmov %p7327_p12 }
  0x41   : > { %4863 = vsyncadd (%p7328_p13), [#allocation8], 4294967232 }
  0x42   : > { %157 = sfence }
  0x43   : > { %v194_v0 = vld [vmem:[%s5040_s17] sm:$0xff]  ;;  %vm196_vm0 = vcmask 130048   ;;  %v4307_v1 = vld [vmem:[%s5040_s17 + $0x10] sm:$0xff]  ;;  %v195_v5 = vld [vmem:[%s5040_s17 + $0x8] sm:$0xff]  ;;  %vm174_vm1 = vcmask 179200   ;;  %v4888_v35 = vmov 0.0  }
  0x44   : > { %v197_v2 = vsel %vm196_vm0, %v194_v0, -inf  ;;  %v248_v3 = vmax.f32 %v194_v0, %v4307_v1  ;;  %v250_v4 = vadd.f32 %v4307_v1, %v194_v0  ;;  %v4308_v6 = vld [vmem:[%s5040_s17 + $0x18] sm:$0xff]  ;;  %v5056_v7 = vsel %vm196_vm0, %v194_v0, 0.0  ;;  %v5059_v8 = vld [vmem:[%s5040_s17 + $0x20] sm:$0xff]  ;;  %v5070_v15 = vld [vmem:[%s5040_s17 + $0x28] sm:$0xff]  ;;  %182 = vst.msk [vmem:[#allocation3] sm:$0xff] %vm174_vm1, %v4888_v35 }
  0x45   : > { %229 = vmax.xlane.f32.xlu1 %v197_v2  ;;  %v198_v9 = vsel %vm196_vm0, %v195_v5, -inf  ;;  %v249_v10 = vmax.f32 %v195_v5, %v4308_v6  ;;  %v251_v11 = vadd.f32 %v4308_v6, %v195_v5  ;;  %v213_v12 = vsel %vm196_vm0, %v195_v5, 0.0  ;;  %175 = vst.msk [vmem:[#allocation2] sm:$0xff] %vm174_vm1, %v4888_v35  ;;  %176 = vst.msk [vmem:[#allocation2 + $0x8] sm:$0xff] %vm174_vm1, %v4888_v35  ;;  %s4889_s20 = smov 3   ;;  %s4423_s23 = sld [smem:[#allocation9 + $0xb1]] }
  0x46   : > { %v5064_v13 = vmax.f32 %v248_v3, %v5059_v8  ;;  %v5067_v14 = vadd.f32 %v5059_v8, %v250_v4  ;;  %v199_v16 = vmax.f32 %v197_v2, %v198_v9  ;;  %v214_v17 = vadd.f32 %v213_v12, %v5056_v7  ;;  %179 = vst.msk [vmem:[#allocation2 + $0x18] sm:$0xff] %vm174_vm1, %v4888_v35  ;;  %s4422_s26 = sld [smem:[#allocation9 + $0x80]]  ;;  %s4890_s29 = smov 127  }
  0x47   : > { %v5074_v18 = vmax.f32 %v249_v10, %v5070_v15  ;;  %v5077_v19 = vadd.f32 %v5070_v15, %v251_v11  ;;  %v5080_v20 = vsel %vm196_vm0, %v4307_v1, -inf  ;;  %v253_v21 = vsel %vm196_vm0, %v4308_v6, -inf  ;;  %180 = vst.msk [vmem:[#allocation2 + $0x20] sm:$0xff] %vm174_vm1, %v4888_v35  ;;  %184 = vst.msk [vmem:[#allocation3 + $0x10] sm:$0xff] %vm174_vm1, %v4888_v35  ;;  %s5273_s5 = sld [smem:[#allocation9 + $0x100]]  ;;  %s4891_s4 = smov 126  }
  0x48   : > { %v200_v22 = vrot.slane %v199_v16, 4  ;;  %v215_v23 = vrot.slane %v214_v17, 4  ;;  %v254_v24 = vmax.f32 %v5080_v20, %v253_v21  ;;  %v266_v25 = vsel %vm196_vm0, %v4307_v1, 0.0  ;;  %s5275_s7 = sld [smem:[#allocation9 + $0x131]]  ;;  %p7348_p7 = scmp.ne.s32.totalorder %s7320_s21, 0 }
  0x49   : > { %231 = vmax.xlane.f32.xlu1 %v198_v9  ;;  %v267_v26 = vsel %vm196_vm0, %v4308_v6, 0.0  ;;  %vm186_vm2 = vcmask 113664   ;;  %vm189_vm3 = vcmask 111616   ;;  %v317_v53 = vsel %vm196_vm0, %v5059_v8, 0.0  ;;  %v5118_v9 = vld [vmem:[%s5040_s17 + $0x38] sm:$0xff]  ;;  %s5277_s8 = sld [smem:[#allocation9 + $0x31]] }
  0x4a   : > { %v201_v27 = vmax.f32 %v199_v16, %v200_v22  ;;  %v216_v28 = vadd.f32 %v215_v23, %v214_v17  ;;  %v255_v29 = vrot.slane %v254_v24, 4  ;;  %v268_v30 = vadd.f32 %v267_v26, %v266_v25  ;;  %187 = vst.msk [vmem:[#allocation4] sm:$0xff] %vm186_vm2, %v4888_v35  ;;  %188 = vst.msk [vmem:[#allocation4 + $0x8] sm:$0xff] %vm186_vm2, %v4888_v35  ;;  %s626_s19 = sld [smem:[#allocation9]] }
  0x4b   : > { %191 = vst.msk [vmem:[#allocation4 + $0x18] sm:$0xff] %vm186_vm2, %v4888_v35  ;;  %192 = vst.msk [vmem:[#allocation4 + $0x20] sm:$0xff] %vm186_vm2, %v4888_v35  ;;  %v318_v54 = vsel %vm196_vm0, %v5070_v15, 0.0  ;;  %v303_v56 = vsel %vm196_vm0, %v5059_v8, -inf  ;;  %v304_v57 = vsel %vm196_vm0, %v5070_v15, -inf  ;;  %v5115_v8 = vld [vmem:[%s5040_s17 + $0x30] sm:$0xff] }
  0x4c   : > { %v217_v31 = vrot.slane %v216_v28, 2  ;;  %v202_v32 = vrot.slane %v201_v27, 2  ;;  %v256_v33 = vmax.f32 %v254_v24, %v255_v29  ;;  %v269_v34 = vrot.slane %v268_v30, 4  ;;  %190 = vst.msk [vmem:[#allocation4 + $0x10] sm:$0x3f] %vm189_vm3, %v4888_v35  ;;  %s4322_s25 = sld [smem:[#allocation9 + $0x1]] }
  0x4d   : > { %238 = vadd.xlane.f32.xlu1 %v213_v12  ;;  %193 = vst.msk [vmem:[#allocation4 + $0x28] sm:$0x3f] %vm189_vm3, %v4888_v35  ;;  %v319_v55 = vadd.f32 %v318_v54, %v317_v53  ;;  %v305_v59 = vmax.f32 %v303_v56, %v304_v57  ;;  %v368_v10 = vsel %vm196_vm0, %v5115_v8, 0.0  ;;  %v369_v11 = vsel %vm196_vm0, %v5118_v9, 0.0  ;;  %s5281_s28 = sld [smem:[#allocation9 + $0x32]] }
  0x4e   : > { %v218_v36 = vadd.f32 %v217_v31, %v216_v28  ;;  %v203_v37 = vmax.f32 %v201_v27, %v202_v32  ;;  %v257_v38 = vrot.slane %v256_v33, 2  ;;  %v270_v39 = vadd.f32 %v269_v34, %v268_v30  ;;  %s4324_s24 = sld [smem:[#allocation9 + $0x2]] }
  0x4f   : > { %v320_v58 = vrot.slane %v319_v55, 4  ;;  %v306_v61 = vrot.slane %v305_v59, 4  ;;  %v370_v12 = vadd.f32 %v369_v11, %v368_v10  ;;  %v354_v17 = vsel %vm196_vm0, %v5115_v8, -inf  ;;  %s4325_s27 = sld [smem:[#allocation9 + $0x33]] }
  0x50   : > { %v204_v40 = vrot.slane %v203_v37, 1  ;;  %v219_v41 = vrot.slane %v218_v36, 1  ;;  %v271_v42 = vrot.slane %v270_v39, 2  ;;  %v258_v45 = vmax.f32 %v256_v33, %v257_v38  ;;  %s4326_s30 = sld [smem:[#allocation9 + $0x3]] }
  0x51   : > { %v321_v60 = vadd.f32 %v320_v58, %v319_v55  ;;  %v307_v63 = vmax.f32 %v305_v59, %v306_v61  ;;  %v371_v15 = vrot.slane %v370_v12, 4  ;;  %vm210_vm4 = vcmask 147480   ;;  %s4327_s3 = sld [smem:[#allocation9 + $0x34]] }
  0x52   : > { %v205_v43 = vmax.f32 %v203_v37, %v204_v40  ;;  %v220_v44 = vadd.f32 %v219_v41, %v218_v36  ;;  %v272_v46 = vadd.f32 %v271_v42, %v270_v39  ;;  %v259_v48 = vrot.slane %v258_v45, 1  ;;  %v5137_v41 = vld [vmem:[%s5040_s17 + $0x40] sm:$0xff]  ;;  %v5140_v42 = vld [vmem:[%s5040_s17 + $0x48] sm:$0xff]  ;;  %s4328_s16 = sld [smem:[#allocation9 + $0x4]] }
  0x53   : > { %v322_v62 = vrot.slane %v321_v60, 2  ;;  %v308_v1 = vrot.slane %v307_v63, 2  ;;  %v372_v16 = vadd.f32 %v371_v15, %v370_v12  ;;  %vm233_vm5 = vcmask 31768   ;;  %v5164_v12 = vld [vmem:[%s5040_s17 + $0x58] sm:$0xff]  ;;  %s5850_s14 = sld [smem:[#allocation9 + $0x86]] }
  0x54   : > { %207 = vrot.lane.b32.xlu0 %v205_v43, %s4889_s20  ;;  %v222_v47 = vmul.f32 0.0625, %v220_v44  ;;  %v273_v49 = vrot.slane %v272_v46, 1  ;;  %v260_v50 = vmax.f32 %v258_v45, %v259_v48  ;;  %v419_v44 = vsel %vm196_vm0, %v5137_v41, 0.0 }
  0x55   : > { %v323_v0 = vadd.f32 %v322_v62, %v321_v60  ;;  %v309_v3 = vmax.f32 %v307_v63, %v308_v1  ;;  %v420_v45 = vsel %vm196_vm0, %v5140_v42, 0.0  ;;  %vm285_vm6 = vcmask 39968  }
  0x56   : > { %v274_v51 = vadd.f32 %v273_v49, %v272_v46  ;;  %v421_v46 = vadd.f32 %v420_v45, %v419_v44  ;;  %vm177_vm7 = vcmask 177152   ;;  %vm336_vm8 = vcmask 48168  }
  0x57   : > { %v324_v2 = vrot.slane %v323_v0, 1  ;;  %v310_v5 = vrot.slane %v309_v3, 1  ;;  %185 = vst.msk [vmem:[#allocation3 + $0x18] sm:$0x3f] %vm177_vm7, %v4888_v35  ;;  %178 = vst.msk [vmem:[#allocation2 + $0x10] sm:$0x3f] %vm177_vm7, %v4888_v35 }
  0x58   : > { %224 = vrot.lane.b32.xlu0 %v222_v47, %s4889_s20  ;;  %v275_v52 = vmul.f32 0.0625, %v274_v51  ;;  %v422_v47 = vrot.slane %v421_v46, 4  ;;  %v405_v51 = vsel %vm196_vm0, %v5137_v41, -inf  ;;  %181 = vst.msk [vmem:[#allocation2 + $0x28] sm:$0x3f] %vm177_vm7, %v4888_v35  ;;  %vm387_vm9 = vcmask 56368  }
  0x59   : > { %v325_v4 = vadd.f32 %v324_v2, %v323_v0  ;;  %183 = vst.msk [vmem:[#allocation3 + $0x8] sm:$0x3f] %vm177_vm7, %v4888_v35  ;;  %vm438_vm10 = vcmask 64568   ;;  %vm489_vm11 = vcmask 72768   ;;  %vm540_vm12 = vcmask 80968  }
  0x5a   : > { %v423_v48 = vadd.f32 %v422_v47, %v421_v46  ;;  %v5182_v46 = vld [vmem:[%s5040_s17 + $0x60] sm:$0xff]  ;;  %v5185_v47 = vld [vmem:[%s5040_s17 + $0x68] sm:$0xff]  ;;  %vm591_vm13 = vcmask 89168   ;;  %vm610_vm14 = vcmask 154648  }
  0x5b   : > { %v326_v6 = vmul.f32 0.0625, %v325_v4 }
  0x5c   : > { %v424_v49 = vrot.slane %v423_v48, 2 }
  0x5e   : > { %262 = vrot.lane.b32.xlu1 %v260_v50, %s4889_s20  ;;  %v425_v50 = vadd.f32 %v424_v49, %v423_v48  ;;  %v5190_v48 = vsel %vm196_vm0, %v5182_v46, 0.0  ;;  %v522_v49 = vsel %vm196_vm0, %v5185_v47, 0.0 }
  0x62   : > { %277 = vrot.lane.b32.xlu1 %v275_v52, %s4889_s20  ;;  %v406_v52 = vsel %vm196_vm0, %v5140_v42, -inf }
  0x77   : > { %236 = vadd.xlane.f32.xlu0 %v5056_v7  ;;  %v311_v7 = vmax.f32 %v309_v3, %v310_v5 }
  0x7b   : > { %283 = vmax.xlane.f32.xlu0 %v253_v21  ;;  %v373_v21 = vrot.slane %v372_v16, 2 }
  0x7d   : > { %v374_v23 = vadd.f32 %v373_v21, %v372_v16  ;;  %v471_v16 = vsel %vm196_vm0, %v5164_v12, 0.0 }
  0x7f   : > { %288 = vadd.xlane.f32.xlu0 %v266_v25  ;;  %v375_v25 = vrot.slane %v374_v23, 1 }
  0x81   : > { %v376_v27 = vadd.f32 %v375_v25, %v374_v23  ;;  %v457_v25 = vsel %vm196_vm0, %v5164_v12, -inf }
  0x83   : > { %290 = vadd.xlane.f32.xlu0 %v267_v26  ;;  %v377_v30 = vmul.f32 0.0625, %v376_v27 }
  0x86   : > { %281 = vmax.xlane.f32.xlu1 %v5080_v20  ;;  %v355_v20 = vsel %vm196_vm0, %v5118_v9, -inf }
  0x87   : > { %v356_v22 = vmax.f32 %v354_v17, %v355_v20 }
  0x89   : > { %v357_v24 = vrot.slane %v356_v22, 4 }
  0x8b   : > { %v358_v26 = vmax.f32 %v356_v22, %v357_v24 }
  0x8d   : > { %v359_v29 = vrot.slane %v358_v26, 2 }
  0x8f   : > { %v360_v32 = vmax.f32 %v358_v26, %v359_v29 }
  0x91   : > { %v361_v34 = vrot.slane %v360_v32, 1 }
  0x93   : > { %v362_v37 = vmax.f32 %v360_v32, %v361_v34 }
  0x97   : > { %328 = vrot.lane.b32.xlu1 %v326_v6, %s4889_s20 }
  0x99   : > { %313 = vrot.lane.b32.xlu0 %v311_v7, %s4889_s20 }
  0xb8   : > { %332 = vmax.xlane.f32.xlu0 %v303_v56 }
  0xbb   : > { %334 = vmax.xlane.f32.xlu1 %v304_v57 }
  0xbc   : > { %339 = vadd.xlane.f32.xlu0 %v317_v53  ;;  %v426_v53 = vrot.slane %v425_v50, 1 }
  0xbe   : > { %v427_v55 = vadd.f32 %v426_v53, %v425_v50  ;;  %v523_v50 = vadd.f32 %v522_v49, %v5190_v48 }
  0xc0   : > { %341 = vadd.xlane.f32.xlu0 %v318_v54  ;;  %v407_v54 = vmax.f32 %v405_v51, %v406_v52  ;;  %v428_v57 = vmul.f32 0.0625, %v427_v55  ;;  %v507_v55 = vsel %vm196_vm0, %v5182_v46, -inf }
  0xc2   : > { %v408_v56 = vrot.slane %v407_v54, 4 }
  0xc4   : > { %v409_v58 = vmax.f32 %v407_v54, %v408_v56  ;;  %v508_v56 = vsel %vm196_vm0, %v5185_v47, -inf }
  0xc6   : > { %v208_v28 = vpop.permute.xlu0 %207  ;;  %v410_v61 = vrot.slane %v409_v58, 2 }
  0xc7   : > { %211 = vst.msk [vmem:[#allocation3 + $0x3] sm:$0x1] %vm210_vm4, %v208_v28 }
  0xc8   : > { %v411_v63 = vmax.f32 %v409_v58, %v410_v61  ;;  %v509_v58 = vmax.f32 %v507_v55, %v508_v56 }
  0xca   : > { %v225_v31 = vpop.permute.xlu0 %224  ;;  %v412_v2 = vrot.slane %v411_v63, 1 }
  0xcb   : > { %228 = vst.msk [vmem:[#allocation3 + $0x13] sm:$0x1] %vm210_vm4, %v225_v31 }
  0xcc   : > { %379 = vrot.lane.b32.xlu1 %v377_v30, %s4889_s20  ;;  %v413_v6 = vmax.f32 %v411_v63, %v412_v2 }
  0xce   : > { %v230_v33 = vpop.xlane.xlu1 %229 }
  0xcf   : > { %234 = vst.msk [vmem:[#allocation4 + $0x3] sm:$0xff] %vm233_vm5, %v230_v33 }
  0xd2   : > { %v232_v36 = vpop.xlane.xlu1 %231 }
  0xd3   : > { %235 = vst.msk [vmem:[#allocation4 + $0xb] sm:$0xff] %vm233_vm5, %v232_v36 }
  0xd6   : > { %364 = vrot.lane.b32.xlu0 %v362_v37, %s4889_s20  ;;  %v239_v38 = vpop.xlane.xlu1 %238 }
  0xd7   : > { %v241_v39 = vmul.f32 0.0625, %v239_v38 }
  0xd9   : > { %244 = vst.msk [vmem:[#allocation4 + $0x23] sm:$0xff] %vm233_vm5, %v241_v39 }
  0xda   : > { %v263_v40 = vpop.permute.xlu1 %262 }
  0xdb   : > { %265 = vst.msk [vmem:[#allocation3 + $0x4] sm:$0x1] %vm210_vm4, %v263_v40 }
  0xde   : > { %v278_v43 = vpop.permute.xlu1 %277 }
  0xdf   : > { %280 = vst.msk [vmem:[#allocation3 + $0x14] sm:$0x1] %vm210_vm4, %v278_v43 }
  0xf0   : > { %385 = vmax.xlane.f32.xlu1 %v355_v20 }
  0xf5   : > { %383 = vmax.xlane.f32.xlu0 %v354_v17 }
  0xf9   : > { %390 = vadd.xlane.f32.xlu0 %v368_v10 }
  0xfd   : > { %392 = vadd.xlane.f32.xlu0 %v369_v11  ;;  %v5161_v11 = vld [vmem:[%s5040_s17 + $0x50] sm:$0xff] }
  0xfe   : > { %v470_v15 = vsel %vm196_vm0, %v5161_v11, 0.0  ;;  %v456_v24 = vsel %vm196_vm0, %v5161_v11, -inf }
  0xff   : > { %v472_v17 = vadd.f32 %v471_v16, %v470_v15  ;;  %v458_v27 = vmax.f32 %v456_v24, %v457_v25 }
 0x100   : > { %v237_v59 = vpop.xlane.xlu0 %236 }
 0x101   : > { %v240_v60 = vmul.f32 0.0625, %v237_v59  ;;  %430 = vrot.lane.b32.xlu1 %v428_v57, %s4889_s20  ;;  %v473_v20 = vrot.slane %v472_v17, 4  ;;  %v459_v29 = vrot.slane %v458_v27, 4 }
 0x103   : > { %243 = vst.msk [vmem:[#allocation4 + $0x1b] sm:$0xff] %vm233_vm5, %v240_v60  ;;  %v474_v21 = vadd.f32 %v473_v20, %v472_v17  ;;  %v460_v31 = vmax.f32 %v458_v27, %v459_v29  ;;  %v510_v60 = vrot.slane %v509_v58, 4 }
 0x104   : > { %v284_v62 = vpop.xlane.xlu0 %283 }
 0x105   : > { %287 = vst.msk [vmem:[#allocation4 + $0xb] sm:$0xff] %vm285_vm6, %v284_v62  ;;  %v475_v22 = vrot.slane %v474_v21, 2  ;;  %v461_v32 = vrot.slane %v460_v31, 2  ;;  %v511_v62 = vmax.f32 %v509_v58, %v510_v60  ;;  %v352_v60 = vadd.f32 %v5115_v8, %v5067_v14 }
 0x106   : > { %v350_v14 = vmax.f32 %v5064_v13, %v5115_v8 }
 0x107   : > { %v476_v23 = vadd.f32 %v475_v22, %v474_v21  ;;  %v462_v33 = vmax.f32 %v460_v31, %v461_v32  ;;  %v512_v63 = vrot.slane %v511_v62, 2 }
 0x108   : > { %v289_v0 = vpop.xlane.xlu0 %288 }
 0x109   : > { %v292_v1 = vmul.f32 0.0625, %v289_v0  ;;  %v477_v26 = vrot.slane %v476_v23, 1  ;;  %v463_v37 = vrot.slane %v462_v33, 1 }
 0x10b   : > { %294 = vst.msk [vmem:[#allocation4 + $0x1b] sm:$0xff] %vm285_vm6, %v292_v1  ;;  %v478_v28 = vadd.f32 %v477_v26, %v476_v23  ;;  %v464_v43 = vmax.f32 %v462_v33, %v463_v37  ;;  %v513_v1 = vmax.f32 %v511_v62, %v512_v63  ;;  %v1936_v26 = vstv %s4422_s26  ;;  %s4330_s26 = sld [smem:[#allocation9 + $0x5]] }
 0x10c   : > { %v291_v3 = vpop.xlane.xlu0 %290  ;;  %v403_v62 = vadd.f32 %v5137_v41, %v352_v60 }
 0x10d   : > { %v293_v4 = vmul.f32 0.0625, %v291_v3  ;;  %v479_v30 = vmul.f32 0.0625, %v478_v28  ;;  %v514_v3 = vrot.slane %v513_v1, 1 }
 0x10f   : > { %295 = vst.msk [vmem:[#allocation4 + $0x23] sm:$0xff] %vm285_vm6, %v293_v4  ;;  %v282_v5 = vpop.xlane.xlu1 %281 }
 0x110   : > { %v314_v7 = vpop.permute.xlu0 %313  ;;  %286 = vst.msk [vmem:[#allocation4 + $0x3] sm:$0xff] %vm285_vm6, %v282_v5  ;;  %v515_v5 = vmax.f32 %v513_v1, %v514_v3 }
 0x111   : > { %316 = vst.msk [vmem:[#allocation3 + $0x5] sm:$0x1] %vm210_vm4, %v314_v7 }
 0x113   : > { %415 = vrot.lane.b32.xlu0 %v413_v6, %s4889_s20  ;;  %v329_v10 = vpop.permute.xlu1 %328 }
 0x114   : > { %331 = vst.msk [vmem:[#allocation3 + $0x15] sm:$0x1] %vm210_vm4, %v329_v10 }
 0x125   : > { %434 = vmax.xlane.f32.xlu1 %v405_v51  ;;  %v524_v51 = vrot.slane %v523_v50, 4 }
 0x129   : > { %443 = vadd.xlane.f32.xlu1 %v420_v45 }
 0x132   : > { %436 = vmax.xlane.f32.xlu0 %v406_v52  ;;  %v525_v52 = vadd.f32 %v524_v51, %v523_v50 }
 0x134   : > { %v526_v53 = vrot.slane %v525_v52, 2 }
 0x136   : > { %441 = vadd.xlane.f32.xlu0 %v419_v44  ;;  %v527_v54 = vadd.f32 %v526_v53, %v525_v52 }
 0x138   : > { %v528_v57 = vrot.slane %v527_v54, 1 }
 0x13a   : > { %481 = vrot.lane.b32.xlu1 %v479_v30, %s4889_s20  ;;  %v529_v59 = vadd.f32 %v528_v57, %v527_v54 }
 0x13c   : > { %v530_v61 = vmul.f32 0.0625, %v529_v59  ;;  %v351_v59 = vmax.f32 %v5074_v18, %v5118_v9 }
 0x141   : > { %v333_v34 = vpop.xlane.xlu0 %332 }
 0x142   : > { %337 = vst.msk [vmem:[#allocation4 + $0x3] sm:$0xff] %vm336_vm8, %v333_v34 }
 0x144   : > { %v335_v36 = vpop.xlane.xlu1 %334 }
 0x145   : > { %v340_v38 = vpop.xlane.xlu0 %339  ;;  %338 = vst.msk [vmem:[#allocation4 + $0xb] sm:$0xff] %vm336_vm8, %v335_v36 }
 0x146   : > { %v343_v39 = vmul.f32 0.0625, %v340_v38 }
 0x148   : > { %345 = vst.msk [vmem:[#allocation4 + $0x1b] sm:$0xff] %vm336_vm8, %v343_v39  ;;  %v380_v40 = vpop.permute.xlu1 %379 }
 0x149   : > { %v342_v44 = vpop.xlane.xlu0 %341  ;;  %382 = vst.msk [vmem:[#allocation3 + $0x16] sm:$0x1] %vm210_vm4, %v380_v40 }
 0x14a   : > { %v344_v35 = vmul.f32 0.0625, %v342_v44 }
 0x14c   : > { %346 = vst.msk [vmem:[#allocation4 + $0x23] sm:$0xff] %vm336_vm8, %v344_v35  ;;  %466 = vrot.lane.b32.xlu0 %v464_v43, %s4889_s20 }
 0x14d   : > { %v365_v45 = vpop.permute.xlu0 %364 }
 0x14e   : > { %367 = vst.msk [vmem:[#allocation3 + $0x6] sm:$0x1] %vm210_vm4, %v365_v45 }
 0x15e   : > { %485 = vmax.xlane.f32.xlu1 %v456_v24  ;;  %v1941_v24 = vstv %s4423_s23  ;;  %s4892_s23 = smov 125  }
 0x162   : > { %494 = vadd.xlane.f32.xlu1 %v471_v16  ;;  %v5209_v16 = vld [vmem:[%s5040_s17 + $0x78] sm:$0xff] }
 0x163   : > { %v573_v21 = vsel %vm196_vm0, %v5209_v16, 0.0  ;;  %v559_v37 = vsel %vm196_vm0, %v5209_v16, -inf }
 0x16b   : > { %487 = vmax.xlane.f32.xlu0 %v457_v25 }
 0x16f   : > { %492 = vadd.xlane.f32.xlu0 %v470_v15  ;;  %v5206_v15 = vld [vmem:[%s5040_s17 + $0x70] sm:$0xff] }
 0x170   : > { %v572_v20 = vsel %vm196_vm0, %v5206_v15, 0.0  ;;  %v558_v36 = vsel %vm196_vm0, %v5206_v15, -inf }
 0x171   : > { %v574_v23 = vadd.f32 %v573_v21, %v572_v20  ;;  %v560_v39 = vmax.f32 %v558_v36, %v559_v37 }
 0x173   : > { %532 = vrot.lane.b32.xlu1 %v530_v61, %s4889_s20  ;;  %v575_v27 = vrot.slane %v574_v23, 4  ;;  %v561_v43 = vrot.slane %v560_v39, 4  ;;  %v402_v61 = vmax.f32 %v351_v59, %v5140_v42  ;;  %v657_v59 = vstv %s5281_s28  ;;  %s4333_s28 = sld [smem:[#allocation9 + $0x37]] }
 0x175   : > { %v576_v31 = vadd.f32 %v575_v27, %v574_v23  ;;  %v562_v35 = vmax.f32 %v560_v39, %v561_v43  ;;  %v453_v63 = vmax.f32 %v402_v61, %v5164_v12 }
 0x177   : > { %v577_v33 = vrot.slane %v576_v31, 2  ;;  %v504_v1 = vmax.f32 %v453_v63, %v5185_v47 }
 0x179   : > { %v386_v0 = vpop.xlane.xlu1 %385  ;;  %v578_v34 = vadd.f32 %v577_v33, %v576_v31  ;;  %v555_v18 = vmax.f32 %v504_v1, %v5209_v16 }
 0x17a   : > { %389 = vst.msk [vmem:[#allocation4 + $0xb] sm:$0xff] %vm387_vm9, %v386_v0  ;;  %v454_v0 = vadd.f32 %v5161_v11, %v403_v62 }
 0x17b   : > { %v579_v38 = vrot.slane %v578_v34, 1 }
 0x17d   : > { %v431_v2 = vpop.permute.xlu1 %430  ;;  %v580_v40 = vadd.f32 %v579_v38, %v578_v34 }
 0x17e   : > { %433 = vst.msk [vmem:[#allocation3 + $0x17] sm:$0x1] %vm210_vm4, %v431_v2  ;;  %v384_v4 = vpop.xlane.xlu0 %383  ;;  %v505_v2 = vadd.f32 %v5182_v46, %v454_v0 }
 0x17f   : > { %388 = vst.msk [vmem:[#allocation4 + $0x3] sm:$0xff] %vm387_vm9, %v384_v4  ;;  %v581_v44 = vmul.f32 0.0625, %v580_v40  ;;  %v353_v4 = vadd.f32 %v5118_v9, %v5077_v19  ;;  %v7308_v40 = vstv %s5273_s5 }
 0x180   : > { %v556_v3 = vadd.f32 %v5206_v15, %v505_v2 }
 0x182   : > { %v391_v6 = vpop.xlane.xlu0 %390 }
 0x183   : > { %v394_v7 = vmul.f32 0.0625, %v391_v6 }
 0x185   : > { %396 = vst.msk [vmem:[#allocation4 + $0x1b] sm:$0xff] %vm387_vm9, %v394_v7  ;;  %517 = vrot.lane.b32.xlu0 %v515_v5, %s4889_s20  ;;  %v1940_v25 = vld [vmem:[#allocation3 + $0x10] sm:$0xff]  ;;  %v613_v5 = vmul.f32 0.125, %v556_v3  ;;  %v401_v7 = vmax.f32 %v350_v14, %v5137_v41  ;;  %v671_v14 = vstv %s4324_s24  ;;  %s4894_s24 = smov 123  }
 0x186   : > { %v393_v10 = vpop.xlane.xlu0 %392  ;;  %v1942_v29 = vmul.f32 %v1941_v24, %v1940_v25 }
 0x187   : > { %v395_v17 = vmul.f32 0.0625, %v393_v10  ;;  %v404_v10 = vadd.f32 %v5140_v42, %v353_v4 }
 0x189   : > { %397 = vst.msk [vmem:[#allocation4 + $0x23] sm:$0xff] %vm387_vm9, %v395_v17  ;;  %v455_v13 = vadd.f32 %v5164_v12, %v404_v10 }
 0x18a   : > { %v416_v22 = vpop.permute.xlu0 %415 }
 0x18b   : > { %418 = vst.msk [vmem:[#allocation3 + $0x7] sm:$0x1] %vm210_vm4, %v416_v22 }
 0x192   : > { %v1935_v28 = vld [vmem:[#allocation3] sm:$0xff] }
 0x193   : > { %v1937_v30 = vmul.f32 %v1936_v26, %v1935_v28 }
 0x195   : > { %v5217_v32 = vadd.f32 %v1942_v29, %v1937_v30 }
 0x197   : > { %536 = vmax.xlane.f32.xlu1 %v507_v55 }
 0x19b   : > { %545 = vadd.xlane.f32.xlu1 %v522_v49  ;;  %v563_v49 = vrot.slane %v562_v35, 2 }
 0x19d   : > { %v564_v51 = vmax.f32 %v562_v35, %v563_v49  ;;  %v637_v35 = vstv %s5277_s8  ;;  %s4331_s8 = sld [smem:[#allocation9 + $0x36]] }
 0x19f   : > { %v565_v54 = vrot.slane %v564_v51, 1 }
 0x1a1   : > { %v566_v55 = vmax.f32 %v564_v51, %v565_v54  ;;  %v629_v51 = vstv %s626_s19  ;;  %s4893_s19 = smov 124  }
 0x1a4   : > { %538 = vmax.xlane.f32.xlu0 %v508_v56 }
 0x1a8   : > { %543 = vadd.xlane.f32.xlu0 %v5190_v48 }
 0x1ac   : > { %583 = vrot.lane.b32.xlu1 %v581_v44, %s4889_s20  ;;  %v7309_v44 = vstv %s5275_s7 }
 0x1ae   : > { %v435_v45 = vpop.xlane.xlu1 %434 }
 0x1af   : > { %439 = vst.msk [vmem:[#allocation4 + $0x3] sm:$0xff] %vm438_vm10, %v435_v45 }
 0x1b2   : > { %v444_v50 = vpop.xlane.xlu1 %443 }
 0x1b3   : > { %v446_v52 = vmul.f32 0.0625, %v444_v50 }
 0x1b5   : > { %448 = vst.msk [vmem:[#allocation4 + $0x23] sm:$0xff] %vm438_vm10, %v446_v52 }
 0x1b6   : > { %v482_v53 = vpop.permute.xlu1 %481 }
 0x1b7   : > { %484 = vst.msk [vmem:[#allocation3 + $0x18] sm:$0x1] %vm210_vm4, %v482_v53 }
 0x1bb   : > { %v437_v48 = vpop.xlane.xlu0 %436 }
 0x1bc   : > { %440 = vst.msk [vmem:[#allocation4 + $0xb] sm:$0xff] %vm438_vm10, %v437_v48 }
 0x1be   : > { %568 = vrot.lane.b32.xlu0 %v566_v55, %s4889_s20 }
 0x1bf   : > { %v442_v56 = vpop.xlane.xlu0 %441 }
 0x1c0   : > { %v445_v57 = vmul.f32 0.0625, %v442_v56  ;;  %v643_v56 = vstv %s4322_s25  ;;  %s4332_s25 = sld [smem:[#allocation9 + $0x6]] }
 0x1c2   : > { %447 = vst.msk [vmem:[#allocation4 + $0x1b] sm:$0xff] %vm438_vm10, %v445_v57 }
 0x1c3   : > { %v467_v58 = vpop.permute.xlu0 %466 }
 0x1c4   : > { %469 = vst.msk [vmem:[#allocation3 + $0x8] sm:$0x1] %vm210_vm4, %v467_v58 }
 0x1d0   : > { %587 = vmax.xlane.f32.xlu1 %v558_v36 }
 0x1d4   : > { %596 = vadd.xlane.f32.xlu1 %v573_v21  ;;  %v506_v21 = vadd.f32 %v5185_v47, %v455_v13 }
 0x1d6   : > { %v557_v42 = vadd.f32 %v5209_v16, %v506_v21  ;;  %v727_v21 = vstv %s4328_s16  ;;  %s4338_s16 = sld [smem:[#allocation9 + $0x9]] }
 0x1dd   : > { %589 = vmax.xlane.f32.xlu0 %v559_v37 }
 0x1e1   : > { %594 = vadd.xlane.f32.xlu0 %v572_v20  ;;  %v452_v20 = vmax.f32 %v401_v7, %v5161_v11  ;;  %v614_v11 = vmul.f32 0.125, %v557_v42 }
 0x1e3   : > { %v503_v9 = vmax.f32 %v452_v20, %v5182_v46 }
 0x1e5   : > { %606 = vrot.lane.b32.xlu1 %v555_v18, %s4889_s20  ;;  %v554_v41 = vmax.f32 %v503_v9, %v5206_v15 }
 0x1e7   : > { %v486_v6 = vpop.xlane.xlu1 %485 }
 0x1e8   : > { %490 = vst.msk [vmem:[#allocation4 + $0x3] sm:$0xff] %vm489_vm11, %v486_v6  ;;  %v685_v6 = vstv %s4325_s27  ;;  %s4336_s27 = sld [smem:[#allocation9 + $0x8]] }
 0x1e9   : > { %617 = vrot.lane.b32.xlu1 %v613_v5, %s4889_s20 }
 0x1eb   : > { %v495_v17 = vpop.xlane.xlu1 %494 }
 0x1ec   : > { %v497_v8 = vmul.f32 0.0625, %v495_v17  ;;  %v699_v17 = vstv %s4326_s30  ;;  %s4337_s30 = sld [smem:[#allocation9 + $0x39]] }
 0x1ee   : > { %499 = vst.msk [vmem:[#allocation4 + $0x23] sm:$0xff] %vm489_vm11, %v497_v8  ;;  %v713_v8 = vstv %s4327_s3  ;;  %s4895_s3 = smov 122  }
 0x1ef   : > { %v533_v19 = vpop.permute.xlu1 %532 }
 0x1f0   : > { %535 = vst.msk [vmem:[#allocation3 + $0x19] sm:$0x1] %vm210_vm4, %v533_v19 }
 0x1f4   : > { %v488_v22 = vpop.xlane.xlu0 %487 }
 0x1f5   : > { %491 = vst.msk [vmem:[#allocation4 + $0xb] sm:$0xff] %vm489_vm11, %v488_v22 }
 0x1f7   : > { %604 = vrot.lane.b32.xlu0 %v554_v41, %s4889_s20 }
 0x1f8   : > { %v493_v12 = vpop.xlane.xlu0 %492 }
 0x1f9   : > { %v496_v23 = vmul.f32 0.0625, %v493_v12 }
 0x1fb   : > { %498 = vst.msk [vmem:[#allocation4 + $0x1b] sm:$0xff] %vm489_vm11, %v496_v23  ;;  %619 = vrot.lane.b32.xlu0 %v614_v11, %s4889_s20  ;;  %s4329_s20 = sld [smem:[#allocation9 + $0x35]]  ;;  %v755_v23 = vstv %s4330_s26 }
 0x1fc   : > { %v518_v46 = vpop.permute.xlu0 %517  ;;  %s4340_s26 = sld [smem:[#allocation9 + $0xa]] }
 0x1fd   : > { %520 = vst.msk [vmem:[#allocation3 + $0x9] sm:$0x1] %vm210_vm4, %v518_v46 }
 0x201   : > { %v741_v22 = vstv %s4329_s20  ;;  %s4339_s20 = sld [smem:[#allocation9 + $0x3a]] }
 0x220   : > { %v537_v47 = vpop.xlane.xlu1 %536 }
 0x221   : > { %541 = vst.msk [vmem:[#allocation4 + $0x3] sm:$0xff] %vm540_vm12, %v537_v47 }
 0x224   : > { %v546_v15 = vpop.xlane.xlu1 %545 }
 0x225   : > { %v548_v16 = vmul.f32 0.0625, %v546_v15  ;;  %v769_v15 = vstv %s4331_s8  ;;  %s4341_s8 = sld [smem:[#allocation9 + $0x3b]] }
 0x227   : > { %550 = vst.msk [vmem:[#allocation4 + $0x23] sm:$0xff] %vm540_vm12, %v548_v16 }
 0x228   : > { %v584_v24 = vpop.permute.xlu1 %583 }
 0x229   : > { %586 = vst.msk [vmem:[#allocation3 + $0x1a] sm:$0x1] %vm210_vm4, %v584_v24 }
 0x22d   : > { %v539_v25 = vpop.xlane.xlu0 %538 }
 0x22e   : > { %542 = vst.msk [vmem:[#allocation4 + $0xb] sm:$0xff] %vm540_vm12, %v539_v25  ;;  %v783_v25 = vstv %s4332_s25  ;;  %s4342_s25 = sld [smem:[#allocation9 + $0xb]] }
 0x231   : > { %v544_v26 = vpop.xlane.xlu0 %543 }
 0x232   : > { %v547_v27 = vmul.f32 0.0625, %v544_v26 }
 0x234   : > { %549 = vst.msk [vmem:[#allocation4 + $0x1b] sm:$0xff] %vm540_vm12, %v547_v27 }
 0x235   : > { %v569_v28 = vpop.permute.xlu0 %568 }
 0x236   : > { %571 = vst.msk [vmem:[#allocation3 + $0xa] sm:$0x1] %vm210_vm4, %v569_v28  ;;  %v797_v28 = vstv %s4333_s28  ;;  %s4343_s28 = sld [smem:[#allocation9 + $0x3c]] }
 0x259   : > { %v588_v29 = vpop.xlane.xlu1 %587 }
 0x25a   : > { %592 = vst.msk [vmem:[#allocation4 + $0x3] sm:$0xff] %vm591_vm13, %v588_v29 }
 0x25d   : > { %v597_v30 = vpop.xlane.xlu1 %596 }
 0x25e   : > { %v599_v31 = vmul.f32 0.0625, %v597_v30 }
 0x260   : > { %601 = vst.msk [vmem:[#allocation4 + $0x23] sm:$0xff] %vm591_vm13, %v599_v31 }
 0x261   : > { %v607_v33 = vpop.permute.xlu1 %606 }
 0x262   : > { %612 = vst.msk [vmem:[#allocation2 + $0xb] sm:$0xff] %vm610_vm14, %v607_v33 }
 0x265   : > { %v618_v34 = vpop.permute.xlu1 %617 }
 0x266   : > { %v590_v36 = vpop.xlane.xlu0 %589  ;;  %624 = vst.msk [vmem:[#allocation2 + $0x1b] sm:$0xff] %vm610_vm14, %v618_v34  ;;  %v827_v34 = vstv %s4336_s27  ;;  %s4344_s27 = sld [smem:[#allocation9 + $0xc]] }
 0x267   : > { %593 = vst.msk [vmem:[#allocation4 + $0xb] sm:$0xff] %vm591_vm13, %v590_v36 }
 0x26a   : > { %v595_v37 = vpop.xlane.xlu0 %594 }
 0x26b   : > { %v598_v38 = vmul.f32 0.0625, %v595_v37 }
 0x26d   : > { %600 = vst.msk [vmem:[#allocation4 + $0x1b] sm:$0xff] %vm591_vm13, %v598_v38  ;;  %v5286_v45 = vld [vmem:[#allocation2 + $0x18] sm:$0xff] }
 0x26e   : > { %v605_v39 = vpop.permute.xlu0 %604  ;;  %v2690_v43 = vld [vmem:[#allocation4 + $0x8] sm:$0xff]  ;;  %v638_v54 = vmul.f32 %v637_v35, %v5286_v45  ;;  %v658_v2 = vmul.f32 %v657_v59, %v5286_v45  ;;  %v686_v10 = vmul.f32 %v685_v6, %v5286_v45  ;;  %v714_v9 = vmul.f32 %v713_v8, %v5286_v45 }
 0x26f   : > { %611 = vst.msk [vmem:[#allocation2 + $0x3] sm:$0xff] %vm610_vm14, %v605_v39  ;;  %v2693_v52 = vmul.f32 %v7308_v40, %v2690_v43  ;;  %v742_v12 = vmul.f32 %v741_v22, %v5286_v45  ;;  %v770_v24 = vmul.f32 %v769_v15, %v5286_v45  ;;  %v798_v30 = vmul.f32 %v797_v28, %v5286_v45  ;;  %v5364_v38 = vld [vmem:[#allocation2 + $0x19] sm:$0xff] }
 0x270   : > { %v841_v43 = vstv %s4337_s30  ;;  %s4345_s30 = sld [smem:[#allocation9 + $0x3d]] }
 0x271   : > { %v842_v45 = vmul.f32 %v841_v43, %v5364_v38 }
 0x272   : > { %v620_v49 = vpop.permute.xlu0 %619 }
 0x273   : > { %625 = vst.msk [vmem:[#allocation2 + $0x23] sm:$0xff] %vm610_vm14, %v620_v49  ;;  %v855_v49 = vstv %s4338_s16  ;;  %s4346_s16 = sld [smem:[#allocation9 + $0xd]] }
 0x274   : > { %v2698_v50 = vld [vmem:[#allocation4 + $0x20] sm:$0xff] }
 0x275   : > { %v2701_v53 = vmul.f32 %v7309_v44, %v2698_v50 }
 0x276   : > { %v5294_v55 = vld [vmem:[#allocation2] sm:$0xff]  ;;  %v5296_v48 = vld [vmem:[#allocation2 + $0x8] sm:$0xff] }
 0x277   : > { %v5298_v57 = vadd.f32 %v2701_v53, %v2693_v52  ;;  %v630_v58 = vmul.f32 %v629_v51, %v5294_v55  ;;  %v645_v61 = vmul.f32 %v643_v56, %v5296_v48  ;;  %v644_v62 = vmul.f32 %v643_v56, %v5294_v55  ;;  %v5356_v31 = vld [vmem:[#allocation2 + $0x1] sm:$0xff]  ;;  %v5358_v33 = vld [vmem:[#allocation2 + $0x9] sm:$0xff] }
 0x278   : > { %v631_v0 = vmul.f32 %v629_v51, %v5296_v48  ;;  %v673_v4 = vmul.f32 %v671_v14, %v5296_v48  ;;  %v672_v5 = vmul.f32 %v671_v14, %v5294_v55  ;;  %v701_v20 = vmul.f32 %v699_v17, %v5296_v48 }
 0x279   : > { %v5302_v60 = vadd.f32 %v638_v54, %v630_v58  ;;  %650 = vrot.lane.b32.xlu0 %v645_v61, %s4890_s29  ;;  %648 = vrot.lane.b32.xlu1 %v644_v62, %s4890_s29  ;;  %v700_v13 = vmul.f32 %v699_v17, %v5294_v55  ;;  %v729_v41 = vmul.f32 %v727_v21, %v5296_v48  ;;  %v869_v52 = vstv %s4339_s20  ;;  %s4347_s20 = sld [smem:[#allocation9 + $0x3e]] }
 0x27a   : > { %v5306_v63 = vld [vmem:[#allocation2 + $0x20] sm:$0xff]  ;;  %v728_v42 = vmul.f32 %v727_v21, %v5294_v55  ;;  %v757_v46 = vmul.f32 %v755_v23, %v5296_v48  ;;  %v756_v47 = vmul.f32 %v755_v23, %v5294_v55  ;;  %v785_v26 = vmul.f32 %v783_v25, %v5296_v48 }
 0x27b   : > { %v639_v1 = vmul.f32 %v637_v35, %v5306_v63  ;;  %v659_v18 = vmul.f32 %v657_v59, %v5306_v63  ;;  %v687_v7 = vmul.f32 %v685_v6, %v5306_v63  ;;  %v715_v19 = vmul.f32 %v713_v8, %v5306_v63  ;;  %v5366_v39 = vld [vmem:[#allocation2 + $0x21] sm:$0xff] }
 0x27c   : > { %v743_v11 = vmul.f32 %v741_v22, %v5306_v63  ;;  %v771_v16 = vmul.f32 %v769_v15, %v5306_v63  ;;  %v784_v27 = vmul.f32 %v783_v25, %v5294_v55  ;;  %v799_v29 = vmul.f32 %v797_v28, %v5306_v63  ;;  %v5412_v21 = vld [vmem:[#allocation2 + $0x2] sm:$0xff] }
 0x27d   : > { %v5314_v3 = vadd.f32 %v639_v1, %v631_v0  ;;  %664 = vrot.lane.b32.xlu0 %v659_v18, %s4890_s29  ;;  %662 = vrot.lane.b32.xlu1 %v658_v2, %s4890_s29  ;;  %v829_v36 = vmul.f32 %v827_v34, %v5358_v33  ;;  %v828_v37 = vmul.f32 %v827_v34, %v5356_v31  ;;  %v883_v55 = vstv %s4340_s26  ;;  %s4350_s26 = sld [smem:[#allocation9 + $0xf]]  ;;  %v5422_v23 = vld [vmem:[#allocation2 + $0x22] sm:$0xff] }
 0x27e   : > { %v843_v35 = vmul.f32 %v841_v43, %v5366_v39  ;;  %v857_v50 = vmul.f32 %v855_v49, %v5358_v33  ;;  %v856_v51 = vmul.f32 %v855_v49, %v5356_v31  ;;  %v871_v53 = vmul.f32 %v869_v52, %v5366_v39 }
 0x27f   : > { %v870_v54 = vmul.f32 %v869_v52, %v5364_v38  ;;  %v885_v48 = vmul.f32 %v883_v55, %v5358_v33  ;;  %v884_v56 = vmul.f32 %v883_v55, %v5356_v31  ;;  %v897_v58 = vstv %s4341_s8  ;;  %s4351_s8 = sld [smem:[#allocation9 + $0x40]] }
 0x280   : > { %v899_v59 = vmul.f32 %v897_v58, %v5366_v39  ;;  %v898_v61 = vmul.f32 %v897_v58, %v5364_v38  ;;  %v911_v62 = vstv %s4342_s25  ;;  %v925_v1 = vstv %s4343_s28  ;;  %s4352_s25 = sld [smem:[#allocation9 + $0x10]] }
 0x281   : > { %678 = vrot.lane.b32.xlu0 %v673_v4, %s4891_s4  ;;  %676 = vrot.lane.b32.xlu1 %v672_v5, %s4891_s4  ;;  %v913_v63 = vmul.f32 %v911_v62, %v5358_v33  ;;  %v912_v0 = vmul.f32 %v911_v62, %v5356_v31  ;;  %v927_v2 = vmul.f32 %v925_v1, %v5366_v39  ;;  %v939_v14 = vstv %s4344_s27  ;;  %s4353_s28 = sld [smem:[#allocation9 + $0x41]] }
 0x282   : > { %v926_v18 = vmul.f32 %v925_v1, %v5364_v38  ;;  %v941_v4 = vmul.f32 %v939_v14, %v5358_v33  ;;  %v940_v5 = vmul.f32 %v939_v14, %v5356_v31  ;;  %v953_v6 = vstv %s4345_s30  ;;  %s4354_s27 = sld [smem:[#allocation9 + $0x11]] }
 0x283   : > { %v967_v17 = vstv %s4346_s16  ;;  %v981_v8 = vstv %s4347_s20  ;;  %s4355_s30 = sld [smem:[#allocation9 + $0x42]] }
 0x284   : > { %s4356_s16 = sld [smem:[#allocation9 + $0x12]] }
 0x285   : > { %692 = vrot.lane.b32.xlu0 %v687_v7, %s4891_s4  ;;  %690 = vrot.lane.b32.xlu1 %v686_v10, %s4891_s4  ;;  %v955_v7 = vmul.f32 %v953_v6, %v5366_v39  ;;  %v954_v10 = vmul.f32 %v953_v6, %v5364_v38  ;;  %s4357_s20 = sld [smem:[#allocation9 + $0x43]] }
 0x289   : > { %706 = vrot.lane.b32.xlu0 %v701_v20, %s4892_s23  ;;  %704 = vrot.lane.b32.xlu1 %v700_v13, %s4892_s23  ;;  %v969_v20 = vmul.f32 %v967_v17, %v5358_v33  ;;  %v968_v13 = vmul.f32 %v967_v17, %v5356_v31 }
 0x28a   : > { %v1095_v49 = vstv %s4356_s16  ;;  %s5476_s16 = sld [smem:[#allocation9 + $0x17]] }
 0x28d   : > { %720 = vrot.lane.b32.xlu0 %v715_v19, %s4892_s23  ;;  %718 = vrot.lane.b32.xlu1 %v714_v9, %s4892_s23  ;;  %v983_v19 = vmul.f32 %v981_v8, %v5366_v39  ;;  %v982_v9 = vmul.f32 %v981_v8, %v5364_v38 }
 0x291   : > { %734 = vrot.lane.b32.xlu0 %v729_v41, %s4893_s19  ;;  %732 = vrot.lane.b32.xlu1 %v728_v42, %s4893_s19  ;;  %v5414_v41 = vld [vmem:[#allocation2 + $0xa] sm:$0xff]  ;;  %v1011_v42 = vstv %s4350_s26  ;;  %s4358_s26 = sld [smem:[#allocation9 + $0x13]] }
 0x292   : > { %v1013_v22 = vmul.f32 %v1011_v42, %v5414_v41  ;;  %v1097_v52 = vmul.f32 %v1095_v49, %v5414_v41 }
 0x295   : > { %748 = vrot.lane.b32.xlu0 %v743_v11, %s4893_s19  ;;  %746 = vrot.lane.b32.xlu1 %v742_v12, %s4893_s19  ;;  %v1012_v11 = vmul.f32 %v1011_v42, %v5412_v21  ;;  %v5420_v12 = vld [vmem:[#allocation2 + $0x1a] sm:$0xff] }
 0x299   : > { %762 = vrot.lane.b32.xlu0 %v757_v46, %s4894_s24  ;;  %760 = vrot.lane.b32.xlu1 %v756_v47, %s4894_s24  ;;  %v1025_v46 = vstv %s4351_s8  ;;  %s4359_s8 = sld [smem:[#allocation9 + $0x44]] }
 0x29a   : > { %v1027_v47 = vmul.f32 %v1025_v46, %v5422_v23  ;;  %v1026_v15 = vmul.f32 %v1025_v46, %v5420_v12  ;;  %v5474_v46 = vld [vmem:[#allocation2 + $0x3] sm:$0xff] }
 0x29d   : > { %776 = vrot.lane.b32.xlu0 %v771_v16, %s4894_s24  ;;  %774 = vrot.lane.b32.xlu1 %v770_v24, %s4894_s24  ;;  %v1039_v16 = vstv %s4352_s25  ;;  %s4360_s25 = sld [smem:[#allocation9 + $0x14]] }
 0x29e   : > { %v1041_v24 = vmul.f32 %v1039_v16, %v5414_v41  ;;  %v1040_v25 = vmul.f32 %v1039_v16, %v5412_v21 }
 0x29f   : > { %v1137_v1 = vstv %s4359_s8  ;;  %s5496_s8 = sld [smem:[#allocation9 + $0x7]] }
 0x2a0   : > { %v1139_v14 = vmul.f32 %v1137_v1, %v5422_v23 }
 0x2a1   : > { %790 = vrot.lane.b32.xlu0 %v785_v26, %s4895_s3  ;;  %788 = vrot.lane.b32.xlu1 %v784_v27, %s4895_s3  ;;  %v1053_v26 = vstv %s4353_s28  ;;  %s4361_s28 = sld [smem:[#allocation9 + $0x45]] }
 0x2a2   : > { %v1055_v27 = vmul.f32 %v1053_v26, %v5422_v23  ;;  %v1054_v28 = vmul.f32 %v1053_v26, %v5420_v12 }
 0x2a5   : > { %804 = vrot.lane.b32.xlu0 %v799_v29, %s4895_s3  ;;  %802 = vrot.lane.b32.xlu1 %v798_v30, %s4895_s3  ;;  %v1067_v29 = vstv %s4354_s27  ;;  %s4364_s27 = sld [smem:[#allocation9 + $0x16]] }
 0x2a6   : > { %v1069_v30 = vmul.f32 %v1067_v29, %v5414_v41  ;;  %v1068_v34 = vmul.f32 %v1067_v29, %v5412_v21  ;;  %v5484_v29 = vld [vmem:[#allocation2 + $0x23] sm:$0xff] }
 0x2a9   : > { %834 = vrot.lane.b32.xlu0 %v829_v36, %s4890_s29  ;;  %832 = vrot.lane.b32.xlu1 %v828_v37, %s4890_s29  ;;  %v1081_v36 = vstv %s4355_s30  ;;  %s5464_s30 = sld [smem:[#allocation9 + $0x47]] }
 0x2ab   : > { %v1195_v16 = vstv %s4364_s27  ;;  %s5512_s27 = sld [smem:[#allocation9 + $0x19]] }
 0x2ad   : > { %848 = vrot.lane.b32.xlu0 %v843_v35, %s4890_s29  ;;  %846 = vrot.lane.b32.xlu1 %v842_v45, %s4890_s29  ;;  %v1083_v35 = vmul.f32 %v1081_v36, %v5422_v23  ;;  %v1082_v45 = vmul.f32 %v1081_v36, %v5420_v12 }
 0x2af   : > { %v1209_v36 = vstv %s5464_s30  ;;  %s4371_s30 = sld [smem:[#allocation9 + $0x4a]] }
 0x2b1   : > { %862 = vrot.lane.b32.xlu0 %v857_v50, %s4891_s4  ;;  %860 = vrot.lane.b32.xlu1 %v856_v51, %s4891_s4 }
 0x2b5   : > { %876 = vrot.lane.b32.xlu0 %v871_v53, %s4891_s4  ;;  %874 = vrot.lane.b32.xlu1 %v870_v54, %s4891_s4  ;;  %v1096_v53 = vmul.f32 %v1095_v49, %v5412_v21  ;;  %v1109_v54 = vstv %s4357_s20  ;;  %s5487_s20 = sld [smem:[#allocation9 + $0x48]]  ;;  %v1211_v49 = vmul.f32 %v1209_v36, %v5484_v29 }
 0x2b6   : > { %v1110_v58 = vmul.f32 %v1109_v54, %v5420_v12 }
 0x2b9   : > { %890 = vrot.lane.b32.xlu0 %v885_v48, %s4892_s23  ;;  %888 = vrot.lane.b32.xlu1 %v884_v56, %s4892_s23  ;;  %v1111_v56 = vmul.f32 %v1109_v54, %v5422_v23 }
 0x2bd   : > { %904 = vrot.lane.b32.xlu0 %v899_v59, %s4892_s23  ;;  %902 = vrot.lane.b32.xlu1 %v898_v61, %s4892_s23  ;;  %v1123_v59 = vstv %s4358_s26  ;;  %s5494_s26 = sld [smem:[#allocation9 + $0x18]] }
 0x2c1   : > { %918 = vrot.lane.b32.xlu0 %v913_v63, %s4893_s19  ;;  %916 = vrot.lane.b32.xlu1 %v912_v0, %s4893_s19  ;;  %v1125_v63 = vmul.f32 %v1123_v59, %v5414_v41  ;;  %v1124_v0 = vmul.f32 %v1123_v59, %v5412_v21 }
 0x2c5   : > { %932 = vrot.lane.b32.xlu0 %v927_v2, %s4893_s19  ;;  %930 = vrot.lane.b32.xlu1 %v926_v18, %s4893_s19 }
 0x2c9   : > { %946 = vrot.lane.b32.xlu0 %v941_v4, %s4894_s24  ;;  %944 = vrot.lane.b32.xlu1 %v940_v5, %s4894_s24  ;;  %v1138_v4 = vmul.f32 %v1137_v1, %v5420_v12  ;;  %v1151_v5 = vstv %s4360_s25  ;;  %s5500_s25 = sld [smem:[#allocation9 + $0x38]] }
 0x2ca   : > { %v1152_v17 = vmul.f32 %v1151_v5, %v5412_v21 }
 0x2cd   : > { %960 = vrot.lane.b32.xlu0 %v955_v7, %s4894_s24  ;;  %958 = vrot.lane.b32.xlu1 %v954_v10, %s4894_s24  ;;  %v1153_v10 = vmul.f32 %v1151_v5, %v5414_v41 }
 0x2d1   : > { %974 = vrot.lane.b32.xlu0 %v969_v20, %s4895_s3  ;;  %972 = vrot.lane.b32.xlu1 %v968_v13, %s4895_s3  ;;  %v1165_v20 = vstv %s4361_s28  ;;  %s5504_s28 = sld [smem:[#allocation9 + $0x49]] }
 0x2d2   : > { %v1167_v42 = vmul.f32 %v1165_v20, %v5422_v23 }
 0x2d5   : > { %988 = vrot.lane.b32.xlu0 %v983_v19, %s4895_s3  ;;  %986 = vrot.lane.b32.xlu1 %v982_v9, %s4895_s3 }
 0x2d9   : > { %1018 = vrot.lane.b32.xlu0 %v1013_v22, %s4890_s29  ;;  %1016 = vrot.lane.b32.xlu1 %v1012_v11, %s4890_s29  ;;  %v1166_v22 = vmul.f32 %v1165_v20, %v5420_v12  ;;  %v5472_v11 = vld [vmem:[#allocation2 + $0xb] sm:$0xff] }
 0x2da   : > { %v1197_v26 = vmul.f32 %v1195_v16, %v5472_v11 }
 0x2dd   : > { %1032 = vrot.lane.b32.xlu0 %v1027_v47, %s4890_s29  ;;  %1030 = vrot.lane.b32.xlu1 %v1026_v15, %s4890_s29 }
 0x2e1   : > { %1046 = vrot.lane.b32.xlu0 %v1041_v24, %s4891_s4  ;;  %1044 = vrot.lane.b32.xlu1 %v1040_v25, %s4891_s4 }
 0x2e5   : > { %1060 = vrot.lane.b32.xlu0 %v1055_v27, %s4891_s4  ;;  %1058 = vrot.lane.b32.xlu1 %v1054_v28, %s4891_s4  ;;  %v1196_v27 = vmul.f32 %v1195_v16, %v5474_v46  ;;  %v5482_v28 = vld [vmem:[#allocation2 + $0x1b] sm:$0xff] }
 0x2e9   : > { %1074 = vrot.lane.b32.xlu0 %v1069_v30, %s4892_s23  ;;  %1072 = vrot.lane.b32.xlu1 %v1068_v34, %s4892_s23 }
 0x2eb   : > { %v651_v37 = vpop.permute.xlu0 %650  ;;  %v649_v43 = vpop.permute.xlu1 %648 }
 0x2ec   : > { %v655_v13 = vadd.f32 %v651_v37, %v5314_v3  ;;  %v654_v8 = vadd.f32 %v649_v43, %v5302_v60 }
 0x2ed   : > { %1088 = vrot.lane.b32.xlu0 %v1083_v35, %s4892_s23  ;;  %1086 = vrot.lane.b32.xlu1 %v1082_v45, %s4892_s23 }
 0x2ef   : > { %v665_v50 = vpop.permute.xlu0 %664  ;;  %v663_v51 = vpop.permute.xlu1 %662 }
 0x2f0   : > { %v669_v47 = vadd.f32 %v665_v50, %v655_v13  ;;  %v668_v15 = vadd.f32 %v663_v51, %v654_v8  ;;  %v1210_v50 = vmul.f32 %v1209_v36, %v5482_v28  ;;  %v821_v13 = vstv %s5500_s25  ;;  %s4378_s25 = sld [smem:[#allocation9 + $0x1d]] }
 0x2f1   : > { %1102 = vrot.lane.b32.xlu0 %v1097_v52, %s4893_s19  ;;  %1100 = vrot.lane.b32.xlu1 %v1096_v53, %s4893_s19  ;;  %v1223_v53 = vstv %s5476_s16  ;;  %s4372_s16 = sld [smem:[#allocation9 + $0x1a]] }
 0x2f2   : > { %v1224_v59 = vmul.f32 %v1223_v53, %v5474_v46 }
 0x2f3   : > { %v679_v55 = vpop.permute.xlu0 %678  ;;  %v677_v48 = vpop.permute.xlu1 %676 }
 0x2f4   : > { %v683_v60 = vadd.f32 %v679_v55, %v669_v47  ;;  %v682_v3 = vadd.f32 %v677_v48, %v668_v15 }
 0x2f5   : > { %1116 = vrot.lane.b32.xlu0 %v1111_v56, %s4893_s19  ;;  %1114 = vrot.lane.b32.xlu1 %v1110_v58, %s4893_s19  ;;  %v1225_v58 = vmul.f32 %v1223_v53, %v5472_v11 }
 0x2f7   : > { %v693_v61 = vpop.permute.xlu0 %692  ;;  %v691_v62 = vpop.permute.xlu1 %690  ;;  %v1307_v53 = vstv %s4372_s16  ;;  %s5578_s16 = sld [smem:[#allocation9 + $0x1f]] }
 0x2f8   : > { %v697_v30 = vadd.f32 %v693_v61, %v683_v60  ;;  %v696_v34 = vadd.f32 %v691_v62, %v682_v3  ;;  %v822_v3 = vmul.f32 %v821_v13, %v5364_v38 }
 0x2f9   : > { %1130 = vrot.lane.b32.xlu0 %v1125_v63, %s4894_s24  ;;  %1128 = vrot.lane.b32.xlu1 %v1124_v0, %s4894_s24  ;;  %v1237_v63 = vstv %s5487_s20  ;;  %s4373_s20 = sld [smem:[#allocation9 + $0x4b]] }
 0x2fb   : > { %v707_v2 = vpop.permute.xlu0 %706  ;;  %v705_v18 = vpop.permute.xlu1 %704 }
 0x2fc   : > { %v711_v37 = vadd.f32 %v707_v2, %v697_v30  ;;  %v710_v43 = vadd.f32 %v705_v18, %v696_v34 }
 0x2fd   : > { %1144 = vrot.lane.b32.xlu0 %v1139_v14, %s4894_s24  ;;  %1142 = vrot.lane.b32.xlu1 %v1138_v4, %s4894_s24  ;;  %v1239_v14 = vmul.f32 %v1237_v63, %v5484_v29  ;;  %v1238_v4 = vmul.f32 %v1237_v63, %v5482_v28 }
 0x2ff   : > { %v721_v6 = vpop.permute.xlu0 %720  ;;  %v719_v7 = vpop.permute.xlu1 %718 }
 0x300   : > { %v725_v51 = vadd.f32 %v721_v6, %v711_v37  ;;  %v724_v52 = vadd.f32 %v719_v7, %v710_v43  ;;  %v1251_v7 = vstv %s5494_s26  ;;  %v1279_v37 = vstv %s5512_s27  ;;  %s4374_s26 = sld [smem:[#allocation9 + $0x1b]] }
 0x301   : > { %1158 = vrot.lane.b32.xlu0 %v1153_v10, %s4895_s3  ;;  %1156 = vrot.lane.b32.xlu1 %v1152_v17, %s4895_s3  ;;  %v813_v10 = vstv %s5496_s8  ;;  %s4375_s8 = sld [smem:[#allocation9 + $0x4c]] }
 0x302   : > { %v814_v47 = vmul.f32 %v813_v10, %v5356_v31  ;;  %v815_v15 = vmul.f32 %v813_v10, %v5358_v33  ;;  %s5560_s27 = sld [smem:[#allocation9 + $0x1e]] }
 0x303   : > { %v735_v19 = vpop.permute.xlu0 %734  ;;  %v733_v9 = vpop.permute.xlu1 %732 }
 0x304   : > { %v739_v54 = vadd.f32 %v735_v19, %v725_v51  ;;  %v738_v55 = vadd.f32 %v733_v9, %v724_v52  ;;  %v1253_v9 = vmul.f32 %v1251_v7, %v5472_v11 }
 0x305   : > { %1172 = vrot.lane.b32.xlu0 %v1167_v42, %s4895_s3  ;;  %1170 = vrot.lane.b32.xlu1 %v1166_v22, %s4895_s3  ;;  %v1252_v42 = vmul.f32 %v1251_v7, %v5474_v46  ;;  %v1265_v22 = vstv %s5504_s28  ;;  %s5550_s28 = sld [smem:[#allocation9 + $0x4e]] }
 0x306   : > { %v1267_v31 = vmul.f32 %v1265_v22, %v5484_v29  ;;  %v1266_v33 = vmul.f32 %v1265_v22, %v5482_v28 }
 0x307   : > { %v749_v24 = vpop.permute.xlu0 %748  ;;  %v747_v25 = vpop.permute.xlu1 %746 }
 0x308   : > { %v753_v61 = vadd.f32 %v749_v24, %v739_v54  ;;  %v752_v62 = vadd.f32 %v747_v25, %v738_v55  ;;  %v823_v24 = vmul.f32 %v821_v13, %v5366_v39  ;;  %v1281_v39 = vmul.f32 %v1279_v37, %v5472_v11 }
 0x309   : > { %1202 = vrot.lane.b32.xlu0 %v1197_v26, %s4890_s29  ;;  %1200 = vrot.lane.b32.xlu1 %v1196_v27, %s4890_s29 }
 0x30b   : > { %v763_v35 = vpop.permute.xlu0 %762  ;;  %v761_v45 = vpop.permute.xlu1 %760 }
 0x30c   : > { %v767_v0 = vadd.f32 %v763_v35, %v753_v61  ;;  %v766_v1 = vadd.f32 %v761_v45, %v752_v62  ;;  %v1280_v35 = vmul.f32 %v1279_v37, %v5474_v46  ;;  %v1293_v45 = vstv %s4371_s30  ;;  %s5571_s30 = sld [smem:[#allocation9 + $0x4f]] }
 0x30d   : > { %1216 = vrot.lane.b32.xlu0 %v1211_v49, %s4890_s29  ;;  %1214 = vrot.lane.b32.xlu1 %v1210_v50, %s4890_s29  ;;  %v1295_v51 = vmul.f32 %v1293_v45, %v5484_v29  ;;  %v1294_v52 = vmul.f32 %v1293_v45, %v5482_v28 }
 0x30f   : > { %v777_v48 = vpop.permute.xlu0 %776  ;;  %v775_v56 = vpop.permute.xlu1 %774 }
 0x310   : > { %v781_v5 = vadd.f32 %v777_v48, %v767_v0  ;;  %v780_v6 = vadd.f32 %v775_v56, %v766_v1  ;;  %v1309_v48 = vmul.f32 %v1307_v53, %v5472_v11  ;;  %v1308_v56 = vmul.f32 %v1307_v53, %v5474_v46 }
 0x311   : > { %1230 = vrot.lane.b32.xlu0 %v1225_v58, %s4891_s4  ;;  %1228 = vrot.lane.b32.xlu1 %v1224_v59, %s4891_s4  ;;  %v1321_v58 = vstv %s4373_s20  ;;  %v1335_v0 = vstv %s4374_s26  ;;  %s5580_s20 = sld [smem:[#allocation9 + $0xe]] }
 0x312   : > { %v1323_v62 = vmul.f32 %v1321_v58, %v5484_v29  ;;  %v1322_v63 = vmul.f32 %v1321_v58, %v5482_v28  ;;  %s5584_s26 = sld [smem:[#allocation9 + $0x3f]] }
 0x313   : > { %v791_v2 = vpop.permute.xlu0 %790  ;;  %v789_v18 = vpop.permute.xlu1 %788 }
 0x314   : > { %v795_v17 = vadd.f32 %v791_v2, %v781_v5  ;;  %v794_v20 = vadd.f32 %v789_v18, %v780_v6  ;;  %v1337_v18 = vmul.f32 %v1335_v0, %v5472_v11  ;;  %v1349_v6 = vstv %s4375_s8  ;;  %s5588_s8 = sld [smem:[#allocation9 + $0x50]] }
 0x315   : > { %1244 = vrot.lane.b32.xlu0 %v1239_v14, %s4891_s4  ;;  %1242 = vrot.lane.b32.xlu1 %v1238_v4, %s4891_s4  ;;  %v1336_v14 = vmul.f32 %v1335_v0, %v5474_v46 }
 0x317   : > { %v805_v8 = vpop.permute.xlu0 %804  ;;  %v803_v19 = vpop.permute.xlu1 %802 }
 0x318   : > { %v809_v16 = vadd.f32 %v805_v8, %v795_v17  ;;  %v808_v60 = vadd.f32 %v803_v19, %v794_v20  ;;  %v1351_v17 = vmul.f32 %v1349_v6, %v5484_v29  ;;  %v1350_v20 = vmul.f32 %v1349_v6, %v5482_v28  ;;  %v5556_v19 = vld [vmem:[#allocation2 + $0xc] sm:$0xff] }
 0x319   : > { %1258 = vrot.lane.b32.xlu0 %v1253_v9, %s4892_s23  ;;  %1256 = vrot.lane.b32.xlu1 %v1252_v42, %s4892_s23  ;;  %v1379_v9 = vstv %s4378_s25  ;;  %v5558_v42 = vld [vmem:[#allocation2 + $0x4] sm:$0xff]  ;;  %s5596_s25 = sld [smem:[#allocation9 + $0x20]] }
 0x31a   : > { %v817_v25 = vadd.f32 %v815_v15, %v809_v16  ;;  %v816_v26 = vadd.f32 %v814_v47, %v808_v60  ;;  %v1381_v60 = vmul.f32 %v1379_v9, %v5556_v19 }
 0x31b   : > { %v835_v27 = vpop.permute.xlu0 %834  ;;  %v833_v30 = vpop.permute.xlu1 %832 }
 0x31c   : > { %v825_v34 = vadd.f32 %v823_v24, %v817_v25  ;;  %v824_v36 = vadd.f32 %v822_v3, %v816_v26  ;;  %v1380_v3 = vmul.f32 %v1379_v9, %v5558_v42  ;;  %v5566_v26 = vld [vmem:[#allocation2 + $0x24] sm:$0xff] }
 0x31d   : > { %1272 = vrot.lane.b32.xlu0 %v1267_v31, %s4892_s23  ;;  %1270 = vrot.lane.b32.xlu1 %v1266_v33, %s4892_s23 }
 0x31e   : > { %v839_v4 = vadd.f32 %v835_v27, %v825_v34  ;;  %v838_v5 = vadd.f32 %v833_v30, %v824_v36  ;;  %v1393_v27 = vstv %s5550_s28  ;;  %v5569_v30 = vld [vmem:[#allocation2 + $0x1c] sm:$0xff]  ;;  %s4385_s28 = sld [smem:[#allocation9 + $0x51]] }
 0x31f   : > { %v849_v43 = vpop.permute.xlu0 %848  ;;  %v847_v38 = vpop.permute.xlu1 %846  ;;  %v1395_v37 = vmul.f32 %v1393_v27, %v5566_v26 }
 0x320   : > { %v853_v13 = vadd.f32 %v849_v43, %v839_v4  ;;  %v852_v8 = vadd.f32 %v847_v38, %v838_v5  ;;  %v1394_v43 = vmul.f32 %v1393_v27, %v5569_v30  ;;  %v1005_v5 = vstv %s5584_s26  ;;  %s4392_s26 = sld [smem:[#allocation9 + $0x24]] }
 0x321   : > { %1286 = vrot.lane.b32.xlu0 %v1281_v39, %s4893_s19  ;;  %1284 = vrot.lane.b32.xlu1 %v1280_v35, %s4893_s19  ;;  %v1407_v35 = vstv %s5560_s27  ;;  %s4386_s27 = sld [smem:[#allocation9 + $0x21]] }
 0x322   : > { %v1408_v53 = vmul.f32 %v1407_v35, %v5558_v42 }
 0x323   : > { %v863_v49 = vpop.permute.xlu0 %862  ;;  %v861_v50 = vpop.permute.xlu1 %860 }
 0x324   : > { %v867_v22 = vadd.f32 %v863_v49, %v853_v13  ;;  %v866_v47 = vadd.f32 %v861_v50, %v852_v8 }
 0x325   : > { %1300 = vrot.lane.b32.xlu0 %v1295_v51, %s4893_s19  ;;  %1298 = vrot.lane.b32.xlu1 %v1294_v52, %s4893_s19  ;;  %v1409_v52 = vmul.f32 %v1407_v35, %v5556_v19 }
 0x327   : > { %v877_v54 = vpop.permute.xlu0 %876  ;;  %v875_v55 = vpop.permute.xlu1 %874  ;;  %v1491_v35 = vstv %s4386_s27  ;;  %s5662_s27 = sld [smem:[#allocation9 + $0x26]] }
 0x328   : > { %v881_v24 = vadd.f32 %v877_v54, %v867_v22  ;;  %v880_v25 = vadd.f32 %v875_v55, %v866_v47  ;;  %v1006_v47 = vmul.f32 %v1005_v5, %v5420_v12 }
 0x329   : > { %1314 = vrot.lane.b32.xlu0 %v1309_v48, %s4894_s24  ;;  %1312 = vrot.lane.b32.xlu1 %v1308_v56, %s4894_s24  ;;  %v1421_v48 = vstv %s5571_s30  ;;  %s4387_s30 = sld [smem:[#allocation9 + $0x52]] }
 0x32b   : > { %v891_v59 = vpop.permute.xlu0 %890  ;;  %v889_v61 = vpop.permute.xlu1 %888 }
 0x32c   : > { %v895_v31 = vadd.f32 %v891_v59, %v881_v24  ;;  %v894_v33 = vadd.f32 %v889_v61, %v880_v25 }
 0x32d   : > { %1328 = vrot.lane.b32.xlu0 %v1323_v62, %s4894_s24  ;;  %1326 = vrot.lane.b32.xlu1 %v1322_v63, %s4894_s24  ;;  %v1423_v62 = vmul.f32 %v1421_v48, %v5566_v26  ;;  %v1422_v63 = vmul.f32 %v1421_v48, %v5569_v30 }
 0x32f   : > { %v905_v1 = vpop.permute.xlu0 %904  ;;  %v903_v2 = vpop.permute.xlu1 %902 }
 0x330   : > { %v909_v38 = vadd.f32 %v905_v1, %v895_v31  ;;  %v908_v39 = vadd.f32 %v903_v2, %v894_v33  ;;  %v1435_v2 = vstv %s5578_s16  ;;  %v1463_v31 = vstv %s5596_s25  ;;  %s4388_s16 = sld [smem:[#allocation9 + $0x22]] }
 0x331   : > { %1342 = vrot.lane.b32.xlu0 %v1337_v18, %s4895_s3  ;;  %1340 = vrot.lane.b32.xlu1 %v1336_v14, %s4895_s3  ;;  %v997_v18 = vstv %s5580_s20  ;;  %s4389_s20 = sld [smem:[#allocation9 + $0x53]] }
 0x332   : > { %v998_v13 = vmul.f32 %v997_v18, %v5412_v21  ;;  %v999_v8 = vmul.f32 %v997_v18, %v5414_v41  ;;  %s5644_s25 = sld [smem:[#allocation9 + $0x25]] }
 0x333   : > { %v919_v7 = vpop.permute.xlu0 %918  ;;  %v917_v10 = vpop.permute.xlu1 %916 }
 0x334   : > { %v923_v45 = vadd.f32 %v919_v7, %v909_v38  ;;  %v922_v49 = vadd.f32 %v917_v10, %v908_v39  ;;  %v1437_v10 = vmul.f32 %v1435_v2, %v5556_v19 }
 0x335   : > { %1356 = vrot.lane.b32.xlu0 %v1351_v17, %s4895_s3  ;;  %1354 = vrot.lane.b32.xlu1 %v1350_v20, %s4895_s3  ;;  %v1436_v17 = vmul.f32 %v1435_v2, %v5558_v42  ;;  %v1449_v20 = vstv %s5588_s8  ;;  %s5634_s8 = sld [smem:[#allocation9 + $0x55]] }
 0x336   : > { %v1451_v21 = vmul.f32 %v1449_v20, %v5566_v26  ;;  %v1450_v41 = vmul.f32 %v1449_v20, %v5569_v30 }
 0x337   : > { %v933_v15 = vpop.permute.xlu0 %932  ;;  %v931_v16 = vpop.permute.xlu1 %930 }
 0x338   : > { %v937_v54 = vadd.f32 %v933_v15, %v923_v45  ;;  %v936_v55 = vadd.f32 %v931_v16, %v922_v49  ;;  %v1007_v15 = vmul.f32 %v1005_v5, %v5422_v23  ;;  %v1465_v23 = vmul.f32 %v1463_v31, %v5556_v19 }
 0x339   : > { %1386 = vrot.lane.b32.xlu0 %v1381_v60, %s4890_s29  ;;  %1384 = vrot.lane.b32.xlu1 %v1380_v3, %s4890_s29 }
 0x33b   : > { %v947_v34 = vpop.permute.xlu0 %946  ;;  %v945_v36 = vpop.permute.xlu1 %944 }
 0x33c   : > { %v951_v56 = vadd.f32 %v947_v34, %v937_v54  ;;  %v950_v58 = vadd.f32 %v945_v36, %v936_v55  ;;  %v1464_v34 = vmul.f32 %v1463_v31, %v5558_v42  ;;  %v1477_v36 = vstv %s4385_s28  ;;  %s5655_s28 = sld [smem:[#allocation9 + $0x56]] }
 0x33d   : > { %1400 = vrot.lane.b32.xlu0 %v1395_v37, %s4890_s29  ;;  %1398 = vrot.lane.b32.xlu1 %v1394_v43, %s4890_s29  ;;  %v1479_v38 = vmul.f32 %v1477_v36, %v5566_v26  ;;  %v1478_v39 = vmul.f32 %v1477_v36, %v5569_v30 }
 0x33f   : > { %v961_v50 = vpop.permute.xlu0 %960  ;;  %v959_v51 = vpop.permute.xlu1 %958 }
 0x340   : > { %v965_v0 = vadd.f32 %v961_v50, %v951_v56  ;;  %v964_v1 = vadd.f32 %v959_v51, %v950_v58  ;;  %v1493_v50 = vmul.f32 %v1491_v35, %v5556_v19  ;;  %v1492_v51 = vmul.f32 %v1491_v35, %v5558_v42 }
 0x341   : > { %1414 = vrot.lane.b32.xlu0 %v1409_v52, %s4891_s4  ;;  %1412 = vrot.lane.b32.xlu1 %v1408_v53, %s4891_s4  ;;  %v1505_v52 = vstv %s4387_s30  ;;  %v1519_v56 = vstv %s4388_s16  ;;  %s5664_s30 = sld [smem:[#allocation9 + $0x15]] }
 0x342   : > { %v1507_v55 = vmul.f32 %v1505_v52, %v5566_v26  ;;  %v1506_v48 = vmul.f32 %v1505_v52, %v5569_v30  ;;  %s5668_s16 = sld [smem:[#allocation9 + $0x46]] }
 0x343   : > { %v975_v59 = vpop.permute.xlu0 %974  ;;  %v973_v61 = vpop.permute.xlu1 %972 }
 0x344   : > { %v979_v14 = vadd.f32 %v975_v59, %v965_v0  ;;  %v978_v4 = vadd.f32 %v973_v61, %v964_v1  ;;  %v1521_v61 = vmul.f32 %v1519_v56, %v5556_v19  ;;  %v1533_v1 = vstv %s4389_s20  ;;  %s5672_s20 = sld [smem:[#allocation9 + $0x57]] }
 0x345   : > { %1428 = vrot.lane.b32.xlu0 %v1423_v62, %s4891_s4  ;;  %1426 = vrot.lane.b32.xlu1 %v1422_v63, %s4891_s4  ;;  %v1520_v62 = vmul.f32 %v1519_v56, %v5558_v42 }
 0x347   : > { %v989_v6 = vpop.permute.xlu0 %988  ;;  %v987_v7 = vpop.permute.xlu1 %986 }
 0x348   : > { %v993_v9 = vadd.f32 %v989_v6, %v979_v14  ;;  %v992_v22 = vadd.f32 %v987_v7, %v978_v4  ;;  %v1535_v14 = vmul.f32 %v1533_v1, %v5566_v26  ;;  %v1534_v4 = vmul.f32 %v1533_v1, %v5569_v30  ;;  %v5640_v7 = vld [vmem:[#allocation2 + $0xd] sm:$0xff] }
 0x349   : > { %1442 = vrot.lane.b32.xlu0 %v1437_v10, %s4892_s23  ;;  %1440 = vrot.lane.b32.xlu1 %v1436_v17, %s4892_s23  ;;  %v1563_v10 = vstv %s4392_s26  ;;  %v5642_v17 = vld [vmem:[#allocation2 + $0x5] sm:$0xff]  ;;  %s5680_s26 = sld [smem:[#allocation9 + $0x27]] }
 0x34a   : > { %v1001_v16 = vadd.f32 %v999_v8, %v993_v9  ;;  %v1000_v60 = vadd.f32 %v998_v13, %v992_v22  ;;  %v1565_v22 = vmul.f32 %v1563_v10, %v5640_v7 }
 0x34b   : > { %v1019_v3 = vpop.permute.xlu0 %1018  ;;  %v1017_v24 = vpop.permute.xlu1 %1016 }
 0x34c   : > { %v1009_v25 = vadd.f32 %v1007_v15, %v1001_v16  ;;  %v1008_v27 = vadd.f32 %v1006_v47, %v1000_v60  ;;  %v1564_v47 = vmul.f32 %v1563_v10, %v5642_v17  ;;  %v5650_v60 = vld [vmem:[#allocation2 + $0x25] sm:$0xff] }
 0x34d   : > { %1456 = vrot.lane.b32.xlu0 %v1451_v21, %s4892_s23  ;;  %1454 = vrot.lane.b32.xlu1 %v1450_v41, %s4892_s23 }
 0x34e   : > { %v1023_v63 = vadd.f32 %v1019_v3, %v1009_v25  ;;  %v1022_v0 = vadd.f32 %v1017_v24, %v1008_v27  ;;  %v1577_v3 = vstv %s5634_s8  ;;  %v5653_v24 = vld [vmem:[#allocation2 + $0x1d] sm:$0xff]  ;;  %s4399_s8 = sld [smem:[#allocation9 + $0x58]] }
 0x34f   : > { %v1033_v33 = vpop.permute.xlu0 %1032  ;;  %v1031_v12 = vpop.permute.xlu1 %1030  ;;  %v1579_v31 = vmul.f32 %v1577_v3, %v5650_v60 }
 0x350   : > { %v1037_v5 = vadd.f32 %v1033_v33, %v1023_v63  ;;  %v1036_v6 = vadd.f32 %v1031_v12, %v1022_v0  ;;  %v1578_v33 = vmul.f32 %v1577_v3, %v5653_v24  ;;  %v1189_v0 = vstv %s5668_s16  ;;  %s4406_s16 = sld [smem:[#allocation9 + $0x2b]] }
 0x351   : > { %1470 = vrot.lane.b32.xlu0 %v1465_v23, %s4893_s19  ;;  %1468 = vrot.lane.b32.xlu1 %v1464_v34, %s4893_s19  ;;  %v1591_v34 = vstv %s5644_s25  ;;  %s4400_s25 = sld [smem:[#allocation9 + $0x28]] }
 0x352   : > { %v1592_v35 = vmul.f32 %v1591_v34, %v5642_v17 }
 0x353   : > { %v1047_v37 = vpop.permute.xlu0 %1046  ;;  %v1045_v43 = vpop.permute.xlu1 %1044 }
 0x354   : > { %v1051_v20 = vadd.f32 %v1047_v37, %v1037_v5  ;;  %v1050_v13 = vadd.f32 %v1045_v43, %v1036_v6 }
 0x355   : > { %1484 = vrot.lane.b32.xlu0 %v1479_v38, %s4893_s19  ;;  %1482 = vrot.lane.b32.xlu1 %v1478_v39, %s4893_s19  ;;  %v1593_v39 = vmul.f32 %v1591_v34, %v5640_v7 }
 0x357   : > { %v1061_v45 = vpop.permute.xlu0 %1060  ;;  %v1059_v49 = vpop.permute.xlu1 %1058  ;;  %v1675_v34 = vstv %s4400_s25  ;;  %s5746_s25 = sld [smem:[#allocation9 + $0x2d]] }
 0x358   : > { %v1065_v15 = vadd.f32 %v1061_v45, %v1051_v20  ;;  %v1064_v16 = vadd.f32 %v1059_v49, %v1050_v13  ;;  %v1190_v13 = vmul.f32 %v1189_v0, %v5482_v28 }
 0x359   : > { %1498 = vrot.lane.b32.xlu0 %v1493_v50, %s4894_s24  ;;  %1496 = vrot.lane.b32.xlu1 %v1492_v51, %s4894_s24  ;;  %v1605_v50 = vstv %s5655_s28  ;;  %s4401_s28 = sld [smem:[#allocation9 + $0x59]] }
 0x35b   : > { %v1075_v53 = vpop.permute.xlu0 %1074  ;;  %v1073_v54 = vpop.permute.xlu1 %1072 }
 0x35c   : > { %v1079_v21 = vadd.f32 %v1075_v53, %v1065_v15  ;;  %v1078_v41 = vadd.f32 %v1073_v54, %v1064_v16 }
 0x35d   : > { %1512 = vrot.lane.b32.xlu0 %v1507_v55, %s4894_s24  ;;  %1510 = vrot.lane.b32.xlu1 %v1506_v48, %s4894_s24  ;;  %v1607_v55 = vmul.f32 %v1605_v50, %v5650_v60  ;;  %v1606_v48 = vmul.f32 %v1605_v50, %v5653_v24 }
 0x35f   : > { %v1089_v58 = vpop.permute.xlu0 %1088  ;;  %v1087_v59 = vpop.permute.xlu1 %1086 }
 0x360   : > { %v1093_v12 = vadd.f32 %v1089_v58, %v1079_v21  ;;  %v1092_v23 = vadd.f32 %v1087_v59, %v1078_v41  ;;  %v1619_v59 = vstv %s5662_s27  ;;  %v1647_v21 = vstv %s5680_s26  ;;  %s4402_s27 = sld [smem:[#allocation9 + $0x29]] }
 0x361   : > { %1526 = vrot.lane.b32.xlu0 %v1521_v61, %s4895_s3  ;;  %1524 = vrot.lane.b32.xlu1 %v1520_v62, %s4895_s3  ;;  %v1181_v61 = vstv %s5664_s30  ;;  %s4403_s30 = sld [smem:[#allocation9 + $0x5a]] }
 0x362   : > { %v1183_v5 = vmul.f32 %v1181_v61, %v5472_v11  ;;  %v1182_v6 = vmul.f32 %v1181_v61, %v5474_v46  ;;  %s5728_s26 = sld [smem:[#allocation9 + $0x2c]] }
 0x363   : > { %v1103_v2 = vpop.permute.xlu0 %1102  ;;  %v1101_v18 = vpop.permute.xlu1 %1100 }
 0x364   : > { %v1107_v36 = vadd.f32 %v1103_v2, %v1093_v12  ;;  %v1106_v37 = vadd.f32 %v1101_v18, %v1092_v23  ;;  %v1621_v18 = vmul.f32 %v1619_v59, %v5640_v7 }
 0x365   : > { %1540 = vrot.lane.b32.xlu0 %v1535_v14, %s4895_s3  ;;  %1538 = vrot.lane.b32.xlu1 %v1534_v4, %s4895_s3  ;;  %v1620_v14 = vmul.f32 %v1619_v59, %v5642_v17  ;;  %v1633_v4 = vstv %s5672_s20  ;;  %s5718_s20 = sld [smem:[#allocation9 + $0x5c]] }
 0x366   : > { %v1635_v11 = vmul.f32 %v1633_v4, %v5650_v60  ;;  %v1634_v46 = vmul.f32 %v1633_v4, %v5653_v24 }
 0x367   : > { %v1117_v8 = vpop.permute.xlu0 %1116  ;;  %v1115_v9 = vpop.permute.xlu1 %1114 }
 0x368   : > { %v1121_v45 = vadd.f32 %v1117_v8, %v1107_v36  ;;  %v1120_v49 = vadd.f32 %v1115_v9, %v1106_v37  ;;  %v1191_v8 = vmul.f32 %v1189_v0, %v5484_v29  ;;  %v1649_v29 = vmul.f32 %v1647_v21, %v5640_v7 }
 0x369   : > { %1570 = vrot.lane.b32.xlu0 %v1565_v22, %s4890_s29  ;;  %1568 = vrot.lane.b32.xlu1 %v1564_v47, %s4890_s29 }
 0x36b   : > { %v1131_v25 = vpop.permute.xlu0 %1130  ;;  %v1129_v27 = vpop.permute.xlu1 %1128 }
 0x36c   : > { %v1135_v51 = vadd.f32 %v1131_v25, %v1121_v45  ;;  %v1134_v52 = vadd.f32 %v1129_v27, %v1120_v49  ;;  %v1648_v25 = vmul.f32 %v1647_v21, %v5642_v17  ;;  %v1661_v27 = vstv %s4399_s8  ;;  %s5739_s8 = sld [smem:[#allocation9 + $0x5d]] }
 0x36d   : > { %1584 = vrot.lane.b32.xlu0 %v1579_v31, %s4890_s29  ;;  %1582 = vrot.lane.b32.xlu1 %v1578_v33, %s4890_s29  ;;  %v1663_v12 = vmul.f32 %v1661_v27, %v5650_v60  ;;  %v1662_v23 = vmul.f32 %v1661_v27, %v5653_v24 }
 0x36f   : > { %v1145_v43 = vpop.permute.xlu0 %1144  ;;  %v1143_v38 = vpop.permute.xlu1 %1142 }
 0x370   : > { %v1149_v56 = vadd.f32 %v1145_v43, %v1135_v51  ;;  %v1148_v58 = vadd.f32 %v1143_v38, %v1134_v52  ;;  %v1677_v43 = vmul.f32 %v1675_v34, %v5640_v7  ;;  %v1676_v38 = vmul.f32 %v1675_v34, %v5642_v17 }
 0x371   : > { %1598 = vrot.lane.b32.xlu0 %v1593_v39, %s4891_s4  ;;  %1596 = vrot.lane.b32.xlu1 %v1592_v35, %s4891_s4  ;;  %v1689_v39 = vstv %s4401_s28  ;;  %v1703_v51 = vstv %s4402_s27  ;;  %s5750_s28 = sld [smem:[#allocation9 + $0x1c]] }
 0x372   : > { %v1691_v49 = vmul.f32 %v1689_v39, %v5650_v60  ;;  %v1690_v50 = vmul.f32 %v1689_v39, %v5653_v24  ;;  %s5752_s27 = sld [smem:[#allocation9 + $0x4d]] }
 0x373   : > { %v1159_v53 = vpop.permute.xlu0 %1158  ;;  %v1157_v54 = vpop.permute.xlu1 %1156 }
 0x374   : > { %v1163_v62 = vadd.f32 %v1159_v53, %v1149_v56  ;;  %v1162_v63 = vadd.f32 %v1157_v54, %v1148_v58  ;;  %v1705_v54 = vmul.f32 %v1703_v51, %v5640_v7  ;;  %v1717_v58 = vstv %s4403_s30  ;;  %s5756_s30 = sld [smem:[#allocation9 + $0x5e]] }
 0x375   : > { %1612 = vrot.lane.b32.xlu0 %v1607_v55, %s4891_s4  ;;  %1610 = vrot.lane.b32.xlu1 %v1606_v48, %s4891_s4  ;;  %v1704_v55 = vmul.f32 %v1703_v51, %v5642_v17 }
 0x377   : > { %v1173_v1 = vpop.permute.xlu0 %1172  ;;  %v1171_v2 = vpop.permute.xlu1 %1170 }
 0x378   : > { %v1177_v10 = vadd.f32 %v1173_v1, %v1163_v62  ;;  %v1176_v20 = vadd.f32 %v1171_v2, %v1162_v63  ;;  %v1719_v62 = vmul.f32 %v1717_v58, %v5650_v60  ;;  %v1718_v63 = vmul.f32 %v1717_v58, %v5653_v24  ;;  %v5724_v2 = vld [vmem:[#allocation2 + $0xe] sm:$0xff] }
 0x379   : > { %1626 = vrot.lane.b32.xlu0 %v1621_v18, %s4892_s23  ;;  %1624 = vrot.lane.b32.xlu1 %v1620_v14, %s4892_s23  ;;  %v1747_v18 = vstv %s4406_s16  ;;  %v5726_v14 = vld [vmem:[#allocation2 + $0x6] sm:$0xff]  ;;  %s5764_s16 = sld [smem:[#allocation9 + $0x2e]] }
 0x37a   : > { %v1185_v9 = vadd.f32 %v1183_v5, %v1177_v10  ;;  %v1184_v22 = vadd.f32 %v1182_v6, %v1176_v20  ;;  %v1749_v20 = vmul.f32 %v1747_v18, %v5724_v2 }
 0x37b   : > { %v1203_v47 = vpop.permute.xlu0 %1202  ;;  %v1201_v15 = vpop.permute.xlu1 %1200 }
 0x37c   : > { %v1193_v16 = vadd.f32 %v1191_v8, %v1185_v9  ;;  %v1192_v3 = vadd.f32 %v1190_v13, %v1184_v22  ;;  %v1748_v13 = vmul.f32 %v1747_v18, %v5726_v14  ;;  %v5734_v22 = vld [vmem:[#allocation2 + $0x26] sm:$0xff] }
 0x37d   : > { %1640 = vrot.lane.b32.xlu0 %v1635_v11, %s4892_s23  ;;  %1638 = vrot.lane.b32.xlu1 %v1634_v46, %s4892_s23 }
 0x37e   : > { %v1207_v48 = vadd.f32 %v1203_v47, %v1193_v16  ;;  %v1206_v56 = vadd.f32 %v1201_v15, %v1192_v3  ;;  %v1761_v47 = vstv %s5718_s20  ;;  %v5737_v15 = vld [vmem:[#allocation2 + $0x1e] sm:$0xff]  ;;  %s4413_s20 = sld [smem:[#allocation9 + $0x5f]] }
 0x37f   : > { %v1217_v41 = vpop.permute.xlu0 %1216  ;;  %v1215_v28 = vpop.permute.xlu1 %1214  ;;  %v1763_v21 = vmul.f32 %v1761_v47, %v5734_v22 }
 0x380   : > { %v1221_v0 = vadd.f32 %v1217_v41, %v1207_v48  ;;  %v1220_v1 = vadd.f32 %v1215_v28, %v1206_v56  ;;  %v1762_v41 = vmul.f32 %v1761_v47, %v5737_v15  ;;  %v1373_v56 = vstv %s5752_s27  ;;  %s5798_s27 = sld [smem:[#allocation9 + $0xb2]] }
 0x381   : > { %1654 = vrot.lane.b32.xlu0 %v1649_v29, %s4893_s19  ;;  %1652 = vrot.lane.b32.xlu1 %v1648_v25, %s4893_s19  ;;  %v1775_v25 = vstv %s5728_s26  ;;  %s4414_s26 = sld [smem:[#allocation9 + $0x2f]] }
 0x382   : > { %v1776_v34 = vmul.f32 %v1775_v25, %v5726_v14 }
 0x383   : > { %v1231_v31 = vpop.permute.xlu0 %1230  ;;  %v1229_v33 = vpop.permute.xlu1 %1228 }
 0x384   : > { %v1235_v4 = vadd.f32 %v1231_v31, %v1221_v0  ;;  %v1234_v5 = vadd.f32 %v1229_v33, %v1220_v1 }
 0x385   : > { %1668 = vrot.lane.b32.xlu0 %v1663_v12, %s4893_s19  ;;  %1666 = vrot.lane.b32.xlu1 %v1662_v23, %s4893_s19  ;;  %v1777_v23 = vmul.f32 %v1775_v25, %v5724_v2 }
 0x387   : > { %v1245_v36 = vpop.permute.xlu0 %1244  ;;  %v1243_v37 = vpop.permute.xlu1 %1242  ;;  %v1859_v25 = vstv %s4414_s26  ;;  %s5814_s26 = sld [smem:[#allocation9 + $0xb4]] }
 0x388   : > { %v1249_v8 = vadd.f32 %v1245_v36, %v1235_v4  ;;  %v1248_v9 = vadd.f32 %v1243_v37, %v1234_v5  ;;  %v1375_v5 = vmul.f32 %v1373_v56, %v5566_v26 }
 0x389   : > { %1682 = vrot.lane.b32.xlu0 %v1677_v43, %s4894_s24  ;;  %1680 = vrot.lane.b32.xlu1 %v1676_v38, %s4894_s24  ;;  %v1789_v43 = vstv %s5739_s8  ;;  %s4415_s8 = sld [smem:[#allocation9 + $0x60]] }
 0x38b   : > { %v1259_v35 = vpop.permute.xlu0 %1258  ;;  %v1257_v45 = vpop.permute.xlu1 %1256 }
 0x38c   : > { %v1263_v11 = vadd.f32 %v1259_v35, %v1249_v8  ;;  %v1262_v46 = vadd.f32 %v1257_v45, %v1248_v9 }
 0x38d   : > { %1696 = vrot.lane.b32.xlu0 %v1691_v49, %s4894_s24  ;;  %1694 = vrot.lane.b32.xlu1 %v1690_v50, %s4894_s24  ;;  %v1791_v49 = vmul.f32 %v1789_v43, %v5734_v22  ;;  %v1790_v50 = vmul.f32 %v1789_v43, %v5737_v15 }
 0x38f   : > { %v1273_v52 = vpop.permute.xlu0 %1272  ;;  %v1271_v53 = vpop.permute.xlu1 %1270 }
 0x390   : > { %v1277_v28 = vadd.f32 %v1273_v52, %v1263_v11  ;;  %v1276_v29 = vadd.f32 %v1271_v53, %v1262_v46  ;;  %v1803_v53 = vstv %s5746_s25  ;;  %v1831_v11 = vstv %s5764_s16  ;;  %s4416_s25 = sld [smem:[#allocation9 + $0x30]] }
 0x391   : > { %1710 = vrot.lane.b32.xlu0 %v1705_v54, %s4895_s3  ;;  %1708 = vrot.lane.b32.xlu1 %v1704_v55, %s4895_s3  ;;  %v1365_v54 = vstv %s5750_s28  ;;  %s4417_s28 = sld [smem:[#allocation9 + $0x61]] }
 0x392   : > { %v1367_v0 = vmul.f32 %v1365_v54, %v5556_v19  ;;  %v1366_v18 = vmul.f32 %v1365_v54, %v5558_v42  ;;  %s5806_s16 = sld [smem:[#allocation9 + $0xb3]] }
 0x393   : > { %v1287_v59 = vpop.permute.xlu0 %1286  ;;  %v1285_v61 = vpop.permute.xlu1 %1284 }
 0x394   : > { %v1291_v27 = vadd.f32 %v1287_v59, %v1277_v28  ;;  %v1290_v31 = vadd.f32 %v1285_v61, %v1276_v29  ;;  %v1805_v61 = vmul.f32 %v1803_v53, %v5724_v2 }
 0x395   : > { %1724 = vrot.lane.b32.xlu0 %v1719_v62, %s4895_s3  ;;  %1722 = vrot.lane.b32.xlu1 %v1718_v63, %s4895_s3  ;;  %v1804_v62 = vmul.f32 %v1803_v53, %v5726_v14  ;;  %v1817_v63 = vstv %s5756_s30  ;;  %s5800_s30 = sld [smem:[#allocation9 + $0x81]] }
 0x396   : > { %v1819_v19 = vmul.f32 %v1817_v63, %v5734_v22  ;;  %v1818_v9 = vmul.f32 %v1817_v63, %v5737_v15 }
 0x397   : > { %v1301_v6 = vpop.permute.xlu0 %1300  ;;  %v1299_v10 = vpop.permute.xlu1 %1298 }
 0x398   : > { %v1305_v36 = vadd.f32 %v1301_v6, %v1291_v27  ;;  %v1304_v37 = vadd.f32 %v1299_v10, %v1290_v31  ;;  %v1374_v10 = vmul.f32 %v1373_v56, %v5569_v30  ;;  %v1832_v30 = vmul.f32 %v1831_v11, %v5726_v14 }
 0x399   : > { %1754 = vrot.lane.b32.xlu0 %v1749_v20, %s4890_s29  ;;  %1752 = vrot.lane.b32.xlu1 %v1748_v13, %s4890_s29 }
 0x39b   : > { %v1315_v16 = vpop.permute.xlu0 %1314  ;;  %v1313_v3 = vpop.permute.xlu1 %1312 }
 0x39c   : > { %v1319_v38 = vadd.f32 %v1315_v16, %v1305_v36  ;;  %v1318_v39 = vadd.f32 %v1313_v3, %v1304_v37  ;;  %v1833_v16 = vmul.f32 %v1831_v11, %v5724_v2  ;;  %v1845_v3 = vstv %s4413_s20  ;;  %s5808_s20 = sld [smem:[#allocation9 + $0x82]] }
 0x39d   : > { %1768 = vrot.lane.b32.xlu0 %v1763_v21, %s4890_s29  ;;  %1766 = vrot.lane.b32.xlu1 %v1762_v41, %s4890_s29  ;;  %v1847_v28 = vmul.f32 %v1845_v3, %v5734_v22  ;;  %v1846_v29 = vmul.f32 %v1845_v3, %v5737_v15 }
 0x39f   : > { %v1329_v33 = vpop.permute.xlu0 %1328  ;;  %v1327_v12 = vpop.permute.xlu1 %1326 }
 0x3a0   : > { %v1333_v51 = vadd.f32 %v1329_v33, %v1319_v38  ;;  %v1332_v52 = vadd.f32 %v1327_v12, %v1318_v39  ;;  %v1861_v33 = vmul.f32 %v1859_v25, %v5724_v2  ;;  %v1860_v12 = vmul.f32 %v1859_v25, %v5726_v14 }
 0x3a1   : > { %1782 = vrot.lane.b32.xlu0 %v1777_v23, %s4891_s4  ;;  %1780 = vrot.lane.b32.xlu1 %v1776_v34, %s4891_s4  ;;  %v1873_v23 = vstv %s4415_s8  ;;  %v1887_v38 = vstv %s4416_s25  ;;  %s5818_s8 = sld [smem:[#allocation9 + $0x83]] }
 0x3a2   : > { %v1875_v37 = vmul.f32 %v1873_v23, %v5734_v22  ;;  %v1874_v43 = vmul.f32 %v1873_v23, %v5737_v15  ;;  %s5828_s25 = sld [smem:[#allocation9 + $0xb5]] }
 0x3a3   : > { %v1343_v35 = vpop.permute.xlu0 %1342  ;;  %v1341_v45 = vpop.permute.xlu1 %1340 }
 0x3a4   : > { %v1347_v55 = vadd.f32 %v1343_v35, %v1333_v51  ;;  %v1346_v48 = vadd.f32 %v1341_v45, %v1332_v52  ;;  %v1889_v45 = vmul.f32 %v1887_v38, %v5724_v2  ;;  %v1901_v52 = vstv %s4417_s28  ;;  %s5832_s28 = sld [smem:[#allocation9 + $0x84]] }
 0x3a5   : > { %1796 = vrot.lane.b32.xlu0 %v1791_v49, %s4891_s4  ;;  %1794 = vrot.lane.b32.xlu1 %v1790_v50, %s4891_s4  ;;  %v1888_v49 = vmul.f32 %v1887_v38, %v5726_v14 }
 0x3a7   : > { %v1357_v58 = vpop.permute.xlu0 %1356  ;;  %v1355_v59 = vpop.permute.xlu1 %1354  ;;  %v1977_v3 = vstv %s5818_s8  ;;  %s5862_s8 = sld [smem:[#allocation9 + $0xb9]] }
 0x3a8   : > { %v1361_v1 = vadd.f32 %v1357_v58, %v1347_v55  ;;  %v1360_v4 = vadd.f32 %v1355_v59, %v1346_v48  ;;  %v1903_v55 = vmul.f32 %v1901_v52, %v5734_v22  ;;  %v1902_v48 = vmul.f32 %v1901_v52, %v5737_v15 }
 0x3a9   : > { %1810 = vrot.lane.b32.xlu0 %v1805_v61, %s4892_s23  ;;  %1808 = vrot.lane.b32.xlu1 %v1804_v62, %s4892_s23  ;;  %v1953_v59 = vstv %s5798_s27  ;;  %v1945_v61 = vstv %s5800_s30  ;;  %s5836_s27 = sld [smem:[#allocation9 + $0xb6]] }
 0x3aa   : > { %v1369_v6 = vadd.f32 %v1367_v0, %v1361_v1  ;;  %v1368_v20 = vadd.f32 %v1366_v18, %v1360_v4  ;;  %v5822_v18 = vld [vmem:[#allocation3 + $0x10] sm:$0xff]  ;;  %s5840_s30 = sld [smem:[#allocation9 + $0xb7]]  ;;  %v1993_v23 = vstv %s5832_s28 }
 0x3ab   : > { %v1387_v13 = vpop.permute.xlu0 %1386  ;;  %v1385_v8 = vpop.permute.xlu1 %1384  ;;  %v1954_v4 = vmul.f32 %v5822_v18, %v1953_v59  ;;  %s5876_s28 = sld [smem:[#allocation9 + $0xba]] }
 0x3ac   : > { %v1377_v47 = vadd.f32 %v1375_v5, %v1369_v6  ;;  %v1376_v42 = vadd.f32 %v1374_v10, %v1368_v20  ;;  %v5825_v5 = vld [vmem:[#allocation3] sm:$0xff] }
 0x3ad   : > { %1824 = vrot.lane.b32.xlu0 %v1819_v19, %s4892_s23  ;;  %1822 = vrot.lane.b32.xlu1 %v1818_v9, %s4892_s23  ;;  %v1946_v6 = vmul.f32 %v5825_v5, %v1945_v61  ;;  %v2025_v61 = vstv %s5850_s14  ;;  %s5888_s14 = sld [smem:[#allocation9 + $0xbb]] }
 0x3ae   : > { %v1391_v50 = vadd.f32 %v1387_v13, %v1377_v47  ;;  %v1390_v51 = vadd.f32 %v1385_v8, %v1376_v42  ;;  %v1969_v13 = vstv %s5806_s16  ;;  %v1961_v8 = vstv %s5808_s20  ;;  %s5844_s16 = sld [smem:[#allocation9 + $0x85]] }
 0x3af   : > { %v1401_v46 = vpop.permute.xlu0 %1400  ;;  %v1399_v26 = vpop.permute.xlu1 %1398  ;;  %v1970_v11 = vmul.f32 %v5822_v18, %v1969_v13  ;;  %s5848_s20 = sld [smem:[#allocation9 + $0x23]] }
 0x3b0   : > { %v1405_v56 = vadd.f32 %v1401_v46, %v1391_v50  ;;  %v1404_v58 = vadd.f32 %v1399_v26, %v1390_v51  ;;  %v1962_v46 = vmul.f32 %v5825_v5, %v1961_v8 }
 0x3b1   : > { %1838 = vrot.lane.b32.xlu0 %v1833_v16, %s4893_s19  ;;  %1836 = vrot.lane.b32.xlu1 %v1832_v30, %s4893_s19  ;;  %v1985_v30 = vstv %s5814_s26  ;;  %s5854_s26 = sld [smem:[#allocation9 + $0x54]] }
 0x3b2   : > { %v1986_v25 = vmul.f32 %v5822_v18, %v1985_v30 }
 0x3b3   : > { %v1415_v21 = vpop.permute.xlu0 %1414  ;;  %v1413_v41 = vpop.permute.xlu1 %1412 }
 0x3b4   : > { %v1419_v62 = vadd.f32 %v1415_v21, %v1405_v56  ;;  %v1418_v63 = vadd.f32 %v1413_v41, %v1404_v58  ;;  %v2009_v50 = vstv %s5844_s16  ;;  %s4445_s16 = sld [smem:[#allocation9 + $0xbc]] }
 0x3b5   : > { %1852 = vrot.lane.b32.xlu0 %v1847_v28, %s4893_s19  ;;  %1850 = vrot.lane.b32.xlu1 %v1846_v29, %s4893_s19  ;;  %v1549_v51 = vstv %s5848_s20  ;;  %v2010_v58 = vmul.f32 %v5825_v5, %v2009_v50  ;;  %s4444_s20 = sld [smem:[#allocation9 + $0x8b]] }
 0x3b7   : > { %v1429_v27 = vpop.permute.xlu0 %1428  ;;  %v1427_v31 = vpop.permute.xlu1 %1426  ;;  %v1557_v59 = vstv %s5854_s26  ;;  %s4447_s26 = sld [smem:[#allocation9 + $0xbd]] }
 0x3b8   : > { %v1433_v10 = vadd.f32 %v1429_v27, %v1419_v62  ;;  %v1432_v20 = vadd.f32 %v1427_v31, %v1418_v63  ;;  %v1978_v27 = vmul.f32 %v5825_v5, %v1977_v3  ;;  %v1551_v62 = vmul.f32 %v1549_v51, %v5640_v7 }
 0x3b9   : > { %1866 = vrot.lane.b32.xlu0 %v1861_v33, %s4894_s24  ;;  %1864 = vrot.lane.b32.xlu1 %v1860_v12, %s4894_s24  ;;  %v2001_v12 = vstv %s5828_s25  ;;  %s5866_s25 = sld [smem:[#allocation9 + $0x88]] }
 0x3ba   : > { %v2002_v38 = vmul.f32 %v5822_v18, %v2001_v12  ;;  %v2107_v12 = vstv %s4445_s16  ;;  %s5925_s16 = sld [smem:[#allocation9 + $0x90]] }
 0x3bb   : > { %v1443_v34 = vpop.permute.xlu0 %1442  ;;  %v1441_v36 = vpop.permute.xlu1 %1440 }
 0x3bc   : > { %v1447_v19 = vadd.f32 %v1443_v34, %v1433_v10  ;;  %v1446_v9 = vadd.f32 %v1441_v36, %v1432_v20  ;;  %v1559_v10 = vmul.f32 %v1557_v59, %v5650_v60  ;;  %v1558_v20 = vmul.f32 %v1557_v59, %v5653_v24 }
 0x3bd   : > { %1880 = vrot.lane.b32.xlu0 %v1875_v37, %s4894_s24  ;;  %1878 = vrot.lane.b32.xlu1 %v1874_v43, %s4894_s24 }
 0x3bf   : > { %v1457_v39 = vpop.permute.xlu0 %1456  ;;  %v1455_v35 = vpop.permute.xlu1 %1454  ;;  %v2051_v60 = vstv %s5866_s25  ;;  %s4449_s25 = sld [smem:[#allocation9 + $0xbe]] }
 0x3c0   : > { %v1461_v26 = vadd.f32 %v1457_v39, %v1447_v19  ;;  %v1460_v16 = vadd.f32 %v1455_v35, %v1446_v9  ;;  %v1994_v39 = vmul.f32 %v5825_v5, %v1993_v23  ;;  %v5890_v19 = vld [vmem:[#allocation3 + $0x11] sm:$0xff]  ;;  %v5892_v9 = vld [vmem:[#allocation3 + $0x1] sm:$0xff]  ;;  %v2099_v23 = vstv %s4444_s20  ;;  %s5931_s20 = sld [smem:[#allocation9 + $0xc2]] }
 0x3c1   : > { %1894 = vrot.lane.b32.xlu0 %v1889_v45, %s4895_s3  ;;  %1892 = vrot.lane.b32.xlu1 %v1888_v49, %s4895_s3  ;;  %v2017_v49 = vstv %s5836_s27  ;;  %s5880_s27 = sld [smem:[#allocation9 + $0x89]] }
 0x3c2   : > { %v2018_v56 = vmul.f32 %v5822_v18, %v2017_v49 }
 0x3c3   : > { %v1471_v53 = vpop.permute.xlu0 %1470  ;;  %v1469_v54 = vpop.permute.xlu1 %1468 }
 0x3c4   : > { %v1475_v21 = vadd.f32 %v1471_v53, %v1461_v26  ;;  %v1474_v41 = vadd.f32 %v1469_v54, %v1460_v16  ;;  %v2033_v54 = vstv %s5840_s30  ;;  %s4442_s30 = sld [smem:[#allocation9 + $0x8a]]  ;;  %v2075_v26 = vstv %s5876_s28 }
 0x3c5   : > { %1908 = vrot.lane.b32.xlu0 %v1903_v55, %s4895_s3  ;;  %1906 = vrot.lane.b32.xlu1 %v1902_v48, %s4895_s3  ;;  %v2034_v8 = vmul.f32 %v5822_v18, %v2033_v54  ;;  %s4448_s28 = sld [smem:[#allocation9 + $0x8d]] }
 0x3c7   : > { %v1485_v0 = vpop.permute.xlu0 %1484  ;;  %v1483_v1 = vpop.permute.xlu1 %1482  ;;  %v2067_v16 = vstv %s5880_s27  ;;  %s5915_s27 = sld [smem:[#allocation9 + $0xc0]] }
 0x3c8   : > { %v1489_v31 = vadd.f32 %v1485_v0, %v1475_v21  ;;  %v1488_v33 = vadd.f32 %v1483_v1, %v1474_v41  ;;  %v1550_v0 = vmul.f32 %v1549_v51, %v5642_v17  ;;  %v2026_v17 = vmul.f32 %v5825_v5, %v2025_v61 }
 0x3c9   : > { %1956 = vrot.lane.b32.xlu0 %v1954_v4, %s4890_s29  ;;  %1948 = vrot.lane.b32.xlu1 %v1946_v6, %s4890_s29  ;;  %v2076_v21 = vmul.f32 %v2075_v26, %v5890_v19  ;;  %v2068_v41 = vmul.f32 %v2067_v16, %v5892_v9 }
 0x3cb   : > { %v1499_v47 = vpop.permute.xlu0 %1498  ;;  %v1497_v42 = vpop.permute.xlu1 %1496  ;;  %v2131_v54 = vstv %s4448_s28  ;;  %s5953_s28 = sld [smem:[#allocation9 + $0xc4]] }
 0x3cc   : > { %v1503_v34 = vadd.f32 %v1499_v47, %v1489_v31  ;;  %v1502_v36 = vadd.f32 %v1497_v42, %v1488_v33 }
 0x3cd   : > { %1972 = vrot.lane.b32.xlu0 %v1970_v11, %s4891_s4  ;;  %1964 = vrot.lane.b32.xlu1 %v1962_v46, %s4891_s4  ;;  %v2059_v11 = vstv %s5862_s8  ;;  %v2052_v46 = vmul.f32 %v2051_v60, %v5892_v9  ;;  %s4446_s8 = sld [smem:[#allocation9 + $0x8c]] }
 0x3ce   : > { %v2060_v5 = vmul.f32 %v2059_v11, %v5890_v19 }
 0x3cf   : > { %v1513_v28 = vpop.permute.xlu0 %1512  ;;  %v1511_v29 = vpop.permute.xlu1 %1510 }
 0x3d0   : > { %v1517_v35 = vadd.f32 %v1513_v28, %v1503_v34  ;;  %v1516_v45 = vadd.f32 %v1511_v29, %v1502_v36  ;;  %v2091_v28 = vstv %s5888_s14  ;;  %v2083_v29 = vstv %s4442_s30  ;;  %s5917_s14 = sld [smem:[#allocation9 + $0x8f]] }
 0x3d1   : > { %1988 = vrot.lane.b32.xlu0 %v1986_v25, %s4892_s23  ;;  %1980 = vrot.lane.b32.xlu1 %v1978_v27, %s4892_s23  ;;  %v2092_v31 = vmul.f32 %v2091_v28, %v5890_v19  ;;  %v2084_v33 = vmul.f32 %v2083_v29, %v5892_v9  ;;  %s5923_s30 = sld [smem:[#allocation9 + $0xc1]] }
 0x3d3   : > { %v1527_v37 = vpop.permute.xlu0 %1526  ;;  %v1525_v43 = vpop.permute.xlu1 %1524 }
 0x3d4   : > { %v1531_v52 = vadd.f32 %v1527_v37, %v1517_v35  ;;  %v1530_v53 = vadd.f32 %v1525_v43, %v1516_v45  ;;  %v2108_v37 = vmul.f32 %v2107_v12, %v5890_v19  ;;  %v2100_v43 = vmul.f32 %v2099_v23, %v5892_v9 }
 0x3d5   : > { %2004 = vrot.lane.b32.xlu0 %v2002_v38, %s4893_s19  ;;  %1996 = vrot.lane.b32.xlu1 %v1994_v39, %s4893_s19  ;;  %v2123_v38 = vstv %s4447_s26  ;;  %v2115_v39 = vstv %s4446_s8  ;;  %s5939_s26 = sld [smem:[#allocation9 + $0x91]] }
 0x3d6   : > { %v2124_v49 = vmul.f32 %v2123_v38, %v5890_v19  ;;  %v2116_v50 = vmul.f32 %v2115_v39, %v5892_v9  ;;  %s5945_s8 = sld [smem:[#allocation9 + $0xc3]] }
 0x3d7   : > { %v1541_v55 = vpop.permute.xlu0 %1540  ;;  %v1539_v48 = vpop.permute.xlu1 %1538 }
 0x3d8   : > { %v1545_v63 = vadd.f32 %v1541_v55, %v1531_v52  ;;  %v1544_v1 = vadd.f32 %v1539_v48, %v1530_v53  ;;  %v2139_v53 = vstv %s4449_s25  ;;  %s5949_s25 = sld [smem:[#allocation9 + $0x92]] }
 0x3d9   : > { %2020 = vrot.lane.b32.xlu0 %v2018_v56, %s4894_s24  ;;  %2012 = vrot.lane.b32.xlu1 %v2010_v58, %s4894_s24  ;;  %v2140_v56 = vmul.f32 %v2139_v53, %v5890_v19  ;;  %v2132_v58 = vmul.f32 %v2131_v54, %v5892_v9 }
 0x3da   : > { %v1553_v4 = vadd.f32 %v1551_v62, %v1545_v63  ;;  %v1552_v6 = vadd.f32 %v1550_v0, %v1544_v1  ;;  %v5933_v62 = vld [vmem:[#allocation3 + $0x12] sm:$0xff]  ;;  %v2165_v63 = vstv %s5915_s27  ;;  %v5936_v0 = vld [vmem:[#allocation3 + $0x2] sm:$0xff]  ;;  %v2157_v1 = vstv %s5917_s14  ;;  %s5957_s27 = sld [smem:[#allocation9 + $0xc5]] }
 0x3db   : > { %v1571_v13 = vpop.permute.xlu0 %1570  ;;  %v1569_v7 = vpop.permute.xlu1 %1568  ;;  %s5961_s14 = sld [smem:[#allocation9 + $0x93]] }
 0x3dc   : > { %v1561_v47 = vadd.f32 %v1559_v10, %v1553_v4  ;;  %v1560_v42 = vadd.f32 %v1558_v20, %v1552_v6  ;;  %v2213_v12 = vstv %s5945_s8  ;;  %s5983_s8 = sld [smem:[#allocation9 + $0x96]] }
 0x3dd   : > { %2036 = vrot.lane.b32.xlu0 %v2034_v8, %s4895_s3  ;;  %2028 = vrot.lane.b32.xlu1 %v2026_v17, %s4895_s3  ;;  %v2214_v38 = vmul.f32 %v2213_v12, %v5933_v62 }
 0x3de   : > { %v1575_v51 = vadd.f32 %v1571_v13, %v1561_v47  ;;  %v1574_v52 = vadd.f32 %v1569_v7, %v1560_v42  ;;  %v2166_v13 = vmul.f32 %v2165_v63, %v5933_v62  ;;  %v2158_v7 = vmul.f32 %v2157_v1, %v5936_v0 }
 0x3df   : > { %v1585_v24 = vpop.permute.xlu0 %1584  ;;  %v1583_v18 = vpop.permute.xlu1 %1582  ;;  %v2181_v47 = vstv %s5923_s30  ;;  %v2173_v42 = vstv %s5925_s16  ;;  %s5965_s30 = sld [smem:[#allocation9 + $0x2a]]  ;;  %v2205_v23 = vstv %s5949_s25 }
 0x3e0   : > { %v1589_v59 = vadd.f32 %v1585_v24, %v1575_v51  ;;  %v1588_v61 = vadd.f32 %v1583_v18, %v1574_v52  ;;  %s5967_s16 = sld [smem:[#allocation9 + $0x94]]  ;;  %v2206_v39 = vmul.f32 %v2205_v23, %v5936_v0  ;;  %v2245_v54 = vstv %s5957_s27 }
 0x3e1   : > { %2062 = vrot.lane.b32.xlu0 %v2060_v5, %s4890_s29  ;;  %2054 = vrot.lane.b32.xlu1 %v2052_v46, %s4890_s29  ;;  %v2182_v5 = vmul.f32 %v2181_v47, %v5933_v62  ;;  %v2174_v46 = vmul.f32 %v2173_v42, %v5936_v0  ;;  %s5993_s25 = sld [smem:[#allocation9 + $0xc8]] }
 0x3e2   : > { %s6009_s27 = sld [smem:[#allocation9 + $0xc9]] }
 0x3e3   : > { %v1599_v30 = vpop.permute.xlu0 %1598  ;;  %v1597_v3 = vpop.permute.xlu1 %1596 }
 0x3e4   : > { %v1603_v4 = vadd.f32 %v1599_v30, %v1589_v59  ;;  %v1602_v6 = vadd.f32 %v1597_v3, %v1588_v61  ;;  %v2197_v30 = vstv %s5931_s20  ;;  %v2189_v3 = vstv %s5939_s26  ;;  %s5971_s20 = sld [smem:[#allocation9 + $0x5b]] }
 0x3e5   : > { %2078 = vrot.lane.b32.xlu0 %v2076_v21, %s4891_s4  ;;  %2070 = vrot.lane.b32.xlu1 %v2068_v41, %s4891_s4  ;;  %s5979_s26 = sld [smem:[#allocation9 + $0xc7]]  ;;  %v1733_v51 = vstv %s5965_s30 }
 0x3e6   : > { %v2237_v61 = vstv %s5967_s16  ;;  %v1735_v63 = vmul.f32 %v1733_v51, %v5724_v2  ;;  %s4473_s30 = sld [smem:[#allocation9 + $0xca]] }
 0x3e7   : > { %v1613_v25 = vpop.permute.xlu0 %1612  ;;  %v1611_v27 = vpop.permute.xlu1 %1610  ;;  %s4472_s16 = sld [smem:[#allocation9 + $0x99]] }
 0x3e8   : > { %v1617_v8 = vadd.f32 %v1613_v25, %v1603_v4  ;;  %v1616_v17 = vadd.f32 %v1611_v27, %v1602_v6  ;;  %v2198_v25 = vmul.f32 %v2197_v30, %v5933_v62  ;;  %v2190_v27 = vmul.f32 %v2189_v3, %v5936_v0 }
 0x3e9   : > { %2094 = vrot.lane.b32.xlu0 %v2092_v31, %s4892_s23  ;;  %2086 = vrot.lane.b32.xlu1 %v2084_v33, %s4892_s23  ;;  %v1734_v4 = vmul.f32 %v1733_v51, %v5726_v14  ;;  %v2246_v14 = vmul.f32 %v2245_v54, %v5933_v62 }
 0x3ea   : > { %v1741_v59 = vstv %s5971_s20  ;;  %s4475_s20 = sld [smem:[#allocation9 + $0xcb]] }
 0x3eb   : > { %v1627_v34 = vpop.permute.xlu0 %1626  ;;  %v1625_v36 = vpop.permute.xlu1 %1624 }
 0x3ec   : > { %v1631_v11 = vadd.f32 %v1627_v34, %v1617_v8  ;;  %v1630_v60 = vadd.f32 %v1625_v36, %v1616_v17  ;;  %v2238_v17 = vmul.f32 %v2237_v61, %v5936_v0  ;;  %v2319_v12 = vstv %s4473_s30  ;;  %s4482_s30 = sld [smem:[#allocation9 + $0x9e]] }
 0x3ed   : > { %2110 = vrot.lane.b32.xlu0 %v2108_v37, %s4893_s19  ;;  %2102 = vrot.lane.b32.xlu1 %v2100_v43, %s4893_s19  ;;  %v2311_v23 = vstv %s4472_s16  ;;  %s4485_s16 = sld [smem:[#allocation9 + $0xd0]] }
 0x3ef   : > { %v1641_v35 = vpop.permute.xlu0 %1640  ;;  %v1639_v45 = vpop.permute.xlu1 %1638 }
 0x3f0   : > { %v1645_v26 = vadd.f32 %v1641_v35, %v1631_v11  ;;  %v1644_v16 = vadd.f32 %v1639_v45, %v1630_v60  ;;  %v6015_v11 = vld [vmem:[#allocation3 + $0x13] sm:$0xff]  ;;  %v2263_v60 = vstv %s5983_s8  ;;  %s4477_s8 = sld [smem:[#allocation9 + $0xcc]] }
 0x3f1   : > { %2126 = vrot.lane.b32.xlu0 %v2124_v49, %s4894_s24  ;;  %2118 = vrot.lane.b32.xlu1 %v2116_v50, %s4894_s24  ;;  %v2229_v49 = vstv %s5953_s28  ;;  %v2221_v50 = vstv %s5961_s14  ;;  %s5997_s28 = sld [smem:[#allocation9 + $0x97]] }
 0x3f2   : > { %s4470_s14 = sld [smem:[#allocation9 + $0x98]] }
 0x3f3   : > { %v1655_v55 = vpop.permute.xlu0 %1654  ;;  %v1653_v48 = vpop.permute.xlu1 %1652 }
 0x3f4   : > { %v1659_v21 = vadd.f32 %v1655_v55, %v1645_v26  ;;  %v1658_v41 = vadd.f32 %v1653_v48, %v1644_v16  ;;  %v2287_v26 = vstv %s5993_s25  ;;  %s4476_s25 = sld [smem:[#allocation9 + $0x9b]] }
 0x3f5   : > { %2142 = vrot.lane.b32.xlu0 %v2140_v56, %s4895_s3  ;;  %2134 = vrot.lane.b32.xlu1 %v2132_v58, %s4895_s3  ;;  %v2230_v56 = vmul.f32 %v2229_v49, %v5933_v62  ;;  %v2222_v58 = vmul.f32 %v2221_v50, %v5936_v0 }
 0x3f6   : > { %v2351_v51 = vstv %s4477_s8  ;;  %s4486_s8 = sld [smem:[#allocation9 + $0xa0]] }
 0x3f7   : > { %v1669_v10 = vpop.permute.xlu0 %1668  ;;  %v1667_v20 = vpop.permute.xlu1 %1666  ;;  %v2279_v16 = vstv %s5997_s28  ;;  %s4481_s28 = sld [smem:[#allocation9 + $0xce]] }
 0x3f8   : > { %v1673_v31 = vadd.f32 %v1669_v10, %v1659_v21  ;;  %v1672_v33 = vadd.f32 %v1667_v20, %v1658_v41  ;;  %v2288_v21 = vmul.f32 %v2287_v26, %v6015_v11 }
 0x3f9   : > { %2168 = vrot.lane.b32.xlu0 %v2166_v13, %s4890_s29  ;;  %2160 = vrot.lane.b32.xlu1 %v2158_v7, %s4890_s29  ;;  %v1743_v13 = vmul.f32 %v1741_v59, %v5734_v22  ;;  %v1742_v7 = vmul.f32 %v1741_v59, %v5737_v15  ;;  %v2271_v22 = vstv %s5979_s26  ;;  %v6018_v15 = vld [vmem:[#allocation3 + $0x3] sm:$0xff]  ;;  %s4474_s26 = sld [smem:[#allocation9 + $0x9a]] }
 0x3fa   : > { %v2280_v41 = vmul.f32 %v2279_v16, %v6018_v15  ;;  %v6074_v59 = vld [vmem:[#allocation3 + $0x4] sm:$0xff] }
 0x3fb   : > { %v1683_v24 = vpop.permute.xlu0 %1682  ;;  %v1681_v18 = vpop.permute.xlu1 %1680 }
 0x3fc   : > { %v1687_v34 = vadd.f32 %v1683_v24, %v1673_v31  ;;  %v1686_v36 = vadd.f32 %v1681_v18, %v1672_v33 }
 0x3fd   : > { %2184 = vrot.lane.b32.xlu0 %v2182_v5, %s4891_s4  ;;  %2176 = vrot.lane.b32.xlu1 %v2174_v46, %s4891_s4  ;;  %v2272_v5 = vmul.f32 %v2271_v22, %v6015_v11  ;;  %v2264_v46 = vmul.f32 %v2263_v60, %v6018_v15  ;;  %v2409_v22 = vstv %s4485_s16  ;;  %s4494_s16 = sld [smem:[#allocation9 + $0xa4]] }
 0x3ff   : > { %v1697_v28 = vpop.permute.xlu0 %1696  ;;  %v1695_v29 = vpop.permute.xlu1 %1694 }
 0x400   : > { %v1701_v35 = vadd.f32 %v1697_v28, %v1687_v34  ;;  %v1700_v45 = vadd.f32 %v1695_v29, %v1686_v36  ;;  %v2303_v28 = vstv %s6009_s27  ;;  %v2295_v29 = vstv %s4470_s14  ;;  %s4480_s27 = sld [smem:[#allocation9 + $0x9d]] }
 0x401   : > { %2200 = vrot.lane.b32.xlu0 %v2198_v25, %s4892_s23  ;;  %2192 = vrot.lane.b32.xlu1 %v2190_v27, %s4892_s23  ;;  %v2304_v31 = vmul.f32 %v2303_v28, %v6015_v11  ;;  %v2296_v33 = vmul.f32 %v2295_v29, %v6018_v15  ;;  %s4483_s14 = sld [smem:[#allocation9 + $0xcf]] }
 0x403   : > { %v1711_v37 = vpop.permute.xlu0 %1710  ;;  %v1709_v43 = vpop.permute.xlu1 %1708 }
 0x404   : > { %v1715_v52 = vadd.f32 %v1711_v37, %v1701_v35  ;;  %v1714_v53 = vadd.f32 %v1709_v43, %v1700_v45  ;;  %v2320_v37 = vmul.f32 %v2319_v12, %v6015_v11  ;;  %v2312_v43 = vmul.f32 %v2311_v23, %v6018_v15 }
 0x405   : > { %2216 = vrot.lane.b32.xlu0 %v2214_v38, %s4893_s19  ;;  %2208 = vrot.lane.b32.xlu1 %v2206_v39, %s4893_s19  ;;  %v2335_v38 = vstv %s4475_s20  ;;  %v2327_v39 = vstv %s4474_s26  ;;  %s4484_s20 = sld [smem:[#allocation9 + $0x9f]] }
 0x406   : > { %v2336_v49 = vmul.f32 %v2335_v38, %v6015_v11  ;;  %v2328_v50 = vmul.f32 %v2327_v39, %v6018_v15  ;;  %v2369_v61 = vstv %s4480_s27  ;;  %s4487_s26 = sld [smem:[#allocation9 + $0xd1]] }
 0x407   : > { %v1725_v55 = vpop.permute.xlu0 %1724  ;;  %v1723_v48 = vpop.permute.xlu1 %1722  ;;  %s4491_s27 = sld [smem:[#allocation9 + $0xd3]] }
 0x408   : > { %v1729_v1 = vadd.f32 %v1725_v55, %v1715_v52  ;;  %v1728_v6 = vadd.f32 %v1723_v48, %v1714_v53  ;;  %v2343_v52 = vstv %s4476_s25  ;;  %v2352_v55 = vmul.f32 %v2351_v51, %v6015_v11  ;;  %s4489_s25 = sld [smem:[#allocation9 + $0xd2]] }
 0x409   : > { %2232 = vrot.lane.b32.xlu0 %v2230_v56, %s4894_s24  ;;  %2224 = vrot.lane.b32.xlu1 %v2222_v58, %s4894_s24  ;;  %v2344_v48 = vmul.f32 %v2343_v52, %v6018_v15  ;;  %v6072_v56 = vld [vmem:[#allocation3 + $0x14] sm:$0xff]  ;;  %v2377_v58 = vstv %s4481_s28  ;;  %s4488_s28 = sld [smem:[#allocation9 + $0xa1]] }
 0x40a   : > { %v1737_v10 = vadd.f32 %v1735_v63, %v1729_v1  ;;  %v1736_v20 = vadd.f32 %v1734_v4, %v1728_v6  ;;  %v2378_v4 = vmul.f32 %v2377_v58, %v6072_v56  ;;  %v2370_v6 = vmul.f32 %v2369_v61, %v6074_v59  ;;  %v6129_v61 = vld [vmem:[#allocation3 + $0x15] sm:$0xff] }
 0x40b   : > { %v6003_v8 = vpop.permute.xlu0 %1754  ;;  %v6005_v2 = vpop.permute.xlu1 %1752  ;;  %v2401_v60 = vstv %s4484_s20  ;;  %v2410_v26 = vmul.f32 %v2409_v22, %v6072_v56  ;;  %s6118_s20 = sld [smem:[#allocation9 + $0xd6]] }
 0x40c   : > { %v6011_v47 = vadd.f32 %v1743_v13, %v1737_v10  ;;  %v6013_v42 = vadd.f32 %v1742_v7, %v1736_v20  ;;  %v2393_v10 = vstv %s4483_s14  ;;  %v2385_v20 = vstv %s4482_s30  ;;  %s4490_s14 = sld [smem:[#allocation9 + $0xa2]] }
 0x40d   : > { %2248 = vrot.lane.b32.xlu0 %v2246_v14, %s4895_s3  ;;  %2240 = vrot.lane.b32.xlu1 %v2238_v17, %s4895_s3  ;;  %v2394_v14 = vmul.f32 %v2393_v10, %v6072_v56  ;;  %v2386_v17 = vmul.f32 %v2385_v20, %v6074_v59  ;;  %v2402_v16 = vmul.f32 %v2401_v60, %v6074_v59  ;;  %s6108_s30 = sld [smem:[#allocation9 + $0xd5]]  ;;  %v2475_v10 = vstv %s4494_s16 }
 0x40e   : > { %v2441_v12 = vstv %s4489_s25  ;;  %s6134_s25 = sld [smem:[#allocation9 + $0xa6]] }
 0x40f   : > { %v6023_v24 = vpop.permute.xlu0 %1768  ;;  %v6025_v18 = vpop.permute.xlu1 %1766  ;;  %v2433_v23 = vstv %s4488_s28  ;;  %v2442_v38 = vmul.f32 %v2441_v12, %v6072_v56  ;;  %s6140_s28 = sld [smem:[#allocation9 + $0xd8]] }
 0x410   : > { %v2434_v39 = vmul.f32 %v2433_v23, %v6074_v59  ;;  %s6158_s16 = sld [smem:[#allocation9 + $0x87]] }
 0x411   : > { %2274 = vrot.lane.b32.xlu0 %v2272_v5, %s4890_s29  ;;  %2266 = vrot.lane.b32.xlu1 %v2264_v46, %s4890_s29 }
 0x413   : > { %v6033_v30 = vpop.permute.xlu0 %1782  ;;  %v6035_v3 = vpop.permute.xlu1 %1780 }
 0x415   : > { %2290 = vrot.lane.b32.xlu0 %v2288_v21, %s4891_s4  ;;  %2282 = vrot.lane.b32.xlu1 %v2280_v41, %s4891_s4  ;;  %v2425_v21 = vstv %s4487_s26  ;;  %v2417_v41 = vstv %s4486_s8  ;;  %s6120_s26 = sld [smem:[#allocation9 + $0xa5]] }
 0x416   : > { %s6126_s8 = sld [smem:[#allocation9 + $0xd7]] }
 0x417   : > { %v6042_v25 = vpop.permute.xlu0 %1796  ;;  %v6044_v27 = vpop.permute.xlu1 %1794 }
 0x419   : > { %2306 = vrot.lane.b32.xlu0 %v2304_v31, %s4892_s23  ;;  %2298 = vrot.lane.b32.xlu1 %v2296_v33, %s4892_s23  ;;  %v2426_v31 = vmul.f32 %v2425_v21, %v6072_v56  ;;  %v2418_v33 = vmul.f32 %v2417_v41, %v6074_v59 }
 0x41b   : > { %v6050_v34 = vpop.permute.xlu0 %1810  ;;  %v6052_v36 = vpop.permute.xlu1 %1808 }
 0x41d   : > { %2322 = vrot.lane.b32.xlu0 %v2320_v37, %s4893_s19  ;;  %2314 = vrot.lane.b32.xlu1 %v2312_v43, %s4893_s19 }
 0x41f   : > { %v6058_v35 = vpop.permute.xlu0 %1824  ;;  %v6060_v45 = vpop.permute.xlu1 %1822 }
 0x421   : > { %2338 = vrot.lane.b32.xlu0 %v2336_v49, %s4894_s24  ;;  %2330 = vrot.lane.b32.xlu1 %v2328_v50, %s4894_s24  ;;  %v2457_v49 = vstv %s4491_s27  ;;  %v2449_v50 = vstv %s4490_s14  ;;  %s6144_s27 = sld [smem:[#allocation9 + $0xa7]] }
 0x422   : > { %s6150_s14 = sld [smem:[#allocation9 + $0xd9]] }
 0x423   : > { %v6066_v53 = vpop.permute.xlu0 %1838  ;;  %v6068_v54 = vpop.permute.xlu1 %1836 }
 0x425   : > { %2354 = vrot.lane.b32.xlu0 %v2352_v55, %s4895_s3  ;;  %2346 = vrot.lane.b32.xlu1 %v2344_v48, %s4895_s3  ;;  %v2458_v55 = vmul.f32 %v2457_v49, %v6072_v56  ;;  %v2450_v48 = vmul.f32 %v2449_v50, %v6074_v59 }
 0x427   : > { %v6078_v63 = vpop.permute.xlu0 %1852  ;;  %v6080_v1 = vpop.permute.xlu1 %1850 }
 0x429   : > { %2380 = vrot.lane.b32.xlu0 %v2378_v4, %s4890_s29  ;;  %2372 = vrot.lane.b32.xlu1 %v2370_v6, %s4890_s29  ;;  %v2483_v4 = vstv %s6108_s30  ;;  %v6132_v6 = vld [vmem:[#allocation3 + $0x5] sm:$0xff]  ;;  %s6154_s30 = sld [smem:[#allocation9 + $0xa8]] }
 0x42a   : > { %v2484_v22 = vmul.f32 %v2483_v4, %v6129_v61  ;;  %v2523_v4 = vstv %s6144_s27  ;;  %s6185_s27 = sld [smem:[#allocation9 + $0xdd]] }
 0x42b   : > { %v6086_v13 = vpop.permute.xlu0 %1866  ;;  %v6088_v7 = vpop.permute.xlu1 %1864 }
 0x42d   : > { %2396 = vrot.lane.b32.xlu0 %v2394_v14, %s4891_s4  ;;  %2388 = vrot.lane.b32.xlu1 %v2386_v17, %s4891_s4 }
 0x42f   : > { %v6094_v5 = vpop.permute.xlu0 %1880  ;;  %v6096_v46 = vpop.permute.xlu1 %1878 }
 0x431   : > { %2412 = vrot.lane.b32.xlu0 %v2410_v26, %s4892_s23  ;;  %2404 = vrot.lane.b32.xlu1 %v2402_v16, %s4892_s23  ;;  %v2499_v26 = vstv %s6118_s20  ;;  %v2491_v16 = vstv %s6120_s26  ;;  %s6162_s20 = sld [smem:[#allocation9 + $0xda]] }
 0x432   : > { %v2492_v12 = vmul.f32 %v2491_v16, %v6132_v6  ;;  %s6166_s26 = sld [smem:[#allocation9 + $0xa9]] }
 0x433   : > { %v6102_v28 = vpop.permute.xlu0 %1894  ;;  %v6104_v29 = vpop.permute.xlu1 %1892 }
 0x435   : > { %2428 = vrot.lane.b32.xlu0 %v2426_v31, %s4893_s19  ;;  %2420 = vrot.lane.b32.xlu1 %v2418_v33, %s4893_s19  ;;  %v2500_v33 = vmul.f32 %v2499_v26, %v6129_v61  ;;  %v2539_v26 = vstv %s6154_s30  ;;  %s6197_s30 = sld [smem:[#allocation9 + $0xde]] }
 0x437   : > { %v6112_v37 = vpop.permute.xlu0 %1908  ;;  %v6114_v43 = vpop.permute.xlu1 %1906 }
 0x439   : > { %2444 = vrot.lane.b32.xlu0 %v2442_v38, %s4894_s24  ;;  %2436 = vrot.lane.b32.xlu1 %v2434_v39, %s4894_s24  ;;  %v2515_v38 = vstv %s6126_s8  ;;  %v2507_v39 = vstv %s6134_s25  ;;  %s6168_s8 = sld [smem:[#allocation9 + $0xb8]] }
 0x43a   : > { %s6174_s25 = sld [smem:[#allocation9 + $0xdc]] }
 0x43b   : > { %v1957_v51 = vpop.permute.xlu0 %1956  ;;  %v1949_v52 = vpop.permute.xlu1 %1948 }
 0x43c   : > { %v1951_v58 = vadd.f32 %v1949_v52, %v5217_v32  ;;  %v2476_v32 = vmul.f32 %v2475_v10, %v6132_v6  ;;  %v2516_v52 = vmul.f32 %v2515_v38, %v6129_v61  ;;  %v2563_v38 = vstv %s6162_s20  ;;  %s6212_s20 = sld [smem:[#allocation9 + $0xdf]] }
 0x43d   : > { %2460 = vrot.lane.b32.xlu0 %v2458_v55, %s4895_s3  ;;  %2452 = vrot.lane.b32.xlu1 %v2450_v48, %s4895_s3  ;;  %v2508_v55 = vmul.f32 %v2507_v39, %v6132_v6  ;;  %v2555_v39 = vstv %s6166_s26  ;;  %s6216_s26 = sld [smem:[#allocation9 + $0xae]] }
 0x43e   : > { %v1959_v20 = vadd.f32 %v1957_v51, %v1951_v58  ;;  %v2531_v58 = vstv %s6140_s28  ;;  %s6178_s28 = sld [smem:[#allocation9 + $0xab]] }
 0x43f   : > { %v1973_v14 = vpop.permute.xlu0 %1972  ;;  %v1965_v17 = vpop.permute.xlu1 %1964 }
 0x440   : > { %v1967_v60 = vadd.f32 %v1965_v17, %v1959_v20  ;;  %v2532_v17 = vmul.f32 %v2531_v58, %v6129_v61  ;;  %v2556_v58 = vmul.f32 %v2555_v39, %v6132_v6 }
 0x441   : > { %2486 = vrot.lane.b32.xlu0 %v2484_v22, %s4890_s29  ;;  %2478 = vrot.lane.b32.xlu1 %v2476_v32, %s4890_s29  ;;  %v2524_v22 = vmul.f32 %v2523_v4, %v6132_v6 }
 0x442   : > { %v1975_v21 = vadd.f32 %v1973_v14, %v1967_v60  ;;  %v2547_v60 = vstv %s6150_s14  ;;  %s6189_s14 = sld [smem:[#allocation9 + $0xac]] }
 0x443   : > { %v1989_v41 = vpop.permute.xlu0 %1988  ;;  %v1981_v31 = vpop.permute.xlu1 %1980 }
 0x444   : > { %v1983_v23 = vadd.f32 %v1981_v31, %v1975_v21  ;;  %v2042_v21 = vstv %s6158_s16  ;;  %s6206_s16 = sld [smem:[#allocation9 + $0xad]] }
 0x445   : > { %2502 = vrot.lane.b32.xlu0 %v2500_v33, %s4891_s4  ;;  %2494 = vrot.lane.b32.xlu1 %v2492_v12, %s4891_s4  ;;  %v2548_v33 = vmul.f32 %v2547_v60, %v6129_v61  ;;  %v2540_v12 = vmul.f32 %v2539_v26, %v6132_v6 }
 0x446   : > { %v1991_v49 = vadd.f32 %v1989_v41, %v1983_v23 }
 0x447   : > { %v2005_v50 = vpop.permute.xlu0 %2004  ;;  %v1997_v51 = vpop.permute.xlu1 %1996 }
 0x448   : > { %v1999_v48 = vadd.f32 %v1997_v51, %v1991_v49  ;;  %v2047_v49 = vstv %s6168_s8  ;;  %s6222_s8 = sld [smem:[#allocation9 + $0xe0]] }
 0x449   : > { %2518 = vrot.lane.b32.xlu0 %v2516_v52, %s4892_s23  ;;  %2510 = vrot.lane.b32.xlu1 %v2508_v55, %s4892_s23  ;;  %v2048_v4 = vmul.f32 %v2047_v49, %v5890_v19  ;;  %v2621_v49 = vstv %s6197_s30  ;;  %s6246_s30 = sld [smem:[#allocation9 + $0x101]] }
 0x44a   : > { %v2007_v10 = vadd.f32 %v2005_v50, %v1999_v48  ;;  %v2043_v50 = vmul.f32 %v2042_v21, %v5892_v9  ;;  %v2564_v48 = vmul.f32 %v2563_v38, %v6129_v61  ;;  %v2581_v9 = vstv %s6178_s28  ;;  %s6232_s28 = sld [smem:[#allocation9 + $0xe1]] }
 0x44b   : > { %v2021_v20 = vpop.permute.xlu0 %2020  ;;  %v2013_v14 = vpop.permute.xlu1 %2012  ;;  %v2605_v21 = vstv %s6185_s27  ;;  %s6236_s27 = sld [smem:[#allocation9 + $0xb0]] }
 0x44c   : > { %v2015_v32 = vadd.f32 %v2013_v14, %v2007_v10  ;;  %v2589_v14 = vstv %s6174_s25  ;;  %s6226_s25 = sld [smem:[#allocation9 + $0xaf]] }
 0x44d   : > { %2534 = vrot.lane.b32.xlu0 %v2532_v17, %s4893_s19  ;;  %2526 = vrot.lane.b32.xlu1 %v2524_v22, %s4893_s19  ;;  %v6203_v17 = vld [vmem:[#allocation3 + $0x6] sm:$0xff] }
 0x44e   : > { %v2023_v16 = vadd.f32 %v2021_v20, %v2015_v32  ;;  %v6200_v20 = vld [vmem:[#allocation3 + $0x16] sm:$0xff]  ;;  %v2582_v26 = vmul.f32 %v2581_v9, %v6203_v17 }
 0x44f   : > { %v2037_v41 = vpop.permute.xlu0 %2036  ;;  %v2029_v31 = vpop.permute.xlu1 %2028  ;;  %v2590_v19 = vmul.f32 %v2589_v14, %v6200_v20  ;;  %v2629_v14 = vstv %s6216_s26  ;;  %s6266_s26 = sld [smem:[#allocation9 + $0x102]] }
 0x450   : > { %v2031_v23 = vadd.f32 %v2029_v31, %v2023_v16 }
 0x451   : > { %2550 = vrot.lane.b32.xlu0 %v2548_v33, %s4894_s24  ;;  %2542 = vrot.lane.b32.xlu1 %v2540_v12, %s4894_s24 }
 0x452   : > { %v2039_v51 = vadd.f32 %v2037_v41, %v2031_v23  ;;  %v2597_v41 = vstv %s6189_s14  ;;  %v2606_v23 = vmul.f32 %v2605_v21, %v6200_v20  ;;  %s6242_s14 = sld [smem:[#allocation9 + $0x8e]]  ;;  %v2645_v21 = vstv %s6226_s25 }
 0x453   : > { %v2063_v52 = vpop.permute.xlu0 %2062  ;;  %v2055_v55 = vpop.permute.xlu1 %2054  ;;  %v2598_v38 = vmul.f32 %v2597_v41, %v6203_v17  ;;  %s4529_s25 = sld [smem:[#allocation9 + $0x103]] }
 0x454   : > { %v2044_v10 = vadd.f32 %v2043_v50, %v2039_v51  ;;  %v2613_v50 = vstv %s6206_s16  ;;  %s6250_s16 = sld [smem:[#allocation9 + $0xbf]] }
 0x455   : > { %2566 = vrot.lane.b32.xlu0 %v2564_v48, %s4895_s3  ;;  %2558 = vrot.lane.b32.xlu1 %v2556_v58, %s4895_s3  ;;  %v2622_v48 = vmul.f32 %v2621_v49, %v6200_v20  ;;  %v2614_v58 = vmul.f32 %v2613_v50, %v6203_v17  ;;  %v2661_v49 = vstv %s6236_s27  ;;  %s4531_s27 = sld [smem:[#allocation9 + $0x104]] }
 0x456   : > { %v2049_v22 = vadd.f32 %v2048_v4, %v2044_v10  ;;  %v2637_v10 = vstv %s6212_s20  ;;  %s6256_s20 = sld [smem:[#allocation9 + $0x132]] }
 0x457   : > { %v2079_v32 = vpop.permute.xlu0 %2078  ;;  %v2071_v60 = vpop.permute.xlu1 %2070 }
 0x458   : > { %v2057_v16 = vadd.f32 %v2055_v55, %v2049_v22 }
 0x459   : > { %2592 = vrot.lane.b32.xlu0 %v2590_v19, %s4890_s29  ;;  %2584 = vrot.lane.b32.xlu1 %v2582_v26, %s4890_s29  ;;  %v2630_v19 = vmul.f32 %v2629_v14, %v6203_v17  ;;  %v2705_v14 = vstv %s6246_s30  ;;  %s6301_s30 = sld [smem:[#allocation9 + $0x135]] }
 0x45a   : > { %v2065_v31 = vadd.f32 %v2063_v52, %v2057_v16  ;;  %v2653_v16 = vstv %s6222_s8  ;;  %s4528_s8 = sld [smem:[#allocation9 + $0x133]] }
 0x45b   : > { %v2095_v33 = vpop.permute.xlu0 %2094  ;;  %v2087_v12 = vpop.permute.xlu1 %2086 }
 0x45c   : > { %v2073_v39 = vadd.f32 %v2071_v60, %v2065_v31  ;;  %v2638_v60 = vmul.f32 %v2637_v10, %v6200_v20 }
 0x45d   : > { %2608 = vrot.lane.b32.xlu0 %v2606_v23, %s4891_s4  ;;  %2600 = vrot.lane.b32.xlu1 %v2598_v38, %s4891_s4  ;;  %v2646_v23 = vmul.f32 %v2645_v21, %v6203_v17 }
 0x45e   : > { %v2081_v51 = vadd.f32 %v2079_v32, %v2073_v39  ;;  %v2669_v39 = vstv %s6232_s28  ;;  %s4530_s28 = sld [smem:[#allocation9 + $0x134]] }
 0x45f   : > { %v2111_v52 = vpop.permute.xlu0 %2110  ;;  %v2103_v55 = vpop.permute.xlu1 %2102 }
 0x460   : > { %v2089_v4 = vadd.f32 %v2087_v12, %v2081_v51  ;;  %v2654_v12 = vmul.f32 %v2653_v16, %v6200_v20  ;;  %v2148_v51 = vstv %s6242_s14  ;;  %s6297_s14 = sld [smem:[#allocation9 + $0x95]] }
 0x461   : > { %2624 = vrot.lane.b32.xlu0 %v2622_v48, %s4892_s23  ;;  %2616 = vrot.lane.b32.xlu1 %v2614_v58, %s4892_s23  ;;  %v2670_v48 = vmul.f32 %v2669_v39, %v6200_v20  ;;  %v2662_v58 = vmul.f32 %v2661_v49, %v6203_v17  ;;  %v6282_v39 = vld [vmem:[#allocation4 + $0x20] sm:$0xff] }
 0x462   : > { %v2097_v9 = vadd.f32 %v2095_v33, %v2089_v4  ;;  %v6263_v4 = vld [vmem:[#allocation4] sm:$0xff] }
 0x463   : > { %v2127_v22 = vpop.permute.xlu0 %2126  ;;  %v2119_v32 = vpop.permute.xlu1 %2118  ;;  %v2706_v21 = vmul.f32 %v2705_v14, %v6263_v4 }
 0x464   : > { %v2105_v26 = vadd.f32 %v2103_v55, %v2097_v9  ;;  %v2153_v9 = vstv %s6250_s16  ;;  %s6303_s16 = sld [smem:[#allocation9 + $0xc6]] }
 0x465   : > { %2640 = vrot.lane.b32.xlu0 %v2638_v60, %s4893_s19  ;;  %2632 = vrot.lane.b32.xlu1 %v2630_v19, %s4893_s19 }
 0x466   : > { %v2113_v41 = vadd.f32 %v2111_v52, %v2105_v26  ;;  %v6272_v26 = vld [vmem:[#allocation4 + $0x8] sm:$0xff] }
 0x467   : > { %v2143_v31 = vpop.permute.xlu0 %2142  ;;  %v2135_v33 = vpop.permute.xlu1 %2134  ;;  %v2707_v16 = vmul.f32 %v6272_v26, %v2705_v14 }
 0x468   : > { %v2121_v38 = vadd.f32 %v2119_v32, %v2113_v41  ;;  %v6276_v41 = vld [vmem:[#allocation4 + $0x18] sm:$0xff] }
 0x469   : > { %2656 = vrot.lane.b32.xlu0 %v2654_v12, %s4894_s24  ;;  %2648 = vrot.lane.b32.xlu1 %v2646_v23, %s4894_s24  ;;  %v2719_v23 = vstv %s6256_s20  ;;  %s6309_s20 = sld [smem:[#allocation9 + $0x105]] }
 0x46a   : > { %v2129_v50 = vadd.f32 %v2127_v22, %v2121_v38  ;;  %v2149_v22 = vmul.f32 %v2148_v51, %v5936_v0  ;;  %v2721_v49 = vmul.f32 %v6282_v39, %v2719_v23 }
 0x46b   : > { %v2169_v52 = vpop.permute.xlu0 %2168  ;;  %v2161_v55 = vpop.permute.xlu1 %2160 }
 0x46c   : > { %v2137_v10 = vadd.f32 %v2135_v33, %v2129_v50  ;;  %v2154_v33 = vmul.f32 %v2153_v9, %v5933_v62  ;;  %v2720_v50 = vmul.f32 %v2719_v23, %v6276_v41  ;;  %v2761_v23 = vstv %s4529_s25  ;;  %s4536_s25 = sld [smem:[#allocation9 + $0x137]] }
 0x46d   : > { %2672 = vrot.lane.b32.xlu0 %v2670_v48, %s4895_s3  ;;  %2664 = vrot.lane.b32.xlu1 %v2662_v58, %s4895_s3  ;;  %v2733_v48 = vstv %s6266_s26  ;;  %s4534_s26 = sld [smem:[#allocation9 + $0x136]] }
 0x46e   : > { %v2145_v32 = vadd.f32 %v2143_v31, %v2137_v10  ;;  %v2735_v14 = vmul.f32 %v6272_v26, %v2733_v48  ;;  %v2734_v9 = vmul.f32 %v2733_v48, %v6263_v4  ;;  %v2775_v48 = vstv %s4530_s28  ;;  %s6333_s28 = sld [smem:[#allocation9 + $0x108]] }
 0x46f   : > { %v2185_v60 = vpop.permute.xlu0 %2184  ;;  %v2177_v19 = vpop.permute.xlu1 %2176 }
 0x470   : > { %v2150_v12 = vadd.f32 %v2149_v22, %v2145_v32  ;;  %v2747_v32 = vstv %s4528_s8  ;;  %s4535_s8 = sld [smem:[#allocation9 + $0x106]] }
 0x471   : > { %2712 = vrot.lane.b32.xlu0 %v2707_v16, %s4890_s29  ;;  %2710 = vrot.lane.b32.xlu1 %v2706_v21, %s4890_s29 }
 0x472   : > { %v2155_v0 = vadd.f32 %v2154_v33, %v2150_v12  ;;  %v2749_v33 = vmul.f32 %v6282_v39, %v2747_v32 }
 0x473   : > { %v2201_v31 = vpop.permute.xlu0 %2200  ;;  %v2193_v38 = vpop.permute.xlu1 %2192 }
 0x474   : > { %v2163_v51 = vadd.f32 %v2161_v55, %v2155_v0 }
 0x475   : > { %2726 = vrot.lane.b32.xlu0 %v2721_v49, %s4890_s29  ;;  %2724 = vrot.lane.b32.xlu1 %v2720_v50, %s4890_s29  ;;  %v2762_v50 = vmul.f32 %v2761_v23, %v6263_v4 }
 0x476   : > { %v2171_v62 = vadd.f32 %v2169_v52, %v2163_v51  ;;  %v2748_v52 = vmul.f32 %v2747_v32, %v6276_v41 }
 0x477   : > { %v2217_v58 = vpop.permute.xlu0 %2216  ;;  %v2209_v10 = vpop.permute.xlu1 %2208 }
 0x478   : > { %v2179_v22 = vadd.f32 %v2177_v19, %v2171_v62 }
 0x479   : > { %2740 = vrot.lane.b32.xlu0 %v2735_v14, %s4891_s4  ;;  %2738 = vrot.lane.b32.xlu1 %v2734_v9, %s4891_s4  ;;  %v2777_v14 = vmul.f32 %v6282_v39, %v2775_v48  ;;  %v2776_v9 = vmul.f32 %v2775_v48, %v6276_v41 }
 0x47a   : > { %v2187_v55 = vadd.f32 %v2185_v60, %v2179_v22  ;;  %v2763_v60 = vmul.f32 %v6272_v26, %v2761_v23  ;;  %v2789_v22 = vstv %s4531_s27  ;;  %s6339_s27 = sld [smem:[#allocation9 + $0x139]] }
 0x47b   : > { %v2233_v16 = vpop.permute.xlu0 %2232  ;;  %v2225_v21 = vpop.permute.xlu1 %2224 }
 0x47c   : > { %v2195_v12 = vadd.f32 %v2193_v38, %v2187_v55  ;;  %v2254_v55 = vstv %s6297_s14  ;;  %s6343_s14 = sld [smem:[#allocation9 + $0x9c]] }
 0x47d   : > { %2754 = vrot.lane.b32.xlu0 %v2749_v33, %s4891_s4  ;;  %2752 = vrot.lane.b32.xlu1 %v2748_v52, %s4891_s4  ;;  %v2791_v52 = vmul.f32 %v6272_v26, %v2789_v22 }
 0x47e   : > { %v2203_v19 = vadd.f32 %v2201_v31, %v2195_v12  ;;  %v2790_v12 = vmul.f32 %v2789_v22, %v6263_v4 }
 0x47f   : > { %v2249_v0 = vpop.permute.xlu0 %2248  ;;  %v2241_v49 = vpop.permute.xlu1 %2240 }
 0x480   : > { %v2211_v51 = vadd.f32 %v2209_v10, %v2203_v19  ;;  %v2803_v19 = vstv %s6301_s30  ;;  %s6352_s30 = sld [smem:[#allocation9 + $0x109]] }
 0x481   : > { %2768 = vrot.lane.b32.xlu0 %v2763_v60, %s4892_s23  ;;  %2766 = vrot.lane.b32.xlu1 %v2762_v50, %s4892_s23  ;;  %v2255_v60 = vmul.f32 %v2254_v55, %v6018_v15  ;;  %v2805_v48 = vmul.f32 %v6282_v39, %v2803_v19 }
 0x482   : > { %v2219_v31 = vadd.f32 %v2217_v58, %v2211_v51 }
 0x483   : > { %v2275_v38 = vpop.permute.xlu0 %2274  ;;  %v2267_v62 = vpop.permute.xlu1 %2266 }
 0x484   : > { %v2227_v10 = vadd.f32 %v2225_v21, %v2219_v31  ;;  %v2259_v21 = vstv %s6303_s16  ;;  %v2804_v31 = vmul.f32 %v2803_v19, %v6276_v41  ;;  %s6354_s16 = sld [smem:[#allocation9 + $0xcd]] }
 0x485   : > { %2782 = vrot.lane.b32.xlu0 %v2777_v14, %s4892_s23  ;;  %2780 = vrot.lane.b32.xlu1 %v2776_v9, %s4892_s23  ;;  %v2260_v14 = vmul.f32 %v2259_v21, %v6015_v11 }
 0x486   : > { %v2235_v32 = vadd.f32 %v2233_v16, %v2227_v10 }
 0x487   : > { %v2291_v33 = vpop.permute.xlu0 %2290  ;;  %v2283_v58 = vpop.permute.xlu1 %2282 }
 0x488   : > { %v2243_v23 = vadd.f32 %v2241_v49, %v2235_v32  ;;  %v2817_v49 = vstv %s6309_s20  ;;  %s6365_s20 = sld [smem:[#allocation9 + $0x13a]] }
 0x489   : > { %2796 = vrot.lane.b32.xlu0 %v2791_v52, %s4893_s19  ;;  %2794 = vrot.lane.b32.xlu1 %v2790_v12, %s4893_s19  ;;  %v2819_v15 = vmul.f32 %v6272_v26, %v2817_v49  ;;  %v2831_v52 = vstv %s4534_s26  ;;  %s4543_s26 = sld [smem:[#allocation9 + $0x10a]] }
 0x48a   : > { %v2251_v50 = vadd.f32 %v2249_v0, %v2243_v23  ;;  %v2818_v0 = vmul.f32 %v2817_v49, %v6263_v4  ;;  %v2833_v19 = vmul.f32 %v6282_v39, %v2831_v52  ;;  %v2832_v21 = vmul.f32 %v2831_v52, %v6276_v41 }
 0x48b   : > { %v2307_v16 = vpop.permute.xlu0 %2306  ;;  %v2299_v51 = vpop.permute.xlu1 %2298  ;;  %v2859_v49 = vstv %s4536_s25  ;;  %v2889_v52 = vstv %s6333_s28  ;;  %s4545_s25 = sld [smem:[#allocation9 + $0x10b]] }
 0x48c   : > { %v2256_v9 = vadd.f32 %v2255_v60, %v2251_v50  ;;  %v2845_v50 = vstv %s4535_s8  ;;  %s4544_s8 = sld [smem:[#allocation9 + $0x13b]] }
 0x48d   : > { %2810 = vrot.lane.b32.xlu0 %v2805_v48, %s4893_s19  ;;  %2808 = vrot.lane.b32.xlu1 %v2804_v31, %s4893_s19  ;;  %s4546_s28 = sld [smem:[#allocation9 + $0x13c]] }
 0x48e   : > { %v2261_v10 = vadd.f32 %v2260_v14, %v2256_v9  ;;  %v2847_v14 = vmul.f32 %v6272_v26, %v2845_v50  ;;  %v2860_v26 = vmul.f32 %v2859_v49, %v6276_v41 }
 0x48f   : > { %v2323_v22 = vpop.permute.xlu0 %2322  ;;  %v2315_v32 = vpop.permute.xlu1 %2314 }
 0x490   : > { %v2269_v55 = vadd.f32 %v2267_v62, %v2261_v10 }
 0x491   : > { %2824 = vrot.lane.b32.xlu0 %v2819_v15, %s4894_s24  ;;  %2822 = vrot.lane.b32.xlu1 %v2818_v0, %s4894_s24  ;;  %v2861_v15 = vmul.f32 %v6282_v39, %v2859_v49  ;;  %v6347_v0 = vld [vmem:[#allocation4 + $0x1] sm:$0xff] }
 0x492   : > { %v2277_v11 = vadd.f32 %v2275_v38, %v2269_v55  ;;  %v2846_v38 = vmul.f32 %v2845_v50, %v6263_v4  ;;  %7329 = vst [vmem:[#allocation14_spill] sm:$0xff] %v6347_v0 }
 0x493   : > { %v2339_v12 = vpop.permute.xlu0 %2338  ;;  %v2331_v23 = vpop.permute.xlu1 %2330 }
 0x494   : > { %v2285_v60 = vadd.f32 %v2283_v58, %v2277_v11 }
 0x495   : > { %2838 = vrot.lane.b32.xlu0 %v2833_v19, %s4894_s24  ;;  %2836 = vrot.lane.b32.xlu1 %v2832_v21, %s4894_s24  ;;  %v2890_v21 = vmul.f32 %v2889_v52, %v6347_v0 }
 0x496   : > { %v2293_v62 = vadd.f32 %v2291_v33, %v2285_v60  ;;  %v6360_v60 = vld [vmem:[#allocation4 + $0x19] sm:$0xff] }
 0x497   : > { %v2355_v48 = vpop.permute.xlu0 %2354  ;;  %v2347_v31 = vpop.permute.xlu1 %2346  ;;  %7331 = vst [vmem:[#allocation16_spill] sm:$0xff] %v6360_v60 }
 0x498   : > { %v2301_v9 = vadd.f32 %v2299_v51, %v2293_v62  ;;  %v6349_v51 = vld [vmem:[#allocation4 + $0x9] sm:$0xff]  ;;  %v2903_v62 = vstv %s6339_s27  ;;  %s4547_s27 = sld [smem:[#allocation9 + $0x10c]] }
 0x499   : > { %2852 = vrot.lane.b32.xlu0 %v2847_v14, %s4895_s3  ;;  %2850 = vrot.lane.b32.xlu1 %v2846_v38, %s4895_s3  ;;  %7330 = vst [vmem:[#allocation15_spill] sm:$0xff] %v6349_v51  ;;  %v2891_v19 = vmul.f32 %v2889_v52, %v6349_v51  ;;  %v2360_v14 = vstv %s6343_s14  ;;  %s6397_s14 = sld [smem:[#allocation9 + $0xa3]] }
 0x49a   : > { %v2309_v58 = vadd.f32 %v2307_v16, %v2301_v9  ;;  %v2361_v52 = vmul.f32 %v2360_v14, %v6074_v59 }
 0x49b   : > { %v2381_v10 = vpop.permute.xlu0 %2380  ;;  %v2373_v33 = vpop.permute.xlu1 %2372 }
 0x49c   : > { %v2317_v55 = vadd.f32 %v2315_v32, %v2309_v58  ;;  %v6362_v32 = vld [vmem:[#allocation4 + $0x21] sm:$0xff]  ;;  %v2904_v58 = vmul.f32 %v2903_v62, %v6360_v60 }
 0x49d   : > { %2866 = vrot.lane.b32.xlu0 %v2861_v15, %s4895_s3  ;;  %2864 = vrot.lane.b32.xlu1 %v2860_v26, %s4895_s3  ;;  %7332 = vst [vmem:[#allocation17_spill] sm:$0xff] %v6362_v32  ;;  %v2905_v49 = vmul.f32 %v2903_v62, %v6362_v32  ;;  %v2917_v26 = vstv %s6352_s30  ;;  %s6403_s30 = sld [smem:[#allocation9 + $0x13d]] }
 0x49e   : > { %v2325_v16 = vadd.f32 %v2323_v22, %v2317_v55 }
 0x49f   : > { %v2397_v39 = vpop.permute.xlu0 %2396  ;;  %v2389_v11 = vpop.permute.xlu1 %2388 }
 0x4a0   : > { %v2333_v50 = vadd.f32 %v2331_v23, %v2325_v16  ;;  %v2365_v23 = vstv %s6354_s16  ;;  %s6405_s16 = sld [smem:[#allocation9 + $0xd4]] }
 0x4a1   : > { %2896 = vrot.lane.b32.xlu0 %v2891_v19, %s4890_s29  ;;  %2894 = vrot.lane.b32.xlu1 %v2890_v21, %s4890_s29  ;;  %v2919_v19 = vmul.f32 %v2917_v26, %v6349_v51  ;;  %v2918_v21 = vmul.f32 %v2917_v26, %v6347_v0  ;;  %v2366_v62 = vmul.f32 %v2365_v23, %v6072_v56 }
 0x4a2   : > { %v2341_v22 = vadd.f32 %v2339_v12, %v2333_v50 }
 0x4a3   : > { %v2413_v38 = vpop.permute.xlu0 %2412  ;;  %v2405_v9 = vpop.permute.xlu1 %2404 }
 0x4a4   : > { %v2349_v15 = vadd.f32 %v2347_v31, %v2341_v22  ;;  %v2931_v31 = vstv %s6365_s20  ;;  %s6413_s20 = sld [smem:[#allocation9 + $0x10d]] }
 0x4a5   : > { %2910 = vrot.lane.b32.xlu0 %v2905_v49, %s4890_s29  ;;  %2908 = vrot.lane.b32.xlu1 %v2904_v58, %s4890_s29  ;;  %v2933_v59 = vmul.f32 %v2931_v31, %v6362_v32  ;;  %v2932_v14 = vmul.f32 %v2931_v31, %v6360_v60 }
 0x4a6   : > { %v2357_v55 = vadd.f32 %v2355_v48, %v2349_v15  ;;  %v2945_v15 = vstv %s4543_s26  ;;  %s4550_s26 = sld [smem:[#allocation9 + $0x13e]] }
 0x4a7   : > { %v2429_v12 = vpop.permute.xlu0 %2428  ;;  %v2421_v16 = vpop.permute.xlu1 %2420 }
 0x4a8   : > { %v2362_v50 = vadd.f32 %v2361_v52, %v2357_v55  ;;  %v2947_v55 = vmul.f32 %v2945_v15, %v6349_v51  ;;  %v2946_v52 = vmul.f32 %v2945_v15, %v6347_v0 }
 0x4a9   : > { %2924 = vrot.lane.b32.xlu0 %v2919_v19, %s4891_s4  ;;  %2922 = vrot.lane.b32.xlu1 %v2918_v21, %s4891_s4  ;;  %v2959_v21 = vstv %s4544_s8  ;;  %s4553_s8 = sld [smem:[#allocation9 + $0x10f]] }
 0x4aa   : > { %v2367_v22 = vadd.f32 %v2366_v62, %v2362_v50  ;;  %v2961_v31 = vmul.f32 %v2959_v21, %v6362_v32 }
 0x4ab   : > { %v2445_v49 = vpop.permute.xlu0 %2444  ;;  %v2437_v48 = vpop.permute.xlu1 %2436 }
 0x4ac   : > { %v2375_v58 = vadd.f32 %v2373_v33, %v2367_v22 }
 0x4ad   : > { %2938 = vrot.lane.b32.xlu0 %v2933_v59, %s4891_s4  ;;  %2936 = vrot.lane.b32.xlu1 %v2932_v14, %s4891_s4  ;;  %v2973_v59 = vstv %s4545_s25  ;;  %s6439_s25 = sld [smem:[#allocation9 + $0x140]] }
 0x4ae   : > { %v2383_v56 = vadd.f32 %v2381_v10, %v2375_v58  ;;  %v2960_v10 = vmul.f32 %v2959_v21, %v6360_v60  ;;  %v2975_v58 = vmul.f32 %v2973_v59, %v6349_v51  ;;  %v2974_v15 = vmul.f32 %v2973_v59, %v6347_v0 }
 0x4af   : > { %v2461_v26 = vpop.permute.xlu0 %2460  ;;  %v2453_v23 = vpop.permute.xlu1 %2452 }
 0x4b0   : > { %v2391_v19 = vadd.f32 %v2389_v11, %v2383_v56 }
 0x4b1   : > { %2952 = vrot.lane.b32.xlu0 %v2947_v55, %s4892_s23  ;;  %2950 = vrot.lane.b32.xlu1 %v2946_v52, %s4892_s23  ;;  %v2987_v55 = vstv %s4546_s28  ;;  %s6454_s28 = sld [smem:[#allocation9 + $0x110]] }
 0x4b2   : > { %v2399_v33 = vadd.f32 %v2397_v39, %v2391_v19  ;;  %v2989_v19 = vmul.f32 %v2987_v55, %v6362_v32 }
 0x4b3   : > { %v6391_v50 = vpop.permute.xlu0 %2486  ;;  %v2479_v62 = vpop.permute.xlu1 %2478 }
 0x4b4   : > { %v2407_v22 = vadd.f32 %v2405_v9, %v2399_v33  ;;  %v3001_v33 = vstv %s4547_s27  ;;  %s4556_s27 = sld [smem:[#allocation9 + $0x141]] }
 0x4b5   : > { %2966 = vrot.lane.b32.xlu0 %v2961_v31, %s4892_s23  ;;  %2964 = vrot.lane.b32.xlu1 %v2960_v10, %s4892_s23  ;;  %v2466_v10 = vstv %s6397_s14  ;;  %v3003_v59 = vmul.f32 %v3001_v33, %v6349_v51  ;;  %s6473_s14 = sld [smem:[#allocation9 + $0xaa]] }
 0x4b6   : > { %v2415_v11 = vadd.f32 %v2413_v38, %v2407_v22 }
 0x4b7   : > { %v6399_v14 = vpop.permute.xlu0 %2502  ;;  %v2495_v39 = vpop.permute.xlu1 %2494 }
 0x4b8   : > { %v2423_v56 = vadd.f32 %v2421_v16, %v2415_v11  ;;  %v2988_v16 = vmul.f32 %v2987_v55, %v6360_v60  ;;  %v3002_v11 = vmul.f32 %v3001_v33, %v6347_v0  ;;  %v3029_v33 = vstv %s6413_s20  ;;  %s6495_s20 = sld [smem:[#allocation9 + $0x142]] }
 0x4b9   : > { %2980 = vrot.lane.b32.xlu0 %v2975_v58, %s4893_s19  ;;  %2978 = vrot.lane.b32.xlu1 %v2974_v15, %s4893_s19  ;;  %v3015_v15 = vstv %s6403_s30  ;;  %s6482_s30 = sld [smem:[#allocation9 + $0x111]] }
 0x4ba   : > { %v2431_v38 = vadd.f32 %v2429_v12, %v2423_v56 }
 0x4bb   : > { %v6409_v9 = vpop.permute.xlu0 %2518  ;;  %v2511_v52 = vpop.permute.xlu1 %2510 }
 0x4bc   : > { %v2439_v21 = vadd.f32 %v2437_v48, %v2431_v38  ;;  %v2471_v48 = vstv %s6405_s16  ;;  %s6487_s16 = sld [smem:[#allocation9 + $0xdb]] }
 0x4bd   : > { %2994 = vrot.lane.b32.xlu0 %v2989_v19, %s4893_s19  ;;  %2992 = vrot.lane.b32.xlu1 %v2988_v16, %s4893_s19  ;;  %v3017_v19 = vmul.f32 %v3015_v15, %v6362_v32  ;;  %v3016_v16 = vmul.f32 %v3015_v15, %v6360_v60 }
 0x4be   : > { %v2447_v31 = vadd.f32 %v2445_v49, %v2439_v21  ;;  %v2467_v49 = vmul.f32 %v2466_v10, %v6132_v6  ;;  %v3031_v10 = vmul.f32 %v3029_v33, %v6349_v51  ;;  %v6607_v51 = vld [vmem:[#allocation4 + $0x1b] sm:$0xff] }
 0x4bf   : > { %v6418_v12 = vpop.permute.xlu0 %2534  ;;  %v2527_v22 = vpop.permute.xlu1 %2526 }
 0x4c0   : > { %v2455_v58 = vadd.f32 %v2453_v23, %v2447_v31  ;;  %v2472_v23 = vmul.f32 %v2471_v48, %v6129_v61 }
 0x4c1   : > { %3008 = vrot.lane.b32.xlu0 %v3003_v59, %s4894_s24  ;;  %3006 = vrot.lane.b32.xlu1 %v3002_v11, %s4894_s24  ;;  %v3030_v59 = vmul.f32 %v3029_v33, %v6347_v0 }
 0x4c2   : > { %v2463_v56 = vadd.f32 %v2461_v26, %v2455_v58  ;;  %v3043_v58 = vstv %s4550_s26  ;;  %s4559_s26 = sld [smem:[#allocation9 + $0x112]] }
 0x4c3   : > { %v6427_v55 = vpop.permute.xlu0 %2550  ;;  %v2543_v38 = vpop.permute.xlu1 %2542 }
 0x4c4   : > { %v2468_v21 = vadd.f32 %v2467_v49, %v2463_v56  ;;  %v3045_v56 = vmul.f32 %v3043_v58, %v6362_v32  ;;  %v3044_v49 = vmul.f32 %v3043_v58, %v6360_v60  ;;  %v3087_v58 = vstv %s6439_s25  ;;  %s4561_s25 = sld [smem:[#allocation9 + $0x113]] }
 0x4c5   : > { %3022 = vrot.lane.b32.xlu0 %v3017_v19, %s4894_s24  ;;  %3020 = vrot.lane.b32.xlu1 %v3016_v16, %s4894_s24  ;;  %v6450_v19 = vld [vmem:[#allocation4 + $0x2] sm:$0xff] }
 0x4c6   : > { %v2473_v31 = vadd.f32 %v2472_v23, %v2468_v21  ;;  %7333 = vst [vmem:[#allocation18_spill] sm:$0xff] %v6450_v19  ;;  %v3073_v21 = vstv %s4553_s8  ;;  %s4560_s8 = sld [smem:[#allocation9 + $0x143]] }
 0x4c7   : > { %v6435_v26 = vpop.permute.xlu0 %2566  ;;  %v2559_v6 = vpop.permute.xlu1 %2558 }
 0x4c8   : > { %v2481_v11 = vadd.f32 %v2479_v62, %v2473_v31  ;;  %v6452_v62 = vld [vmem:[#allocation4 + $0xa] sm:$0xff]  ;;  %v3157_v32 = vstv %s4559_s26  ;;  %s6609_s26 = sld [smem:[#allocation9 + $0x148]] }
 0x4c9   : > { %3036 = vrot.lane.b32.xlu0 %v3031_v10, %s4895_s3  ;;  %3034 = vrot.lane.b32.xlu1 %v3030_v59, %s4895_s3  ;;  %7334 = vst [vmem:[#allocation19_spill] sm:$0xff] %v6452_v62  ;;  %v3075_v31 = vmul.f32 %v3073_v21, %v6452_v62  ;;  %v3074_v10 = vmul.f32 %v3073_v21, %v6450_v19  ;;  %v6465_v59 = vld [vmem:[#allocation4 + $0x1a] sm:$0xff] }
 0x4ca   : > { %v2489_v61 = vadd.f32 %v6391_v50, %v2481_v11  ;;  %7335 = vst [vmem:[#allocation20_spill] sm:$0xff] %v6465_v59 }
 0x4cb   : > { %v6444_v15 = vpop.permute.xlu0 %2592  ;;  %v6446_v48 = vpop.permute.xlu1 %2584 }
 0x4cc   : > { %v2497_v16 = vadd.f32 %v2495_v39, %v2489_v61  ;;  %v6467_v39 = vld [vmem:[#allocation4 + $0x22] sm:$0xff] }
 0x4cd   : > { %3050 = vrot.lane.b32.xlu0 %v3045_v56, %s4895_s3  ;;  %3048 = vrot.lane.b32.xlu1 %v3044_v49, %s4895_s3  ;;  %7336 = vst [vmem:[#allocation21_spill] sm:$0xff] %v6467_v39  ;;  %v3089_v49 = vmul.f32 %v3087_v58, %v6467_v39 }
 0x4ce   : > { %v2505_v50 = vadd.f32 %v6399_v14, %v2497_v16  ;;  %v3088_v16 = vmul.f32 %v3087_v58, %v6465_v59  ;;  %v3115_v58 = vstv %s4556_s27  ;;  %s4563_s27 = sld [smem:[#allocation9 + $0x114]] }
 0x4cf   : > { %v6459_v23 = vpop.permute.xlu0 %2608  ;;  %v6461_v33 = vpop.permute.xlu1 %2600 }
 0x4d0   : > { %v2513_v11 = vadd.f32 %v2511_v52, %v2505_v50  ;;  %v3101_v52 = vstv %s6454_s28  ;;  %s4562_s28 = sld [smem:[#allocation9 + $0x144]] }
 0x4d1   : > { %3080 = vrot.lane.b32.xlu0 %v3075_v31, %s4890_s29  ;;  %3078 = vrot.lane.b32.xlu1 %v3074_v10, %s4890_s29  ;;  %v3103_v10 = vmul.f32 %v3101_v52, %v6452_v62 }
 0x4d2   : > { %v2521_v14 = vadd.f32 %v6409_v9, %v2513_v11 }
 0x4d3   : > { %v6475_v61 = vpop.permute.xlu0 %2624  ;;  %v6477_v56 = vpop.permute.xlu1 %2616 }
 0x4d4   : > { %v2529_v21 = vadd.f32 %v2527_v22, %v2521_v14  ;;  %v3102_v22 = vmul.f32 %v3101_v52, %v6450_v19  ;;  %v2572_v14 = vstv %s6473_s14  ;;  %s4564_s14 = sld [smem:[#allocation9 + $0x145]] }
 0x4d5   : > { %3094 = vrot.lane.b32.xlu0 %v3089_v49, %s4890_s29  ;;  %3092 = vrot.lane.b32.xlu1 %v3088_v16, %s4890_s29 }
 0x4d6   : > { %v2537_v9 = vadd.f32 %v6418_v12, %v2529_v21  ;;  %v3117_v21 = vmul.f32 %v3115_v58, %v6467_v39 }
 0x4d7   : > { %v6489_v50 = vpop.permute.xlu0 %2640  ;;  %v6491_v31 = vpop.permute.xlu1 %2632 }
 0x4d8   : > { %v2545_v11 = vadd.f32 %v2543_v38, %v2537_v9  ;;  %v3116_v38 = vmul.f32 %v3115_v58, %v6465_v59  ;;  %v3129_v9 = vstv %s6482_s30  ;;  %s4567_s30 = sld [smem:[#allocation9 + $0x116]] }
 0x4d9   : > { %3108 = vrot.lane.b32.xlu0 %v3103_v10, %s4891_s4  ;;  %3106 = vrot.lane.b32.xlu1 %v3102_v22, %s4891_s4  ;;  %v2577_v22 = vstv %s6487_s16  ;;  %v3131_v44 = vmul.f32 %v3129_v9, %v6452_v62  ;;  %v3130_v58 = vmul.f32 %v3129_v9, %v6450_v19  ;;  %s6574_s16 = sld [smem:[#allocation9 + $0x147]] }
 0x4da   : > { %v2553_v12 = vadd.f32 %v6427_v55, %v2545_v11  ;;  %v2573_v55 = vmul.f32 %v2572_v14, %v6203_v17  ;;  %v3227_v60 = vstv %s4564_s14  ;;  %s6684_s14 = sld [smem:[#allocation9 + $0xe3]] }
 0x4db   : > { %v6501_v49 = vpop.permute.xlu0 %2656  ;;  %v6503_v16 = vpop.permute.xlu1 %2648 }
 0x4dc   : > { %v2561_v52 = vadd.f32 %v2559_v6, %v2553_v12  ;;  %v3143_v12 = vstv %s6495_s20  ;;  %s6589_s20 = sld [smem:[#allocation9 + $0x117]] }
 0x4dd   : > { %3122 = vrot.lane.b32.xlu0 %v3117_v21, %s4891_s4  ;;  %3120 = vrot.lane.b32.xlu1 %v3116_v38, %s4891_s4  ;;  %v2578_v21 = vmul.f32 %v2577_v22, %v6200_v20  ;;  %v3145_v38 = vmul.f32 %v3143_v12, %v6467_v39  ;;  %v3171_v22 = vstv %s4560_s8  ;;  %s6624_s8 = sld [smem:[#allocation9 + $0x118]] }
 0x4de   : > { %v2569_v10 = vadd.f32 %v6435_v26, %v2561_v52  ;;  %v3144_v52 = vmul.f32 %v3143_v12, %v6465_v59 }
 0x4df   : > { %v6513_v11 = vpop.permute.xlu0 %2672  ;;  %v6515_v40 = vpop.permute.xlu1 %2664 }
 0x4e0   : > { %v2574_v6 = vadd.f32 %v2573_v55, %v2569_v10  ;;  %v3159_v10 = vmul.f32 %v3157_v32, %v6452_v62  ;;  %v3158_v55 = vmul.f32 %v3157_v32, %v6450_v19 }
 0x4e1   : > { %3136 = vrot.lane.b32.xlu0 %v3131_v44, %s4892_s23  ;;  %3134 = vrot.lane.b32.xlu1 %v3130_v58, %s4892_s23 }
 0x4e2   : > { %v2579_v26 = vadd.f32 %v2578_v21, %v2574_v6  ;;  %v3172_v21 = vmul.f32 %v3171_v22, %v6465_v59 }
 0x4e3   : > { %v6523_v17 = vpop.permute.xlu0 %2712  ;;  %v6525_v14 = vpop.permute.xlu1 %2710 }
 0x4e4   : > { %v2587_v20 = vadd.f32 %v6446_v48, %v2579_v26  ;;  %v3173_v48 = vmul.f32 %v3171_v22, %v6467_v39  ;;  %v3185_v26 = vstv %s4561_s25  ;;  %s6630_s25 = sld [smem:[#allocation9 + $0x149]] }
 0x4e5   : > { %3150 = vrot.lane.b32.xlu0 %v3145_v38, %s4892_s23  ;;  %3148 = vrot.lane.b32.xlu1 %v3144_v52, %s4892_s23 }
 0x4e6   : > { %v2595_v58 = vadd.f32 %v6444_v15, %v2587_v20  ;;  %v3187_v15 = vmul.f32 %v3185_v26, %v6452_v62  ;;  %v3186_v20 = vmul.f32 %v3185_v26, %v6450_v19 }
 0x4e7   : > { %v6532_v44 = vpop.permute.xlu0 %2726  ;;  %v6534_v9 = vpop.permute.xlu1 %2724 }
 0x4e8   : > { %v2603_v32 = vadd.f32 %v6461_v33, %v2595_v58 }
 0x4e9   : > { %3164 = vrot.lane.b32.xlu0 %v3159_v10, %s4893_s19  ;;  %3162 = vrot.lane.b32.xlu1 %v3158_v55, %s4893_s19  ;;  %v3199_v10 = vstv %s4562_s28  ;;  %s6657_s28 = sld [smem:[#allocation9 + $0x119]] }
 0x4ea   : > { %v2611_v55 = vadd.f32 %v6459_v23, %v2603_v32  ;;  %v3201_v33 = vmul.f32 %v3199_v10, %v6467_v39  ;;  %v3200_v58 = vmul.f32 %v3199_v10, %v6465_v59 }
 0x4eb   : > { %v6541_v6 = vpop.permute.xlu0 %2740  ;;  %v6543_v12 = vpop.permute.xlu1 %2738 }
 0x4ec   : > { %v2619_v26 = vadd.f32 %v6477_v56, %v2611_v55  ;;  %v3229_v55 = vmul.f32 %v3227_v60, %v6467_v39 }
 0x4ed   : > { %3178 = vrot.lane.b32.xlu0 %v3173_v48, %s4893_s19  ;;  %3176 = vrot.lane.b32.xlu1 %v3172_v21, %s4893_s19  ;;  %v3213_v21 = vstv %s4563_s27  ;;  %s6669_s27 = sld [smem:[#allocation9 + $0x14a]] }
 0x4ee   : > { %v3215_v23 = vmul.f32 %v3213_v21, %v6452_v62  ;;  %v3214_v32 = vmul.f32 %v3213_v21, %v6450_v19  ;;  %v2627_v10 = vadd.f32 %v6475_v61, %v2619_v26  ;;  %v6585_v62 = vld [vmem:[#allocation4 + $0x3] sm:$0xff]  ;;  %v6587_v21 = vld [vmem:[#allocation4 + $0xb] sm:$0xff]  ;;  %v3257_v19 = vstv %s4567_s30  ;;  %s6697_s30 = sld [smem:[#allocation9 + $0x63]] }
 0x4ef   : > { %v6550_v38 = vpop.permute.xlu0 %2754  ;;  %v6552_v52 = vpop.permute.xlu1 %2752  ;;  %v1759_v61 = vadd.f32 %v6003_v8, %v6011_v47  ;;  %v1758_v26 = vadd.f32 %v6005_v2, %v6013_v42  ;;  %v3259_v39 = vmul.f32 %v3257_v19, %v6587_v21 }
 0x4f1   : > { %3192 = vrot.lane.b32.xlu0 %v3187_v15, %s4894_s24  ;;  %3190 = vrot.lane.b32.xlu1 %v3186_v20, %s4894_s24  ;;  %v1773_v8 = vadd.f32 %v6023_v24, %v1759_v61  ;;  %v1772_v2 = vadd.f32 %v6025_v18, %v1758_v26 }
 0x4f3   : > { %v6559_v22 = vpop.permute.xlu0 %2768  ;;  %v6561_v48 = vpop.permute.xlu1 %2766  ;;  %v1787_v0 = vadd.f32 %v6033_v30, %v1773_v8  ;;  %v1786_v24 = vadd.f32 %v6035_v3, %v1772_v2 }
 0x4f5   : > { %3206 = vrot.lane.b32.xlu0 %v3201_v33, %s4894_s24  ;;  %3204 = vrot.lane.b32.xlu1 %v3200_v58, %s4894_s24  ;;  %v3228_v58 = vmul.f32 %v3227_v60, %v6465_v59  ;;  %v3258_v59 = vmul.f32 %v3257_v19, %v6585_v62  ;;  %v1801_v18 = vadd.f32 %v6042_v25, %v1787_v0 }
 0x4f7   : > { %v6568_v15 = vpop.permute.xlu0 %2782  ;;  %v6570_v20 = vpop.permute.xlu1 %2780 }
 0x4f9   : > { %3220 = vrot.lane.b32.xlu0 %v3215_v23, %s4895_s3  ;;  %3218 = vrot.lane.b32.xlu1 %v3214_v32, %s4895_s3  ;;  %v2635_v23 = vadd.f32 %v6491_v31, %v2627_v10 }
 0x4fb   : > { %v6579_v33 = vpop.permute.xlu0 %2796  ;;  %v6581_v56 = vpop.permute.xlu1 %2794  ;;  %v2643_v47 = vadd.f32 %v6489_v50, %v2635_v23  ;;  %v1815_v23 = vadd.f32 %v6050_v34, %v1801_v18  ;;  %v3327_v18 = vstv %s6630_s25  ;;  %s6763_s25 = sld [smem:[#allocation9 + $0x14c]] }
 0x4fd   : > { %3234 = vrot.lane.b32.xlu0 %v3229_v55, %s4895_s3  ;;  %3232 = vrot.lane.b32.xlu1 %v3228_v58, %s4895_s3  ;;  %v6604_v55 = vld [vmem:[#allocation4 + $0x23] sm:$0xff]  ;;  %v3271_v58 = vstv %s6574_s16  ;;  %v2651_v50 = vadd.f32 %v6503_v16, %v2643_v47  ;;  %v1829_v16 = vadd.f32 %v6058_v35, %v1815_v23  ;;  %s6710_s16 = sld [smem:[#allocation9 + $0x11a]] }
 0x4fe   : > { %v3273_v31 = vmul.f32 %v3271_v58, %v6604_v55  ;;  %v3272_v10 = vmul.f32 %v3271_v58, %v6607_v51  ;;  %v3299_v58 = vstv %s6609_s26  ;;  %s6746_s26 = sld [smem:[#allocation9 + $0x11b]] }
 0x4ff   : > { %v6598_v60 = vpop.permute.xlu0 %2810  ;;  %v6600_v32 = vpop.permute.xlu1 %2808  ;;  %v2659_v2 = vadd.f32 %v6501_v49, %v2651_v50  ;;  %v1843_v35 = vadd.f32 %v6066_v53, %v1829_v16 }
 0x501   : > { %3264 = vrot.lane.b32.xlu0 %v3259_v39, %s4890_s29  ;;  %3262 = vrot.lane.b32.xlu1 %v3258_v59, %s4890_s29  ;;  %v3285_v39 = vstv %s6589_s20  ;;  %v1800_v59 = vadd.f32 %v6044_v27, %v1786_v24  ;;  %v7337_v27 = vstv %s5275_s7  ;;  %s6663_s7 = sld [smem:[#allocation9 + $0xe2]]  ;;  %v1857_v24 = vadd.f32 %v6078_v63, %v1843_v35 }
 0x502   : > { %v3287_v26 = vmul.f32 %v3285_v39, %v6587_v21  ;;  %v3286_v3 = vmul.f32 %v3285_v39, %v6585_v62  ;;  %v2700_v0 = vmul.f32 %v7337_v27, %v6276_v41  ;;  %v2667_v53 = vadd.f32 %v6515_v40, %v2659_v2  ;;  %s6730_s20 = sld [smem:[#allocation9 + $0x14b]] }
 0x503   : > { %v6616_v42 = vpop.permute.xlu0 %2824  ;;  %v6618_v19 = vpop.permute.xlu1 %2822  ;;  %v1814_v25 = vadd.f32 %v6052_v36, %v1800_v59  ;;  %v3301_v36 = vmul.f32 %v3299_v58, %v6604_v55  ;;  %v2717_v63 = vadd.f32 %v6523_v17, %v5298_v57  ;;  %v3341_v27 = vstv %s6657_s28  ;;  %s6765_s28 = sld [smem:[#allocation9 + $0x138]] }
 0x504   : > { %v2675_v17 = vadd.f32 %v6513_v11, %v2667_v53  ;;  %v3355_v11 = vstv %s6669_s27  ;;  %v2680_v35 = vstv %s6684_s14  ;;  %s6796_s27 = sld [smem:[#allocation9 + $0x14e]] }
 0x505   : > { %3278 = vrot.lane.b32.xlu0 %v3273_v31, %s4890_s29  ;;  %3276 = vrot.lane.b32.xlu1 %v3272_v10, %s4890_s29  ;;  %v1828_v8 = vadd.f32 %v6060_v45, %v1814_v25  ;;  %v3300_v31 = vmul.f32 %v3299_v58, %v6607_v51  ;;  %v7338_v10 = vstv %s5273_s5  ;;  %v3313_v45 = vstv %s6624_s8  ;;  %s6674_s5 = sld [smem:[#allocation9 + $0x62]] }
 0x506   : > { %v2692_v41 = vmul.f32 %v7338_v10, %v6263_v4  ;;  %v2731_v58 = vadd.f32 %v6532_v44, %v2717_v63  ;;  %v3329_v25 = vmul.f32 %v3327_v18, %v6604_v55  ;;  %s6748_s8 = sld [smem:[#allocation9 + $0x107]] }
 0x507   : > { %v6634_v61 = vpop.permute.xlu0 %2838  ;;  %v6636_v30 = vpop.permute.xlu1 %2836  ;;  %v1842_v49 = vadd.f32 %v6068_v54, %v1828_v8  ;;  %v3315_v54 = vmul.f32 %v3313_v45, %v6587_v21  ;;  %s6829_s14 = sld [smem:[#allocation9 + $0x14f]] }
 0x508   : > { %v2702_v39 = vadd.f32 %v2700_v0, %v2692_v41  ;;  %v2745_v0 = vadd.f32 %v6541_v6, %v2731_v58  ;;  %v3343_v6 = vmul.f32 %v3341_v27, %v6587_v21  ;;  %v3342_v41 = vmul.f32 %v3341_v27, %v6585_v62 }
 0x509   : > { %3292 = vrot.lane.b32.xlu0 %v3287_v26, %s4891_s4  ;;  %3290 = vrot.lane.b32.xlu1 %v3286_v3, %s4891_s4  ;;  %v1856_v59 = vadd.f32 %v6080_v1, %v1842_v49  ;;  %v3314_v26 = vmul.f32 %v3313_v45, %v6585_v62  ;;  %v1871_v3 = vadd.f32 %v6086_v13, %v1857_v24 }
 0x50a   : > { %v2716_v1 = vadd.f32 %v6525_v14, %v2702_v39  ;;  %v2759_v2 = vadd.f32 %v6550_v38, %v2745_v0  ;;  %v3357_v49 = vmul.f32 %v3355_v11, %v6604_v55  ;;  %v1919_v39 = vstv %s6697_s30  ;;  %s6842_s30 = sld [smem:[#allocation9 + $0x11f]] }
 0x50b   : > { %v6651_v47 = vpop.permute.xlu0 %2852  ;;  %v6653_v34 = vpop.permute.xlu1 %2850  ;;  %v1870_v40 = vadd.f32 %v6088_v7, %v1856_v59  ;;  %v1885_v23 = vadd.f32 %v6094_v5, %v1871_v3  ;;  %v3328_v5 = vmul.f32 %v3327_v18, %v6607_v51  ;;  %v3356_v59 = vmul.f32 %v3355_v11, %v6607_v51 }
 0x50c   : > { %v2730_v13 = vadd.f32 %v6534_v9, %v2716_v1  ;;  %v2677_v9 = vstv %s6663_s7  ;;  %v3397_v0 = vstv %s6746_s26  ;;  %s6780_s7 = sld [smem:[#allocation9 + $0x11d]] }
 0x50d   : > { %3306 = vrot.lane.b32.xlu0 %v3301_v36, %s4891_s4  ;;  %3304 = vrot.lane.b32.xlu1 %v3300_v31, %s4891_s4  ;;  %v1884_v57 = vadd.f32 %v6096_v46, %v1870_v40  ;;  %v1899_v44 = vadd.f32 %v6102_v28, %v1885_v23  ;;  %v1915_v36 = vstv %s6674_s5  ;;  %v2678_v31 = vmul.f32 %v2677_v9, %v2675_v17  ;;  %s6814_s5 = sld [smem:[#allocation9 + $0x11e]] }
 0x50e   : > { %v2744_v16 = vadd.f32 %v6543_v12, %v2730_v13  ;;  %v3398_v11 = vmul.f32 %v3397_v0, %v6585_v62  ;;  %s6857_s26 = sld [smem:[#allocation9 + $0x120]] }
 0x50f   : > { %v6677_v4 = vpop.permute.xlu0 %2866  ;;  %v6679_v50 = vpop.permute.xlu1 %2864  ;;  %v1898_v46 = vadd.f32 %v6104_v29, %v1884_v57  ;;  %v1913_v8 = vadd.f32 %v6112_v37, %v1899_v44  ;;  %v2773_v37 = vadd.f32 %v6559_v22, %v2759_v2  ;;  %v2681_v18 = vadd.f32 %v2680_v35, %v2678_v31 }
 0x510   : > { %v2758_v28 = vadd.f32 %v6552_v52, %v2744_v16 }
 0x511   : > { %3320 = vrot.lane.b32.xlu0 %v3315_v54, %s4892_s23  ;;  %3318 = vrot.lane.b32.xlu1 %v3314_v26, %s4892_s23  ;;  %v1912_v12 = vadd.f32 %v6114_v43, %v1898_v46  ;;  %v1917_v43 = vmul.f32 %v1915_v36, %v1913_v8  ;;  %v2787_v52 = vadd.f32 %v6568_v15, %v2773_v37  ;;  %v3369_v26 = vstv %s6710_s16  ;;  %v7339_v8 = vld [vmem:[#allocation14_spill] sm:$0xff]  ;;  %s6846_s16 = sld [smem:[#allocation9 + $0x10e]] }
 0x512   : > { %v2772_v38 = vadd.f32 %v6561_v48, %v2758_v28  ;;  %v4522_v1 = vmul.f32 -1.442695, %v2681_v18  ;;  %v3371_v40 = vmul.f32 %v3369_v26, %v6587_v21  ;;  %v3370_v23 = vmul.f32 %v3369_v26, %v6585_v62  ;;  %v7340_v28 = vld [vmem:[#allocation15_spill] sm:$0xff] }
 0x513   : > { %v6700_v7 = vpop.permute.xlu0 %2896  ;;  %v6702_v14 = vpop.permute.xlu1 %2894  ;;  %v1916_v24 = vmul.f32 %v1915_v36, %v1912_v12  ;;  %v2801_v53 = vadd.f32 %v6579_v33, %v2787_v52  ;;  %v1921_v15 = vadd.f32 %v1919_v39, %v1917_v43  ;;  %v3411_v36 = vstv %s6763_s25  ;;  %v7342_v52 = vld [vmem:[#allocation17_spill] sm:$0xff]  ;;  %s6867_s25 = sld [smem:[#allocation9 + $0x121]] }
 0x514   : > { %v2786_v45 = vadd.f32 %v6570_v20, %v2772_v38  ;;  %4751 = vpow2.f32 %v4522_v1  ;;  %v3413_v35 = vmul.f32 %v3411_v36, %v6604_v55  ;;  %v3412_v37 = vmul.f32 %v3411_v36, %v6607_v51  ;;  %v7341_v38 = vld [vmem:[#allocation16_spill] sm:$0xff] }
 0x515   : > { %3334 = vrot.lane.b32.xlu0 %v3329_v25, %s4892_s23  ;;  %3332 = vrot.lane.b32.xlu1 %v3328_v5, %s4892_s23  ;;  %v2815_v20 = vadd.f32 %v6598_v60, %v2801_v53  ;;  %v1920_v63 = vadd.f32 %v1919_v39, %v1916_v24  ;;  %v3383_v25 = vstv %s6730_s20  ;;  %v4421_v60 = vmul.f32 -1.442695, %v1921_v15  ;;  %v6812_v24 = vld [vmem:[#allocation4 + $0x4] sm:$0xff]  ;;  %v6827_v1 = vld [vmem:[#allocation4 + $0x1c] sm:$0xff]  ;;  %s6852_s20 = sld [smem:[#allocation9 + $0x150]] }
 0x516   : > { %v2800_v54 = vadd.f32 %v6581_v56, %v2786_v45  ;;  %v3385_v5 = vmul.f32 %v3383_v25, %v6604_v55  ;;  %v3384_v27 = vmul.f32 %v3383_v25, %v6607_v51  ;;  %v3441_v39 = vstv %s6780_s7  ;;  %s6921_s7 = sld [smem:[#allocation9 + $0x152]] }
 0x517   : > { %v6722_v10 = vpop.permute.xlu0 %2910  ;;  %v6724_v29 = vpop.permute.xlu1 %2908  ;;  %v2829_v58 = vadd.f32 %v6616_v42, %v2815_v20  ;;  %v4420_v17 = vmul.f32 -1.442695, %v1920_v63  ;;  %4753 = vpow2.f32 %v4421_v60  ;;  %v3442_v15 = vmul.f32 %v3441_v39, %v6812_v24 }
 0x518   : > { %v2814_v3 = vadd.f32 %v6600_v32, %v2800_v54  ;;  %v3455_v63 = vstv %s6796_s27  ;;  %v3497_v36 = vstv %s6842_s30  ;;  %s6952_s27 = sld [smem:[#allocation9 + $0x122]] }
 0x519   : > { %3348 = vrot.lane.b32.xlu0 %v3343_v6, %s4893_s19  ;;  %3346 = vrot.lane.b32.xlu1 %v3342_v41, %s4893_s19  ;;  %v2843_v32 = vadd.f32 %v6634_v61, %v2829_v58  ;;  %v2875_v61 = vstv %s6748_s8  ;;  %4755 = vpow2.f32 %v4420_v17  ;;  %s6861_s8 = sld [smem:[#allocation9 + $0x151]] }
 0x51a   : > { %v2828_v13 = vadd.f32 %v6618_v19, %v2814_v3  ;;  %v2876_v2 = vmul.f32 %v2875_v61, %v7339_v8  ;;  %v2877_v6 = vmul.f32 %v2875_v61, %v7340_v28  ;;  %v6824_v3 = vld [vmem:[#allocation4 + $0x24] sm:$0xff]  ;;  %s6996_s30 = sld [smem:[#allocation9 + $0x155]] }
 0x51b   : > { %v6738_v22 = vpop.permute.xlu0 %2924  ;;  %v6740_v48 = vpop.permute.xlu1 %2922  ;;  %v2857_v44 = vadd.f32 %v6651_v47, %v2843_v32  ;;  %v3457_v32 = vmul.f32 %v3455_v63, %v6824_v3 }
 0x51c   : > { %v2842_v57 = vadd.f32 %v6636_v30, %v2828_v13 }
 0x51d   : > { %3362 = vrot.lane.b32.xlu0 %v3357_v49, %s4893_s19  ;;  %3360 = vrot.lane.b32.xlu1 %v3356_v59, %s4893_s19  ;;  %v2871_v30 = vadd.f32 %v6677_v4, %v2857_v44  ;;  %v2883_v4 = vstv %s6765_s28  ;;  %v6809_v49 = vld [vmem:[#allocation4 + $0xc] sm:$0xff]  ;;  %s6915_s28 = sld [smem:[#allocation9 + $0x13f]] }
 0x51e   : > { %v2856_v9 = vadd.f32 %v6653_v34, %v2842_v57  ;;  %v3399_v34 = vmul.f32 %v3397_v0, %v6587_v21  ;;  %v2884_v43 = vmul.f32 %v2883_v4, %v7341_v38  ;;  %v2885_v45 = vmul.f32 %v2883_v4, %v7342_v52 }
 0x51f   : > { %v6754_v33 = vpop.permute.xlu0 %2938  ;;  %v6756_v56 = vpop.permute.xlu1 %2936  ;;  %v3443_v26 = vmul.f32 %v3441_v39, %v6809_v49  ;;  %v3456_v57 = vmul.f32 %v3455_v63, %v6827_v1  ;;  %v3525_v38 = vstv %s6857_s26  ;;  %s7025_s26 = sld [smem:[#allocation9 + $0x115]] }
 0x520   : > { %v2870_v16 = vadd.f32 %v6679_v50, %v2856_v9  ;;  %v2879_v50 = vadd.f32 %v2877_v6, %v2871_v30 }
 0x521   : > { %3376 = vrot.lane.b32.xlu0 %v3371_v40, %s4894_s24  ;;  %3374 = vrot.lane.b32.xlu1 %v3370_v23, %s4894_s24  ;;  %v4752_v20 = vpop.eup %4751 }
 0x522   : > { %v2878_v12 = vadd.f32 %v2876_v2, %v2870_v16  ;;  %v2887_v18 = vadd.f32 %v2885_v45, %v2879_v50  ;;  %v2685_v13 = vadd.f32 1.0, %v4752_v20 }
 0x523   : > { %v6771_v42 = vpop.permute.xlu0 %2952  ;;  %v6773_v19 = vpop.permute.xlu1 %2950 }
 0x524   : > { %v2886_v59 = vadd.f32 %v2884_v43, %v2878_v12  ;;  %v2901_v40 = vadd.f32 %v6700_v7, %v2887_v18  ;;  %v4754_v58 = vpop.eup %4753  ;;  %4757 = vrcp.f32 %v2685_v13  ;;  %v3499_v12 = vmul.f32 %v3497_v36, %v6809_v49 }
 0x525   : > { %3390 = vrot.lane.b32.xlu0 %v3385_v5, %s4894_s24  ;;  %3388 = vrot.lane.b32.xlu1 %v3384_v27, %s4894_s24  ;;  %v3469_v5 = vstv %s6814_s5  ;;  %v1929_v7 = vadd.f32 1.0, %v4754_v58  ;;  %v3059_v43 = vstv %s6846_s16  ;;  %s4592_s5 = sld [smem:[#allocation9 + $0x153]] }
 0x526   : > { %v2900_v23 = vadd.f32 %v6702_v14, %v2886_v59  ;;  %v4756_v17 = vpop.eup %4755  ;;  %v2915_v14 = vadd.f32 %v6722_v10, %v2901_v40  ;;  %v3471_v61 = vmul.f32 %v3469_v5, %v6809_v49  ;;  %v3470_v30 = vmul.f32 %v3469_v5, %v6812_v24  ;;  %s7008_s16 = sld [smem:[#allocation9 + $0x125]] }
 0x527   : > { %v6787_v46 = vpop.permute.xlu0 %2966  ;;  %v6789_v47 = vpop.permute.xlu1 %2964  ;;  %v1928_v44 = vadd.f32 1.0, %v4756_v17  ;;  %4759 = vrcp.f32 %v1929_v7 }
 0x528   : > { %v2914_v27 = vadd.f32 %v6724_v29, %v2900_v23  ;;  %v2929_v16 = vadd.f32 %v6738_v22, %v2915_v14 }
 0x529   : > { %3404 = vrot.lane.b32.xlu0 %v3399_v34, %s4895_s3  ;;  %3402 = vrot.lane.b32.xlu1 %v3398_v11, %s4895_s3  ;;  %v3483_v11 = vstv %s6829_s14  ;;  %4761 = vrcp.f32 %v1928_v44  ;;  %s4595_s14 = sld [smem:[#allocation9 + $0x124]] }
 0x52a   : > { %v2928_v34 = vadd.f32 %v6740_v48, %v2914_v27  ;;  %v2943_v10 = vadd.f32 %v6754_v33, %v2929_v16  ;;  %v3485_v48 = vmul.f32 %v3483_v11, %v6824_v3  ;;  %v3484_v2 = vmul.f32 %v3483_v11, %v6827_v1 }
 0x52b   : > { %v6801_v31 = vpop.permute.xlu0 %2980  ;;  %v6803_v41 = vpop.permute.xlu1 %2978 }
 0x52c   : > { %v2942_v29 = vadd.f32 %v6756_v56, %v2928_v34  ;;  %v2957_v28 = vadd.f32 %v6771_v42, %v2943_v10  ;;  %v3498_v42 = vmul.f32 %v3497_v36, %v6812_v24 }
 0x52d   : > { %3418 = vrot.lane.b32.xlu0 %v3413_v35, %s4895_s3  ;;  %3416 = vrot.lane.b32.xlu1 %v3412_v37, %s4895_s3  ;;  %v3511_v35 = vstv %s6852_s20  ;;  %s7021_s20 = sld [smem:[#allocation9 + $0x156]] }
 0x52e   : > { %v2956_v6 = vadd.f32 %v6773_v19, %v2942_v29  ;;  %v2971_v33 = vadd.f32 %v6787_v46, %v2957_v28  ;;  %v3539_v46 = vstv %s6861_s8  ;;  %v3513_v39 = vmul.f32 %v3511_v35, %v6824_v3  ;;  %s7030_s8 = sld [smem:[#allocation9 + $0x126]] }
 0x52f   : > { %v6818_v53 = vpop.permute.xlu0 %2994  ;;  %v6820_v54 = vpop.permute.xlu1 %2992  ;;  %v3512_v18 = vmul.f32 %v3511_v35, %v6827_v1  ;;  %v3541_v40 = vmul.f32 %v3539_v46, %v6824_v3  ;;  %v3540_v23 = vmul.f32 %v3539_v46, %v6827_v1 }
 0x530   : > { %v2970_v56 = vadd.f32 %v6789_v47, %v2956_v6  ;;  %v2985_v19 = vadd.f32 %v6801_v31, %v2971_v33  ;;  %v3998_v47 = vlaneseq }
 0x531   : > { %3448 = vrot.lane.b32.xlu0 %v3443_v26, %s4890_s29  ;;  %3446 = vrot.lane.b32.xlu1 %v3442_v15, %s4890_s29  ;;  %v3526_v26 = vmul.f32 %v3525_v38, %v6812_v24  ;;  %v3553_v15 = vstv %s6867_s25  ;;  %v4758_v63 = vpop.eup %4757  ;;  %s7036_s25 = sld [smem:[#allocation9 + $0x146]] }
 0x532   : > { %v2984_v37 = vadd.f32 %v6803_v41, %v2970_v56  ;;  %v2999_v52 = vadd.f32 %v6818_v53, %v2985_v19  ;;  %v3527_v41 = vmul.f32 %v3525_v38, %v6809_v49  ;;  %v6901_v20 = vshrl.u32 %v3998_v47, 7 }
 0x533   : > { %v6835_v25 = vpop.permute.xlu0 %3008  ;;  %v6837_v60 = vpop.permute.xlu1 %3006 }
 0x534   : > { %v2998_v45 = vadd.f32 %v6820_v54, %v2984_v37  ;;  %v3013_v53 = vadd.f32 %v6835_v25, %v2999_v52  ;;  %v4000_v58 = vsub.s32 0, %v6901_v20  ;;  %v4051_v13 = vsub.s32 2, %v6901_v20  ;;  %v4760_v7 = vpop.eup %4759 }
 0x535   : > { %3462 = vrot.lane.b32.xlu0 %v3457_v32, %s4890_s29  ;;  %3460 = vrot.lane.b32.xlu1 %v3456_v57, %s4890_s29  ;;  %v4026_v32 = vsub.s32 1, %v6901_v20  ;;  %v4076_v57 = vsub.s32 3, %v6901_v20  ;;  %v4151_v5 = vsub.s32 6, %v6901_v20  ;;  %v4101_v28 = vsub.s32 4, %v6901_v20 }
 0x536   : > { %v3012_v54 = vadd.f32 %v6837_v60, %v2998_v45  ;;  %v4126_v60 = vsub.s32 5, %v6901_v20  ;;  %v4001_v44 = vrot.slane %v4758_v63, %v4000_v58  ;;  %v4762_v34 = vpop.eup %4761 }
 0x537   : > { %v3023_v9 = vpop.permute.xlu0 %3022  ;;  %v3021_v0 = vpop.permute.xlu1 %3020  ;;  %v4077_v16 = vrot.slane %v4758_v63, %v4076_v57  ;;  %v4102_v19 = vrot.slane %v4758_v63, %v4101_v28 }
 0x538   : > { %v3027_v17 = vadd.f32 %v3023_v9, %v3013_v53  ;;  %v3026_v25 = vadd.f32 %v3021_v0, %v3012_v54  ;;  %v4127_v9 = vrot.slane %v4758_v63, %v4126_v60  ;;  %v4152_v0 = vrot.slane %v4758_v63, %v4151_v5  ;;  %v7346_v60 = vld [vmem:[#allocation21_spill] sm:$0xff] }
 0x539   : > { %3476 = vrot.lane.b32.xlu0 %v3471_v61, %s4891_s4  ;;  %3474 = vrot.lane.b32.xlu1 %v3470_v30, %s4891_s4  ;;  %v4052_v61 = vrot.slane %v4758_v63, %v4051_v13  ;;  %v4027_v30 = vrot.slane %v4758_v63, %v4026_v32  ;;  %v6925_v29 = vadd.f32 %v4760_v7, %v4001_v44 }
 0x53a   : > { %v6948_v35 = vadd.f32 %v4760_v7, %v4152_v0  ;;  %v6954_v46 = vadd.f32 %v4760_v7, %v4127_v9  ;;  %v6956_v47 = vadd.f32 %v4762_v34, %v4152_v0  ;;  %v6960_v52 = vadd.f32 %v4762_v34, %v4102_v19 }
 0x53b   : > { %v3037_v8 = vpop.permute.xlu0 %3036  ;;  %v3035_v22 = vpop.permute.xlu1 %3034  ;;  %v6932_v6 = vadd.f32 %v4762_v34, %v4027_v30  ;;  %v6938_v36 = vadd.f32 %v4760_v7, %v4052_v61  ;;  %v6962_v45 = vadd.f32 %v4760_v7, %v4102_v19  ;;  %v3595_v19 = vstv %s4592_s5  ;;  %s4603_s5 = sld [smem:[#allocation9 + $0x128]] }
 0x53c   : > { %v3041_v11 = vadd.f32 %v3037_v8, %v3027_v17  ;;  %v3040_v10 = vadd.f32 %v3035_v22, %v3026_v25  ;;  %v6934_v8 = vadd.f32 %v4760_v7, %v4027_v30  ;;  %v6936_v22 = vadd.f32 %v4760_v7, %v4077_v16  ;;  %v7345_v17 = vld [vmem:[#allocation20_spill] sm:$0xff] }
 0x53d   : > { %3490 = vrot.lane.b32.xlu0 %v3485_v48, %s4891_s4  ;;  %3488 = vrot.lane.b32.xlu1 %v3484_v2, %s4891_s4  ;;  %v6927_v48 = vadd.f32 %v4762_v34, %v4001_v44  ;;  %v6929_v2 = vadd.f32 %v4762_v34, %v4052_v61 }
 0x53f   : > { %v6876_v4 = vpop.permute.xlu0 %3050  ;;  %v6878_v50 = vpop.permute.xlu1 %3048 }
 0x540   : > { %v3055_v37 = vadd.f32 %v6876_v4, %v3041_v11  ;;  %v3054_v38 = vadd.f32 %v6878_v50, %v3040_v10  ;;  %v4176_v4 = vsub.s32 7, %v6901_v20  ;;  %v3567_v20 = vstv %s6921_s7  ;;  %s7047_s7 = sld [smem:[#allocation9 + $0x127]] }
 0x541   : > { %3504 = vrot.lane.b32.xlu0 %v3499_v12, %s4892_s23  ;;  %3502 = vrot.lane.b32.xlu1 %v3498_v42, %s4892_s23  ;;  %v6944_v12 = vadd.f32 %v4762_v34, %v4127_v9  ;;  %v6946_v42 = vadd.f32 %v4762_v34, %v4077_v16  ;;  %v3568_v61 = vmul.f32 %v3567_v20, %v6827_v1  ;;  %v3581_v11 = vstv %s6952_s27  ;;  %s4602_s27 = sld [smem:[#allocation9 + $0x158]] }
 0x542   : > { %v4177_v58 = vrot.slane %v4758_v63, %v4176_v4  ;;  %v3569_v63 = vmul.f32 %v3567_v20, %v6824_v3  ;;  %v3583_v10 = vmul.f32 %v3581_v11, %v6809_v49  ;;  %v3582_v9 = vmul.f32 %v3581_v11, %v6812_v24  ;;  %v7016_v20 = vld [vmem:[#allocation4 + $0x25] sm:$0xff] }
 0x543   : > { %v6894_v31 = vpop.permute.xlu0 %3080  ;;  %v6896_v59 = vpop.permute.xlu1 %3078  ;;  %v3597_v4 = vmul.f32 %v3595_v19, %v6824_v3 }
 0x544   : > { %v6983_v57 = vadd.f32 %v4760_v7, %v4177_v58 }
 0x545   : > { %3518 = vrot.lane.b32.xlu0 %v3513_v39, %s4892_s23  ;;  %3516 = vrot.lane.b32.xlu1 %v3512_v18, %s4892_s23  ;;  %v7343_v39 = vld [vmem:[#allocation18_spill] sm:$0xff]  ;;  %v7344_v18 = vld [vmem:[#allocation19_spill] sm:$0xff] }
 0x546   : > { %v3060_v50 = vmul.f32 %v3059_v43, %v7343_v39  ;;  %v3596_v39 = vmul.f32 %v3595_v19, %v6827_v1 }
 0x547   : > { %v6917_v14 = vpop.permute.xlu0 %3094  ;;  %v6919_v27 = vpop.permute.xlu1 %3092 }
 0x548   : > { %v3062_v32 = vadd.f32 %v3060_v50, %v3054_v38 }
 0x549   : > { %3532 = vrot.lane.b32.xlu0 %v3527_v41, %s4893_s19  ;;  %3530 = vrot.lane.b32.xlu1 %v3526_v26, %s4893_s19  ;;  %v3061_v41 = vmul.f32 %v3059_v43, %v7344_v18  ;;  %v3067_v26 = vstv %s6915_s28  ;;  %v6981_v43 = vadd.f32 %v4762_v34, %v4177_v58  ;;  %s7039_s28 = sld [smem:[#allocation9 + $0x157]] }
 0x54a   : > { %v3068_v25 = vmul.f32 %v3067_v26, %v7345_v17  ;;  %v3069_v5 = vmul.f32 %v3067_v26, %v7346_v60  ;;  %v3639_v17 = vstv %s6996_s30  ;;  %s4605_s30 = sld [smem:[#allocation9 + $0x129]] }
 0x54b   : > { %v6940_v33 = vpop.permute.xlu0 %3108  ;;  %v6942_v56 = vpop.permute.xlu1 %3106  ;;  %v3063_v13 = vadd.f32 %v3061_v41, %v3055_v37  ;;  %v7006_v41 = vld [vmem:[#allocation4 + $0x5] sm:$0xff] }
 0x54c   : > { %v3070_v16 = vadd.f32 %v3068_v25, %v3062_v32  ;;  %v7019_v25 = vld [vmem:[#allocation4 + $0x1d] sm:$0xff] }
 0x54d   : > { %3546 = vrot.lane.b32.xlu0 %v3541_v40, %s4893_s19  ;;  %3544 = vrot.lane.b32.xlu1 %v3540_v23, %s4893_s19  ;;  %v3555_v40 = vmul.f32 %v3553_v15, %v6809_v49  ;;  %v3554_v23 = vmul.f32 %v3553_v15, %v6812_v24  ;;  %v3071_v30 = vadd.f32 %v3069_v5, %v3063_v13 }
 0x54e   : > { %v3084_v28 = vadd.f32 %v6896_v59, %v3070_v16  ;;  %v3625_v59 = vstv %s4595_s14  ;;  %s4604_s14 = sld [smem:[#allocation9 + $0x159]] }
 0x54f   : > { %v3123_v53 = vpop.permute.xlu0 %3122  ;;  %v3121_v54 = vpop.permute.xlu1 %3120  ;;  %v3085_v0 = vadd.f32 %v6894_v31, %v3071_v30  ;;  %v7004_v31 = vld [vmem:[#allocation4 + $0xd] sm:$0xff]  ;;  %v3626_v58 = vmul.f32 %v3625_v59, %v7006_v41  ;;  %v3653_v30 = vstv %s7008_s16  ;;  %s4606_s16 = sld [smem:[#allocation9 + $0x15a]] }
 0x550   : > { %v3098_v18 = vadd.f32 %v6919_v27, %v3084_v28  ;;  %v3627_v27 = vmul.f32 %v3625_v59, %v7004_v31 }
 0x551   : > { %3560 = vrot.lane.b32.xlu0 %v3555_v40, %s4894_s24  ;;  %3558 = vrot.lane.b32.xlu1 %v3554_v23, %s4894_s24  ;;  %v3099_v50 = vadd.f32 %v6917_v14, %v3085_v0  ;;  %v3667_v0 = vstv %s7021_s20  ;;  %s4609_s20 = sld [smem:[#allocation9 + $0x12b]] }
 0x552   : > { %v3112_v40 = vadd.f32 %v6942_v56, %v3098_v18 }
 0x553   : > { %v3137_v44 = vpop.permute.xlu0 %3136  ;;  %v3135_v15 = vpop.permute.xlu1 %3134  ;;  %v3113_v26 = vadd.f32 %v6940_v33, %v3099_v50  ;;  %v3243_v50 = vstv %s7025_s26  ;;  %s7084_s26 = sld [smem:[#allocation9 + $0x15c]] }
 0x554   : > { %v3126_v32 = vadd.f32 %v3121_v54, %v3112_v40  ;;  %v3640_v54 = vmul.f32 %v3639_v17, %v7019_v25 }
 0x555   : > { %3574 = vrot.lane.b32.xlu0 %v3569_v63, %s4894_s24  ;;  %3572 = vrot.lane.b32.xlu1 %v3568_v61, %s4894_s24  ;;  %v3127_v13 = vadd.f32 %v3123_v53, %v3113_v26  ;;  %v3641_v53 = vmul.f32 %v3639_v17, %v7016_v20  ;;  %v3681_v26 = vstv %s7030_s8  ;;  %s7094_s8 = sld [smem:[#allocation9 + $0x12c]] }
 0x556   : > { %v3140_v56 = vadd.f32 %v3135_v15, %v3126_v32  ;;  %v3683_v32 = vmul.f32 %v3681_v26, %v7004_v31  ;;  %v3682_v17 = vmul.f32 %v3681_v26, %v7006_v41 }
 0x557   : > { %v3151_v7 = vpop.permute.xlu0 %3150  ;;  %v3149_v34 = vpop.permute.xlu1 %3148  ;;  %v3141_v33 = vadd.f32 %v3137_v44, %v3127_v13 }
 0x558   : > { %v3154_v61 = vadd.f32 %v3149_v34, %v3140_v56 }
 0x559   : > { %3588 = vrot.lane.b32.xlu0 %v3583_v10, %s4895_s3  ;;  %3586 = vrot.lane.b32.xlu1 %v3582_v9, %s4895_s3  ;;  %v3155_v63 = vadd.f32 %v3151_v7, %v3141_v33  ;;  %v3655_v10 = vmul.f32 %v3653_v30, %v7004_v31  ;;  %v3654_v9 = vmul.f32 %v3653_v30, %v7006_v41 }
 0x55a   : > { %v3245_v33 = vmul.f32 %v3243_v50, %v6587_v21 }
 0x55b   : > { %v3165_v37 = vpop.permute.xlu0 %3164  ;;  %v3163_v38 = vpop.permute.xlu1 %3162 }
 0x55c   : > { %v3169_v44 = vadd.f32 %v3165_v37, %v3155_v63  ;;  %v3168_v15 = vadd.f32 %v3163_v38, %v3154_v61 }
 0x55d   : > { %3602 = vrot.lane.b32.xlu0 %v3597_v4, %s4895_s3  ;;  %3600 = vrot.lane.b32.xlu1 %v3596_v39, %s4895_s3  ;;  %v3669_v4 = vmul.f32 %v3667_v0, %v7016_v20  ;;  %v3668_v39 = vmul.f32 %v3667_v0, %v7019_v25 }
 0x55f   : > { %v3179_v23 = vpop.permute.xlu0 %3178  ;;  %v3177_v14 = vpop.permute.xlu1 %3176 }
 0x560   : > { %v3183_v7 = vadd.f32 %v3179_v23, %v3169_v44  ;;  %v3182_v34 = vadd.f32 %v3177_v14, %v3168_v15  ;;  %v3244_v14 = vmul.f32 %v3243_v50, %v6585_v62 }
 0x561   : > { %3632 = vrot.lane.b32.xlu0 %v3627_v27, %s4890_s29  ;;  %3630 = vrot.lane.b32.xlu1 %v3626_v58, %s4890_s29  ;;  %v3251_v27 = vstv %s7036_s25  ;;  %s7105_s25 = sld [smem:[#allocation9 + $0x15d]] }
 0x562   : > { %v3253_v62 = vmul.f32 %v3251_v27, %v6604_v55 }
 0x563   : > { %v3193_v60 = vpop.permute.xlu0 %3192  ;;  %v3191_v5 = vpop.permute.xlu1 %3190 }
 0x564   : > { %v3197_v28 = vadd.f32 %v3193_v60, %v3183_v7  ;;  %v3196_v19 = vadd.f32 %v3191_v5, %v3182_v34  ;;  %v3695_v5 = vstv %s7039_s28  ;;  %v3723_v7 = vstv %s4602_s27  ;;  %s7111_s28 = sld [smem:[#allocation9 + $0x11c]] }
 0x565   : > { %3646 = vrot.lane.b32.xlu0 %v3641_v53, %s4890_s29  ;;  %3644 = vrot.lane.b32.xlu1 %v3640_v54, %s4890_s29  ;;  %v3252_v54 = vmul.f32 %v3251_v27, %v6607_v51  ;;  %v3697_v44 = vmul.f32 %v3695_v5, %v7016_v20  ;;  %v3696_v21 = vmul.f32 %v3695_v5, %v7019_v25  ;;  %s7120_s27 = sld [smem:[#allocation9 + $0x14d]] }
 0x567   : > { %v3207_v16 = vpop.permute.xlu0 %3206  ;;  %v3205_v11 = vpop.permute.xlu1 %3204 }
 0x568   : > { %v3211_v18 = vadd.f32 %v3207_v16, %v3197_v28  ;;  %v3210_v59 = vadd.f32 %v3205_v11, %v3196_v19  ;;  %v3709_v11 = vstv %s7047_s7  ;;  %v3725_v19 = vmul.f32 %v3723_v7, %v7016_v20  ;;  %s7114_s7 = sld [smem:[#allocation9 + $0x12d]] }
 0x569   : > { %3660 = vrot.lane.b32.xlu0 %v3655_v10, %s4891_s4  ;;  %3658 = vrot.lane.b32.xlu1 %v3654_v9, %s4891_s4  ;;  %v3711_v9 = vmul.f32 %v3709_v11, %v7004_v31  ;;  %v3710_v51 = vmul.f32 %v3709_v11, %v7006_v41 }
 0x56b   : > { %v3221_v37 = vpop.permute.xlu0 %3220  ;;  %v3219_v38 = vpop.permute.xlu1 %3218 }
 0x56c   : > { %v3225_v40 = vadd.f32 %v3221_v37, %v3211_v18  ;;  %v3224_v23 = vadd.f32 %v3219_v38, %v3210_v59  ;;  %v3724_v37 = vmul.f32 %v3723_v7, %v7019_v25  ;;  %v3737_v38 = vstv %s4603_s5  ;;  %s7123_s5 = sld [smem:[#allocation9 + $0x15e]] }
 0x56d   : > { %3674 = vrot.lane.b32.xlu0 %v3669_v4, %s4891_s4  ;;  %3672 = vrot.lane.b32.xlu1 %v3668_v39, %s4891_s4  ;;  %v3739_v18 = vmul.f32 %v3737_v38, %v7004_v31  ;;  %v3738_v59 = vmul.f32 %v3737_v38, %v7006_v41  ;;  %v3823_v38 = vstv %s7084_s26  ;;  %s4621_s26 = sld [smem:[#allocation9 + $0x162]] }
 0x56f   : > { %v3235_v58 = vpop.permute.xlu0 %3234  ;;  %v3233_v13 = vpop.permute.xlu1 %3232 }
 0x570   : > { %v3239_v56 = vadd.f32 %v3235_v58, %v3225_v40  ;;  %v3238_v60 = vadd.f32 %v3233_v13, %v3224_v23  ;;  %v3751_v40 = vstv %s4604_s14  ;;  %s4616_s14 = sld [smem:[#allocation9 + $0x15f]] }
 0x571   : > { %3688 = vrot.lane.b32.xlu0 %v3683_v32, %s4892_s23  ;;  %3686 = vrot.lane.b32.xlu1 %v3682_v17, %s4892_s23  ;;  %v3753_v58 = vmul.f32 %v3751_v40, %v7016_v20  ;;  %v3752_v13 = vmul.f32 %v3751_v40, %v7019_v25  ;;  %v3765_v17 = vstv %s4605_s30  ;;  %s4618_s30 = sld [smem:[#allocation9 + $0x160]] }
 0x572   : > { %v3247_v53 = vadd.f32 %v3245_v33, %v3239_v56  ;;  %v3246_v63 = vadd.f32 %v3244_v14, %v3238_v60  ;;  %v3767_v60 = vmul.f32 %v3765_v17, %v7004_v31  ;;  %v3766_v5 = vmul.f32 %v3765_v17, %v7006_v41 }
 0x573   : > { %v3265_v61 = vpop.permute.xlu0 %3264  ;;  %v3263_v30 = vpop.permute.xlu1 %3262 }
 0x574   : > { %v3255_v15 = vadd.f32 %v3253_v62, %v3247_v53  ;;  %v3254_v16 = vadd.f32 %v3252_v54, %v3246_v63  ;;  %v3779_v54 = vstv %s4606_s16  ;;  %s4620_s16 = sld [smem:[#allocation9 + $0x161]] }
 0x575   : > { %3702 = vrot.lane.b32.xlu0 %v3697_v44, %s4892_s23  ;;  %3700 = vrot.lane.b32.xlu1 %v3696_v21, %s4892_s23  ;;  %v3781_v44 = vmul.f32 %v3779_v54, %v7016_v20  ;;  %v3780_v21 = vmul.f32 %v3779_v54, %v7019_v25 }
 0x576   : > { %v3269_v34 = vadd.f32 %v3265_v61, %v3255_v15  ;;  %v3268_v62 = vadd.f32 %v3263_v30, %v3254_v16  ;;  %v3809_v30 = vstv %s4609_s20  ;;  %v7092_v16 = vld [vmem:[#allocation4 + $0x6] sm:$0xff]  ;;  %s4608_s20 = sld [smem:[#allocation9 + $0x15b]] }
 0x577   : > { %v3279_v10 = vpop.permute.xlu0 %3278  ;;  %v3277_v55 = vpop.permute.xlu1 %3276 }
 0x578   : > { %v3283_v4 = vadd.f32 %v3279_v10, %v3269_v34  ;;  %v3282_v15 = vadd.f32 %v3277_v55, %v3268_v62  ;;  %v7090_v10 = vld [vmem:[#allocation4 + $0xe] sm:$0xff]  ;;  %v3810_v55 = vmul.f32 %v3809_v30, %v7092_v16 }
 0x579   : > { %3716 = vrot.lane.b32.xlu0 %v3711_v9, %s4893_s19  ;;  %3714 = vrot.lane.b32.xlu1 %v3710_v51, %s4893_s19  ;;  %v3811_v34 = vmul.f32 %v3809_v30, %v7090_v10  ;;  %v3435_v30 = vstv %s7120_s27 }
 0x57b   : > { %v3293_v0 = vpop.permute.xlu0 %3292  ;;  %v3291_v28 = vpop.permute.xlu1 %3290 }
 0x57c   : > { %v3297_v26 = vadd.f32 %v3293_v0, %v3283_v4  ;;  %v3296_v9 = vadd.f32 %v3291_v28, %v3282_v15  ;;  %v7103_v4 = vld [vmem:[#allocation4 + $0x1e] sm:$0xff] }
 0x57d   : > { %3730 = vrot.lane.b32.xlu0 %v3725_v19, %s4893_s19  ;;  %3728 = vrot.lane.b32.xlu1 %v3724_v37, %s4893_s19  ;;  %v7100_v37 = vld [vmem:[#allocation4 + $0x26] sm:$0xff] }
 0x57f   : > { %v3307_v39 = vpop.permute.xlu0 %3306  ;;  %v3305_v50 = vpop.permute.xlu1 %3304 }
 0x580   : > { %v3311_v23 = vadd.f32 %v3307_v39, %v3297_v26  ;;  %v3310_v0 = vadd.f32 %v3305_v50, %v3296_v9  ;;  %v3824_v50 = vmul.f32 %v3823_v38, %v7103_v4 }
 0x581   : > { %3744 = vrot.lane.b32.xlu0 %v3739_v18, %s4894_s24  ;;  %3742 = vrot.lane.b32.xlu1 %v3738_v59, %s4894_s24  ;;  %v3825_v59 = vmul.f32 %v3823_v38, %v7100_v37  ;;  %v3879_v38 = vstv %s7123_s5 }
 0x583   : > { %v3321_v14 = vpop.permute.xlu0 %3320  ;;  %v3319_v27 = vpop.permute.xlu1 %3318 }
 0x584   : > { %v3325_v32 = vadd.f32 %v3321_v14, %v3311_v23  ;;  %v3324_v28 = vadd.f32 %v3319_v27, %v3310_v0  ;;  %v3837_v23 = vstv %s7094_s8  ;;  %s4622_s8 = sld [smem:[#allocation9 + $0x163]] }
 0x585   : > { %3758 = vrot.lane.b32.xlu0 %v3753_v58, %s4894_s24  ;;  %3756 = vrot.lane.b32.xlu1 %v3752_v13, %s4894_s24  ;;  %v3839_v13 = vmul.f32 %v3837_v23, %v7090_v10 }
 0x587   : > { %v3335_v33 = vpop.permute.xlu0 %3334  ;;  %v3333_v56 = vpop.permute.xlu1 %3332 }
 0x588   : > { %v3339_v53 = vadd.f32 %v3335_v33, %v3325_v32  ;;  %v3338_v26 = vadd.f32 %v3333_v56, %v3324_v28  ;;  %v3838_v32 = vmul.f32 %v3837_v23, %v7092_v16  ;;  %v3851_v56 = vstv %s7105_s25  ;;  %s7347_s25 = sshll.u32 %s5034_s6, 7 }
 0x589   : > { %3772 = vrot.lane.b32.xlu0 %v3767_v60, %s4895_s3  ;;  %3770 = vrot.lane.b32.xlu1 %v3766_v5, %s4895_s3  ;;  %v3852_v54 = vmul.f32 %v3851_v56, %v7103_v4 }
 0x58b   : > { %v3349_v63 = vpop.permute.xlu0 %3348  ;;  %v3347_v61 = vpop.permute.xlu1 %3346 }
 0x58c   : > { %v3353_v11 = vadd.f32 %v3349_v63, %v3339_v53  ;;  %v3352_v14 = vadd.f32 %v3347_v61, %v3338_v26  ;;  %v3853_v53 = vmul.f32 %v3851_v56, %v7100_v37  ;;  %v3427_v61 = vstv %s7111_s28  ;;  %s7189_s28 = scalar_lea.vmem [#allocation10], %s7347_s25 }
 0x58d   : > { %3786 = vrot.lane.b32.xlu0 %v3781_v44, %s4895_s3  ;;  %3784 = vrot.lane.b32.xlu1 %v3780_v21, %s4895_s3  ;;  %v3865_v44 = vstv %s7114_s7  ;;  %v3428_v0 = vmul.f32 %v3427_v61, %v6812_v24  ;;  %v3881_v26 = vmul.f32 %v3879_v38, %v7100_v37  ;;  %v3880_v24 = vmul.f32 %v3879_v38, %v7103_v4  ;;  %s4659_s7 = sshll.u32 %s4943_s13, 11  ;;  %s4211_s27 = sshll.u32 %s7189_s28, 4  ;;  %s7255_s27 = int_to_ptr.vmem [resolvable:$true] %s4211_s27 }
 0x58e   : > { %s4814_s13 = scalar_lea.vmem %s7255_s27, 2048 }
 0x58f   : > { %v3363_v51 = vpop.permute.xlu0 %3362  ;;  %v3361_v7 = vpop.permute.xlu1 %3360  ;;  %p4815_p1 = scmp.ne.s32.totalorder %s7255_s27, %s4814_s13 }
 0x590   : > { %v3367_v19 = vadd.f32 %v3363_v51, %v3353_v11  ;;  %v3366_v17 = vadd.f32 %v3361_v7, %v3352_v14  ;;  %v3429_v11 = vmul.f32 %v3427_v61, %v6809_v49  ;;  %v3867_v7 = vmul.f32 %v3865_v44, %v7090_v10 }
 0x591   : > { %3816 = vrot.lane.b32.xlu0 %v3811_v34, %s4890_s29  ;;  %3814 = vrot.lane.b32.xlu1 %v3810_v55, %s4890_s29  ;;  %v3866_v34 = vmul.f32 %v3865_v44, %v7092_v16  ;;  %v3437_v49 = vmul.f32 %v3435_v30, %v6824_v3  ;;  %p4816_p6 = pnand %p4815_p1, %p7348_p7 }
 0x593   : > { %v3377_v39 = vpop.permute.xlu0 %3376  ;;  %v3375_v18 = vpop.permute.xlu1 %3374  ;;  %p4817_p8 = pneg %p4816_p6 }
 0x594   : > { %v3381_v40 = vadd.f32 %v3377_v39, %v3367_v19  ;;  %v3380_v60 = vadd.f32 %v3375_v18, %v3366_v17  ;;  %v3436_v39 = vmul.f32 %v3435_v30, %v6827_v1 }
 0x595   : > { %3830 = vrot.lane.b32.xlu0 %v3825_v59, %s4890_s29  ;;  %3828 = vrot.lane.b32.xlu1 %v3824_v50, %s4890_s29  ;;  %s7131_s29 = sld [smem:[#allocation9 + $0x12e]] }
 0x597   : > { %v3391_v27 = vpop.permute.xlu0 %3390  ;;  %v3389_v58 = vpop.permute.xlu1 %3388 }
 0x598   : > { %v3395_v33 = vadd.f32 %v3391_v27, %v3381_v40  ;;  %v3394_v63 = vadd.f32 %v3389_v58, %v3380_v60 }
 0x599   : > { %3844 = vrot.lane.b32.xlu0 %v3839_v13, %s4891_s4  ;;  %3842 = vrot.lane.b32.xlu1 %v3838_v32, %s4891_s4  ;;  %v3907_v13 = vstv %s4616_s14  ;;  %s7253_s14 = scalar_lea.hbm %s7302_s2, %s4659_s7 }
 0x59a   : > { %v3908_v56 = vmul.f32 %v3907_v13, %v7103_v4 }
 0x59b   : > { %v3405_v5 = vpop.permute.xlu0 %3404  ;;  %v3403_v62 = vpop.permute.xlu1 %3402  ;;  %v3893_v14 = vstv %s7131_s29 }
 0x59c   : > { %v3409_v21 = vadd.f32 %v3405_v5, %v3395_v33  ;;  %v3408_v15 = vadd.f32 %v3403_v62, %v3394_v63  ;;  %v3895_v58 = vmul.f32 %v3893_v14, %v7090_v10  ;;  %v3894_v1 = vmul.f32 %v3893_v14, %v7092_v16 }
 0x59d   : > { %3858 = vrot.lane.b32.xlu0 %v3853_v53, %s4891_s4  ;;  %3856 = vrot.lane.b32.xlu1 %v3852_v54, %s4891_s4  ;;  %s4617_s4 = sld [smem:[#allocation9 + $0x12f]]  ;;  %v3909_v33 = vmul.f32 %v3907_v13, %v7100_v37  ;;  %v3935_v63 = vstv %s4618_s30 }
 0x59f   : > { %v3419_v9 = vpop.permute.xlu0 %3418  ;;  %v3417_v51 = vpop.permute.xlu1 %3416 }
 0x5a0   : > { %v3423_v55 = vadd.f32 %v3419_v9, %v3409_v21  ;;  %v3422_v19 = vadd.f32 %v3417_v51, %v3408_v15  ;;  %v3937_v21 = vmul.f32 %v3935_v63, %v7100_v37  ;;  %v3936_v15 = vmul.f32 %v3935_v63, %v7103_v4 }
 0x5a1   : > { %3872 = vrot.lane.b32.xlu0 %v3867_v7, %s4892_s23  ;;  %3870 = vrot.lane.b32.xlu1 %v3866_v34, %s4892_s23 }
 0x5a2   : > { %v3431_v28 = vadd.f32 %v3429_v11, %v3423_v55  ;;  %v3430_v18 = vadd.f32 %v3428_v0, %v3422_v19  ;;  %v3963_v0 = vstv %s4620_s16 }
 0x5a3   : > { %v3449_v59 = vpop.permute.xlu0 %3448  ;;  %v3447_v50 = vpop.permute.xlu1 %3446  ;;  %v3921_v60 = vstv %s4617_s4  ;;  %s4198_s4 = scalar_lea.sflag [#allocation7], %s5034_s6 }
 0x5a4   : > { %v3439_v40 = vadd.f32 %v3437_v49, %v3431_v28  ;;  %v3438_v23 = vadd.f32 %v3436_v39, %v3430_v18  ;;  %v3923_v53 = vmul.f32 %v3921_v60, %v7090_v10  ;;  %v3922_v54 = vmul.f32 %v3921_v60, %v7092_v16 }
 0x5a5   : > { %3886 = vrot.lane.b32.xlu0 %v3881_v26, %s4892_s23  ;;  %3884 = vrot.lane.b32.xlu1 %v3880_v24, %s4892_s23  ;;  %s4619_s23 = sld [smem:[#allocation9 + $0x130]]  ;;  %v3965_v49 = vmul.f32 %v3963_v0, %v7100_v37  ;;  %v3964_v28 = vmul.f32 %v3963_v0, %v7103_v4 }
 0x5a6   : > { %v3453_v34 = vadd.f32 %v3449_v59, %v3439_v40  ;;  %v3452_v55 = vadd.f32 %v3447_v50, %v3438_v23 }
 0x5a7   : > { %v3463_v27 = vpop.permute.xlu0 %3462  ;;  %v3461_v3 = vpop.permute.xlu1 %3460 }
 0x5a8   : > { %v3467_v39 = vadd.f32 %v3463_v27, %v3453_v34  ;;  %v3466_v18 = vadd.f32 %v3461_v3, %v3452_v55 }
 0x5a9   : > { %3900 = vrot.lane.b32.xlu0 %v3895_v58, %s4893_s19  ;;  %3898 = vrot.lane.b32.xlu1 %v3894_v1, %s4893_s19 }
 0x5ab   : > { %v3477_v32 = vpop.permute.xlu0 %3476  ;;  %v3475_v17 = vpop.permute.xlu1 %3474  ;;  %v3949_v11 = vstv %s4619_s23 }
 0x5ac   : > { %v3951_v51 = vmul.f32 %v3949_v11, %v7090_v10  ;;  %v3950_v7 = vmul.f32 %v3949_v11, %v7092_v16  ;;  %v3481_v26 = vadd.f32 %v3477_v32, %v3467_v39  ;;  %v3480_v59 = vadd.f32 %v3475_v17, %v3466_v18 }
 0x5ad   : > { %3914 = vrot.lane.b32.xlu0 %v3909_v33, %s4893_s19  ;;  %3912 = vrot.lane.b32.xlu1 %v3908_v56, %s4893_s19  ;;  %s4593_s19 = sld [smem:[#allocation9 + $0x123]] }
 0x5af   : > { %v3491_v5 = vpop.permute.xlu0 %3490  ;;  %v3489_v62 = vpop.permute.xlu1 %3488 }
 0x5b0   : > { %v3495_v40 = vadd.f32 %v3491_v5, %v3481_v26  ;;  %v3494_v23 = vadd.f32 %v3489_v62, %v3480_v59 }
 0x5b1   : > { %3928 = vrot.lane.b32.xlu0 %v3923_v53, %s4894_s24  ;;  %3926 = vrot.lane.b32.xlu1 %v3922_v54, %s4894_s24 }
 0x5b3   : > { %v3505_v61 = vpop.permute.xlu0 %3504  ;;  %v3503_v44 = vpop.permute.xlu1 %3502 }
 0x5b4   : > { %v3509_v14 = vadd.f32 %v3505_v61, %v3495_v40  ;;  %v3508_v58 = vadd.f32 %v3503_v44, %v3494_v23 }
 0x5b5   : > { %3942 = vrot.lane.b32.xlu0 %v3937_v21, %s4894_s24  ;;  %3940 = vrot.lane.b32.xlu1 %v3936_v15, %s4894_s24  ;;  %s4594_s24 = sld [smem:[#allocation9 + $0x154]]  ;;  %v4896_v21 = vmov 0   ;;  %v3611_v15 = vstv %s4593_s19 }
 0x5b6   : > { %4738 = vset.pattern.permute.xlu0 %v4896_v21  ;;  %4737 = vset.pattern.permute.xlu1 %v4896_v21  ;;  %v3613_v34 = vmul.f32 %v3611_v15, %v7004_v31  ;;  %v3612_v0 = vmul.f32 %v3611_v15, %v7006_v41 }
 0x5b7   : > { %v3519_v30 = vpop.permute.xlu0 %3518  ;;  %v3517_v9 = vpop.permute.xlu1 %3516 }
 0x5b8   : > { %v3523_v33 = vadd.f32 %v3519_v30, %v3509_v14  ;;  %v3522_v56 = vadd.f32 %v3517_v9, %v3508_v58 }
 0x5b9   : > { %3956 = vrot.lane.b32.xlu0 %v3951_v51, %s4895_s3  ;;  %3954 = vrot.lane.b32.xlu1 %v3950_v7, %s4895_s3 }
 0x5bb   : > { %v3533_v19 = vpop.permute.xlu0 %3532  ;;  %v3531_v38 = vpop.permute.xlu1 %3530  ;;  %v3619_v7 = vstv %s4594_s24 }
 0x5bc   : > { %v3537_v60 = vadd.f32 %v3533_v19, %v3523_v33  ;;  %v3536_v27 = vadd.f32 %v3531_v38, %v3522_v56  ;;  %v3620_v39 = vmul.f32 %v3619_v7, %v7019_v25 }
 0x5bd   : > { %3970 = vrot.lane.b32.xlu0 %v3965_v49, %s4895_s3  ;;  %3968 = vrot.lane.b32.xlu1 %v3964_v28, %s4895_s3  ;;  %v3621_v28 = vmul.f32 %v3619_v7, %v7016_v20  ;;  %s4607_s3 = sld [smem:[#allocation9 + $0x12a]] }
 0x5bf   : > { %v3547_v50 = vpop.permute.xlu0 %3546  ;;  %v3545_v24 = vpop.permute.xlu1 %3544 }
 0x5c0   : > { %v3551_v54 = vadd.f32 %v3547_v50, %v3537_v60  ;;  %v3550_v63 = vadd.f32 %v3545_v24, %v3536_v27 }
 0x5c3   : > { %v3561_v1 = vpop.permute.xlu0 %3560  ;;  %v3559_v13 = vpop.permute.xlu1 %3558 }
 0x5c4   : > { %v3565_v32 = vadd.f32 %v3561_v1, %v3551_v54  ;;  %v3564_v17 = vadd.f32 %v3559_v13, %v3550_v63 }
 0x5c7   : > { %v3575_v3 = vpop.permute.xlu0 %3574  ;;  %v3573_v53 = vpop.permute.xlu1 %3572 }
 0x5c8   : > { %v3579_v61 = vadd.f32 %v3575_v3, %v3565_v32  ;;  %v3578_v44 = vadd.f32 %v3573_v53, %v3564_v17 }
 0x5cb   : > { %v3589_v5 = vpop.permute.xlu0 %3588  ;;  %v3587_v62 = vpop.permute.xlu1 %3586 }
 0x5cc   : > { %v3593_v11 = vadd.f32 %v3589_v5, %v3579_v61  ;;  %v3592_v30 = vadd.f32 %v3587_v62, %v3578_v44 }
 0x5cf   : > { %v3603_v9 = vpop.permute.xlu0 %3602  ;;  %v3601_v51 = vpop.permute.xlu1 %3600 }
 0x5d0   : > { %v3607_v55 = vadd.f32 %v3603_v9, %v3593_v11  ;;  %v3606_v19 = vadd.f32 %v3601_v51, %v3592_v30 }
 0x5d2   : > { %v3615_v38 = vadd.f32 %v3613_v34, %v3607_v55  ;;  %v3614_v49 = vadd.f32 %v3612_v0, %v3606_v19 }
 0x5d3   : > { %v3633_v18 = vpop.permute.xlu0 %3632  ;;  %v3631_v26 = vpop.permute.xlu1 %3630 }
 0x5d4   : > { %v3623_v59 = vadd.f32 %v3621_v28, %v3615_v38  ;;  %v3622_v50 = vadd.f32 %v3620_v39, %v3614_v49 }
 0x5d6   : > { %v3637_v56 = vadd.f32 %v3633_v18, %v3623_v59  ;;  %v3636_v60 = vadd.f32 %v3631_v26, %v3622_v50  ;;  %v3795_v18 = vstv %s4607_s3 }
 0x5d7   : > { %v3647_v24 = vpop.permute.xlu0 %3646  ;;  %v3645_v40 = vpop.permute.xlu1 %3644 }
 0x5d8   : > { %v3651_v3 = vadd.f32 %v3647_v24, %v3637_v56  ;;  %v3650_v25 = vadd.f32 %v3645_v40, %v3636_v60  ;;  %v3803_v40 = vstv %s4608_s20 }
 0x5db   : > { %v3661_v23 = vpop.permute.xlu0 %3660  ;;  %v3659_v14 = vpop.permute.xlu1 %3658 }
 0x5dc   : > { %v3665_v53 = vadd.f32 %v3661_v23, %v3651_v3  ;;  %v3664_v54 = vadd.f32 %v3659_v14, %v3650_v25  ;;  %v3797_v23 = vmul.f32 %v3795_v18, %v7090_v10 }
 0x5df   : > { %v3675_v58 = vpop.permute.xlu0 %3674  ;;  %v3673_v31 = vpop.permute.xlu1 %3672 }
 0x5e0   : > { %v3679_v17 = vadd.f32 %v3675_v58, %v3665_v53  ;;  %v3678_v21 = vadd.f32 %v3673_v31, %v3664_v54  ;;  %v3796_v58 = vmul.f32 %v3795_v18, %v7092_v16 }
 0x5e3   : > { %v3689_v1 = vpop.permute.xlu0 %3688  ;;  %v3687_v13 = vpop.permute.xlu1 %3686 }
 0x5e4   : > { %v3693_v5 = vadd.f32 %v3689_v1, %v3679_v17  ;;  %v3692_v62 = vadd.f32 %v3687_v13, %v3678_v21 }
 0x5e7   : > { %v3703_v41 = vpop.permute.xlu0 %3702  ;;  %v3701_v33 = vpop.permute.xlu1 %3700 }
 0x5e8   : > { %v3707_v15 = vadd.f32 %v3703_v41, %v3693_v5  ;;  %v3706_v11 = vadd.f32 %v3701_v33, %v3692_v62  ;;  %v3805_v41 = vmul.f32 %v3803_v40, %v7100_v37  ;;  %v3804_v33 = vmul.f32 %v3803_v40, %v7103_v4 }
 0x5eb   : > { %v3717_v27 = vpop.permute.xlu0 %3716  ;;  %v3715_v20 = vpop.permute.xlu1 %3714 }
 0x5ec   : > { %v3721_v30 = vadd.f32 %v3717_v27, %v3707_v15  ;;  %v3720_v9 = vadd.f32 %v3715_v20, %v3706_v11 }
 0x5ef   : > { %v3731_v63 = vpop.permute.xlu0 %3730  ;;  %v3729_v32 = vpop.permute.xlu1 %3728 }
 0x5f0   : > { %v3735_v34 = vadd.f32 %v3731_v63, %v3721_v30  ;;  %v3734_v55 = vadd.f32 %v3729_v32, %v3720_v9 }
 0x5f3   : > { %v3745_v61 = vpop.permute.xlu0 %3744  ;;  %v3743_v44 = vpop.permute.xlu1 %3742 }
 0x5f4   : > { %v3749_v0 = vadd.f32 %v3745_v61, %v3735_v34  ;;  %v3748_v19 = vadd.f32 %v3743_v44, %v3734_v55 }
 0x5f7   : > { %v3759_v51 = vpop.permute.xlu0 %3758  ;;  %v3757_v7 = vpop.permute.xlu1 %3756 }
 0x5f8   : > { %v3763_v28 = vadd.f32 %v3759_v51, %v3749_v0  ;;  %v3762_v39 = vadd.f32 %v3757_v7, %v3748_v19 }
 0x5fb   : > { %v3773_v38 = vpop.permute.xlu0 %3772  ;;  %v3771_v49 = vpop.permute.xlu1 %3770 }
 0x5fc   : > { %v3777_v26 = vadd.f32 %v3773_v38, %v3763_v28  ;;  %v3776_v59 = vadd.f32 %v3771_v49, %v3762_v39 }
 0x5ff   : > { %v3787_v50 = vpop.permute.xlu0 %3786  ;;  %v3785_v24 = vpop.permute.xlu1 %3784 }
 0x600   : > { %v3791_v14 = vadd.f32 %v3787_v50, %v3777_v26  ;;  %v3790_v31 = vadd.f32 %v3785_v24, %v3776_v59 }
 0x602   : > { %v3799_v1 = vadd.f32 %v3797_v23, %v3791_v14  ;;  %v3798_v13 = vadd.f32 %v3796_v58, %v3790_v31 }
 0x603   : > { %v3817_v56 = vpop.permute.xlu0 %3816  ;;  %v3815_v60 = vpop.permute.xlu1 %3814 }
 0x604   : > { %v3807_v27 = vadd.f32 %v3805_v41, %v3799_v1  ;;  %v3806_v20 = vadd.f32 %v3804_v33, %v3798_v13  ;;  %v3977_v41 = vstv %s4621_s26 }
 0x606   : > { %v3821_v5 = vadd.f32 %v3817_v56, %v3807_v27  ;;  %v3820_v62 = vadd.f32 %v3815_v60, %v3806_v20  ;;  %v3981_v20 = vstv %s4622_s8 }
 0x607   : > { %v3831_v3 = vpop.permute.xlu0 %3830  ;;  %v3829_v25 = vpop.permute.xlu1 %3828 }
 0x608   : > { %v3835_v44 = vadd.f32 %v3831_v3, %v3821_v5  ;;  %v3834_v4 = vadd.f32 %v3829_v25, %v3820_v62 }
 0x60b   : > { %v3845_v53 = vpop.permute.xlu0 %3844  ;;  %v3843_v54 = vpop.permute.xlu1 %3842 }
 0x60c   : > { %v3849_v15 = vadd.f32 %v3845_v53, %v3835_v44  ;;  %v3848_v11 = vadd.f32 %v3843_v54, %v3834_v4  ;;  %v4899_v44 = vmov 3   ;;  %v4900_v4 = vmov 5  }
 0x60f   : > { %v3859_v63 = vpop.permute.xlu0 %3858  ;;  %v3857_v10 = vpop.permute.xlu1 %3856 }
 0x610   : > { %v3863_v51 = vadd.f32 %v3859_v63, %v3849_v15  ;;  %v3862_v7 = vadd.f32 %v3857_v10, %v3848_v11  ;;  %v4901_v15 = vmov 6   ;;  %v4902_v11 = vmov 4  }
 0x613   : > { %v3873_v32 = vpop.permute.xlu0 %3872  ;;  %v3871_v17 = vpop.permute.xlu1 %3870 }
 0x614   : > { %v3877_v34 = vadd.f32 %v3873_v32, %v3863_v51  ;;  %v3876_v55 = vadd.f32 %v3871_v17, %v3862_v7 }
 0x617   : > { %v3887_v16 = vpop.permute.xlu0 %3886  ;;  %v3885_v21 = vpop.permute.xlu1 %3884 }
 0x618   : > { %v3891_v38 = vadd.f32 %v3887_v16, %v3877_v34  ;;  %v3890_v49 = vadd.f32 %v3885_v21, %v3876_v55  ;;  %v3997_v34 = vld [vmem:[%s5040_s17 + $0x8] sm:$0xff] }
 0x61b   : > { %v3901_v61 = vpop.permute.xlu0 %3900  ;;  %v3899_v37 = vpop.permute.xlu1 %3898 }
 0x61c   : > { %v3905_v28 = vadd.f32 %v3901_v61, %v3891_v38  ;;  %v3904_v39 = vadd.f32 %v3899_v37, %v3890_v49  ;;  %v4897_v61 = vmov 2   ;;  %v4898_v37 = vmov 1  }
 0x61f   : > { %v3915_v30 = vpop.permute.xlu0 %3914  ;;  %v3913_v9 = vpop.permute.xlu1 %3912 }
 0x620   : > { %v3919_v59 = vadd.f32 %v3915_v30, %v3905_v28  ;;  %v3918_v50 = vadd.f32 %v3913_v9, %v3904_v39  ;;  %v4903_v30 = vmov 7  }
 0x623   : > { %v3929_v0 = vpop.permute.xlu0 %3928  ;;  %v3927_v19 = vpop.permute.xlu1 %3926 }
 0x624   : > { %v3933_v24 = vadd.f32 %v3929_v0, %v3919_v59  ;;  %v3932_v40 = vadd.f32 %v3927_v19, %v3918_v50  ;;  %v3996_v19 = vld [vmem:[%s5040_s17] sm:$0xff]  ;;  %v4625_v50 = vld [vmem:[%s5040_s17 + $0x10] sm:$0xff] }
 0x627   : > { %v3943_v18 = vpop.permute.xlu0 %3942  ;;  %v3941_v26 = vpop.permute.xlu1 %3940 }
 0x628   : > { %v3947_v58 = vadd.f32 %v3943_v18, %v3933_v24  ;;  %v3946_v31 = vadd.f32 %v3941_v26, %v3932_v40 }
 0x62b   : > { %v3957_v23 = vpop.permute.xlu0 %3956  ;;  %v3955_v14 = vpop.permute.xlu1 %3954 }
 0x62c   : > { %v3961_v1 = vadd.f32 %v3957_v23, %v3947_v58  ;;  %v3960_v13 = vadd.f32 %v3955_v14, %v3946_v31 }
 0x62f   : > { %v3971_v33 = vpop.permute.xlu0 %3970  ;;  %v3969_v56 = vpop.permute.xlu1 %3968 }
 0x630   : > { %v3975_v60 = vadd.f32 %v3971_v33, %v3961_v1  ;;  %v3974_v27 = vadd.f32 %v3969_v56, %v3960_v13  ;;  %v4634_v1 = vld [vmem:[%s5040_s17 + $0x38] sm:$0xff] }
 0x632   : > { %v3979_v3 = vmul.f32 %v3977_v41, %v3975_v60  ;;  %v3978_v25 = vmul.f32 %v3977_v41, %v3974_v27 }
 0x634   : > { %v3983_v53 = vadd.f32 %v3981_v20, %v3979_v3  ;;  %v3982_v54 = vadd.f32 %v3981_v20, %v3978_v25  ;;  %v4630_v20 = vld [vmem:[%s5040_s17 + $0x28] sm:$0xff]  ;;  %v4641_v3 = vld [vmem:[%s5040_s17 + $0x50] sm:$0xff] }
 0x636   : > { %v4624_v63 = vmul.f32 -1.442695, %v3983_v53  ;;  %v4623_v10 = vmul.f32 -1.442695, %v3982_v54 }
 0x638   : > { %4763 = vpow2.f32 %v4624_v63 }
 0x639   : > { %4765 = vpow2.f32 %v4623_v10 }
 0x645   : > { %v4764_v32 = vpop.eup %4763 }
 0x646   : > { %v4766_v17 = vpop.eup %4765  ;;  %v3991_v16 = vadd.f32 1.0, %v4764_v32 }
 0x647   : > { %v3990_v21 = vadd.f32 1.0, %v4766_v17  ;;  %v4633_v17 = vld [vmem:[%s5040_s17 + $0x30] sm:$0xff] }
 0x648   : > { %4767 = vrcp.f32 %v3991_v16  ;;  %v4646_v16 = vld [vmem:[%s5040_s17 + $0x68] sm:$0xff] }
 0x649   : > { %4769 = vrcp.f32 %v3990_v21 }
 0x655   : > { %v4768_v5 = vpop.eup %4767 }
 0x656   : > { %v4770_v62 = vpop.eup %4769  ;;  %4011 = vperm.xlu0 %4738, %v4768_v5  }
 0x657   : > { %4006 = vperm.xlu1 %4737, %v4770_v62  }
 0x65a   : > { %4740 = vset.pattern.permute.xlu0 %v4897_v61 }
 0x65b   : > { %4739 = vset.pattern.permute.xlu1 %v4898_v37  ;;  %4056 = vperm.xlu0 %4740, %v4770_v62  }
 0x65c   : > { %4031 = vperm.xlu1 %4739, %v4770_v62  }
 0x65f   : > { %4743 = vset.pattern.permute.xlu0 %v4899_v44 }
 0x660   : > { %4035 = vperm.xlu1 %4739, %v4768_v5   ;;  %4085 = vperm.xlu0 %4743, %v4768_v5  }
 0x664   : > { %4741 = vset.pattern.permute.xlu1 %v4897_v61  ;;  %4745 = vset.pattern.permute.xlu0 %v4900_v4 }
 0x665   : > { %4060 = vperm.xlu1 %4741, %v4768_v5   ;;  %4131 = vperm.xlu0 %4745, %v4770_v62  }
 0x669   : > { %4742 = vset.pattern.permute.xlu1 %v4899_v44  ;;  %4748 = vset.pattern.permute.xlu0 %v4901_v15 }
 0x66a   : > { %4081 = vperm.xlu1 %4742, %v4770_v62   ;;  %4160 = vperm.xlu0 %4748, %v4768_v5  }
 0x66e   : > { %4744 = vset.pattern.permute.xlu1 %v4902_v11  ;;  %4750 = vset.pattern.permute.xlu0 %v4903_v30 }
 0x66f   : > { %4106 = vperm.xlu1 %4744, %v4770_v62  }
 0x673   : > { %4110 = vperm.xlu1 %4744, %v4768_v5  }
 0x677   : > { %4746 = vset.pattern.permute.xlu1 %v4900_v4 }
 0x678   : > { %4135 = vperm.xlu1 %4746, %v4768_v5  }
 0x67c   : > { %4747 = vset.pattern.permute.xlu1 %v4901_v15 }
 0x67d   : > { %4156 = vperm.xlu1 %4747, %v4770_v62  }
 0x681   : > { %4749 = vset.pattern.permute.xlu1 %v4903_v30  ;;  %v4638_v30 = vld [vmem:[%s5040_s17 + $0x48] sm:$0xff] }
 0x682   : > { %4181 = vperm.xlu1 %4749, %v4770_v62  }
 0x686   : > { %4185 = vperm.xlu1 %4749, %v4768_v5  }
 0x6d1   : > { %v4012_v9 = vpop.permute.xlu0 %4011 }
 0x6d2   : > { %v4015_v51 = vadd.f32 %v4012_v9, %v6925_v29  ;;  %v4007_v7 = vpop.permute.xlu1 %4006  ;;  %v4629_v29 = vld [vmem:[%s5040_s17 + $0x20] sm:$0xff] }
 0x6d3   : > { %v4014_v55 = vadd.f32 %v4007_v7, %v6927_v48 }
 0x6d4   : > { %v4017_v0 = vmul.f32 0.33333334, %v4015_v51 }
 0x6d5   : > { %v4016_v38 = vmul.f32 0.33333334, %v4014_v55 }
 0x6d6   : > { %v4019_v49 = vmul.f32 %v4017_v0, %v3997_v34  ;;  %v4057_v28 = vpop.permute.xlu0 %4056  ;;  %v4642_v34 = vld [vmem:[%s5040_s17 + $0x58] sm:$0xff] }
 0x6d7   : > { %v4018_v39 = vmul.f32 %v4016_v38, %v3996_v19  ;;  %v4063_v18 = vadd.f32 %v4057_v28, %v6929_v2  ;;  %v4032_v26 = vpop.permute.xlu1 %4031  ;;  %v4645_v38 = vld [vmem:[%s5040_s17 + $0x60] sm:$0xff] }
 0x6d8   : > { %4021 = vst.msk [vmem:[%s7189_s28 + $0x8] sm:$0xff] %vm196_vm0, %v4019_v49  ;;  %v4038_v48 = vadd.f32 %v4032_v26, %v6932_v6  ;;  %v4626_v6 = vld [vmem:[%s5040_s17 + $0x18] sm:$0xff] }
 0x6d9   : > { %4020 = vst.msk [vmem:[%s7189_s28] sm:$0xff] %vm196_vm0, %v4018_v39  ;;  %v4065_v59 = vmul.f32 0.33333334, %v4063_v18  ;;  %v4649_v18 = vld [vmem:[%s5040_s17 + $0x70] sm:$0xff] }
 0x6da   : > { %v4040_v2 = vmul.f32 0.33333334, %v4038_v48 }
 0x6db   : > { %v4067_v24 = vmul.f32 %v4629_v29, %v4065_v59  ;;  %v4036_v40 = vpop.permute.xlu1 %4035  ;;  %v4086_v23 = vpop.permute.xlu0 %4085  ;;  %v4650_v59 = vld [vmem:[%s5040_s17 + $0x78] sm:$0xff] }
 0x6dc   : > { %v4042_v14 = vmul.f32 %v4625_v50, %v4040_v2  ;;  %v4039_v58 = vadd.f32 %v4036_v40, %v6934_v8  ;;  %v4089_v31 = vadd.f32 %v4086_v23, %v6936_v22 }
 0x6dd   : > { %4631 = vst.msk [vmem:[%s7189_s28 + $0x20] sm:$0xff] %vm196_vm0, %v4067_v24 }
 0x6de   : > { %4627 = vst.msk [vmem:[%s7189_s28 + $0x10] sm:$0xff] %vm196_vm0, %v4042_v14  ;;  %v4041_v13 = vmul.f32 0.33333334, %v4039_v58  ;;  %v4091_v41 = vmul.f32 0.33333334, %v4089_v31 }
 0x6e0   : > { %v4043_v33 = vmul.f32 %v4626_v6, %v4041_v13  ;;  %v4093_v56 = vmul.f32 %v4634_v1, %v4091_v41  ;;  %v4061_v60 = vpop.permute.xlu1 %4060  ;;  %v4132_v27 = vpop.permute.xlu0 %4131 }
 0x6e1   : > { %v4064_v8 = vadd.f32 %v4061_v60, %v6938_v36  ;;  %v4138_v22 = vadd.f32 %v4132_v27, %v6944_v12 }
 0x6e2   : > { %4628 = vst.msk [vmem:[%s7189_s28 + $0x18] sm:$0xff] %vm196_vm0, %v4043_v33  ;;  %4636 = vst.msk [vmem:[%s7189_s28 + $0x38] sm:$0xff] %vm196_vm0, %v4093_v56 }
 0x6e3   : > { %v4066_v25 = vmul.f32 0.33333334, %v4064_v8  ;;  %v4140_v53 = vmul.f32 0.33333334, %v4138_v22 }
 0x6e5   : > { %v4068_v54 = vmul.f32 %v4630_v20, %v4066_v25  ;;  %v4142_v63 = vmul.f32 %v4641_v3, %v4140_v53  ;;  %v4082_v10 = vpop.permute.xlu1 %4081  ;;  %v4161_v32 = vpop.permute.xlu0 %4160 }
 0x6e6   : > { %v4088_v36 = vadd.f32 %v4082_v10, %v6946_v42  ;;  %v4164_v12 = vadd.f32 %v4161_v32, %v6948_v35  ;;  %v4637_v42 = vld [vmem:[%s5040_s17 + $0x40] sm:$0xff]  ;;  %s4904_s17 = smov [#allocation10]  }
 0x6e7   : > { %4632 = vst.msk [vmem:[%s7189_s28 + $0x28] sm:$0xff] %vm196_vm0, %v4068_v54  ;;  %4643 = vst.msk [vmem:[%s7189_s28 + $0x50] sm:$0xff] %vm196_vm0, %v4142_v63  ;;  %s4818_s30 = sshll.u32 %s4904_s17, 4  ;;  %s4819_s30 = int_to_ptr.vmem [resolvable:$false] %s4818_s30 }
 0x6e8   : > { %v4090_v21 = vmul.f32 0.33333334, %v4088_v36  ;;  %v4166_v5 = vmul.f32 0.33333334, %v4164_v12  ;;  %s4820_s23 = scalar_lea.vmem %s4819_s30, 4096  ;;  %p4821_p9 = scmp.lt.s32.totalorder %s7255_s27, %s4819_s30 }
 0x6e9   : > { %p4822_p10 = scmp.lt.s32.totalorder %s4820_s23, %s4814_s13 }
 0x6ea   : > { %v4092_v62 = vmul.f32 %v4633_v17, %v4090_v21  ;;  %v4168_v61 = vmul.f32 %v4646_v16, %v4166_v5  ;;  %v4107_v37 = vpop.permute.xlu1 %4106 }
 0x6eb   : > { %v4113_v44 = vadd.f32 %v4107_v37, %v6960_v52  ;;  %p4823_p2 = por %p4822_p10, %p4821_p9 }
 0x6ec   : > { %4635 = vst.msk [vmem:[%s7189_s28 + $0x30] sm:$0xff] %vm196_vm0, %v4092_v62  ;;  %4648 = vst.msk [vmem:[%s7189_s28 + $0x68] sm:$0xff] %vm196_vm0, %v4168_v61 }
 0x6ed   : > { %v4115_v35 = vmul.f32 0.33333334, %v4113_v44  ;;  %p4824_p0 = pnand %p4823_p2, %p4817_p8 }
 0x6ee   : > { %v4111_v4 = vpop.permute.xlu1 %4110 }
 0x6ef   : > { %v4117_v15 = vmul.f32 %v4637_v42, %v4115_v35  ;;  %v4114_v11 = vadd.f32 %v4111_v4, %v6962_v45 }
 0x6f1   : > { %4639 = vst.msk [vmem:[%s7189_s28 + $0x40] sm:$0xff] %vm196_vm0, %v4117_v15  ;;  %v4116_v9 = vmul.f32 0.33333334, %v4114_v11 }
 0x6f3   : > { %v4118_v51 = vmul.f32 %v4638_v30, %v4116_v9  ;;  %v4136_v52 = vpop.permute.xlu1 %4135 }
 0x6f4   : > { %v4139_v7 = vadd.f32 %v4136_v52, %v6954_v46 }
 0x6f5   : > { %4640 = vst.msk [vmem:[%s7189_s28 + $0x48] sm:$0xff] %vm196_vm0, %v4118_v51 }
 0x6f6   : > { %v4141_v55 = vmul.f32 0.33333334, %v4139_v7 }
 0x6f8   : > { %v4143_v0 = vmul.f32 %v4642_v34, %v4141_v55  ;;  %v4157_v19 = vpop.permute.xlu1 %4156 }
 0x6f9   : > { %v4163_v45 = vadd.f32 %v4157_v19, %v6956_v47 }
 0x6fa   : > { %4644 = vst.msk [vmem:[%s7189_s28 + $0x58] sm:$0xff] %vm196_vm0, %v4143_v0 }
 0x6fb   : > { %v4165_v49 = vmul.f32 0.33333334, %v4163_v45 }
 0x6fd   : > { %v4167_v28 = vmul.f32 %v4645_v38, %v4165_v49  ;;  %v4182_v39 = vpop.permute.xlu1 %4181 }
 0x6fe   : > { %v4188_v46 = vadd.f32 %v4182_v39, %v6981_v43 }
 0x6ff   : > { %4647 = vst.msk [vmem:[%s7189_s28 + $0x60] sm:$0xff] %vm196_vm0, %v4167_v28 }
 0x700   : > { %v4190_v26 = vmul.f32 0.33333334, %v4188_v46 }
 0x701   : > { %v4186_v29 = vpop.permute.xlu1 %4185 }
 0x702   : > { %v4192_v48 = vmul.f32 %v4649_v18, %v4190_v26  ;;  %v4189_v47 = vadd.f32 %v4186_v29, %v6983_v57 }
 0x704   : > { %4651 = vst.msk [vmem:[%s7189_s28 + $0x70] sm:$0xff] %vm196_vm0, %v4192_v48  ;;  %v4191_v50 = vmul.f32 0.33333334, %v4189_v47 }
 0x706   : > { %v4193_v43 = vmul.f32 %v4650_v59, %v4191_v50 }
 0x708   : > { %4652 = vst.msk [vmem:[%s7189_s28 + $0x78] sm:$0xff] %vm196_vm0, %v4193_v43 }
 0x709   : > { %4827 = shalt.err (!%p4824_p0)
}
 0x70a   : > { %s4828_s16 = scalar_lea.hbm %s7253_s14, 2048  ;;  %s4832_s3 = scalar_lea.hbm %s7302_s2, 4096 }
 0x70b   : > { %p4829_p3 = scmp.ne.s32.totalorder %s7253_s14, %s4828_s16  ;;  %p4833_p11 = scmp.lt.s32.totalorder %s7253_s14, %s7302_s2 }
 0x70c   : > { %p4834_p12 = scmp.lt.s32.totalorder %s4832_s3, %s4828_s16 }
 0x70d   : > { %p4830_p5 = pnand %p4829_p3, %p7348_p7 }
 0x70e   : > { %p4835_p13 = por %p4834_p12, %p4833_p11 }
 0x70f   : > { %p4831_p4 = pneg %p4830_p5 }
 0x711   : > { %p4836_p1 = pnand %p4835_p13, %p4831_p4 }
 0x713   : > { %4839 = shalt.err (!%p4836_p1)
}
 0x714   : > { %s4905_s8 = smov 128   ;;  %s4906_s25 = smov 8  }
 0x715   : > { %4666 = dma.vmem_to_hbm [thread:$0]  (%p7348_p7), %s7255_s27, 2048, %s7253_s14, %s4198_s4, %s4905_s8, %s4905_s8, %s4906_s25  }
 0x716 PF: > { %s4226_s28 = sand.u32 1, %s4870_s9   ;;  %p7349_p6 = scmp.ne.s32.totalorder %s7321_s22, 0 }
 0x717   : > { %p7350_p8 = scmp.ge.s32.totalorder %s4882_s12, 2  ;;  %s4227_s7 = scalar_lea.sflag [#allocation7], %s4226_s28 }
 0x719   : > { %p4677_p9 = pnand %p7350_p8, %p7349_p6 }
 0x71b   : > { %p4678_p10 = pneg %p4677_p9 }
 0x71d   : > { %4865 = dma.done.wait (%p4678_p10), %s4227_s7, 2048  }
 0x71e   : > { %4867 = vsyncadd (%p4678_p10), %s4227_s7, 4294965248  ;;  %p16_p2 = scmp.ge.s32.totalorder %s4947_s15, 4   ;;  %s7351_s9 = smov %s4874_s10 }
 0x71f   : > { %s7352_s10 = smov %s4878_s11  ;;  %s7353_s11 = smov %s4959_s18 }
 0x720   : > { %s7354_s12 = smov %s4947_s15  ;;  %18 = sbr.rel (!%p16_p2) target bundleno = 6 (0x6), region = 95 }
 0x725   :  { %4232 = vsyncpa [#allocation6], 1 }
 0x726   :  { %4234 = vsyncpa [#allocation6 + $0x1], 1 }
 0x727   :  { %4235 = vsyncpa [#allocation7], 1 }
 0x728   :  { %4237 = vsyncpa [#allocation7 + $0x1], 1 }
 0x729   :  { %4238 = vsyncpa [#allocation8], 1 }
 0x72a   :  { %4240 = vsyncpa [#allocation8 + $0x1], 1 }

</bundles_post_ra>
